<compile_context>
chip_gen: v6e
topology: v6e:2x2x1
jax: 0.10.0
libtpu: 0.0.40
codegen_flags: <defaults>
</compile_context>

<pallas_src>
import math

import jax
import jax.numpy as jnp
from jax.experimental import pallas as pl
from jax.experimental.pallas import tpu as pltpu


# Tap order (dy, dx) matches the HWIO (3, 3, 2C, n_out) -> (9*2C, n_out)
# weight reshape: tap t = (dy + 1) * 3 + (dx + 1) uses weight rows
# [t*2C, (t+1)*2C).
_TAPS = tuple((dy, dx) for dy in (-1, 0, 1) for dx in (-1, 0, 1))


# -----------------------------------------------------------------------------
# Pallas kernel: nb batch images per grid step, d & s branches fused.
# -----------------------------------------------------------------------------
def _make_kernel(nb, H, W, C):
    C2 = 2 * C
    HW = H * W
    M = nb * HW

    def kernel(mask_ref, x_ref, w1_ref, b1_ref, w2_ref, b2_ref, out_ref):
        # (nb, HW, 2C) -> (M, 2C): merges leading dims only (no relayout).
        x = x_ref[...].reshape(M, C2)

        def conv3x3(a, w_ref):
            """'SAME' 3x3 conv of the flat activation via 9 rolled taps."""
            acc = None
            for t, (dy, dx) in enumerate(_TAPS):
                off = dy * W + dx                       # tap reads pixel p+off
                if off % M == 0:
                    tap = a
                else:
                    tap = pltpu.roll(a, shift=(-off) % M, axis=0)
                if (dy, dx) != (0, 0):
                    # Zero out-of-image pixels (also kills roll wrap-around,
                    # including wraps across images inside the same block).
                    tap = tap * mask_ref[:, t:t + 1]
                contrib = jnp.dot(tap.astype(jnp.bfloat16),
                                  w_ref[t * C2:(t + 1) * C2, :],
                                  preferred_element_type=jnp.float32)
                acc = contrib if acc is None else acc + contrib
            return acc

        # conv1: block-diagonal (2C -> 2C) weight => both branches in one pass.
        h1 = jnp.maximum(conv3x3(x, w1_ref) + b1_ref[...], 0.0)
        # conv2: wd2 stacked over ws2 along K => hsd = d2(out_d) + s2(out_s).
        hsd = conv3x3(h1, w2_ref) + b2_ref[...]
        # out_d = hsd + hd ; out_s = hsd + hs   (identity path exact, f32)
        out = jnp.concatenate([hsd, hsd], axis=-1) + x
        out_ref[...] = out.reshape(out_ref.shape).astype(out_ref.dtype)

    return kernel


# -----------------------------------------------------------------------------
# Wrapper helpers: weight packing, boundary masks, batch blocking.
# -----------------------------------------------------------------------------
def _block_diag_hwio(wd, ws):
    """(3,3,C,C) HWIO pair -> (9*2C, 2C) block-diagonal im2col weight."""
    kh, kw, c, _ = wd.shape
    z = jnp.zeros((kh, kw, c, c), wd.dtype)
    top = jnp.concatenate([wd, z], axis=-1)      # d-in -> (d-out, 0)
    bot = jnp.concatenate([z, ws], axis=-1)      # s-in -> (0, s-out)
    w = jnp.concatenate([top, bot], axis=-2)     # (3, 3, 2C, 2C)
    return w.reshape(kh * kw * 2 * c, 2 * c)


def _stacked_hwio(wd, ws):
    """(3,3,C,C) HWIO pair -> (9*2C, C): conv_d2 + conv_s2 in one contraction."""
    kh, kw, c, _ = wd.shape
    w = jnp.concatenate([wd, ws], axis=-2)       # (3, 3, 2C, C)
    return w.reshape(kh * kw * 2 * c, c)


def _tap_masks(nb, H, W):
    """(nb*H*W, 9) float32 0/1 validity mask for each of the 9 conv taps."""
    y = jnp.arange(H)[:, None]
    x = jnp.arange(W)[None, :]
    cols = []
    for dy, dx in _TAPS:
        ok = ((y + dy >= 0) & (y + dy <= H - 1)
              & (x + dx >= 0) & (x + dx <= W - 1))
        cols.append(ok.reshape(H * W))
    m = jnp.stack(cols, axis=-1).astype(jnp.float32)   # (HW, 9)
    return jnp.tile(m, (nb, 1))                        # (nb*HW, 9)


def _pick_batch_block(N, max_block=8):
    # Largest divisor of N that still leaves >= 2 grid steps (keeps both v7x
    # TensorCores busy), capped so one step's activations stay small in VMEM.
    for cand in range(min(N // 2, max_block), 0, -1):
        if N % cand == 0:
            return cand
    return 1


def residual_block_nobn(hd, hs, params, *, batch_block=None):
    """hd, hs: (N, H, W, C) float32 (NHWC). params: dict of HWIO weights + biases."""
    N, H, W, C = hd.shape
    C2 = 2 * C
    HW = H * W

    nb = batch_block if batch_block is not None else _pick_batch_block(N)
    assert N % nb == 0
    M = nb * HW

    # d and s concatenated on the channel (lane) axis; flat (N, HW, 2C) layout.
    x = jnp.concatenate([hd, hs], axis=-1).reshape(N, HW, C2)
    w1 = _block_diag_hwio(params["wd1"], params["ws1"]).astype(jnp.bfloat16)
    w2 = _stacked_hwio(params["wd2"], params["ws2"]).astype(jnp.bfloat16)
    b1 = jnp.concatenate([params["bd1"], params["bs1"]], axis=-1)   # (1, 2C)
    b2 = params["bd2"] + params["bs2"]                              # (1, C)
    masks = _tap_masks(nb, H, W)                                    # (M, 9)

    out = pl.pallas_call(
        _make_kernel(nb, H, W, C),
        out_shape=jax.ShapeDtypeStruct((N, HW, C2), hd.dtype),
        grid=(N // nb,),
        in_specs=[
            pl.BlockSpec((M, 9), lambda n: (0, 0)),           # tap masks
            pl.BlockSpec((nb, HW, C2), lambda n: (n, 0, 0)),  # x
            pl.BlockSpec((9 * C2, C2), lambda n: (0, 0)),     # w1 (block-diag)
            pl.BlockSpec((1, C2), lambda n: (0, 0)),          # b1
            pl.BlockSpec((9 * C2, C), lambda n: (0, 0)),      # w2 (stacked)
            pl.BlockSpec((1, C), lambda n: (0, 0)),           # b2
        ],
        out_specs=pl.BlockSpec((nb, HW, C2), lambda n: (n, 0, 0)),
        compiler_params=pltpu.CompilerParams(
            dimension_semantics=("parallel",)),
    )(masks, x, w1, b1, w2, b2)

    out = out.reshape(N, H, W, C2)
    return out[..., :C], out[..., C:]


# -----------------------------------------------------------------------------
# Deterministic parameter init (mirrors initialize_weights: kaiming fan_in * 0.1,
# zero bias) and pure-JAX reference for verification.
# -----------------------------------------------------------------------------
def _init_conv(key, c, scale=0.1):
    fan_in = c * 3 * 3
    std = math.sqrt(2.0 / fan_in)
    w_oihw = jax.random.normal(key, (c, c, 3, 3), jnp.float32) * std * scale
    w_hwio = jnp.transpose(w_oihw, (2, 3, 1, 0))  # OIHW -> HWIO
    b = jnp.zeros((1, c), jnp.float32)
    return w_hwio, b


def _conv3x3_ref(x, w, b):
    y = jax.lax.conv_general_dilated(
        x, w, window_strides=(1, 1), padding="SAME",
        dimension_numbers=("NHWC", "HWIO", "NHWC"))
    return y + b[0][None, None, None, :]


def _reference(hd, hs, p):
    od = jnp.maximum(_conv3x3_ref(hd, p["wd1"], p["bd1"]), 0.0)
    od = _conv3x3_ref(od, p["wd2"], p["bd2"])
    os_ = jnp.maximum(_conv3x3_ref(hs, p["ws1"], p["bs1"]), 0.0)
    os_ = _conv3x3_ref(os_, p["ws2"], p["bs2"])
    hsd = od + os_
    return hsd + hd, hsd + hs


if __name__ == "__main__":
    N, H, W, C = 2, 16, 16, 32  # nf=32 (small), spatial 16x16, batch 2

    key = jax.random.PRNGKey(0)
    k_hd, k_hs, k1, k2, k3, k4 = jax.random.split(key, 6)
    hd = jax.random.normal(k_hd, (N, H, W, C), jnp.float32)
    hs = jax.random.normal(k_hs, (N, H, W, C), jnp.float32)

    wd1, bd1 = _init_conv(k1, C)
    wd2, bd2 = _init_conv(k2, C)
    ws1, bs1 = _init_conv(k3, C)
    ws2, bs2 = _init_conv(k4, C)
    params = dict(wd1=wd1, bd1=bd1, wd2=wd2, bd2=bd2,
                  ws1=ws1, bs1=bs1, ws2=ws2, bs2=bs2)

    out_d, out_s = residual_block_nobn(hd, hs, params)
    jax.block_until_ready((out_d, out_s))

    ref_d, ref_s = _reference(hd, hs, params)
    # bf16 matmul operands (f32 accumulation) -> slightly looser tolerance.
    assert jnp.allclose(out_d, ref_d, rtol=5e-3, atol=5e-3)
    assert jnp.allclose(out_s, ref_s, rtol=5e-3, atol=5e-3)

    print("KERNEL_OK")
</pallas_src>

<mosaic_0001>
module attributes {stable_mosaic.version = 11 : i64} {
  func.func @kernel(%arg0: i32, %arg1: memref<256x9xf32, #tpu.memory_space<vmem>>, %arg2: memref<1x256x64xf32, #tpu.memory_space<vmem>>, %arg3: memref<576x64xbf16, #tpu.memory_space<vmem>>, %arg4: memref<1x64xf32, #tpu.memory_space<vmem>>, %arg5: memref<576x32xbf16, #tpu.memory_space<vmem>>, %arg6: memref<1x32xf32, #tpu.memory_space<vmem>>, %arg7: memref<1x256x64xf32, #tpu.memory_space<vmem>>) attributes {dimension_semantics = [#tpu.dimension_semantics<parallel>], iteration_bounds = array<i64: 2>, scalar_prefetch = 0 : i64, scratch_operands = 0 : i64, tpu.core_type = #tpu.core_type<tc>, window_params = [{pipeline_mode = #tpu.pipeline_mode<synchronous>, transform_indices = @transform_0, window_bounds = array<i64: 256, 9>}, {transform_indices = @transform_1, window_bounds = array<i64: 1, 256, 64>}, {pipeline_mode = #tpu.pipeline_mode<synchronous>, transform_indices = @transform_2, window_bounds = array<i64: 576, 64>}, {pipeline_mode = #tpu.pipeline_mode<synchronous>, transform_indices = @transform_3, window_bounds = array<i64: 1, 64>}, {pipeline_mode = #tpu.pipeline_mode<synchronous>, transform_indices = @transform_4, window_bounds = array<i64: 576, 32>}, {pipeline_mode = #tpu.pipeline_mode<synchronous>, transform_indices = @transform_5, window_bounds = array<i64: 1, 32>}, {transform_indices = @transform_6, window_bounds = array<i64: 1, 256, 64>}]} {
    %c0 = arith.constant 0 : index
    %c0_0 = arith.constant 0 : index
    %c0_1 = arith.constant 0 : index
    %0 = vector.load %arg2[%c0, %c0_0, %c0_1] : memref<1x256x64xf32, #tpu.memory_space<vmem>>, vector<1x256x64xf32>
    %1 = vector.shape_cast %0 : vector<1x256x64xf32> to vector<256x64xf32>
    %c17_i32 = arith.constant 17 : i32
    %2 = tpu.dynamic_rotate %1 by %c17_i32 dim 0 : vector<256x64xf32>, i32 -> vector<256x64xf32>
    %c0_2 = arith.constant 0 : index
    %c0_3 = arith.constant 0 : index
    %3 = vector.load %arg1[%c0_2, %c0_3] : memref<256x9xf32, #tpu.memory_space<vmem>>, vector<256x1xf32>
    %4 = vector.broadcast %3 : vector<256x1xf32> to vector<256x64xf32>
    %5 = arith.mulf %2, %4 : vector<256x64xf32>
    %6 = arith.truncf %5 : vector<256x64xf32> to vector<256x64xbf16>
    %c0_4 = arith.constant 0 : index
    %c0_5 = arith.constant 0 : index
    %7 = vector.load %arg3[%c0_4, %c0_5] : memref<576x64xbf16, #tpu.memory_space<vmem>>, vector<64x64xbf16>
    %cst = arith.constant dense<0.000000e+00> : vector<256x64xf32>
    %8 = tpu.matmul %6, %7, %cst {dimension_numbers = #tpu.dot_dimension_numbers<[1], [0], [0], [1], [0, 0, 1, 1], [], []>} : vector<256x64xbf16>, vector<64x64xbf16>, vector<256x64xf32> -> vector<256x64xf32>
    %c16_i32 = arith.constant 16 : i32
    %9 = tpu.dynamic_rotate %1 by %c16_i32 dim 0 : vector<256x64xf32>, i32 -> vector<256x64xf32>
    %c0_6 = arith.constant 0 : index
    %c1 = arith.constant 1 : index
    %10 = vector.load %arg1[%c0_6, %c1] : memref<256x9xf32, #tpu.memory_space<vmem>>, vector<256x1xf32>
    %11 = vector.broadcast %10 : vector<256x1xf32> to vector<256x64xf32>
    %12 = arith.mulf %9, %11 : vector<256x64xf32>
    %13 = arith.truncf %12 : vector<256x64xf32> to vector<256x64xbf16>
    %c64 = arith.constant 64 : index
    %c0_7 = arith.constant 0 : index
    %14 = vector.load %arg3[%c64, %c0_7] : memref<576x64xbf16, #tpu.memory_space<vmem>>, vector<64x64xbf16>
    %cst_8 = arith.constant dense<0.000000e+00> : vector<256x64xf32>
    %15 = tpu.matmul %13, %14, %cst_8 {dimension_numbers = #tpu.dot_dimension_numbers<[1], [0], [0], [1], [0, 0, 1, 1], [], []>} : vector<256x64xbf16>, vector<64x64xbf16>, vector<256x64xf32> -> vector<256x64xf32>
    %16 = arith.addf %8, %15 : vector<256x64xf32>
    %c15_i32 = arith.constant 15 : i32
    %17 = tpu.dynamic_rotate %1 by %c15_i32 dim 0 : vector<256x64xf32>, i32 -> vector<256x64xf32>
    %c0_9 = arith.constant 0 : index
    %c2 = arith.constant 2 : index
    %18 = vector.load %arg1[%c0_9, %c2] : memref<256x9xf32, #tpu.memory_space<vmem>>, vector<256x1xf32>
    %19 = vector.broadcast %18 : vector<256x1xf32> to vector<256x64xf32>
    %20 = arith.mulf %17, %19 : vector<256x64xf32>
    %21 = arith.truncf %20 : vector<256x64xf32> to vector<256x64xbf16>
    %c128 = arith.constant 128 : index
    %c0_10 = arith.constant 0 : index
    %22 = vector.load %arg3[%c128, %c0_10] : memref<576x64xbf16, #tpu.memory_space<vmem>>, vector<64x64xbf16>
    %cst_11 = arith.constant dense<0.000000e+00> : vector<256x64xf32>
    %23 = tpu.matmul %21, %22, %cst_11 {dimension_numbers = #tpu.dot_dimension_numbers<[1], [0], [0], [1], [0, 0, 1, 1], [], []>} : vector<256x64xbf16>, vector<64x64xbf16>, vector<256x64xf32> -> vector<256x64xf32>
    %24 = arith.addf %16, %23 : vector<256x64xf32>
    %c1_i32 = arith.constant 1 : i32
    %25 = tpu.dynamic_rotate %1 by %c1_i32 dim 0 : vector<256x64xf32>, i32 -> vector<256x64xf32>
    %c0_12 = arith.constant 0 : index
    %c3 = arith.constant 3 : index
    %26 = vector.load %arg1[%c0_12, %c3] : memref<256x9xf32, #tpu.memory_space<vmem>>, vector<256x1xf32>
    %27 = vector.broadcast %26 : vector<256x1xf32> to vector<256x64xf32>
    %28 = arith.mulf %25, %27 : vector<256x64xf32>
    %29 = arith.truncf %28 : vector<256x64xf32> to vector<256x64xbf16>
    %c192 = arith.constant 192 : index
    %c0_13 = arith.constant 0 : index
    %30 = vector.load %arg3[%c192, %c0_13] : memref<576x64xbf16, #tpu.memory_space<vmem>>, vector<64x64xbf16>
    %cst_14 = arith.constant dense<0.000000e+00> : vector<256x64xf32>
    %31 = tpu.matmul %29, %30, %cst_14 {dimension_numbers = #tpu.dot_dimension_numbers<[1], [0], [0], [1], [0, 0, 1, 1], [], []>} : vector<256x64xbf16>, vector<64x64xbf16>, vector<256x64xf32> -> vector<256x64xf32>
    %32 = arith.addf %24, %31 : vector<256x64xf32>
    %33 = arith.truncf %1 : vector<256x64xf32> to vector<256x64xbf16>
    %c256 = arith.constant 256 : index
    %c0_15 = arith.constant 0 : index
    %34 = vector.load %arg3[%c256, %c0_15] : memref<576x64xbf16, #tpu.memory_space<vmem>>, vector<64x64xbf16>
    %cst_16 = arith.constant dense<0.000000e+00> : vector<256x64xf32>
    %35 = tpu.matmul %33, %34, %cst_16 {dimension_numbers = #tpu.dot_dimension_numbers<[1], [0], [0], [1], [0, 0, 1, 1], [], []>} : vector<256x64xbf16>, vector<64x64xbf16>, vector<256x64xf32> -> vector<256x64xf32>
    %36 = arith.addf %32, %35 : vector<256x64xf32>
    %c255_i32 = arith.constant 255 : i32
    %37 = tpu.dynamic_rotate %1 by %c255_i32 dim 0 : vector<256x64xf32>, i32 -> vector<256x64xf32>
    %c0_17 = arith.constant 0 : index
    %c5 = arith.constant 5 : index
    %38 = vector.load %arg1[%c0_17, %c5] : memref<256x9xf32, #tpu.memory_space<vmem>>, vector<256x1xf32>
    %39 = vector.broadcast %38 : vector<256x1xf32> to vector<256x64xf32>
    %40 = arith.mulf %37, %39 : vector<256x64xf32>
    %41 = arith.truncf %40 : vector<256x64xf32> to vector<256x64xbf16>
    %c320 = arith.constant 320 : index
    %c0_18 = arith.constant 0 : index
    %42 = vector.load %arg3[%c320, %c0_18] : memref<576x64xbf16, #tpu.memory_space<vmem>>, vector<64x64xbf16>
    %cst_19 = arith.constant dense<0.000000e+00> : vector<256x64xf32>
    %43 = tpu.matmul %41, %42, %cst_19 {dimension_numbers = #tpu.dot_dimension_numbers<[1], [0], [0], [1], [0, 0, 1, 1], [], []>} : vector<256x64xbf16>, vector<64x64xbf16>, vector<256x64xf32> -> vector<256x64xf32>
    %44 = arith.addf %36, %43 : vector<256x64xf32>
    %c241_i32 = arith.constant 241 : i32
    %45 = tpu.dynamic_rotate %1 by %c241_i32 dim 0 : vector<256x64xf32>, i32 -> vector<256x64xf32>
    %c0_20 = arith.constant 0 : index
    %c6 = arith.constant 6 : index
    %46 = vector.load %arg1[%c0_20, %c6] : memref<256x9xf32, #tpu.memory_space<vmem>>, vector<256x1xf32>
    %47 = vector.broadcast %46 : vector<256x1xf32> to vector<256x64xf32>
    %48 = arith.mulf %45, %47 : vector<256x64xf32>
    %49 = arith.truncf %48 : vector<256x64xf32> to vector<256x64xbf16>
    %c384 = arith.constant 384 : index
    %c0_21 = arith.constant 0 : index
    %50 = vector.load %arg3[%c384, %c0_21] : memref<576x64xbf16, #tpu.memory_space<vmem>>, vector<64x64xbf16>
    %cst_22 = arith.constant dense<0.000000e+00> : vector<256x64xf32>
    %51 = tpu.matmul %49, %50, %cst_22 {dimension_numbers = #tpu.dot_dimension_numbers<[1], [0], [0], [1], [0, 0, 1, 1], [], []>} : vector<256x64xbf16>, vector<64x64xbf16>, vector<256x64xf32> -> vector<256x64xf32>
    %52 = arith.addf %44, %51 : vector<256x64xf32>
    %c240_i32 = arith.constant 240 : i32
    %53 = tpu.dynamic_rotate %1 by %c240_i32 dim 0 : vector<256x64xf32>, i32 -> vector<256x64xf32>
    %c0_23 = arith.constant 0 : index
    %c7 = arith.constant 7 : index
    %54 = vector.load %arg1[%c0_23, %c7] : memref<256x9xf32, #tpu.memory_space<vmem>>, vector<256x1xf32>
    %55 = vector.broadcast %54 : vector<256x1xf32> to vector<256x64xf32>
    %56 = arith.mulf %53, %55 : vector<256x64xf32>
    %57 = arith.truncf %56 : vector<256x64xf32> to vector<256x64xbf16>
    %c448 = arith.constant 448 : index
    %c0_24 = arith.constant 0 : index
    %58 = vector.load %arg3[%c448, %c0_24] : memref<576x64xbf16, #tpu.memory_space<vmem>>, vector<64x64xbf16>
    %cst_25 = arith.constant dense<0.000000e+00> : vector<256x64xf32>
    %59 = tpu.matmul %57, %58, %cst_25 {dimension_numbers = #tpu.dot_dimension_numbers<[1], [0], [0], [1], [0, 0, 1, 1], [], []>} : vector<256x64xbf16>, vector<64x64xbf16>, vector<256x64xf32> -> vector<256x64xf32>
    %60 = arith.addf %52, %59 : vector<256x64xf32>
    %c239_i32 = arith.constant 239 : i32
    %61 = tpu.dynamic_rotate %1 by %c239_i32 dim 0 : vector<256x64xf32>, i32 -> vector<256x64xf32>
    %c0_26 = arith.constant 0 : index
    %c8 = arith.constant 8 : index
    %62 = vector.load %arg1[%c0_26, %c8] : memref<256x9xf32, #tpu.memory_space<vmem>>, vector<256x1xf32>
    %63 = vector.broadcast %62 : vector<256x1xf32> to vector<256x64xf32>
    %64 = arith.mulf %61, %63 : vector<256x64xf32>
    %65 = arith.truncf %64 : vector<256x64xf32> to vector<256x64xbf16>
    %c512 = arith.constant 512 : index
    %c0_27 = arith.constant 0 : index
    %66 = vector.load %arg3[%c512, %c0_27] : memref<576x64xbf16, #tpu.memory_space<vmem>>, vector<64x64xbf16>
    %cst_28 = arith.constant dense<0.000000e+00> : vector<256x64xf32>
    %67 = tpu.matmul %65, %66, %cst_28 {dimension_numbers = #tpu.dot_dimension_numbers<[1], [0], [0], [1], [0, 0, 1, 1], [], []>} : vector<256x64xbf16>, vector<64x64xbf16>, vector<256x64xf32> -> vector<256x64xf32>
    %68 = arith.addf %60, %67 : vector<256x64xf32>
    %c0_29 = arith.constant 0 : index
    %c0_30 = arith.constant 0 : index
    %69 = vector.load %arg4[%c0_29, %c0_30] : memref<1x64xf32, #tpu.memory_space<vmem>>, vector<1x64xf32>
    %70 = vector.broadcast %69 : vector<1x64xf32> to vector<256x64xf32>
    %71 = arith.addf %68, %70 : vector<256x64xf32>
    %cst_31 = arith.constant 0.000000e+00 : f32
    %72 = vector.broadcast %cst_31 : f32 to vector<256x64xf32>
    %73 = arith.maximumf %71, %72 : vector<256x64xf32>
    %c17_i32_32 = arith.constant 17 : i32
    %74 = tpu.dynamic_rotate %73 by %c17_i32_32 dim 0 : vector<256x64xf32>, i32 -> vector<256x64xf32>
    %c0_33 = arith.constant 0 : index
    %c0_34 = arith.constant 0 : index
    %75 = vector.load %arg1[%c0_33, %c0_34] : memref<256x9xf32, #tpu.memory_space<vmem>>, vector<256x1xf32>
    %76 = vector.broadcast %75 : vector<256x1xf32> to vector<256x64xf32>
    %77 = arith.mulf %74, %76 : vector<256x64xf32>
    %78 = arith.truncf %77 : vector<256x64xf32> to vector<256x64xbf16>
    %c0_35 = arith.constant 0 : index
    %c0_36 = arith.constant 0 : index
    %79 = vector.load %arg5[%c0_35, %c0_36] : memref<576x32xbf16, #tpu.memory_space<vmem>>, vector<64x32xbf16>
    %cst_37 = arith.constant dense<0.000000e+00> : vector<256x32xf32>
    %80 = tpu.matmul %78, %79, %cst_37 {dimension_numbers = #tpu.dot_dimension_numbers<[1], [0], [0], [1], [0, 0, 1, 1], [], []>} : vector<256x64xbf16>, vector<64x32xbf16>, vector<256x32xf32> -> vector<256x32xf32>
    %c16_i32_38 = arith.constant 16 : i32
    %81 = tpu.dynamic_rotate %73 by %c16_i32_38 dim 0 : vector<256x64xf32>, i32 -> vector<256x64xf32>
    %c0_39 = arith.constant 0 : index
    %c1_40 = arith.constant 1 : index
    %82 = vector.load %arg1[%c0_39, %c1_40] : memref<256x9xf32, #tpu.memory_space<vmem>>, vector<256x1xf32>
    %83 = vector.broadcast %82 : vector<256x1xf32> to vector<256x64xf32>
    %84 = arith.mulf %81, %83 : vector<256x64xf32>
    %85 = arith.truncf %84 : vector<256x64xf32> to vector<256x64xbf16>
    %c64_41 = arith.constant 64 : index
    %c0_42 = arith.constant 0 : index
    %86 = vector.load %arg5[%c64_41, %c0_42] : memref<576x32xbf16, #tpu.memory_space<vmem>>, vector<64x32xbf16>
    %cst_43 = arith.constant dense<0.000000e+00> : vector<256x32xf32>
    %87 = tpu.matmul %85, %86, %cst_43 {dimension_numbers = #tpu.dot_dimension_numbers<[1], [0], [0], [1], [0, 0, 1, 1], [], []>} : vector<256x64xbf16>, vector<64x32xbf16>, vector<256x32xf32> -> vector<256x32xf32>
    %88 = arith.addf %80, %87 : vector<256x32xf32>
    %c15_i32_44 = arith.constant 15 : i32
    %89 = tpu.dynamic_rotate %73 by %c15_i32_44 dim 0 : vector<256x64xf32>, i32 -> vector<256x64xf32>
    %c0_45 = arith.constant 0 : index
    %c2_46 = arith.constant 2 : index
    %90 = vector.load %arg1[%c0_45, %c2_46] : memref<256x9xf32, #tpu.memory_space<vmem>>, vector<256x1xf32>
    %91 = vector.broadcast %90 : vector<256x1xf32> to vector<256x64xf32>
    %92 = arith.mulf %89, %91 : vector<256x64xf32>
    %93 = arith.truncf %92 : vector<256x64xf32> to vector<256x64xbf16>
    %c128_47 = arith.constant 128 : index
    %c0_48 = arith.constant 0 : index
    %94 = vector.load %arg5[%c128_47, %c0_48] : memref<576x32xbf16, #tpu.memory_space<vmem>>, vector<64x32xbf16>
    %cst_49 = arith.constant dense<0.000000e+00> : vector<256x32xf32>
    %95 = tpu.matmul %93, %94, %cst_49 {dimension_numbers = #tpu.dot_dimension_numbers<[1], [0], [0], [1], [0, 0, 1, 1], [], []>} : vector<256x64xbf16>, vector<64x32xbf16>, vector<256x32xf32> -> vector<256x32xf32>
    %96 = arith.addf %88, %95 : vector<256x32xf32>
    %c1_i32_50 = arith.constant 1 : i32
    %97 = tpu.dynamic_rotate %73 by %c1_i32_50 dim 0 : vector<256x64xf32>, i32 -> vector<256x64xf32>
    %c0_51 = arith.constant 0 : index
    %c3_52 = arith.constant 3 : index
    %98 = vector.load %arg1[%c0_51, %c3_52] : memref<256x9xf32, #tpu.memory_space<vmem>>, vector<256x1xf32>
    %99 = vector.broadcast %98 : vector<256x1xf32> to vector<256x64xf32>
    %100 = arith.mulf %97, %99 : vector<256x64xf32>
    %101 = arith.truncf %100 : vector<256x64xf32> to vector<256x64xbf16>
    %c192_53 = arith.constant 192 : index
    %c0_54 = arith.constant 0 : index
    %102 = vector.load %arg5[%c192_53, %c0_54] : memref<576x32xbf16, #tpu.memory_space<vmem>>, vector<64x32xbf16>
    %cst_55 = arith.constant dense<0.000000e+00> : vector<256x32xf32>
    %103 = tpu.matmul %101, %102, %cst_55 {dimension_numbers = #tpu.dot_dimension_numbers<[1], [0], [0], [1], [0, 0, 1, 1], [], []>} : vector<256x64xbf16>, vector<64x32xbf16>, vector<256x32xf32> -> vector<256x32xf32>
    %104 = arith.addf %96, %103 : vector<256x32xf32>
    %105 = arith.truncf %73 : vector<256x64xf32> to vector<256x64xbf16>
    %c256_56 = arith.constant 256 : index
    %c0_57 = arith.constant 0 : index
    %106 = vector.load %arg5[%c256_56, %c0_57] : memref<576x32xbf16, #tpu.memory_space<vmem>>, vector<64x32xbf16>
    %cst_58 = arith.constant dense<0.000000e+00> : vector<256x32xf32>
    %107 = tpu.matmul %105, %106, %cst_58 {dimension_numbers = #tpu.dot_dimension_numbers<[1], [0], [0], [1], [0, 0, 1, 1], [], []>} : vector<256x64xbf16>, vector<64x32xbf16>, vector<256x32xf32> -> vector<256x32xf32>
    %108 = arith.addf %104, %107 : vector<256x32xf32>
    %c255_i32_59 = arith.constant 255 : i32
    %109 = tpu.dynamic_rotate %73 by %c255_i32_59 dim 0 : vector<256x64xf32>, i32 -> vector<256x64xf32>
    %c0_60 = arith.constant 0 : index
    %c5_61 = arith.constant 5 : index
    %110 = vector.load %arg1[%c0_60, %c5_61] : memref<256x9xf32, #tpu.memory_space<vmem>>, vector<256x1xf32>
    %111 = vector.broadcast %110 : vector<256x1xf32> to vector<256x64xf32>
    %112 = arith.mulf %109, %111 : vector<256x64xf32>
    %113 = arith.truncf %112 : vector<256x64xf32> to vector<256x64xbf16>
    %c320_62 = arith.constant 320 : index
    %c0_63 = arith.constant 0 : index
    %114 = vector.load %arg5[%c320_62, %c0_63] : memref<576x32xbf16, #tpu.memory_space<vmem>>, vector<64x32xbf16>
    %cst_64 = arith.constant dense<0.000000e+00> : vector<256x32xf32>
    %115 = tpu.matmul %113, %114, %cst_64 {dimension_numbers = #tpu.dot_dimension_numbers<[1], [0], [0], [1], [0, 0, 1, 1], [], []>} : vector<256x64xbf16>, vector<64x32xbf16>, vector<256x32xf32> -> vector<256x32xf32>
    %116 = arith.addf %108, %115 : vector<256x32xf32>
    %c241_i32_65 = arith.constant 241 : i32
    %117 = tpu.dynamic_rotate %73 by %c241_i32_65 dim 0 : vector<256x64xf32>, i32 -> vector<256x64xf32>
    %c0_66 = arith.constant 0 : index
    %c6_67 = arith.constant 6 : index
    %118 = vector.load %arg1[%c0_66, %c6_67] : memref<256x9xf32, #tpu.memory_space<vmem>>, vector<256x1xf32>
    %119 = vector.broadcast %118 : vector<256x1xf32> to vector<256x64xf32>
    %120 = arith.mulf %117, %119 : vector<256x64xf32>
    %121 = arith.truncf %120 : vector<256x64xf32> to vector<256x64xbf16>
    %c384_68 = arith.constant 384 : index
    %c0_69 = arith.constant 0 : index
    %122 = vector.load %arg5[%c384_68, %c0_69] : memref<576x32xbf16, #tpu.memory_space<vmem>>, vector<64x32xbf16>
    %cst_70 = arith.constant dense<0.000000e+00> : vector<256x32xf32>
    %123 = tpu.matmul %121, %122, %cst_70 {dimension_numbers = #tpu.dot_dimension_numbers<[1], [0], [0], [1], [0, 0, 1, 1], [], []>} : vector<256x64xbf16>, vector<64x32xbf16>, vector<256x32xf32> -> vector<256x32xf32>
    %124 = arith.addf %116, %123 : vector<256x32xf32>
    %c240_i32_71 = arith.constant 240 : i32
    %125 = tpu.dynamic_rotate %73 by %c240_i32_71 dim 0 : vector<256x64xf32>, i32 -> vector<256x64xf32>
    %c0_72 = arith.constant 0 : index
    %c7_73 = arith.constant 7 : index
    %126 = vector.load %arg1[%c0_72, %c7_73] : memref<256x9xf32, #tpu.memory_space<vmem>>, vector<256x1xf32>
    %127 = vector.broadcast %126 : vector<256x1xf32> to vector<256x64xf32>
    %128 = arith.mulf %125, %127 : vector<256x64xf32>
    %129 = arith.truncf %128 : vector<256x64xf32> to vector<256x64xbf16>
    %c448_74 = arith.constant 448 : index
    %c0_75 = arith.constant 0 : index
    %130 = vector.load %arg5[%c448_74, %c0_75] : memref<576x32xbf16, #tpu.memory_space<vmem>>, vector<64x32xbf16>
    %cst_76 = arith.constant dense<0.000000e+00> : vector<256x32xf32>
    %131 = tpu.matmul %129, %130, %cst_76 {dimension_numbers = #tpu.dot_dimension_numbers<[1], [0], [0], [1], [0, 0, 1, 1], [], []>} : vector<256x64xbf16>, vector<64x32xbf16>, vector<256x32xf32> -> vector<256x32xf32>
    %132 = arith.addf %124, %131 : vector<256x32xf32>
    %c239_i32_77 = arith.constant 239 : i32
    %133 = tpu.dynamic_rotate %73 by %c239_i32_77 dim 0 : vector<256x64xf32>, i32 -> vector<256x64xf32>
    %c0_78 = arith.constant 0 : index
    %c8_79 = arith.constant 8 : index
    %134 = vector.load %arg1[%c0_78, %c8_79] : memref<256x9xf32, #tpu.memory_space<vmem>>, vector<256x1xf32>
    %135 = vector.broadcast %134 : vector<256x1xf32> to vector<256x64xf32>
    %136 = arith.mulf %133, %135 : vector<256x64xf32>
    %137 = arith.truncf %136 : vector<256x64xf32> to vector<256x64xbf16>
    %c512_80 = arith.constant 512 : index
    %c0_81 = arith.constant 0 : index
    %138 = vector.load %arg5[%c512_80, %c0_81] : memref<576x32xbf16, #tpu.memory_space<vmem>>, vector<64x32xbf16>
    %cst_82 = arith.constant dense<0.000000e+00> : vector<256x32xf32>
    %139 = tpu.matmul %137, %138, %cst_82 {dimension_numbers = #tpu.dot_dimension_numbers<[1], [0], [0], [1], [0, 0, 1, 1], [], []>} : vector<256x64xbf16>, vector<64x32xbf16>, vector<256x32xf32> -> vector<256x32xf32>
    %140 = arith.addf %132, %139 : vector<256x32xf32>
    %c0_83 = arith.constant 0 : index
    %c0_84 = arith.constant 0 : index
    %141 = vector.load %arg6[%c0_83, %c0_84] : memref<1x32xf32, #tpu.memory_space<vmem>>, vector<1x32xf32>
    %142 = vector.broadcast %141 : vector<1x32xf32> to vector<256x32xf32>
    %143 = arith.addf %140, %142 : vector<256x32xf32>
    %144 = tpu.concatenate %143, %143 in 1 : vector<256x32xf32>, vector<256x32xf32> -> vector<256x64xf32>
    %145 = arith.addf %144, %1 : vector<256x64xf32>
    %146 = vector.shape_cast %145 : vector<256x64xf32> to vector<1x256x64xf32>
    %c0_85 = arith.constant 0 : index
    %c0_86 = arith.constant 0 : index
    %c0_87 = arith.constant 0 : index
    %147 = vector.load %arg7[%c0_85, %c0_86, %c0_87] : memref<1x256x64xf32, #tpu.memory_space<vmem>>, vector<1x256x64xf32>
    tpu.vector_store %arg7[%c0_85, %c0_86, %c0_87], %146 {strides = array<i32>} : memref<1x256x64xf32, #tpu.memory_space<vmem>>, vector<1x256x64xf32>,
    return
  }
  func.func @transform_0(%arg0: i32) -> (i32, i32) {
    %c0_i32 = arith.constant 0 : i32
    %c0_i32_0 = arith.constant 0 : i32
    %c0_i32_1 = arith.constant 0 : i32
    return %c0_i32, %c0_i32_0 : i32, i32
  }
  func.func @transform_1(%arg0: i32) -> (i32, i32, i32) {
    %c0_i32 = arith.constant 0 : i32
    %c0_i32_0 = arith.constant 0 : i32
    %c0_i32_1 = arith.constant 0 : i32
    return %arg0, %c0_i32, %c0_i32_0 : i32, i32, i32
  }
  func.func @transform_2(%arg0: i32) -> (i32, i32) {
    %c0_i32 = arith.constant 0 : i32
    %c0_i32_0 = arith.constant 0 : i32
    %c0_i32_1 = arith.constant 0 : i32
    return %c0_i32, %c0_i32_0 : i32, i32
  }
  func.func @transform_3(%arg0: i32) -> (i32, i32) {
    %c0_i32 = arith.constant 0 : i32
    %c0_i32_0 = arith.constant 0 : i32
    %c0_i32_1 = arith.constant 0 : i32
    return %c0_i32, %c0_i32_0 : i32, i32
  }
  func.func @transform_4(%arg0: i32) -> (i32, i32) {
    %c0_i32 = arith.constant 0 : i32
    %c0_i32_0 = arith.constant 0 : i32
    %c0_i32_1 = arith.constant 0 : i32
    return %c0_i32, %c0_i32_0 : i32, i32
  }
  func.func @transform_5(%arg0: i32) -> (i32, i32) {
    %c0_i32 = arith.constant 0 : i32
    %c0_i32_0 = arith.constant 0 : i32
    %c0_i32_1 = arith.constant 0 : i32
    return %c0_i32, %c0_i32_0 : i32, i32
  }
  func.func @transform_6(%arg0: i32) -> (i32, i32, i32) {
    %c0_i32 = arith.constant 0 : i32
    %c0_i32_0 = arith.constant 0 : i32
    %c0_i32_1 = arith.constant 0 : i32
    return %arg0, %c0_i32, %c0_i32_0 : i32, i32, i32
  }
}

</mosaic_0001>

<bundles_post_ra>
// kernel: tpu_custom_call.1
= control target key start
LH: loop header
LB: loop body
LE: loop exit
PB: predicated region body
PF: predicated region fallthrough
CT: control target
= control target key end

     0   :  { %s9426_s21 = smov 0   ;;  %s15458_s0 = inlined_call_operand.vmem [shape: f32[256,9], index: 0, kind: input, shape index: {}]   ;;  %s15459_s1 = inlined_call_operand.vmem [shape: f32[2,256,64], index: 1, kind: input, shape index: {}]   ;;  %s15460_s2 = inlined_call_operand.vmem [shape: bf16[576,64], index: 2, kind: input, shape index: {}]   ;;  %s15461_s3 = inlined_call_operand.vmem [shape: f32[1,64], index: 3, kind: input, shape index: {}]   ;;  %s15462_s4 = inlined_call_operand.vmem [shape: bf16[576,32], index: 4, kind: input, shape index: {}]   ;;  %s15463_s5 = inlined_call_operand.vmem [shape: f32[1,32], index: 5, kind: input, shape index: {}]   ;;  %s15464_s6 = inlined_call_operand.vmem [shape: f32[2,256,64], index: 6, kind: output, shape index: {}]  }
   0x1 LB: > { %s7610_s22 = sadd.s32 4294967295, %s9380_s21   ;;  %p7614_p0 = scmp.ge.s32.totalorder %s9380_s21, 1  ;;  %s9380_s21 = sphi %s9426_s21, %s16_s21  }
   0x2   : > { %p212_p1 = scmp.lt.s32.totalorder %s9380_s21, 3 }
   0x4   : > { %p213_p2 = pnand %p7614_p0, %p212_p1 }
   0x6   : > { %216 = sbr.rel (%p213_p2) target bundleno = 1642 (0x66a), region = 44 }
   0xb   : > { %v9437_v0 = vld [vmem:[%s15458_s0 + $0x10] sm:$0xff]  ;;  %v9442_v1 = vld [vmem:[%s15458_s0] sm:$0xff]  ;;  %v9382_v2 = vmov 1   ;;  %v9449_v3 = vld [vmem:[%s15458_s0 + $0x18] sm:$0xff]  ;;  %v15468_v41 = vmov 0   ;;  %v15465_v42 = vmov 2  }
   0xc   : > { %9083 = vset.pattern.permute.xlu1 %v9382_v2  ;;  %9082 = vset.pattern.permute.xlu0 %v9382_v2  ;;  %v9454_v4 = vld [vmem:[%s15458_s0 + $0x8] sm:$0xff]  ;;  %v9466_v6 = vld [vmem:[%s15458_s0 + $0x20] sm:$0xff]  ;;  %v9473_v7 = vld [vmem:[%s15458_s0 + $0x38] sm:$0xff]  ;;  %p242_p3 = scmp.lt.s32.totalorder %s7610_s22, 1  ;;  %vm808_vm0 = vcmask 523264   ;;  %s9390_s23 = smov 32  }
   0xd   : > { %609 = vperm.xlu1 %9083, %v9437_v0   ;;  %601 = vperm.xlu0 %9082, %v9442_v1   ;;  %v9461_v5 = vld [vmem:[%s15458_s0 + $0x28] sm:$0xff]  ;;  %v9478_v8 = vld [vmem:[%s15458_s0 + $0x30] sm:$0xff]  ;;  %v9140_v9 = vld [vmem:[%s15460_s2 + $0x38] sm:$0xff]   ;;  %vm7458_vm3 = vcmask 261120  }
   0xe   : > { %v9141_v10 = vld [vmem:[%s15460_s2 + $0x30] sm:$0xff]   ;;  %8345 = vmatprep.subr.bf16.mxu0 %v9140_v9  ;;  %v9491_v11 = vld [vmem:[%s15458_s0 + $0x48] sm:$0xff]  ;;  %v9496_v12 = vld [vmem:[%s15458_s0 + $0x40] sm:$0xff]  ;;  %s17603_s22 = smov (!%p242_p3, %s7610_s22), 1 }
   0xf   : > { %8346 = vmatpush3.bf16.msra.mxu0 %v9140_v9  ;;  %v9142_v13 = vld [vmem:[%s15460_s2 + $0x28] sm:$0xff]   ;;  %v9504_v14 = vld [vmem:[%s15458_s0 + $0x58] sm:$0xff]  ;;  %v9511_v15 = vld [vmem:[%s15458_s0 + $0x50] sm:$0xff]  ;;  %s7983_s15 = sshll.u32 %s17603_s22, 8 }
  0x10   : > { %8347 = vmatprep.subr.bf16.mxu0 %v9141_v10  ;;  %v9143_v16 = vld [vmem:[%s15460_s2 + $0x20] sm:$0xff]   ;;  %v9519_v17 = vld [vmem:[%s15458_s0 + $0x68] sm:$0xff]  ;;  %v9531_v19 = vld [vmem:[%s15458_s0 + $0x78] sm:$0xff]  ;;  %s9701_s18 = scalar_lea.vmem %s15459_s1, %s7983_s15  ;;  %s15293_s26 = scalar_lea.vmem %s15464_s6, %s7983_s15 }
  0x11   : > { %613 = vperm.xlu1 %9083, %v9449_v3   ;;  %605 = vperm.xlu0 %9082, %v9454_v4   ;;  %v9524_v18 = vld [vmem:[%s15458_s0 + $0x60] sm:$0xff]  ;;  %v9536_v20 = vld [vmem:[%s15458_s0 + $0x70] sm:$0xff]  ;;  %v9543_v21 = vld [vmem:[%s15458_s0 + $0x88] sm:$0xff] }
  0x12   : > { %v9548_v22 = vld [vmem:[%s15458_s0 + $0x80] sm:$0xff]  ;;  %v9555_v23 = vld [vmem:[%s15458_s0 + $0x98] sm:$0xff]  ;;  %v9560_v24 = vld [vmem:[%s15458_s0 + $0x90] sm:$0xff] }
  0x13   : > { %8348 = vmatpush3.bf16.msra.mxu0 %v9141_v10  ;;  %v9567_v25 = vld [vmem:[%s15458_s0 + $0xa8] sm:$0xff]  ;;  %v9572_v26 = vld [vmem:[%s15458_s0 + $0xa0] sm:$0xff]  ;;  %v9579_v27 = vld [vmem:[%s15458_s0 + $0xb8] sm:$0xff] }
  0x14   : > { %8349 = vmatprep.subr.bf16.mxu0 %v9142_v13  ;;  %v9584_v28 = vld [vmem:[%s15458_s0 + $0xb0] sm:$0xff]  ;;  %v9591_v29 = vld [vmem:[%s15458_s0 + $0xc8] sm:$0xff]  ;;  %v9596_v30 = vld [vmem:[%s15458_s0 + $0xc0] sm:$0xff] }
  0x15   : > { %621 = vperm.xlu1 %9083, %v9461_v5   ;;  %617 = vperm.xlu0 %9082, %v9466_v6   ;;  %v9603_v31 = vld [vmem:[%s15458_s0 + $0xd8] sm:$0xff]  ;;  %v9608_v32 = vld [vmem:[%s15458_s0 + $0xd0] sm:$0xff]  ;;  %v9615_v33 = vld [vmem:[%s15458_s0 + $0xe8] sm:$0xff] }
  0x16   : > { %v9620_v34 = vld [vmem:[%s15458_s0 + $0xe0] sm:$0xff]  ;;  %v9144_v35 = vld [vmem:[%s15460_s2 + $0x18] sm:$0xff]   ;;  %v9145_v37 = vld [vmem:[%s15460_s2 + $0x10] sm:$0xff]  }
  0x17   : > { %8350 = vmatpush3.bf16.msra.mxu0 %v9142_v13  ;;  %8385 = vmatprep.subr.bf16.mxu1 %v9144_v35  ;;  %v9630_v36 = vld [vmem:[%s15458_s0 + $0xf8] sm:$0xff]  ;;  %v9640_v38 = vld [vmem:[%s15458_s0 + $0xf0] sm:$0xff]  ;;  %v9146_v39 = vld [vmem:[%s15460_s2 + $0x8] sm:$0xff]  }
  0x18   : > { %8351 = vmatprep.subr.bf16.mxu0 %v9143_v16  ;;  %8386 = vmatpush3.bf16.msra.mxu1 %v9144_v35  ;;  %v9147_v40 = vld [vmem:[%s15460_s2] sm:$0xff]   ;;  %v9148_v43 = vld [vmem:[%s15460_s2 + $0x58] sm:$0xff]   ;;  %v9708_v46 = vld [vmem:[%s9701_s18 + $0xf0] sm:$0xff] }
  0x19   : > { %629 = vperm.xlu1 %9083, %v9473_v7   ;;  %625 = vperm.xlu0 %9082, %v9478_v8   ;;  %v9711_v47 = vld [vmem:[%s9701_s18] sm:$0xff]  ;;  %v9715_v48 = vld [vmem:[%s9701_s18 + $0x8] sm:$0xff]  ;;  %v9718_v49 = vld [vmem:[%s9701_s18 + $0xf8] sm:$0xff] }
  0x1a   : > { %8387 = vmatprep.subr.bf16.mxu1 %v9145_v37  ;;  %v9735_v56 = vld [vmem:[%s9701_s18 + $0x18] sm:$0xff]  ;;  %v9738_v57 = vld [vmem:[%s9701_s18 + $0x10] sm:$0xff]  ;;  %v9757_v2 = vld [vmem:[%s9701_s18 + $0x28] sm:$0xff] }
  0x1b   : > { %8352 = vmatpush3.bf16.msra.mxu0 %v9143_v16  ;;  %v9149_v62 = vld [vmem:[%s15460_s2 + $0x50] sm:$0xff]   ;;  %v9150_v10 = vld [vmem:[%s15460_s2 + $0x48] sm:$0xff]  }
  0x1c   : > { %8388 = vmatpush3.bf16.msra.mxu1 %v9145_v37  ;;  %8425 = vmatprep.subr.bf16.mxu0 %v9148_v43  ;;  %v9780_v16 = vld [vmem:[%s9701_s18 + $0x30] sm:$0xff] }
  0x1d   : > { %637 = vperm.xlu1 %9083, %v9491_v11   ;;  %633 = vperm.xlu0 %9082, %v9496_v12  }
  0x1e   : > { %8389 = vmatprep.subr.bf16.mxu1 %v9146_v39 }
  0x20   : > { %8390 = vmatpush3.bf16.msra.mxu1 %v9146_v39 }
  0x21   : > { %645 = vperm.xlu1 %9083, %v9504_v14   ;;  %641 = vperm.xlu0 %9082, %v9511_v15  }
  0x22   : > { %8391 = vmatprep.subr.bf16.mxu1 %v9147_v40 }
  0x24   : > { %8392 = vmatpush3.bf16.msra.mxu1 %v9147_v40  ;;  %v9151_v40 = vld [vmem:[%s15460_s2 + $0x40] sm:$0xff]  }
  0x25   : > { %653 = vperm.xlu1 %9083, %v9519_v17   ;;  %649 = vperm.xlu0 %9082, %v9524_v18  }
  0x29   : > { %661 = vperm.xlu1 %9083, %v9531_v19   ;;  %657 = vperm.xlu0 %9082, %v9536_v20  }
  0x2d   : > { %669 = vperm.xlu1 %9083, %v9543_v21   ;;  %665 = vperm.xlu0 %9082, %v9548_v22  }
  0x31   : > { %677 = vperm.xlu1 %9083, %v9555_v23   ;;  %673 = vperm.xlu0 %9082, %v9560_v24  }
  0x35   : > { %685 = vperm.xlu1 %9083, %v9567_v25   ;;  %681 = vperm.xlu0 %9082, %v9572_v26  }
  0x39   : > { %693 = vperm.xlu1 %9083, %v9579_v27   ;;  %689 = vperm.xlu0 %9082, %v9584_v28  }
  0x3d   : > { %701 = vperm.xlu1 %9083, %v9591_v29   ;;  %697 = vperm.xlu0 %9082, %v9596_v30  }
  0x41   : > { %709 = vperm.xlu1 %9083, %v9603_v31   ;;  %705 = vperm.xlu0 %9082, %v9608_v32  }
  0x45   : > { %717 = vperm.xlu1 %9083, %v9615_v33   ;;  %713 = vperm.xlu0 %9082, %v9620_v34  }
  0x49   : > { %725 = vperm.xlu1 %9083, %v9630_v36   ;;  %721 = vperm.xlu0 %9082, %v9640_v38  }
  0x4d   : > { %9085 = vset.pattern.permute.xlu1 %v15468_v41  ;;  %9084 = vset.pattern.permute.xlu0 %v15468_v41 }
  0x4e   : > { %391 = vperm.xlu1 %9085, %v9454_v4   ;;  %386 = vperm.xlu0 %9084, %v9442_v1  }
  0x52   : > { %396 = vperm.xlu1 %9085, %v9437_v0   ;;  %401 = vperm.xlu0 %9084, %v9449_v3  }
  0x56   : > { %9086 = vset.pattern.permute.xlu1 %v15465_v42  ;;  %406 = vperm.xlu0 %9084, %v9466_v6  }
  0x57   : > { %1317 = vperm.xlu1 %9086, %v9442_v1  }
  0x5a   : > { %421 = vperm.xlu0 %9084, %v9473_v7  }
  0x5b   : > { %1325 = vperm.xlu1 %9086, %v9437_v0  }
  0x5e   : > { %426 = vperm.xlu0 %9084, %v9496_v12  }
  0x5f   : > { %1329 = vperm.xlu1 %9086, %v9449_v3  }
  0x62   : > { %441 = vperm.xlu0 %9084, %v9504_v14  }
  0x63   : > { %9087 = vset.pattern.permute.xlu1 %v15468_v41 }
  0x64   : > { %411 = vperm.xlu1 %9087, %v9461_v5  }
  0x66   : > { %446 = vperm.xlu0 %9084, %v9524_v18  }
  0x68   : > { %416 = vperm.xlu1 %9087, %v9478_v8  }
  0x6a   : > { %461 = vperm.xlu0 %9084, %v9531_v19  }
  0x6c   : > { %9088 = vset.pattern.permute.xlu1 %v15465_v42 }
  0x6d   : > { %1333 = vperm.xlu1 %9088, %v9466_v6  }
  0x6e   : > { %466 = vperm.xlu0 %9084, %v9548_v22  }
  0x71   : > { %1341 = vperm.xlu1 %9088, %v9478_v8  }
  0x72   : > { %481 = vperm.xlu0 %9084, %v9555_v23  }
  0x75   : > { %1345 = vperm.xlu1 %9088, %v9473_v7  }
  0x76   : > { %486 = vperm.xlu0 %9084, %v9572_v26  }
  0x79   : > { %9089 = vset.pattern.permute.xlu1 %v15468_v41 }
  0x7a   : > { %431 = vperm.xlu1 %9089, %v9491_v11   ;;  %501 = vperm.xlu0 %9084, %v9579_v27  }
  0x7e   : > { %436 = vperm.xlu1 %9089, %v9511_v15   ;;  %506 = vperm.xlu0 %9084, %v9596_v30  }
  0x82   : > { %9090 = vset.pattern.permute.xlu1 %v15465_v42  ;;  %521 = vperm.xlu0 %9084, %v9603_v31  }
  0x83   : > { %1349 = vperm.xlu1 %9090, %v9496_v12  }
  0x86   : > { %526 = vperm.xlu0 %9084, %v9620_v34  }
  0x87   : > { %1357 = vperm.xlu1 %9090, %v9511_v15   ;;  %v9777_v15 = vld [vmem:[%s9701_s18 + $0x38] sm:$0xff] }
  0x88   : > { %v9703_v44 = vpop.permute.xlu1 %609  ;;  %v9705_v45 = vpop.permute.xlu0 %601 }
  0x89   : > { %16084 = vst [vmem:[#allocation2_spill] sm:$0xff] %v9703_v44  ;;  %16085 = vst [vmem:[#allocation3_spill] sm:$0xff] %v9705_v45  ;;  %v728_v50 = vmul.f32 %v9705_v45, %v9708_v46  ;;  %v730_v53 = vmul.f32 %v9703_v44, %v9711_v47 }
  0x8a   : > { %541 = vperm.xlu0 %9084, %v9630_v36  }
  0x8b   : > { %1361 = vperm.xlu1 %9090, %v9504_v14  }
  0x8c   : > { %v9723_v51 = vpop.permute.xlu1 %613  ;;  %v9725_v52 = vpop.permute.xlu0 %605 }
  0x8d   : > { %16086 = vst [vmem:[#allocation4_spill] sm:$0xff] %v9723_v51  ;;  %16087 = vst [vmem:[#allocation5_spill] sm:$0xff] %v9725_v52  ;;  %v731_v54 = vmul.f32 %v9723_v51, %v9715_v48  ;;  %v729_v55 = vmul.f32 %v9725_v52, %v9718_v49 }
  0x8e   : > { %9100 = vset.pattern.permute.xlu0 %v15465_v42 }
  0x8f   : > { %v761_v58 = vpack.c.bf16 %v731_v54, %v730_v53  ;;  %9091 = vset.pattern.permute.xlu1 %v15468_v41  ;;  %1321 = vperm.xlu0 %9100, %v9454_v4   ;;  %v760_v59 = vpack.c.bf16 %v729_v55, %v728_v50  ;;  %v9760_v4 = vld [vmem:[%s9701_s18 + $0x20] sm:$0xff]  ;;  %v9798_v53 = vld [vmem:[%s9701_s18 + $0x48] sm:$0xff] }
  0x90   : > { %v9742_v60 = vpop.permute.xlu1 %621  ;;  %451 = vperm.xlu1 %9091, %v9519_v17   ;;  %v9745_v61 = vpop.permute.xlu0 %617  ;;  %v9801_v54 = vld [vmem:[%s9701_s18 + $0x40] sm:$0xff] }
  0x91   : > { %16088 = vst [vmem:[#allocation6_spill] sm:$0xff] %v9742_v60  ;;  %16089 = vst [vmem:[#allocation7_spill] sm:$0xff] %v9745_v61  ;;  %v733_v63 = vmul.f32 %v9742_v60, %v9735_v56  ;;  %v732_v0 = vmul.f32 %v9745_v61, %v9738_v57  ;;  %8353 = vmatprep.mubr.msk.bf16.mxu0 %vm808_vm0, %v760_v59  ;;  %v286_v60 = vrot.slane %v9715_v48, 7 }
  0x92   : > { %8354 = vmatmul.mubr.msk.bf16.vlgmr.msra.gmra.mxu0 %vm808_vm0, %v761_v58 }
  0x93   : > { %v762_v6 = vpack.c.bf16 %v733_v63, %v732_v0  ;;  %1337 = vperm.xlu0 %9100, %v9461_v5   ;;  %8426 = vmatpush3.bf16.msra.mxu0 %v9148_v43  ;;  %v9815_v63 = vld [vmem:[%s9701_s18 + $0x58] sm:$0xff]  ;;  %v9818_v0 = vld [vmem:[%s9701_s18 + $0x50] sm:$0xff] }
  0x94   : > { %v9763_v8 = vpop.permute.xlu1 %629  ;;  %456 = vperm.xlu1 %9091, %v9536_v20   ;;  %v9766_v9 = vpop.permute.xlu0 %625  ;;  %8427 = vmatprep.subr.bf16.mxu0 %v9149_v62 }
  0x95   : > { %16090 = vst [vmem:[#allocation8_spill] sm:$0xff] %v9763_v8  ;;  %16091 = vst [vmem:[#allocation9_spill] sm:$0xff] %v9766_v9  ;;  %v735_v12 = vmul.f32 %v9763_v8, %v9757_v2  ;;  %v734_v13 = vmul.f32 %v9766_v9, %v9760_v4  ;;  %8357 = vmatprep.mubr.msk.bf16.mxu0 %vm808_vm0, %v762_v6  ;;  %v9884_v9 = vld [vmem:[%s9701_s18 + $0x98] sm:$0xff]  ;;  %v15480_v8 = vmov 3  }
  0x97   : > { %v763_v35 = vpack.c.bf16 %v735_v12, %v734_v13  ;;  %1353 = vperm.xlu0 %9100, %v9491_v11   ;;  %8428 = vmatpush3.bf16.msra.mxu0 %v9149_v62 }
  0x98   : > { %v9783_v37 = vpop.permute.xlu1 %637  ;;  %9092 = vset.pattern.permute.xlu1 %v15465_v42  ;;  %v9786_v39 = vpop.permute.xlu0 %633  ;;  %8429 = vmatprep.subr.bf16.mxu0 %v9150_v10 }
  0x99   : > { %16092 = vst [vmem:[#allocation10_spill] sm:$0xff] %v9783_v37  ;;  %16093 = vst [vmem:[#allocation11_spill] sm:$0xff] %v9786_v39  ;;  %v737_v43 = vmul.f32 %v9783_v37, %v9777_v15  ;;  %v736_v50 = vmul.f32 %v9786_v39, %v9780_v16  ;;  %1365 = vperm.xlu1 %9092, %v9524_v18  }
  0x9a   : > { %8358 = vmatmul.mubr.msk.bf16.gmra.mxu0 %vm808_vm0, %v763_v35  ;;  %v9832_v35 = vld [vmem:[%s9701_s18 + $0x68] sm:$0xff] }
  0x9b   : > { %v764_v55 = vpack.c.bf16 %v737_v43, %v736_v50  ;;  %1369 = vperm.xlu0 %9100, %v9519_v17   ;;  %8430 = vmatpush3.bf16.msra.mxu0 %v9150_v10  ;;  %v9835_v43 = vld [vmem:[%s9701_s18 + $0x60] sm:$0xff] }
  0x9c   : > { %v9804_v58 = vpop.permute.xlu1 %645  ;;  %v9806_v59 = vpop.permute.xlu0 %641  ;;  %8431 = vmatprep.subr.bf16.mxu0 %v9151_v40 }
  0x9d   : > { %16094 = vst [vmem:[#allocation12_spill] sm:$0xff] %v9804_v58  ;;  %16095 = vst [vmem:[#allocation13_spill] sm:$0xff] %v9806_v59  ;;  %v739_v62 = vmul.f32 %v9804_v58, %v9798_v53  ;;  %v738_v18 = vmul.f32 %v9806_v59, %v9801_v54  ;;  %1373 = vperm.xlu1 %9092, %v9536_v20   ;;  %8361 = vmatprep.mubr.msk.bf16.mxu0 %vm808_vm0, %v764_v55 }
  0x9f   : > { %v765_v6 = vpack.c.bf16 %v739_v62, %v738_v18  ;;  %1385 = vperm.xlu0 %9100, %v9543_v21   ;;  %8432 = vmatpush3.bf16.msra.mxu0 %v9151_v40 }
  0xa0   : > { %v9821_v10 = vpop.permute.xlu1 %653  ;;  %v9823_v12 = vpop.permute.xlu0 %649 }
  0xa1   : > { %16096 = vst [vmem:[#allocation14_spill] sm:$0xff] %v9821_v10  ;;  %16097 = vst [vmem:[#allocation15_spill] sm:$0xff] %v9823_v12  ;;  %v741_v13 = vmul.f32 %v9821_v10, %v9815_v63  ;;  %v740_v20 = vmul.f32 %v9823_v12, %v9818_v0  ;;  %1377 = vperm.xlu1 %9092, %v9531_v19  }
  0xa2   : > { %8362 = vmatmul.mubr.msk.bf16.gmra.mxu0 %vm808_vm0, %v765_v6  ;;  %v9850_v6 = vld [vmem:[%s9701_s18 + $0x78] sm:$0xff] }
  0xa3   : > { %v766_v40 = vpack.c.bf16 %v741_v13, %v740_v20  ;;  %1401 = vperm.xlu0 %9100, %v9567_v25   ;;  %v9853_v13 = vld [vmem:[%s9701_s18 + $0x70] sm:$0xff] }
  0xa4   : > { %v9838_v50 = vpop.permute.xlu1 %661  ;;  %v9840_v55 = vpop.permute.xlu0 %657 }
  0xa5   : > { %16098 = vst [vmem:[#allocation16_spill] sm:$0xff] %v9838_v50  ;;  %16099 = vst [vmem:[#allocation17_spill] sm:$0xff] %v9840_v55  ;;  %v743_v62 = vmul.f32 %v9838_v50, %v9832_v35  ;;  %v742_v18 = vmul.f32 %v9840_v55, %v9835_v43  ;;  %9093 = vset.pattern.permute.xlu1 %v15468_v41  ;;  %8365 = vmatprep.mubr.msk.bf16.mxu0 %vm808_vm0, %v766_v40  ;;  %v9867_v55 = vld [vmem:[%s9701_s18 + $0x88] sm:$0xff] }
  0xa6   : > { %471 = vperm.xlu1 %9093, %v9543_v21  }
  0xa7   : > { %v767_v20 = vpack.c.bf16 %v743_v62, %v742_v18  ;;  %1417 = vperm.xlu0 %9100, %v9591_v29   ;;  %v9870_v62 = vld [vmem:[%s9701_s18 + $0x80] sm:$0xff] }
  0xa8   : > { %v9856_v42 = vpop.permute.xlu1 %669  ;;  %v9858_v50 = vpop.permute.xlu0 %665 }
  0xa9   : > { %16100 = vst [vmem:[#allocation18_spill] sm:$0xff] %v9856_v42  ;;  %16101 = vst [vmem:[#allocation19_spill] sm:$0xff] %v9858_v50  ;;  %v745_v41 = vmul.f32 %v9856_v42, %v9850_v6  ;;  %v744_v40 = vmul.f32 %v9858_v50, %v9853_v13  ;;  %v317_v42 = vlaneseq }
  0xaa   : > { %476 = vperm.xlu1 %9093, %v9560_v24   ;;  %8366 = vmatmul.mubr.msk.bf16.gmra.mxu0 %vm808_vm0, %v767_v20  ;;  %v16104_v20 = vmov 2  }
  0xab   : > { %v768_v18 = vpack.c.bf16 %v745_v41, %v744_v40  ;;  %1433 = vperm.xlu0 %9100, %v9615_v33   ;;  %v9887_v41 = vld [vmem:[%s9701_s18 + $0x90] sm:$0xff]  ;;  %v9959_v10 = vshrl.u32 %v317_v42, 7  ;;  %v9976_v42 = vld [vmem:[%s9701_s18 + $0xe0] sm:$0xff] }
  0xac   : > { %v9873_v52 = vpop.permute.xlu1 %677  ;;  %v9875_v45 = vpop.permute.xlu0 %673  ;;  %16120 = vst [vmem:[#allocation36_spill] sm:$0xff] %v9976_v42 }
  0xad   : > { %16102 = vst [vmem:[#allocation20_spill] sm:$0xff] %v9873_v52  ;;  %16103 = vst [vmem:[#allocation21_spill] sm:$0xff] %v9875_v45  ;;  %v747_v58 = vmul.f32 %v9873_v52, %v9867_v55  ;;  %v746_v59 = vmul.f32 %v9875_v45, %v9870_v62  ;;  %8369 = vmatprep.mubr.msk.bf16.mxu0 %vm808_vm0, %v768_v18  ;;  %vm319_vm1 = vcmp.lt.s32.totalorder %v9959_v10, 1  ;;  %vm1283_vm2 = vcmp.lt.s32.totalorder %v9959_v10, 7 }
  0xae   : > { %9094 = vset.pattern.permute.xlu1 %v16104_v20  ;;  %16116 = vst [vmem:[#allocation32_spill] sm:$0xff] %v9959_v10  ;;  %v9244_v10 = vld [vmem:[%s9701_s18 + $0x8] sm:$0xff] }
  0xaf   : > { %v769_v40 = vpack.c.bf16 %v747_v58, %v746_v59  ;;  %1381 = vperm.xlu1 %9094, %v9548_v22   ;;  %9102 = vset.pattern.permute.xlu0 %v15480_v8  ;;  %v9902_v22 = vld [vmem:[%s9701_s18 + $0xa8] sm:$0xff]  ;;  %v9905_v58 = vld [vmem:[%s9701_s18 + $0xa0] sm:$0xff] }
  0xb0   : > { %v9891_v52 = vpop.permute.xlu1 %685  ;;  %v9893_v44 = vpop.permute.xlu0 %681  ;;  %1766 = vperm.xlu0 %9102, %v9442_v1  }
  0xb1   : > { %16105 = vst [vmem:[#allocation22_spill] sm:$0xff] %v9891_v52  ;;  %16106 = vst [vmem:[#allocation23_spill] sm:$0xff] %v9893_v44  ;;  %v749_v18 = vmul.f32 %v9891_v52, %v9884_v9  ;;  %v748_v45 = vmul.f32 %v9893_v44, %v9887_v41  ;;  %v9919_v52 = vld [vmem:[%s9701_s18 + $0xb8] sm:$0xff] }
  0xb2   : > { %8370 = vmatmul.mubr.msk.bf16.gmra.mxu0 %vm808_vm0, %v769_v40 }
  0xb3   : > { %v770_v59 = vpack.c.bf16 %v749_v18, %v748_v45  ;;  %1389 = vperm.xlu1 %9094, %v9560_v24   ;;  %v9922_v45 = vld [vmem:[%s9701_s18 + $0xb0] sm:$0xff] }
  0xb4   : > { %v9908_v8 = vpop.permute.xlu1 %693  ;;  %v9910_v51 = vpop.permute.xlu0 %689  ;;  %1778 = vperm.xlu0 %9102, %v9449_v3  }
  0xb5   : > { %16107 = vst [vmem:[#allocation24_spill] sm:$0xff] %v9908_v8  ;;  %16108 = vst [vmem:[#allocation25_spill] sm:$0xff] %v9910_v51  ;;  %v751_v1 = vmul.f32 %v9908_v8, %v9902_v22  ;;  %v750_v40 = vmul.f32 %v9910_v51, %v9905_v58  ;;  %8373 = vmatprep.mubr.msk.bf16.mxu0 %vm808_vm0, %v770_v59  ;;  %v9936_v51 = vld [vmem:[%s9701_s18 + $0xc8] sm:$0xff]  ;;  %v16111_v8 = vmov 0  }
  0xb7   : > { %v771_v24 = vpack.c.bf16 %v751_v1, %v750_v40  ;;  %1393 = vperm.xlu1 %9094, %v9555_v23   ;;  %v9939_v1 = vld [vmem:[%s9701_s18 + $0xc0] sm:$0xff] }
  0xb8   : > { %v9925_v18 = vpop.permute.xlu1 %701  ;;  %v9927_v44 = vpop.permute.xlu0 %697  ;;  %1786 = vperm.xlu0 %9102, %v9461_v5  }
  0xb9   : > { %16109 = vst [vmem:[#allocation26_spill] sm:$0xff] %v9925_v18  ;;  %16110 = vst [vmem:[#allocation27_spill] sm:$0xff] %v9927_v44  ;;  %v753_v3 = vmul.f32 %v9925_v18, %v9919_v52  ;;  %v752_v59 = vmul.f32 %v9927_v44, %v9922_v45 }
  0xba   : > { %8374 = vmatmul.mubr.msk.bf16.gmra.mxu0 %vm808_vm0, %v771_v24 }
  0xbb   : > { %v772_v40 = vpack.c.bf16 %v753_v3, %v752_v59  ;;  %9095 = vset.pattern.permute.xlu1 %v16111_v8  ;;  %v9954_v3 = vld [vmem:[%s9701_s18 + $0xd8] sm:$0xff]  ;;  %v9957_v59 = vld [vmem:[%s9701_s18 + $0xd0] sm:$0xff] }
  0xbc   : > { %v9942_v50 = vpop.permute.xlu1 %709  ;;  %491 = vperm.xlu1 %9095, %v9567_v25   ;;  %v9945_v5 = vpop.permute.xlu0 %705  ;;  %1794 = vperm.xlu0 %9102, %v9473_v7   ;;  %16114 = vst [vmem:[#allocation30_spill] sm:$0xff] %v9954_v3  ;;  %16115 = vst [vmem:[#allocation31_spill] sm:$0xff] %v9957_v59 }
  0xbd   : > { %16112 = vst [vmem:[#allocation28_spill] sm:$0xff] %v9942_v50  ;;  %16113 = vst [vmem:[#allocation29_spill] sm:$0xff] %v9945_v5  ;;  %v755_v24 = vmul.f32 %v9942_v50, %v9936_v51  ;;  %v754_v18 = vmul.f32 %v9945_v5, %v9939_v1  ;;  %8377 = vmatprep.mubr.msk.bf16.mxu0 %vm808_vm0, %v772_v40  ;;  %v9973_v50 = vld [vmem:[%s9701_s18 + $0xe8] sm:$0xff] }
  0xbe   : > { %16119 = vst [vmem:[#allocation35_spill] sm:$0xff] %v9973_v50 }
  0xbf   : > { %v773_v44 = vpack.c.bf16 %v755_v24, %v754_v18  ;;  %v316_v18 = vrot.slane %v9718_v49, 7  ;;  %v315_v24 = vrot.slane %v9708_v46, 7 }
  0xc0   : > { %v9961_v12 = vpop.permute.xlu1 %717  ;;  %496 = vperm.xlu1 %9095, %v9584_v28   ;;  %v9964_v7 = vpop.permute.xlu0 %713  ;;  %1802 = vperm.xlu0 %9102, %v9491_v11   ;;  %v285_v11 = vrot.slane %v9711_v47, 7 }
  0xc1   : > { %16117 = vst [vmem:[#allocation33_spill] sm:$0xff] %v9961_v12  ;;  %16118 = vst [vmem:[#allocation34_spill] sm:$0xff] %v9964_v7  ;;  %v757_v5 = vmul.f32 %v9961_v12, %v9954_v3  ;;  %v756_v40 = vmul.f32 %v9964_v7, %v9957_v59  ;;  %v1254_v3 = vrot.slane %v9735_v56, 1 }
  0xc2   : > { %8378 = vmatmul.mubr.msk.bf16.gmra.mxu0 %vm808_vm0, %v773_v44 }
  0xc3   : > { %v774_v37 = vpack.c.bf16 %v757_v5, %v756_v40  ;;  %v9996_v5 = vsel %vm319_vm1, %v315_v24, %v316_v18 }
  0xc4   : > { %v9982_v39 = vpop.permute.xlu1 %725  ;;  %9096 = vset.pattern.permute.xlu1 %v16104_v20  ;;  %v9985_v12 = vpop.permute.xlu0 %721  ;;  %1810 = vperm.xlu0 %9102, %v9504_v14   ;;  %16123 = vst [vmem:[#allocation39_spill] sm:$0xff] %v9996_v5  ;;  %v16124_v14 = vrot.slane %v9973_v50, 7 }
  0xc5   : > { %16121 = vst [vmem:[#allocation37_spill] sm:$0xff] %v9982_v39  ;;  %16122 = vst [vmem:[#allocation38_spill] sm:$0xff] %v9985_v12  ;;  %v759_v44 = vmul.f32 %v9982_v39, %v9973_v50  ;;  %v758_v7 = vmul.f32 %v9985_v12, %v9976_v42  ;;  %1397 = vperm.xlu1 %9096, %v9572_v26   ;;  %8381 = vmatprep.mubr.msk.bf16.mxu0 %vm808_vm0, %v774_v37 }
  0xc6   : > { %v10004_v39 = vsel %vm319_vm1, %v16124_v14, %v315_v24  ;;  %v10019_v24 = vsel %vm319_vm1, %v316_v18, %v285_v11 }
  0xc7   : > { %v775_v40 = vpack.c.bf16 %v759_v44, %v758_v7  ;;  %16125 = vst [vmem:[#allocation40_spill] sm:$0xff] %v10004_v39  ;;  %16128 = vst [vmem:[#allocation43_spill] sm:$0xff] %v10019_v24 }
  0xc8   : > { %1818 = vperm.xlu0 %9102, %v9519_v17   ;;  %v10023_v17 = vsel %vm319_vm1, %v285_v11, %v286_v60 }
  0xc9   : > { %v10007_v26 = vpop.permute.xlu1 %391  ;;  %1405 = vperm.xlu1 %9096, %v9584_v28   ;;  %v10010_v37 = vpop.permute.xlu0 %386  ;;  %16129 = vst [vmem:[#allocation44_spill] sm:$0xff] %v10023_v17 }
  0xca   : > { %16126 = vst [vmem:[#allocation41_spill] sm:$0xff] %v10007_v26  ;;  %16127 = vst [vmem:[#allocation42_spill] sm:$0xff] %v10010_v37  ;;  %8382 = vmatmul.mubr.msk.bf16.gmra.mxu0 %vm808_vm0, %v775_v40  ;;  %v544_v7 = vmul.f32 %v10010_v37, %v10004_v39  ;;  %v545_v44 = vmul.f32 %v10007_v26, %v9996_v5 }
  0xcc   : > { %v576_v14 = vpack.c.bf16 %v545_v44, %v544_v7  ;;  %1826 = vperm.xlu0 %9102, %v9531_v19  }
  0xcd   : > { %v10026_v28 = vpop.permute.xlu1 %396  ;;  %1409 = vperm.xlu1 %9096, %v9579_v27   ;;  %v10029_v40 = vpop.permute.xlu0 %401 }
  0xce   : > { %16130 = vst [vmem:[#allocation45_spill] sm:$0xff] %v10026_v28  ;;  %16131 = vst [vmem:[#allocation46_spill] sm:$0xff] %v10029_v40  ;;  %v546_v12 = vmul.f32 %v10026_v28, %v10019_v24  ;;  %v547_v18 = vmul.f32 %v10029_v40, %v10023_v17  ;;  %8393 = vmatprep.mubr.msk.bf16.mxu1 %vm808_vm0, %v576_v14  ;;  %v290_v28 = vrot.slane %v9757_v2, 7 }
  0xd0   : > { %v577_v26 = vpack.c.bf16 %v547_v18, %v546_v12  ;;  %1834 = vperm.xlu0 %9102, %v9543_v21   ;;  %v287_v12 = vrot.slane %v9738_v57, 7  ;;  %v288_v18 = vrot.slane %v9735_v56, 7  ;;  %v1255_v56 = vrot.slane %v9760_v4, 1 }
  0xd1   : > { %9097 = vset.pattern.permute.xlu1 %v16111_v8  ;;  %v10038_v19 = vpop.permute.xlu0 %406 }
  0xd2   : > { %16132 = vst [vmem:[#allocation47_spill] sm:$0xff] %v10038_v19  ;;  %511 = vperm.xlu1 %9097, %v9591_v29   ;;  %v10041_v11 = vpop.permute.xlu1 %1317  ;;  %8394 = vmatmul.mubr.msk.bf16.vlgmr.msra.gmra.mxu1 %vm808_vm0, %v577_v26  ;;  %v289_v26 = vrot.slane %v9760_v4, 7  ;;  %v10070_v61 = vsel %vm319_vm1, %v287_v12, %v288_v18  ;;  %v1257_v4 = vrot.slane %v9780_v16, 1 }
  0xd3   : > { %16133 = vst [vmem:[#allocation48_spill] sm:$0xff] %v10041_v11  ;;  %16140 = vst [vmem:[#allocation55_spill] sm:$0xff] %v10070_v61 }
  0xd4   : > { %1842 = vperm.xlu0 %9102, %v9555_v23   ;;  %v10060_v23 = vsel %vm319_vm1, %v286_v60, %v287_v12  ;;  %v10076_v60 = vsel %vm319_vm1, %v289_v26, %v290_v28  ;;  %v10088_v12 = vsel %vm319_vm1, %v288_v18, %v289_v26 }
  0xd5   : > { %v10045_v7 = vpop.permute.xlu0 %421  ;;  %16138 = vst [vmem:[#allocation53_spill] sm:$0xff] %v10060_v23  ;;  %v548_v39 = vmul.f32 %v10038_v19, %v10060_v23  ;;  %16141 = vst [vmem:[#allocation56_spill] sm:$0xff] %v10076_v60 }
  0xd6   : > { %16134 = vst [vmem:[#allocation49_spill] sm:$0xff] %v10045_v7  ;;  %516 = vperm.xlu1 %9097, %v9608_v32   ;;  %v10048_v44 = vpop.permute.xlu1 %1325  ;;  %16144 = vst [vmem:[#allocation59_spill] sm:$0xff] %v10088_v12  ;;  %v551_v19 = vmul.f32 %v10045_v7, %v10076_v60  ;;  %v9154_v7 = vld [vmem:[%s15460_s2 + $0x70] sm:$0xff]   ;;  %v16155_v60 = vrot.slane %v9798_v53, 7 }
  0xd7   : > { %16135 = vst [vmem:[#allocation50_spill] sm:$0xff] %v10048_v44 }
  0xd8   : > { %1850 = vperm.xlu0 %9102, %v9567_v25  }
  0xd9   : > { %v10052_v14 = vpop.permute.xlu0 %426 }
  0xda   : > { %16136 = vst [vmem:[#allocation51_spill] sm:$0xff] %v10052_v14  ;;  %9098 = vset.pattern.permute.xlu1 %v16104_v20  ;;  %v10056_v37 = vpop.permute.xlu1 %1329 }
  0xdb   : > { %16137 = vst [vmem:[#allocation52_spill] sm:$0xff] %v10056_v37  ;;  %1413 = vperm.xlu1 %9098, %v9596_v30  }
  0xdc   : > { %1858 = vperm.xlu0 %9102, %v9579_v27  }
  0xdd   : > { %v10066_v40 = vpop.permute.xlu0 %441 }
  0xde   : > { %16139 = vst [vmem:[#allocation54_spill] sm:$0xff] %v10066_v40 }
  0xdf   : > { %1421 = vperm.xlu1 %9098, %v9608_v32   ;;  %v10079_v5 = vpop.permute.xlu1 %411 }
  0xe0   : > { %16142 = vst [vmem:[#allocation57_spill] sm:$0xff] %v10079_v5  ;;  %v549_v27 = vmul.f32 %v10079_v5, %v10070_v61  ;;  %1866 = vperm.xlu0 %9102, %v9591_v29  }
  0xe1   : > { %v10084_v30 = vpop.permute.xlu0 %446 }
  0xe2   : > { %16143 = vst [vmem:[#allocation58_spill] sm:$0xff] %v10084_v30  ;;  %v578_v23 = vpack.c.bf16 %v549_v27, %v548_v39  ;;  %v293_v27 = vrot.slane %v9801_v54, 7 }
  0xe3   : > { %1425 = vperm.xlu1 %9098, %v9603_v31   ;;  %v10093_v32 = vpop.permute.xlu1 %416 }
  0xe4   : > { %16145 = vst [vmem:[#allocation60_spill] sm:$0xff] %v10093_v32  ;;  %v550_v17 = vmul.f32 %v10093_v32, %v10088_v12  ;;  %8397 = vmatprep.mubr.msk.bf16.mxu1 %vm808_vm0, %v578_v23  ;;  %1874 = vperm.xlu0 %9102, %v9603_v31   ;;  %v291_v31 = vrot.slane %v9780_v16, 7  ;;  %v15522_v12 = vmov 5   ;;  %v10158_v24 = vsel %vm319_vm1, %v293_v27, %v16155_v60 }
  0xe5   : > { %v10099_v5 = vpop.permute.xlu0 %461  ;;  %16156 = vst [vmem:[#allocation70_spill] sm:$0xff] %v10158_v24  ;;  %v10310_v16 = vsel %vm1283_vm2, %v1254_v3, %v1255_v56 }
  0xe6   : > { %16146 = vst [vmem:[#allocation61_spill] sm:$0xff] %v10099_v5  ;;  %v579_v61 = vpack.c.bf16 %v551_v19, %v550_v17  ;;  %v10125_v19 = vsel %vm319_vm1, %v290_v28, %v291_v31  ;;  %v10142_v28 = vld [vmem:[%s15460_s2 + $0x98] sm:$0xff]   ;;  %16183 = vst [vmem:[#allocation93_spill] sm:$0xff] %v10310_v16 }
  0xe7   : > { %9099 = vset.pattern.permute.xlu1 %v16111_v8  ;;  %v292_v8 = vrot.slane %v9777_v15, 7  ;;  %16152 = vst [vmem:[#allocation67_spill] sm:$0xff] %v10125_v19  ;;  %8505 = vmatprep.subr.bf16.mxu0 %v10142_v28 }
  0xe8   : > { %531 = vperm.xlu1 %9099, %v9615_v33   ;;  %v10103_v18 = vpop.permute.xlu1 %1333  ;;  %8398 = vmatmul.mubr.msk.bf16.gmra.mxu1 %vm808_vm0, %v579_v61  ;;  %v9152_v61 = vld [vmem:[%s15460_s2 + $0x78] sm:$0xff]  }
  0xe9   : > { %16147 = vst [vmem:[#allocation62_spill] sm:$0xff] %v10103_v18  ;;  %v10106_v39 = vpop.permute.xlu0 %466  ;;  %1882 = vperm.xlu0 %9102, %v9615_v33   ;;  %8465 = vmatprep.subr.bf16.mxu1 %v9152_v61  ;;  %v10175_v60 = vsel %vm319_vm1, %v292_v8, %v293_v27  ;;  %v10209_v27 = vld [vmem:[%s15458_s0 + $0x68] sm:$0xff] }
  0xea   : > { %16148 = vst [vmem:[#allocation63_spill] sm:$0xff] %v10106_v39  ;;  %8466 = vmatpush3.bf16.msra.mxu1 %v9152_v61  ;;  %16160 = vst [vmem:[#allocation74_spill] sm:$0xff] %v10175_v60 }
  0xeb   : > { %8467 = vmatprep.subr.bf16.mxu1 %v9154_v7  ;;  %16167 = vst [vmem:[#allocation80_spill] sm:$0xff] %v10209_v27 }
  0xec   : > { %536 = vperm.xlu1 %9099, %v9640_v38   ;;  %v10110_v23 = vpop.permute.xlu1 %1341 }
  0xed   : > { %16149 = vst [vmem:[#allocation64_spill] sm:$0xff] %v10110_v23  ;;  %v10113_v26 = vpop.permute.xlu0 %481  ;;  %1890 = vperm.xlu0 %9102, %v9630_v36  }
  0xee   : > { %16150 = vst [vmem:[#allocation65_spill] sm:$0xff] %v10113_v26  ;;  %8468 = vmatpush3.bf16.msra.mxu1 %v9154_v7  ;;  %v10193_v7 = vld [vmem:[%s15458_s0 + $0x48] sm:$0xff] }
  0xef   : > { %16163 = vst [vmem:[#allocation77_spill] sm:$0xff] %v10193_v7 }
  0xf0   : > { %9101 = vset.pattern.permute.xlu1 %v16104_v20  ;;  %v10118_v17 = vpop.permute.xlu1 %1345  ;;  %v10136_v20 = vld [vmem:[%s15458_s0 + $0x8] sm:$0xff] }
  0xf1   : > { %16151 = vst [vmem:[#allocation66_spill] sm:$0xff] %v10118_v17  ;;  %1429 = vperm.xlu1 %9101, %v9620_v34   ;;  %v10130_v32 = vpop.permute.xlu0 %486  ;;  %9105 = vset.pattern.permute.xlu0 %v15522_v12  ;;  %v10146_v34 = vsel %vm319_vm1, %v291_v31, %v292_v8  ;;  %v552_v12 = vmul.f32 %v10052_v14, %v10125_v19  ;;  %v10170_v19 = vld [vmem:[%s15458_s0 + $0x28] sm:$0xff] }
  0xf2   : > { %16153 = vst [vmem:[#allocation68_spill] sm:$0xff] %v10130_v32  ;;  %2508 = vperm.xlu0 %9105, %v10136_v20   ;;  %16154 = vst [vmem:[#allocation69_spill] sm:$0xff] %v10146_v34 }
  0xf3   : > { %16159 = vst [vmem:[#allocation73_spill] sm:$0xff] %v10170_v19 }
  0xf5   : > { %1437 = vperm.xlu1 %9101, %v9640_v38   ;;  %v10161_v31 = vpop.permute.xlu1 %431  ;;  %v10163_v61 = vpop.permute.xlu0 %501  ;;  %v555_v38 = vmul.f32 %v10066_v40, %v10158_v24  ;;  %v297_v40 = vrot.slane %v9835_v43, 7 }
  0xf6   : > { %16157 = vst [vmem:[#allocation71_spill] sm:$0xff] %v10161_v31  ;;  %16158 = vst [vmem:[#allocation72_spill] sm:$0xff] %v10163_v61  ;;  %v553_v14 = vmul.f32 %v10161_v31, %v10146_v34  ;;  %2524 = vperm.xlu0 %9105, %v10170_v19   ;;  %v9156_v31 = vld [vmem:[%s15460_s2 + $0x68] sm:$0xff]  }
  0xf7   : > { %8469 = vmatprep.subr.bf16.mxu1 %v9156_v31 }
  0xf8   : > { %v580_v50 = vpack.c.bf16 %v553_v14, %v552_v12  ;;  %8470 = vmatpush3.bf16.msra.mxu1 %v9156_v31  ;;  %v16164_v12 = vmov 3   ;;  %v10217_v31 = vld [vmem:[%s15458_s0 + $0x10] sm:$0xff] }
  0xf9   : > { %1441 = vperm.xlu1 %9101, %v9630_v36   ;;  %v10183_v34 = vpop.permute.xlu1 %436  ;;  %v10185_v42 = vpop.permute.xlu0 %506  ;;  %v9158_v36 = vld [vmem:[%s15460_s2 + $0x60] sm:$0xff]  }
  0xfa   : > { %16161 = vst [vmem:[#allocation75_spill] sm:$0xff] %v10183_v34  ;;  %16162 = vst [vmem:[#allocation76_spill] sm:$0xff] %v10185_v42  ;;  %v554_v19 = vmul.f32 %v10183_v34, %v10175_v60  ;;  %8401 = vmatprep.mubr.msk.bf16.mxu1 %vm808_vm0, %v580_v50  ;;  %2540 = vperm.xlu0 %9105, %v10193_v7   ;;  %v1251_v34 = vrot.slane %v9711_v47, 1  ;;  %v1252_v60 = vrot.slane %v9715_v48, 1  ;;  %v16173_v47 = vrot.slane %v9798_v53, 7 }
  0xfb   : > { %8471 = vmatprep.subr.bf16.mxu1 %v9158_v36  ;;  %v16175_v7 = vrot.slane %v9708_v46, 1 }
  0xfc   : > { %v581_v14 = vpack.c.bf16 %v555_v38, %v554_v19  ;;  %8472 = vmatpush3.bf16.msra.mxu1 %v9158_v36  ;;  %v1282_v36 = vrot.slane %v9718_v49, 1 }
  0xfd   : > { %9103 = vset.pattern.permute.xlu1 %v16164_v12  ;;  %v10200_v8 = vpop.permute.xlu0 %521  ;;  %v295_v12 = vrot.slane %v9818_v0, 7 }
  0xfe   : > { %16165 = vst [vmem:[#allocation78_spill] sm:$0xff] %v10200_v8  ;;  %1770 = vperm.xlu1 %9103, %v10136_v20   ;;  %v10203_v50 = vpop.permute.xlu1 %1349  ;;  %8402 = vmatmul.mubr.msk.bf16.gmra.mxu1 %vm808_vm0, %v581_v14  ;;  %v1253_v14 = vrot.slane %v9738_v57, 1  ;;  %v10236_v57 = vld [vmem:[%s15458_s0 + $0x20] sm:$0xff]  ;;  %v10263_v59 = vsel %vm1283_vm2, %v1282_v36, %v1251_v34 }
  0xff   : > { %16166 = vst [vmem:[#allocation79_spill] sm:$0xff] %v10203_v50  ;;  %2556 = vperm.xlu0 %9105, %v10209_v27   ;;  %v296_v27 = vrot.slane %v9815_v63, 7  ;;  %v10249_v48 = vsel %vm319_vm1, %v16173_v47, %v295_v12  ;;  %16177 = vst [vmem:[#allocation88_spill] sm:$0xff] %v10263_v59  ;;  %v10267_v47 = vsel %vm1283_vm2, %v1251_v34, %v1252_v60 }
 0x100   : > { %v10243_v49 = vsel %vm1283_vm2, %v1252_v60, %v1253_v14  ;;  %16174 = vst [vmem:[#allocation86_spill] sm:$0xff] %v10249_v48  ;;  %16178 = vst [vmem:[#allocation89_spill] sm:$0xff] %v10267_v47 }
 0x101   : > { %v10212_v19 = vpop.permute.xlu0 %526  ;;  %16172 = vst [vmem:[#allocation85_spill] sm:$0xff] %v10243_v49 }
 0x102   : > { %16168 = vst [vmem:[#allocation81_spill] sm:$0xff] %v10212_v19  ;;  %1774 = vperm.xlu1 %9103, %v10217_v31   ;;  %v10220_v38 = vpop.permute.xlu1 %1357  ;;  %v10258_v19 = vsel %vm1283_vm2, %v16175_v7, %v1282_v36  ;;  %v556_v7 = vmul.f32 %v10084_v30, %v10249_v48  ;;  %v10281_v36 = vld [vmem:[%s15458_s0 + $0x30] sm:$0xff]  ;;  %v1446_v48 = vmul.f32 %v10048_v44, %v10267_v47  ;;  %v1259_v47 = vrot.slane %v9801_v54, 1 }
 0x103   : > { %16169 = vst [vmem:[#allocation82_spill] sm:$0xff] %v10220_v38  ;;  %2572 = vperm.xlu0 %9105, %v9543_v21   ;;  %16176 = vst [vmem:[#allocation87_spill] sm:$0xff] %v10258_v19  ;;  %v1444_v60 = vmul.f32 %v10041_v11, %v10258_v19  ;;  %v10304_v11 = vsel %vm1283_vm2, %v1253_v14, %v1254_v3  ;;  %v10324_v3 = vld [vmem:[%s15458_s0 + $0x40] sm:$0xff] }
 0x104   : > { %16182 = vst [vmem:[#allocation92_spill] sm:$0xff] %v10304_v11 }
 0x105   : > { %v10230_v24 = vpop.permute.xlu0 %541 }
 0x106   : > { %16170 = vst [vmem:[#allocation83_spill] sm:$0xff] %v10230_v24  ;;  %1782 = vperm.xlu1 %9103, %v10236_v57   ;;  %v10239_v21 = vpop.permute.xlu1 %1361  ;;  %v10271_v24 = vsel %vm319_vm1, %v295_v12, %v296_v27  ;;  %v16180_v12 = vrot.slane %v9832_v35, 7 }
 0x107   : > { %16171 = vst [vmem:[#allocation84_spill] sm:$0xff] %v10239_v21  ;;  %2588 = vperm.xlu0 %9105, %v9567_v25   ;;  %v1447_v25 = vmul.f32 %v10056_v37, %v10243_v49 }
 0x108   : > { %v10292_v37 = vsel %vm319_vm1, %v297_v40, %v16180_v12 }
 0x109   : > { %v1477_v44 = vpack.c.bf16 %v1447_v25, %v1446_v48  ;;  %v559_v14 = vmul.f32 %v10099_v5, %v10292_v37 }
 0x10a   : > { %1790 = vperm.xlu1 %9103, %v10281_v36   ;;  %v10284_v34 = vpop.permute.xlu0 %1321 }
 0x10b   : > { %16179 = vst [vmem:[#allocation90_spill] sm:$0xff] %v10284_v34  ;;  %v1445_v30 = vmul.f32 %v10284_v34, %v10263_v59  ;;  %v10297_v49 = vpop.permute.xlu1 %451  ;;  %2604 = vperm.xlu0 %9105, %v9591_v29   ;;  %v1256_v34 = vrot.slane %v9757_v2, 1  ;;  %v1258_v59 = vrot.slane %v9777_v15, 1  ;;  %v10316_v29 = vsel %vm319_vm1, %v296_v27, %v297_v40  ;;  %v9155_v15 = vld [vmem:[%s15460_s2 + $0x90] sm:$0xff]  }
 0x10c   : > { %16181 = vst [vmem:[#allocation91_spill] sm:$0xff] %v10297_v49  ;;  %v557_v12 = vmul.f32 %v10297_v49, %v10271_v24  ;;  %v1448_v40 = vmul.f32 %v10103_v18, %v10304_v11  ;;  %v16241_v11 = vmov 6  }
 0x10d   : > { %v1476_v19 = vpack.c.bf16 %v1445_v30, %v1444_v60  ;;  %v10336_v54 = vsel %vm1283_vm2, %v1256_v34, %v1257_v4  ;;  %v10350_v25 = vsel %vm1283_vm2, %v1258_v59, %v1259_v47 }
 0x10e   : > { %v582_v49 = vpack.c.bf16 %v557_v12, %v556_v7  ;;  %1798 = vperm.xlu1 %9103, %v10324_v3   ;;  %v10327_v2 = vpop.permute.xlu0 %1337  ;;  %16185 = vst [vmem:[#allocation95_spill] sm:$0xff] %v10336_v54  ;;  %16187 = vst [vmem:[#allocation97_spill] sm:$0xff] %v10350_v25  ;;  %v10354_v7 = vsel %vm1283_vm2, %v1255_v56, %v1256_v34  ;;  %v1261_v34 = vrot.slane %v9818_v0, 1  ;;  %v10388_v0 = vld [vmem:[%s15458_s0] sm:$0xff] }
 0x10f   : > { %16184 = vst [vmem:[#allocation94_spill] sm:$0xff] %v10327_v2  ;;  %v1449_v30 = vmul.f32 %v10327_v2, %v10310_v16  ;;  %v10340_v27 = vpop.permute.xlu1 %456  ;;  %8433 = vmatprep.mubr.msk.bf16.mxu0 %vm808_vm0, %v1476_v19  ;;  %2620 = vperm.xlu0 %9105, %v9615_v33   ;;  %16188 = vst [vmem:[#allocation98_spill] sm:$0xff] %v10354_v7  ;;  %v1451_v33 = vmul.f32 %v10118_v17, %v10336_v54  ;;  %v1264_v17 = vrot.slane %v9832_v35, 1 }
 0x110   : > { %16186 = vst [vmem:[#allocation96_spill] sm:$0xff] %v10340_v27  ;;  %v558_v48 = vmul.f32 %v10340_v27, %v10316_v29  ;;  %8405 = vmatprep.mubr.msk.bf16.mxu1 %vm808_vm0, %v582_v49  ;;  %8434 = vmatmul.mubr.msk.bf16.vlgmr.msra.gmra.mxu0 %vm808_vm0, %v1477_v44  ;;  %v10361_v19 = vsel %vm1283_vm2, %v1257_v4, %v1258_v59  ;;  %v10366_v44 = vld [vmem:[%s15458_s0 + $0x50] sm:$0xff]  ;;  %v15572_v4 = vmov 6   ;;  %v10421_v27 = vld [vmem:[%s15458_s0 + $0x18] sm:$0xff] }
 0x111   : > { %v1478_v60 = vpack.c.bf16 %v1449_v30, %v1448_v40  ;;  %8506 = vmatpush3.bf16.msra.mxu0 %v10142_v28  ;;  %16189 = vst [vmem:[#allocation99_spill] sm:$0xff] %v10361_v19  ;;  %v9157_v28 = vld [vmem:[%s15460_s2 + $0x88] sm:$0xff]   ;;  %v1450_v12 = vmul.f32 %v10110_v23, %v10354_v7  ;;  %v1263_v40 = vrot.slane %v9835_v43, 1  ;;  %v1452_v30 = vmul.f32 %v10203_v50, %v10361_v19  ;;  %v10398_v43 = vld [vmem:[%s15458_s0 + $0x60] sm:$0xff] }
 0x112   : > { %v583_v49 = vpack.c.bf16 %v559_v14, %v558_v48  ;;  %1806 = vperm.xlu1 %9103, %v10366_v44   ;;  %v10369_v56 = vpop.permute.xlu0 %1353  ;;  %8507 = vmatprep.subr.bf16.mxu0 %v9155_v15  ;;  %v1260_v48 = vrot.slane %v9798_v53, 1  ;;  %v301_v50 = vrot.slane %v9870_v62, 7 }
 0x113   : > { %16190 = vst [vmem:[#allocation100_spill] sm:$0xff] %v10369_v56  ;;  %v1453_v59 = vmul.f32 %v10369_v56, %v10350_v25  ;;  %8437 = vmatprep.mubr.msk.bf16.mxu0 %vm808_vm0, %v1478_v60  ;;  %9120 = vset.pattern.permute.xlu0 %v15572_v4  ;;  %v1479_v60 = vpack.c.bf16 %v1451_v33, %v1450_v12  ;;  %v1262_v4 = vrot.slane %v9815_v63, 1  ;;  %v10438_v56 = vld [vmem:[%s15458_s0 + $0x70] sm:$0xff] }
 0x114   : > { %v10381_v14 = vpop.permute.xlu1 %1365  ;;  %8406 = vmatmul.mubr.msk.bf16.gmra.mxu1 %vm808_vm0, %v583_v49  ;;  %2953 = vperm.xlu0 %9120, %v10388_v0   ;;  %v9159_v49 = vld [vmem:[%s15460_s2 + $0x80] sm:$0xff]   ;;  %v10406_v5 = vsel %vm1283_vm2, %v1260_v48, %v1261_v34 }
 0x115   : > { %16191 = vst [vmem:[#allocation101_spill] sm:$0xff] %v10381_v14  ;;  %8508 = vmatpush3.bf16.msra.mxu0 %v9155_v15  ;;  %16192 = vst [vmem:[#allocation102_spill] sm:$0xff] %v10406_v5  ;;  %v1480_v53 = vpack.c.bf16 %v1453_v59, %v1452_v30  ;;  %v299_v15 = vrot.slane %v9853_v13, 7  ;;  %v10413_v33 = vsel %vm1283_vm2, %v1262_v4, %v1263_v40 }
 0x116   : > { %1814 = vperm.xlu1 %9103, %v10398_v43   ;;  %8509 = vmatprep.subr.bf16.mxu0 %v9157_v28  ;;  %v10409_v63 = vpop.permute.xlu0 %1369  ;;  %16194 = vst [vmem:[#allocation104_spill] sm:$0xff] %v10413_v33  ;;  %v10426_v59 = vsel %vm1283_vm2, %v1259_v47, %v1260_v48  ;;  %v1455_v30 = vmul.f32 %v10239_v21, %v10406_v5  ;;  %v300_v48 = vrot.slane %v9850_v6, 7  ;;  %v10623_v5 = vld [vmem:[%s15460_s2 + $0xb8] sm:$0xff]  }
 0x117   : > { %16193 = vst [vmem:[#allocation103_spill] sm:$0xff] %v10409_v63  ;;  %16196 = vst [vmem:[#allocation106_spill] sm:$0xff] %v10426_v59  ;;  %v1457_v47 = vmul.f32 %v10409_v63, %v10413_v33  ;;  %v306_v33 = vrot.slane %v9902_v22, 7  ;;  %8545 = vmatprep.subr.bf16.mxu1 %v10623_v5 }
 0x118   : > { %v10415_v12 = vpop.permute.xlu1 %1373  ;;  %8438 = vmatmul.mubr.msk.bf16.gmra.mxu0 %vm808_vm0, %v1479_v60  ;;  %2965 = vperm.xlu0 %9120, %v10421_v27   ;;  %v10433_v60 = vsel %vm1283_vm2, %v1261_v34, %v1262_v4  ;;  %v1454_v4 = vmul.f32 %v10220_v38, %v10426_v59 }
 0x119   : > { %16195 = vst [vmem:[#allocation105_spill] sm:$0xff] %v10415_v12  ;;  %8441 = vmatprep.mubr.msk.bf16.mxu0 %vm808_vm0, %v1480_v53  ;;  %8510 = vmatpush3.bf16.msra.mxu0 %v9157_v28  ;;  %16197 = vst [vmem:[#allocation107_spill] sm:$0xff] %v10433_v60  ;;  %v1265_v28 = vrot.slane %v9853_v13, 1  ;;  %v16198_v53 = vrot.slane %v9832_v35, 7  ;;  %v1456_v13 = vmul.f32 %v10381_v14, %v10433_v60 }
 0x11a   : > { %1822 = vperm.xlu1 %9103, %v10438_v56   ;;  %8511 = vmatprep.subr.bf16.mxu0 %v9159_v49  ;;  %v1481_v23 = vpack.c.bf16 %v1455_v30, %v1454_v4  ;;  %v10467_v38 = vpop.permute.xlu0 %1385  ;;  %v10475_v14 = vsel %vm319_vm1, %v299_v15, %v300_v48  ;;  %v16202_v30 = vrot.slane %v9867_v55, 7 }
 0x11b   : > { %v10449_v34 = vsel %vm319_vm1, %v16198_v53, %v299_v15  ;;  %v10464_v53 = vld [vmem:[%s15458_s0 + $0x80] sm:$0xff]  ;;  %16200 = vst [vmem:[#allocation109_spill] sm:$0xff] %v10467_v38  ;;  %v1482_v2 = vpack.c.bf16 %v1457_v47, %v1456_v13  ;;  %v10471_v63 = vsel %vm1283_vm2, %v1264_v17, %v1265_v28  ;;  %v10494_v15 = vsel %vm1283_vm2, %v1263_v40, %v1264_v17 }
 0x11c   : > { %v10453_v21 = vpop.permute.xlu1 %1377  ;;  %2969 = vperm.xlu0 %9120, %v10236_v57   ;;  %16201 = vst [vmem:[#allocation110_spill] sm:$0xff] %v10471_v63  ;;  %v560_v35 = vmul.f32 %v10106_v39, %v10449_v34  ;;  %v10490_v47 = vsel %vm319_vm1, %v301_v50, %v16202_v30  ;;  %16203 = vst [vmem:[#allocation111_spill] sm:$0xff] %v10494_v15  ;;  %v10506_v39 = vld [vmem:[%s15458_s0 + $0x90] sm:$0xff]  ;;  %v1266_v17 = vrot.slane %v9850_v6, 1  ;;  %v1267_v40 = vrot.slane %v9870_v62, 1 }
 0x11d   : > { %16199 = vst [vmem:[#allocation108_spill] sm:$0xff] %v10453_v21  ;;  %8512 = vmatpush3.bf16.msra.mxu0 %v9159_v49  ;;  %v10483_v49 = vld [vmem:[%s15458_s0 + $0x38] sm:$0xff] }
 0x11e   : > { %1830 = vperm.xlu1 %9103, %v10464_v53   ;;  %v10511_v30 = vpop.permute.xlu0 %1401 }
 0x11f   : > { %16205 = vst [vmem:[#allocation113_spill] sm:$0xff] %v10511_v30 }
 0x120   : > { %8442 = vmatmul.mubr.msk.bf16.gmra.mxu0 %vm808_vm0, %v1481_v23  ;;  %2981 = vperm.xlu0 %9120, %v10483_v49   ;;  %v1459_v23 = vmul.f32 %v10453_v21, %v10471_v63  ;;  %v563_v21 = vmul.f32 %v10113_v26, %v10490_v47  ;;  %v1269_v26 = vrot.slane %v9887_v41, 1 }
 0x121   : > { %v10496_v4 = vpop.permute.xlu1 %471  ;;  %8445 = vmatprep.mubr.msk.bf16.mxu0 %vm808_vm0, %v1482_v2  ;;  %v10515_v2 = vsel %vm319_vm1, %v300_v48, %v301_v50  ;;  %v10529_v50 = vld [vmem:[%s15458_s0 + $0xa0] sm:$0xff]  ;;  %v10535_v48 = vsel %vm1283_vm2, %v1266_v17, %v1267_v40 }
 0x122   : > { %16204 = vst [vmem:[#allocation112_spill] sm:$0xff] %v10496_v4  ;;  %v561_v13 = vmul.f32 %v10496_v4, %v10475_v14  ;;  %1838 = vperm.xlu1 %9103, %v10506_v39   ;;  %v1458_v4 = vmul.f32 %v10415_v12, %v10494_v15  ;;  %16207 = vst [vmem:[#allocation115_spill] sm:$0xff] %v10529_v50  ;;  %v10572_v12 = vld [vmem:[%s15458_s0 + $0xc0] sm:$0xff]  ;;  %v305_v15 = vrot.slane %v9905_v58, 7 }
 0x123   : > { %16208 = vst [vmem:[#allocation116_spill] sm:$0xff] %v10535_v48  ;;  %16214 = vst [vmem:[#allocation122_spill] sm:$0xff] %v10572_v12 }
 0x124   : > { %v584_v18 = vpack.c.bf16 %v561_v13, %v560_v35  ;;  %2985 = vperm.xlu0 %9120, %v10324_v3   ;;  %v1483_v6 = vpack.c.bf16 %v1459_v23, %v1458_v4  ;;  %v10537_v35 = vpop.permute.xlu0 %1417  ;;  %v10542_v4 = vsel %vm1283_vm2, %v1265_v28, %v1266_v17  ;;  %v10547_v23 = vld [vmem:[%s15458_s0 + $0x58] sm:$0xff] }
 0x125   : > { %v10522_v63 = vpop.permute.xlu1 %476  ;;  %16209 = vst [vmem:[#allocation117_spill] sm:$0xff] %v10537_v35  ;;  %16210 = vst [vmem:[#allocation118_spill] sm:$0xff] %v10542_v4 }
 0x126   : > { %16206 = vst [vmem:[#allocation114_spill] sm:$0xff] %v10522_v63  ;;  %v562_v62 = vmul.f32 %v10522_v63, %v10515_v2  ;;  %1846 = vperm.xlu1 %9103, %v10529_v50   ;;  %8409 = vmatprep.mubr.msk.bf16.mxu1 %vm808_vm0, %v584_v18  ;;  %v1461_v18 = vmul.f32 %v10467_v38, %v10535_v48  ;;  %v303_v38 = vrot.slane %v9887_v41, 7  ;;  %v304_v48 = vrot.slane %v9884_v9, 7 }
 0x128   : > { %v585_v13 = vpack.c.bf16 %v563_v21, %v562_v62  ;;  %8446 = vmatmul.mubr.msk.bf16.gmra.mxu0 %vm808_vm0, %v1483_v6  ;;  %2997 = vperm.xlu0 %9120, %v10547_v23   ;;  %v10555_v21 = vld [vmem:[%s15458_s0 + $0xb0] sm:$0xff]  ;;  %v10561_v28 = vpop.permute.xlu0 %1433  ;;  %v1268_v62 = vrot.slane %v9867_v55, 1  ;;  %v10618_v59 = vsel %vm319_vm1, %v303_v38, %v304_v48  ;;  %v10655_v19 = vsel %vm319_vm1, %v304_v48, %v305_v15 }
 0x129   : > { %16211 = vst [vmem:[#allocation119_spill] sm:$0xff] %v10555_v21  ;;  %16213 = vst [vmem:[#allocation121_spill] sm:$0xff] %v10561_v28 }
 0x12a   : > { %1854 = vperm.xlu1 %9103, %v10555_v21   ;;  %v10558_v6 = vpop.permute.xlu1 %1381  ;;  %8410 = vmatmul.mubr.msk.bf16.gmra.mxu1 %vm808_vm0, %v585_v13 }
 0x12b   : > { %16212 = vst [vmem:[#allocation120_spill] sm:$0xff] %v10558_v6  ;;  %v1460_v17 = vmul.f32 %v10558_v6, %v10542_v4  ;;  %v10580_v6 = vsel %vm1283_vm2, %v1267_v40, %v1268_v62 }
 0x12c   : > { %3001 = vperm.xlu0 %9120, %v10398_v43   ;;  %16216 = vst [vmem:[#allocation124_spill] sm:$0xff] %v10580_v6  ;;  %v10586_v41 = vpop.permute.xlu0 %1766 }
 0x12d   : > { %v1484_v63 = vpack.c.bf16 %v1461_v18, %v1460_v17  ;;  %v10584_v18 = vsel %vm1283_vm2, %v1268_v62, %v1269_v26  ;;  %16218 = vst [vmem:[#allocation126_spill] sm:$0xff] %v10586_v41  ;;  %v10591_v17 = vld [vmem:[%s15458_s0 + $0x78] sm:$0xff]  ;;  %v10604_v62 = vld [vmem:[%s15458_s0 + $0xd0] sm:$0xff] }
 0x12e   : > { %1862 = vperm.xlu1 %9103, %v10572_v12   ;;  %v10575_v13 = vpop.permute.xlu1 %1389  ;;  %16217 = vst [vmem:[#allocation125_spill] sm:$0xff] %v10584_v18  ;;  %16220 = vst [vmem:[#allocation127_spill] sm:$0xff] %v10604_v62 }
 0x12f   : > { %16215 = vst [vmem:[#allocation123_spill] sm:$0xff] %v10575_v13  ;;  %8449 = vmatprep.mubr.msk.bf16.mxu0 %vm808_vm0, %v1484_v63  ;;  %v16219_v63 = vrot.slane %v9867_v55, 7  ;;  %v1462_v55 = vmul.f32 %v10575_v13, %v10580_v6  ;;  %v10630_v13 = vld [vmem:[%s15458_s0 + $0xe0] sm:$0xff]  ;;  %v1271_v6 = vrot.slane %v9905_v58, 1 }
 0x130   : > { %3013 = vperm.xlu0 %9120, %v10591_v17   ;;  %16222 = vst [vmem:[#allocation129_spill] sm:$0xff] %v10630_v13 }
 0x131   : > { %v10599_v40 = vsel %vm319_vm1, %v16219_v63, %v303_v38  ;;  %v10637_v38 = vsel %vm319_vm1, %v305_v15, %v306_v33 }
 0x132   : > { %1870 = vperm.xlu1 %9103, %v10604_v62   ;;  %v10607_v4 = vpop.permute.xlu1 %1393  ;;  %v564_v25 = vmul.f32 %v10130_v32, %v10599_v40  ;;  %v1270_v32 = vrot.slane %v9884_v9, 1  ;;  %v10662_v9 = vld [vmem:[%s15458_s0 + $0xf0] sm:$0xff] }
 0x133   : > { %16221 = vst [vmem:[#allocation128_spill] sm:$0xff] %v10607_v4  ;;  %v1463_v63 = vmul.f32 %v10607_v4, %v10584_v18  ;;  %v10650_v18 = vld [vmem:[%s15458_s0 + $0x98] sm:$0xff]  ;;  %16225 = vst [vmem:[#allocation132_spill] sm:$0xff] %v10662_v9 }
 0x134   : > { %3017 = vperm.xlu0 %9120, %v10464_v53   ;;  %v10672_v15 = vsel %vm1283_vm2, %v1270_v32, %v1271_v6 }
 0x135   : > { %v1485_v60 = vpack.c.bf16 %v1463_v63, %v1462_v55  ;;  %v10633_v55 = vpop.permute.xlu0 %1778  ;;  %16227 = vst [vmem:[#allocation134_spill] sm:$0xff] %v10672_v15 }
 0x136   : > { %1878 = vperm.xlu1 %9103, %v10630_v13   ;;  %16223 = vst [vmem:[#allocation130_spill] sm:$0xff] %v10633_v55 }
 0x137   : > { %v10639_v63 = vpop.permute.xlu1 %491  ;;  %8450 = vmatmul.mubr.msk.bf16.gmra.mxu0 %vm808_vm0, %v1485_v60  ;;  %v567_v60 = vmul.f32 %v10163_v61, %v10637_v38  ;;  %v10680_v61 = vsel %vm1283_vm2, %v1269_v26, %v1270_v32  ;;  %v1272_v26 = vrot.slane %v9902_v22, 1 }
 0x138   : > { %16224 = vst [vmem:[#allocation131_spill] sm:$0xff] %v10639_v63  ;;  %v565_v4 = vmul.f32 %v10639_v63, %v10618_v59  ;;  %3029 = vperm.xlu0 %9120, %v10650_v18   ;;  %16230 = vst [vmem:[#allocation136_spill] sm:$0xff] %v10680_v61 }
 0x139   : > { %v10674_v48 = vpop.permute.xlu0 %1786 }
 0x13a   : > { %v586_v7 = vpack.c.bf16 %v565_v4, %v564_v25  ;;  %1886 = vperm.xlu1 %9103, %v10662_v9   ;;  %16228 = vst [vmem:[#allocation135_spill] sm:$0xff] %v10674_v48  ;;  %v16229_v4 = vmov 5  }
 0x13b   : > { %v10665_v58 = vpop.permute.xlu1 %496 }
 0x13c   : > { %16226 = vst [vmem:[#allocation133_spill] sm:$0xff] %v10665_v58  ;;  %v566_v63 = vmul.f32 %v10665_v58, %v10655_v19  ;;  %8413 = vmatprep.mubr.msk.bf16.mxu1 %vm808_vm0, %v586_v7  ;;  %3033 = vperm.xlu0 %9120, %v10529_v50   ;;  %v10685_v58 = vld [vmem:[%s15460_s2 + $0xd8] sm:$0xff]   ;;  %v1465_v7 = vmul.f32 %v10511_v30, %v10672_v15 }
 0x13d   : > { %8585 = vmatprep.subr.bf16.mxu0 %v10685_v58  ;;  %v10704_v30 = vpop.permute.xlu0 %1794 }
 0x13e   : > { %v587_v25 = vpack.c.bf16 %v567_v60, %v566_v63  ;;  %9104 = vset.pattern.permute.xlu1 %v16229_v4  ;;  %v10696_v63 = vld [vmem:[%s15458_s0 + $0xb8] sm:$0xff]  ;;  %v1273_v60 = vrot.slane %v9922_v45, 1  ;;  %16233 = vst [vmem:[#allocation139_spill] sm:$0xff] %v10704_v30 }
 0x13f   : > { %2504 = vperm.xlu1 %9104, %v10388_v0   ;;  %16232 = vst [vmem:[#allocation138_spill] sm:$0xff] %v10696_v63 }
 0x140   : > { %v10690_v9 = vpop.permute.xlu1 %1397  ;;  %8414 = vmatmul.mubr.msk.bf16.gmra.mxu1 %vm808_vm0, %v587_v25  ;;  %3045 = vperm.xlu0 %9120, %v10696_v63   ;;  %v307_v25 = vrot.slane %v9922_v45, 7  ;;  %v10718_v22 = vsel %vm1283_vm2, %v1272_v26, %v1273_v60 }
 0x141   : > { %16231 = vst [vmem:[#allocation137_spill] sm:$0xff] %v10690_v9  ;;  %v1464_v32 = vmul.f32 %v10690_v9, %v10680_v61  ;;  %v10714_v9 = vsel %vm1283_vm2, %v1271_v6, %v1272_v26  ;;  %16236 = vst [vmem:[#allocation142_spill] sm:$0xff] %v10718_v22  ;;  %v10728_v61 = vpop.permute.xlu0 %1802  ;;  %v10733_v6 = vld [vmem:[%s15458_s0 + $0xd8] sm:$0xff]  ;;  %v310_v26 = vrot.slane %v9936_v51, 7 }
 0x142   : > { %16235 = vst [vmem:[#allocation141_spill] sm:$0xff] %v10714_v9  ;;  %v10724_v45 = vsel %vm319_vm1, %v306_v33, %v307_v25  ;;  %16239 = vst [vmem:[#allocation145_spill] sm:$0xff] %v10728_v61 }
 0x143   : > { %v1486_v15 = vpack.c.bf16 %v1465_v7, %v1464_v32  ;;  %2512 = vperm.xlu1 %9104, %v10217_v31   ;;  %v308_v7 = vrot.slane %v9919_v52, 7  ;;  %16237 = vst [vmem:[#allocation143_spill] sm:$0xff] %v10724_v45  ;;  %16240 = vst [vmem:[#allocation146_spill] sm:$0xff] %v10733_v6 }
 0x144   : > { %v10708_v54 = vpop.permute.xlu1 %1405  ;;  %3049 = vperm.xlu0 %9120, %v10572_v12  }
 0x145   : > { %16234 = vst [vmem:[#allocation140_spill] sm:$0xff] %v10708_v54  ;;  %8453 = vmatprep.mubr.msk.bf16.mxu0 %vm808_vm0, %v1486_v15  ;;  %v309_v15 = vrot.slane %v9939_v1, 7  ;;  %v1466_v62 = vmul.f32 %v10708_v54, %v10714_v9  ;;  %v10745_v12 = vsel %vm319_vm1, %v307_v25, %v308_v7  ;;  %v1274_v25 = vrot.slane %v9919_v52, 1 }
 0x146   : > { %16242 = vst [vmem:[#allocation147_spill] sm:$0xff] %v10745_v12 }
 0x147   : > { %2516 = vperm.xlu1 %9104, %v10421_v27   ;;  %v10753_v54 = vsel %vm319_vm1, %v309_v15, %v310_v26 }
 0x148   : > { %v10726_v32 = vpop.permute.xlu1 %1409  ;;  %3061 = vperm.xlu0 %9120, %v10733_v6   ;;  %v568_v6 = vmul.f32 %v10185_v42, %v10724_v45  ;;  %16243 = vst [vmem:[#allocation148_spill] sm:$0xff] %v10753_v54  ;;  %v10766_v42 = vsel %vm319_vm1, %v308_v7, %v309_v15  ;;  %v10791_v15 = vsel %vm1283_vm2, %v1273_v60, %v1274_v25  ;;  %v16253_v60 = vld [vmem:[#allocation31_spill] sm:$0xff] }
 0x149   : > { %16238 = vst [vmem:[#allocation144_spill] sm:$0xff] %v10726_v32  ;;  %v1467_v33 = vmul.f32 %v10726_v32, %v10718_v22  ;;  %v10762_v32 = vpop.permute.xlu0 %1810  ;;  %16246 = vst [vmem:[#allocation151_spill] sm:$0xff] %v10766_v42  ;;  %v571_v22 = vmul.f32 %v10200_v8, %v10753_v54  ;;  %v16267_v54 = vld [vmem:[#allocation81_spill] sm:$0xff] }
 0x14a   : > { %16245 = vst [vmem:[#allocation150_spill] sm:$0xff] %v10762_v32  ;;  %16250 = vst [vmem:[#allocation155_spill] sm:$0xff] %v10791_v15 }
 0x14b   : > { %v1487_v16 = vpack.c.bf16 %v1467_v33, %v1466_v62  ;;  %9106 = vset.pattern.permute.xlu1 %v16241_v11  ;;  %v1275_v33 = vrot.slane %v9939_v1, 1 }
 0x14c   : > { %2957 = vperm.xlu1 %9106, %v10136_v20   ;;  %3065 = vperm.xlu0 %9120, %v10630_v13  }
 0x14d   : > { %v10755_v9 = vpop.permute.xlu1 %511  ;;  %8454 = vmatmul.mubr.msk.bf16.gmra.mxu0 %vm808_vm0, %v1487_v16  ;;  %v10774_v16 = vld [vmem:[%s15458_s0 + $0xf8] sm:$0xff] }
 0x14e   : > { %16244 = vst [vmem:[#allocation149_spill] sm:$0xff] %v10755_v9  ;;  %v569_v62 = vmul.f32 %v10755_v9, %v10745_v12  ;;  %16247 = vst [vmem:[#allocation152_spill] sm:$0xff] %v10774_v16 }
 0x150   : > { %v588_v13 = vpack.c.bf16 %v569_v62, %v568_v6  ;;  %2961 = vperm.xlu1 %9106, %v10217_v31   ;;  %3077 = vperm.xlu0 %9120, %v10774_v16   ;;  %v10786_v6 = vsel %vm1283_vm2, %v1274_v25, %v1275_v33  ;;  %v10793_v62 = vpop.permute.xlu0 %1818  ;;  %v1277_v25 = vrot.slane %v16253_v60, 1 }
 0x151   : > { %v10777_v52 = vpop.permute.xlu1 %516  ;;  %16249 = vst [vmem:[#allocation154_spill] sm:$0xff] %v10786_v6  ;;  %16251 = vst [vmem:[#allocation156_spill] sm:$0xff] %v10793_v62 }
 0x152   : > { %16248 = vst [vmem:[#allocation153_spill] sm:$0xff] %v10777_v52  ;;  %v570_v1 = vmul.f32 %v10777_v52, %v10766_v42  ;;  %v10781_v7 = vpop.f32.mrf.mxu0  ;;  %8417 = vmatprep.mubr.msk.bf16.mxu1 %vm808_vm0, %v588_v13  ;;  %v1469_v13 = vmul.f32 %v10537_v35, %v10786_v6  ;;  %v311_v35 = vrot.slane %v16253_v60, 7  ;;  %v16259_v60 = vld [vmem:[#allocation30_spill] sm:$0xff] }
 0x154   : > { %v589_v31 = vpack.c.bf16 %v571_v22, %v570_v1  ;;  %9107 = vset.pattern.permute.xlu1 %v16229_v4  ;;  %v10795_v8 = vpop.f32.mrf.mxu0  ;;  %v1276_v1 = vrot.slane %v9936_v51, 1  ;;  %v10812_v21 = vpop.permute.xlu0 %1826 }
 0x155   : > { %2520 = vperm.xlu1 %9107, %v10236_v57   ;;  %16255 = vst [vmem:[#allocation158_spill] sm:$0xff] %v10812_v21 }
 0x156   : > { %v10800_v52 = vpop.permute.xlu1 %1413  ;;  %8418 = vmatmul.mubr.msk.bf16.gmra.mxu1 %vm808_vm0, %v589_v31  ;;  %v10807_v16 = vpop.f32.mrf.mxu0  ;;  %v15666_v31 = vmov 7   ;;  %v10819_v51 = vsel %vm1283_vm2, %v1275_v33, %v1276_v1  ;;  %v16262_v33 = vld [vmem:[#allocation36_spill] sm:$0xff] }
 0x157   : > { %16252 = vst [vmem:[#allocation157_spill] sm:$0xff] %v10800_v52  ;;  %v1468_v22 = vmul.f32 %v10800_v52, %v10791_v15  ;;  %9123 = vset.pattern.permute.xlu0 %v15666_v31  ;;  %16256 = vst [vmem:[#allocation159_spill] sm:$0xff] %v10819_v51  ;;  %v312_v52 = vrot.slane %v16259_v60, 7  ;;  %v10834_v31 = vsel %vm319_vm1, %v310_v26, %v311_v35  ;;  %v313_v6 = vrot.slane %v16262_v33, 7 }
 0x158   : > { %3406 = vperm.xlu0 %9123, %v10136_v20   ;;  %16261 = vst [vmem:[#allocation162_spill] sm:$0xff] %v10834_v31  ;;  %v10841_v15 = vpop.permute.xlu0 %1834  ;;  %v572_v45 = vmul.f32 %v16267_v54, %v10834_v31  ;;  %v16272_v54 = vld [vmem:[#allocation77_spill] sm:$0xff] }
 0x159   : > { %v1488_v9 = vpack.c.bf16 %v1469_v13, %v1468_v22  ;;  %2528 = vperm.xlu1 %9107, %v10281_v36   ;;  %v10823_v13 = vsel %vm1283_vm2, %v1276_v1, %v1277_v25  ;;  %v10826_v22 = vpop.f32.mrf.mxu0  ;;  %16263 = vst [vmem:[#allocation36_spill] sm:$0xff] %v10841_v15  ;;  %v10849_v26 = vsel %vm319_vm1, %v311_v35, %v312_v52  ;;  %v1278_v35 = vrot.slane %v16259_v60, 1 }
 0x15a   : > { %v10810_v63 = vpop.permute.xlu1 %1421  ;;  %16257 = vst [vmem:[#allocation160_spill] sm:$0xff] %v10823_v13  ;;  %16258 = vst [vmem:[#allocation161_spill] sm:$0xff] %v10826_v22  ;;  %v16264_v22 = vld [vmem:[#allocation73_spill] sm:$0xff] }
 0x15b   : > { %16254 = vst [vmem:[#allocation31_spill] sm:$0xff] %v10810_v63  ;;  %8457 = vmatprep.mubr.msk.bf16.mxu0 %vm808_vm0, %v1488_v9  ;;  %v1470_v1 = vmul.f32 %v10810_v63, %v10819_v51  ;;  %v10844_v50 = vpop.f32.mrf.mxu0  ;;  %16266 = vst [vmem:[#allocation163_spill] sm:$0xff] %v10849_v26  ;;  %v16268_v63 = vld [vmem:[#allocation35_spill] sm:$0xff] }
 0x15c   : > { %3422 = vperm.xlu0 %9123, %v16264_v22   ;;  %16265 = vst [vmem:[#allocation73_spill] sm:$0xff] %v10844_v50  ;;  %v10872_v50 = vsel %vm319_vm1, %v312_v52, %v313_v6  ;;  %v16279_v52 = vld [vmem:[#allocation80_spill] sm:$0xff] }
 0x15d   : > { %2532 = vperm.xlu1 %9107, %v10483_v49   ;;  %16274 = vst [vmem:[#allocation165_spill] sm:$0xff] %v10872_v50 }
 0x15e   : > { %v10830_v9 = vpop.permute.xlu1 %1425 }
 0x15f   : > { %16260 = vst [vmem:[#allocation30_spill] sm:$0xff] %v10830_v9  ;;  %v1471_v20 = vmul.f32 %v10830_v9, %v10823_v13  ;;  %v16269_v9 = vrot.slane %v16268_v63, 7 }
 0x160   : > { %3438 = vperm.xlu0 %9123, %v16272_v54  }
 0x161   : > { %v1489_v42 = vpack.c.bf16 %v1471_v20, %v1470_v1  ;;  %9108 = vset.pattern.permute.xlu1 %v16241_v11  ;;  %v10858_v51 = vsel %vm319_vm1, %v313_v6, %v16269_v9  ;;  %v1279_v20 = vrot.slane %v16262_v33, 1  ;;  %v16275_v9 = vld [vmem:[#allocation83_spill] sm:$0xff] }
 0x162   : > { %2973 = vperm.xlu1 %9108, %v16264_v22   ;;  %16270 = vst [vmem:[#allocation35_spill] sm:$0xff] %v10858_v51  ;;  %v10868_v22 = vpop.f32.mrf.mxu0  ;;  %v575_v31 = vmul.f32 %v16275_v9, %v10858_v51 }
 0x163   : > { %v10860_v13 = vpop.permute.xlu1 %531  ;;  %8458 = vmatmul.mubr.msk.bf16.gmra.mxu0 %vm808_vm0, %v1489_v42  ;;  %16273 = vst [vmem:[#allocation77_spill] sm:$0xff] %v10868_v22  ;;  %v10877_v42 = vpop.permute.xlu0 %1842  ;;  %v10883_v60 = vsel %vm1283_vm2, %v1278_v35, %v1279_v20 }
 0x164   : > { %16271 = vst [vmem:[#allocation164_spill] sm:$0xff] %v10860_v13  ;;  %v573_v1 = vmul.f32 %v10860_v13, %v10849_v26  ;;  %16276 = vst [vmem:[#allocation166_spill] sm:$0xff] %v10877_v42  ;;  %3454 = vperm.xlu0 %9123, %v16279_v52   ;;  %v10889_v6 = vpop.f32.mrf.mxu0 }
 0x165   : > { %16278 = vst [vmem:[#allocation168_spill] sm:$0xff] %v10883_v60  ;;  %16280 = vst [vmem:[#allocation80_spill] sm:$0xff] %v10889_v6  ;;  %v16294_v6 = vld [vmem:[#allocation43_spill] sm:$0xff] }
 0x166   : > { %v590_v12 = vpack.c.bf16 %v573_v1, %v572_v45  ;;  %2977 = vperm.xlu1 %9108, %v10281_v36   ;;  %v10894_v36 = vsel %vm1283_vm2, %v1277_v25, %v1278_v35  ;;  %v1473_v1 = vmul.f32 %v10561_v28, %v10883_v60  ;;  %v10910_v25 = vpop.f32.mrf.mxu0  ;;  %v1893_v22 = vmul.f32 %v10586_v41, %v16294_v6 }
 0x167   : > { %v10879_v13 = vpop.permute.xlu1 %536  ;;  %16281 = vst [vmem:[#allocation169_spill] sm:$0xff] %v10894_v36  ;;  %16284 = vst [vmem:[#allocation172_spill] sm:$0xff] %v10910_v25  ;;  %v15711_v6 = vmov 8  }
 0x168   : > { %16277 = vst [vmem:[#allocation167_spill] sm:$0xff] %v10879_v13  ;;  %v574_v33 = vmul.f32 %v10879_v13, %v10872_v50  ;;  %8421 = vmatprep.mubr.msk.bf16.mxu1 %vm808_vm0, %v590_v12  ;;  %v10902_v12 = vpop.permute.xlu0 %1850  ;;  %v10921_v13 = vld [vmem:[%s15458_s0 + $0xa8] sm:$0xff]  ;;  %v10924_v25 = vpop.f32.mrf.mxu0 }
 0x169   : > { %16283 = vst [vmem:[#allocation171_spill] sm:$0xff] %v10902_v12  ;;  %16286 = vst [vmem:[#allocation174_spill] sm:$0xff] %v10924_v25 }
 0x16a   : > { %v591_v45 = vpack.c.bf16 %v575_v31, %v574_v33  ;;  %9109 = vset.pattern.permute.xlu1 %v16229_v4  ;;  %v10907_v31 = vld [vmem:[%s15458_s0 + $0x88] sm:$0xff]  ;;  %v1280_v33 = vrot.slane %v16268_v63, 1 }
 0x16b   : > { %2536 = vperm.xlu1 %9109, %v10324_v3   ;;  %3470 = vperm.xlu0 %9123, %v10907_v31  }
 0x16c   : > { %v10899_v9 = vpop.permute.xlu1 %1429  ;;  %8422 = vmatmul.mubr.msk.bf16.gmra.mxu1 %vm808_vm0, %v591_v45  ;;  %v10929_v63 = vsel %vm1283_vm2, %v1279_v20, %v1280_v33  ;;  %v10948_v20 = vpop.f32.mrf.mxu0 }
 0x16d   : > { %16282 = vst [vmem:[#allocation170_spill] sm:$0xff] %v10899_v9  ;;  %v1472_v35 = vmul.f32 %v10899_v9, %v10894_v36  ;;  %16287 = vst [vmem:[#allocation175_spill] sm:$0xff] %v10929_v63  ;;  %v10937_v9 = vpop.permute.xlu0 %1858 }
 0x16e   : > { %16290 = vst [vmem:[#allocation177_spill] sm:$0xff] %v10937_v9  ;;  %16293 = vst [vmem:[#allocation180_spill] sm:$0xff] %v10948_v20  ;;  %v9253_v20 = vld [vmem:[%s9701_s18 + $0x40] sm:$0xff] }
 0x16f   : > { %v1490_v28 = vpack.c.bf16 %v1473_v1, %v1472_v35  ;;  %2544 = vperm.xlu1 %9109, %v10366_v44   ;;  %3486 = vperm.xlu0 %9123, %v10921_v13   ;;  %v16288_v1 = vrot.slane %v9708_v46, 1 }
 0x170   : > { %v10916_v45 = vpop.permute.xlu1 %1437 }
 0x171   : > { %16285 = vst [vmem:[#allocation173_spill] sm:$0xff] %v10916_v45  ;;  %8461 = vmatprep.mubr.msk.bf16.mxu0 %vm808_vm0, %v1490_v28  ;;  %v10935_v35 = vsel %vm1283_vm2, %v1280_v33, %v16288_v1  ;;  %v10945_v28 = vld [vmem:[%s15458_s0 + $0xc8] sm:$0xff]  ;;  %v1474_v46 = vmul.f32 %v10916_v45, %v10929_v63  ;;  %v9243_v1 = vld [vmem:[%s9701_s18] sm:$0xff] }
 0x172   : > { %16289 = vst [vmem:[#allocation176_spill] sm:$0xff] %v10935_v35  ;;  %16292 = vst [vmem:[#allocation179_spill] sm:$0xff] %v10945_v28  ;;  %v2214_v36 = vpack.c.bf16 %v9244_v10, %v9243_v1  ;;  %v10965_v45 = vld [vmem:[%s15458_s0 + $0xe8] sm:$0xff]  ;;  %v10968_v10 = vpop.f32.mrf.mxu0 }
 0x173   : > { %2548 = vperm.xlu1 %9109, %v10547_v23   ;;  %3502 = vperm.xlu0 %9123, %v10945_v28   ;;  %v10960_v28 = vpop.permute.xlu0 %1866  ;;  %16296 = vst [vmem:[#allocation182_spill] sm:$0xff] %v10965_v45  ;;  %16297 = vst [vmem:[#allocation183_spill] sm:$0xff] %v10968_v10  ;;  %v16300_v1 = vld [vmem:[#allocation55_spill] sm:$0xff] }
 0x174   : > { %v10940_v60 = vpop.permute.xlu1 %1441  ;;  %16295 = vst [vmem:[#allocation181_spill] sm:$0xff] %v10960_v28  ;;  %v10980_v63 = vpop.f32.mrf.mxu0 }
 0x175   : > { %16291 = vst [vmem:[#allocation178_spill] sm:$0xff] %v10940_v60  ;;  %v1475_v33 = vmul.f32 %v10940_v60, %v10935_v35  ;;  %v1896_v60 = vmul.f32 %v10633_v55, %v16300_v1  ;;  %16301 = vst [vmem:[#allocation55_spill] sm:$0xff] %v10980_v63 }
 0x177   : > { %v1491_v25 = vpack.c.bf16 %v1475_v33, %v1474_v46  ;;  %9110 = vset.pattern.permute.xlu1 %v16241_v11  ;;  %3518 = vperm.xlu0 %9123, %v10965_v45   ;;  %v16299_v33 = vld [vmem:[#allocation44_spill] sm:$0xff]  ;;  %v10992_v55 = vpop.permute.xlu0 %1874 }
 0x178   : > { %2989 = vperm.xlu1 %9110, %v16272_v54   ;;  %v9247_v45 = vld [vmem:[%s9701_s18 + $0x10] sm:$0xff] }
 0x179   : > { %v10970_v46 = vpop.permute.xlu1 %1770  ;;  %8462 = vmatmul.mubr.msk.bf16.gmra.mxu0 %vm808_vm0, %v1491_v25  ;;  %v9246_v25 = vld [vmem:[%s9701_s18 + $0x18] sm:$0xff] }
 0x17a   : > { %16298 = vst [vmem:[#allocation184_spill] sm:$0xff] %v10970_v46  ;;  %v1894_v54 = vmul.f32 %v10970_v46, %v16299_v33  ;;  %8513 = vmatprep.mubr.msk.bf16.mxu0 %vm808_vm0, %v2214_v36  ;;  %v2215_v10 = vpack.c.bf16 %v9246_v25, %v9247_v45  ;;  %v16303_v46 = vld [vmem:[#allocation53_spill] sm:$0xff]  ;;  %v9165_v45 = vld [vmem:[%s15460_s2 + $0xd0] sm:$0xff]  }
 0x17b   : > { %9138 = vset.pattern.permute.xlu0 %v15711_v6  ;;  %16304 = vst [vmem:[#allocation53_spill] sm:$0xff] %v10992_v55  ;;  %v16305_v6 = vld [vmem:[#allocation56_spill] sm:$0xff] }
 0x17c   : > { %v1925_v41 = vpack.c.bf16 %v1894_v54, %v1893_v22  ;;  %2993 = vperm.xlu1 %9110, %v10366_v44   ;;  %3851 = vperm.xlu0 %9138, %v10388_v0   ;;  %v9248_v22 = vld [vmem:[%s9701_s18 + $0x28] sm:$0xff]  ;;  %v9249_v54 = vld [vmem:[%s9701_s18 + $0x20] sm:$0xff]  ;;  %v1898_v63 = vmul.f32 %v10674_v48, %v16305_v6  ;;  %v9161_v0 = vld [vmem:[%s15460_s2 + $0xb0] sm:$0xff]  }
 0x17d   : > { %v10982_v35 = vpop.permute.xlu1 %1774  ;;  %v2216_v44 = vpack.c.bf16 %v9248_v22, %v9249_v54  ;;  %v16308_v22 = vld [vmem:[#allocation59_spill] sm:$0xff] }
 0x17e   : > { %16302 = vst [vmem:[#allocation185_spill] sm:$0xff] %v10982_v35  ;;  %v1895_v36 = vmul.f32 %v10982_v35, %v16303_v46  ;;  %8473 = vmatprep.mubr.msk.bf16.mxu1 %vm808_vm0, %v1925_v41  ;;  %v11003_v41 = vpop.f32.mrf.mxu0 }
 0x17f   : > { %16306 = vst [vmem:[#allocation186_spill] sm:$0xff] %v11003_v41  ;;  %v9252_v41 = vld [vmem:[%s9701_s18 + $0x48] sm:$0xff] }
 0x180   : > { %v1926_v33 = vpack.c.bf16 %v1896_v60, %v1895_v36  ;;  %9111 = vset.pattern.permute.xlu1 %v16229_v4  ;;  %v16309_v36 = vld [vmem:[#allocation69_spill] sm:$0xff]  ;;  %3863 = vperm.xlu0 %9138, %v10421_v27   ;;  %v9167_v27 = vld [vmem:[%s15460_s2 + $0xc0] sm:$0xff]  }
 0x181   : > { %2552 = vperm.xlu1 %9111, %v10398_v43   ;;  %v11006_v25 = vpop.permute.xlu1 %1782  ;;  %8514 = vmatmul.mubr.msk.bf16.vlgmr.msra.gmra.mxu0 %vm808_vm0, %v2215_v10  ;;  %v1900_v54 = vmul.f32 %v10704_v30, %v16309_v36  ;;  %v11017_v10 = vpop.permute.xlu0 %1882  ;;  %v16313_v30 = vld [vmem:[#allocation67_spill] sm:$0xff]  ;;  %v2218_v36 = vpack.c.bf16 %v9252_v41, %v9253_v20  ;;  %v1904_v41 = vmul.f32 %v10762_v32, %v10271_v24 }
 0x182   : > { %16307 = vst [vmem:[#allocation187_spill] sm:$0xff] %v11006_v25  ;;  %v1897_v60 = vmul.f32 %v11006_v25, %v16308_v22  ;;  %8474 = vmatmul.mubr.msk.bf16.vlgmr.msra.gmra.mxu1 %vm808_vm0, %v1926_v33  ;;  %8517 = vmatprep.mubr.msk.bf16.mxu0 %vm808_vm0, %v2216_v44  ;;  %16310 = vst [vmem:[#allocation188_spill] sm:$0xff] %v11017_v10  ;;  %v9162_v25 = vld [vmem:[%s15460_s2 + $0xa8] sm:$0xff]   ;;  %v11025_v33 = vpop.f32.mrf.mxu0  ;;  %v9251_v44 = vld [vmem:[%s9701_s18 + $0x30] sm:$0xff] }
 0x183   : > { %8546 = vmatpush3.bf16.msra.mxu1 %v10623_v5  ;;  %8586 = vmatpush3.bf16.msra.mxu0 %v10685_v58  ;;  %v9166_v5 = vld [vmem:[%s15460_s2 + $0xc8] sm:$0xff]   ;;  %16311 = vst [vmem:[#allocation189_spill] sm:$0xff] %v11025_v33  ;;  %v16314_v33 = vld [vmem:[#allocation70_spill] sm:$0xff] }
 0x184   : > { %v1927_v48 = vpack.c.bf16 %v1898_v63, %v1897_v60  ;;  %8547 = vmatprep.subr.bf16.mxu1 %v9161_v0  ;;  %8587 = vmatprep.subr.bf16.mxu0 %v9165_v45  ;;  %v9250_v63 = vld [vmem:[%s9701_s18 + $0x38] sm:$0xff]  ;;  %v1902_v22 = vmul.f32 %v10728_v61, %v16314_v33 }
 0x185   : > { %2560 = vperm.xlu1 %9111, %v10438_v56   ;;  %v11028_v58 = vpop.permute.xlu1 %1790  ;;  %v2217_v60 = vpack.c.bf16 %v9250_v63, %v9251_v44  ;;  %v9164_v63 = vld [vmem:[%s15460_s2 + $0xa0] sm:$0xff]   ;;  %3867 = vperm.xlu0 %9138, %v10236_v57  }
 0x186   : > { %16312 = vst [vmem:[#allocation190_spill] sm:$0xff] %v11028_v58  ;;  %v1899_v35 = vmul.f32 %v11028_v58, %v16313_v30  ;;  %8477 = vmatprep.mubr.msk.bf16.mxu1 %vm808_vm0, %v1927_v48  ;;  %v11046_v48 = vpop.f32.mrf.mxu0 }
 0x187   : > { %8548 = vmatpush3.bf16.msra.mxu1 %v9161_v0  ;;  %8588 = vmatpush3.bf16.msra.mxu0 %v9165_v45  ;;  %v11056_v45 = vpop.permute.xlu0 %1890 }
 0x188   : > { %v1928_v6 = vpack.c.bf16 %v1900_v54, %v1899_v35  ;;  %8549 = vmatprep.subr.bf16.mxu1 %v9162_v25  ;;  %8589 = vmatprep.subr.bf16.mxu0 %v9166_v5  ;;  %v16316_v35 = vld [vmem:[#allocation74_spill] sm:$0xff]  ;;  %16317 = vst [vmem:[#allocation70_spill] sm:$0xff] %v11056_v45  ;;  %v11060_v44 = vpop.f32.mrf.mxu0 }
 0x189   : > { %2564 = vperm.xlu1 %9111, %v10591_v17   ;;  %v11049_v20 = vpop.permute.xlu1 %1798  ;;  %8518 = vmatmul.mubr.msk.bf16.gmra.mxu0 %vm808_vm0, %v2217_v60  ;;  %16318 = vst [vmem:[#allocation74_spill] sm:$0xff] %v11060_v44 }
 0x18a   : > { %16315 = vst [vmem:[#allocation67_spill] sm:$0xff] %v11049_v20  ;;  %v1901_v0 = vmul.f32 %v11049_v20, %v16316_v35  ;;  %8478 = vmatmul.mubr.msk.bf16.gmra.mxu1 %vm808_vm0, %v1928_v6  ;;  %8521 = vmatprep.mubr.msk.bf16.mxu0 %vm808_vm0, %v2218_v36  ;;  %v9254_v6 = vld [vmem:[%s9701_s18 + $0x58] sm:$0xff]  ;;  %v9255_v36 = vld [vmem:[%s9701_s18 + $0x50] sm:$0xff]  ;;  %v1906_v20 = vmul.f32 %v10793_v62, %v10292_v37 }
 0x18b   : > { %8550 = vmatpush3.bf16.msra.mxu1 %v9162_v25  ;;  %8590 = vmatpush3.bf16.msra.mxu0 %v9166_v5  ;;  %v2219_v61 = vpack.c.bf16 %v9254_v6, %v9255_v36  ;;  %v16320_v25 = vld [vmem:[#allocation86_spill] sm:$0xff]  ;;  %v11076_v44 = vpop.permute.xlu0 %2508  ;;  %v11078_v6 = vpop.f32.mrf.mxu0 }
 0x18c   : > { %v1929_v54 = vpack.c.bf16 %v1902_v22, %v1901_v0  ;;  %8551 = vmatprep.subr.bf16.mxu1 %v9164_v63  ;;  %8591 = vmatprep.subr.bf16.mxu0 %v9167_v27  ;;  %v9256_v22 = vld [vmem:[%s9701_s18 + $0x68] sm:$0xff]  ;;  %v9257_v0 = vld [vmem:[%s9701_s18 + $0x60] sm:$0xff]  ;;  %16321 = vst [vmem:[#allocation86_spill] sm:$0xff] %v11076_v44 }
 0x18d   : > { %9112 = vset.pattern.permute.xlu1 %v16241_v11  ;;  %v11063_v60 = vpop.permute.xlu1 %1806  ;;  %v2220_v32 = vpack.c.bf16 %v9256_v22, %v9257_v0  ;;  %3879 = vperm.xlu0 %9138, %v10483_v49   ;;  %v9261_v0 = vld [vmem:[%s9701_s18 + $0x80] sm:$0xff] }
 0x18e   : > { %16319 = vst [vmem:[#allocation191_spill] sm:$0xff] %v11063_v60  ;;  %v1903_v5 = vmul.f32 %v11063_v60, %v16320_v25  ;;  %3005 = vperm.xlu1 %9112, %v16279_v52   ;;  %8481 = vmatprep.mubr.msk.bf16.mxu1 %vm808_vm0, %v1929_v54  ;;  %v11094_v54 = vpop.f32.mrf.mxu0  ;;  %v16350_v60 = vld [vmem:[#allocation122_spill] sm:$0xff] }
 0x18f   : > { %8552 = vmatpush3.bf16.msra.mxu1 %v9164_v63  ;;  %8592 = vmatpush3.bf16.msra.mxu0 %v9167_v27 }
 0x190   : > { %v1930_v58 = vpack.c.bf16 %v1904_v41, %v1903_v5  ;;  %v9259_v5 = vld [vmem:[%s9701_s18 + $0x70] sm:$0xff] }
 0x191   : > { %v11080_v57 = vpop.permute.xlu1 %1814  ;;  %8522 = vmatmul.mubr.msk.bf16.gmra.mxu0 %vm808_vm0, %v2219_v61  ;;  %v1908_v61 = vmul.f32 %v10812_v21, %v10475_v14  ;;  %3883 = vperm.xlu0 %9138, %v10324_v3   ;;  %v1910_v3 = vmul.f32 %v10841_v15, %v10490_v47  ;;  %v9265_v15 = vld [vmem:[%s9701_s18 + $0xa0] sm:$0xff] }
 0x192   : > { %16322 = vst [vmem:[#allocation192_spill] sm:$0xff] %v11080_v57  ;;  %v1905_v52 = vmul.f32 %v11080_v57, %v10316_v29  ;;  %3009 = vperm.xlu1 %9112, %v10438_v56   ;;  %v8395_v63 = vpop.f32.mrf.mxu1  ;;  %8482 = vmatmul.mubr.msk.bf16.gmra.mxu1 %vm808_vm0, %v1930_v58  ;;  %v9258_v58 = vld [vmem:[%s9701_s18 + $0x78] sm:$0xff] }
 0x193   : > { %v11089_v27 = vadd.f32 %v8395_v63, %v10781_v7  ;;  %8525 = vmatprep.mubr.msk.bf16.mxu0 %vm808_vm0, %v2220_v32  ;;  %v2221_v7 = vpack.c.bf16 %v9258_v58, %v9259_v5  ;;  %v11118_v58 = vpop.f32.mrf.mxu0 }
 0x194   : > { %v1931_v41 = vpack.c.bf16 %v1906_v20, %v1905_v52  ;;  %v1124_v49 = vpop.f32.mrf.mxu1  ;;  %v9260_v20 = vld [vmem:[%s9701_s18 + $0x88] sm:$0xff] }
 0x195   : > { %v11097_v36 = vadd.f32 %v1124_v49, %v10795_v8  ;;  %v11099_v56 = vpop.permute.xlu1 %1822  ;;  %v2222_v52 = vpack.c.bf16 %v9260_v20, %v9261_v0  ;;  %v11110_v8 = vpop.permute.xlu0 %2524  ;;  %3895 = vperm.xlu0 %9138, %v10547_v23   ;;  %v9263_v20 = vld [vmem:[%s9701_s18 + $0x90] sm:$0xff] }
 0x196   : > { %16323 = vst [vmem:[#allocation193_spill] sm:$0xff] %v11099_v56  ;;  %v1907_v32 = vmul.f32 %v11099_v56, %v10449_v34  ;;  %9113 = vset.pattern.permute.xlu1 %v16229_v4  ;;  %v8396_v22 = vpop.f32.mrf.mxu1  ;;  %8485 = vmatprep.mubr.msk.bf16.mxu1 %vm808_vm0, %v1931_v41  ;;  %16324 = vst [vmem:[#allocation194_spill] sm:$0xff] %v11110_v8 }
 0x197   : > { %v11113_v63 = vadd.f32 %v8396_v22, %v10807_v16  ;;  %2568 = vperm.xlu1 %9113, %v10464_v53   ;;  %v9262_v22 = vld [vmem:[%s9701_s18 + $0x98] sm:$0xff] }
 0x198   : > { %v1932_v49 = vpack.c.bf16 %v1908_v61, %v1907_v32  ;;  %v1912_v61 = vmul.f32 %v10877_v42, %v10618_v59  ;;  %v2223_v0 = vpack.c.bf16 %v9262_v22, %v9263_v20 }
 0x199   : > { %v11120_v5 = vpop.permute.xlu1 %1830  ;;  %8526 = vmatmul.mubr.msk.bf16.gmra.mxu0 %vm808_vm0, %v2221_v7  ;;  %v11131_v32 = vpop.permute.xlu0 %2540  ;;  %3899 = vperm.xlu0 %9138, %v10398_v43  }
 0x19a   : > { %16325 = vst [vmem:[#allocation195_spill] sm:$0xff] %v11120_v5  ;;  %v1909_v16 = vmul.f32 %v11120_v5, %v10515_v2  ;;  %8486 = vmatmul.mubr.msk.bf16.gmra.mxu1 %vm808_vm0, %v1932_v49  ;;  %8529 = vmatprep.mubr.msk.bf16.mxu0 %vm808_vm0, %v2222_v52  ;;  %16326 = vst [vmem:[#allocation196_spill] sm:$0xff] %v11131_v32  ;;  %v11133_v7 = vpop.f32.mrf.mxu0  ;;  %v9264_v49 = vld [vmem:[%s9701_s18 + $0xa8] sm:$0xff] }
 0x19b   : > { %2576 = vperm.xlu1 %9113, %v10506_v39   ;;  %16327 = vst [vmem:[#allocation197_spill] sm:$0xff] %v11133_v7  ;;  %v2224_v42 = vpack.c.bf16 %v9264_v49, %v9265_v15  ;;  %v9267_v49 = vld [vmem:[%s9701_s18 + $0xb0] sm:$0xff] }
 0x19c   : > { %v1933_v41 = vpack.c.bf16 %v1910_v3, %v1909_v16  ;;  %v1914_v3 = vmul.f32 %v10902_v12, %v10637_v38  ;;  %v11148_v5 = vpop.f32.mrf.mxu0 }
 0x19d   : > { %v11135_v23 = vpop.permute.xlu1 %1838  ;;  %3911 = vperm.xlu0 %9138, %v10591_v17   ;;  %v11158_v15 = vpop.permute.xlu0 %2556 }
 0x19e   : > { %16328 = vst [vmem:[#allocation198_spill] sm:$0xff] %v11135_v23  ;;  %v1911_v52 = vmul.f32 %v11135_v23, %v10599_v40  ;;  %8489 = vmatprep.mubr.msk.bf16.mxu1 %vm808_vm0, %v1933_v41  ;;  %16330 = vst [vmem:[#allocation200_spill] sm:$0xff] %v11158_v15  ;;  %v11164_v17 = vpop.f32.mrf.mxu0  ;;  %v9269_v23 = vld [vmem:[%s9701_s18 + $0xc0] sm:$0xff] }
 0x19f   : > { %2580 = vperm.xlu1 %9113, %v10650_v18  }
 0x1a0   : > { %v1934_v16 = vpack.c.bf16 %v1912_v61, %v1911_v52  ;;  %v16331_v61 = vld [vmem:[#allocation147_spill] sm:$0xff]  ;;  %v9266_v52 = vld [vmem:[%s9701_s18 + $0xb8] sm:$0xff] }
 0x1a1   : > { %v11150_v22 = vpop.permute.xlu1 %1846  ;;  %8530 = vmatmul.mubr.msk.bf16.gmra.mxu0 %vm808_vm0, %v2223_v0  ;;  %v1916_v41 = vmul.f32 %v10937_v9, %v16331_v61  ;;  %3915 = vperm.xlu0 %9138, %v10464_v53   ;;  %v11179_v21 = vpop.permute.xlu0 %2572 }
 0x1a2   : > { %16329 = vst [vmem:[#allocation199_spill] sm:$0xff] %v11150_v22  ;;  %v1913_v43 = vmul.f32 %v11150_v22, %v10655_v19  ;;  %8490 = vmatmul.mubr.msk.bf16.gmra.mxu1 %vm808_vm0, %v1934_v16  ;;  %8533 = vmatprep.mubr.msk.bf16.mxu0 %vm808_vm0, %v2224_v42  ;;  %v2225_v16 = vpack.c.bf16 %v9266_v52, %v9267_v49  ;;  %v16333_v42 = vld [vmem:[#allocation143_spill] sm:$0xff]  ;;  %v11181_v52 = vpop.f32.mrf.mxu0  ;;  %v9270_v49 = vld [vmem:[%s9701_s18 + $0xd8] sm:$0xff] }
 0x1a3   : > { %9114 = vset.pattern.permute.xlu1 %v16241_v11  ;;  %v9268_v22 = vld [vmem:[%s9701_s18 + $0xc8] sm:$0xff]  ;;  %16335 = vst [vmem:[#allocation143_spill] sm:$0xff] %v11179_v21 }
 0x1a4   : > { %v1935_v20 = vpack.c.bf16 %v1914_v3, %v1913_v43  ;;  %3021 = vperm.xlu1 %9114, %v10907_v31   ;;  %v2226_v9 = vpack.c.bf16 %v9268_v22, %v9269_v23  ;;  %v16334_v3 = vld [vmem:[#allocation148_spill] sm:$0xff]  ;;  %v11194_v22 = vpop.f32.mrf.mxu0 }
 0x1a5   : > { %v11166_v0 = vpop.permute.xlu1 %1854  ;;  %v1918_v31 = vmul.f32 %v10960_v28, %v16334_v3  ;;  %3927 = vperm.xlu0 %9138, %v10650_v18  }
 0x1a6   : > { %16332 = vst [vmem:[#allocation147_spill] sm:$0xff] %v11166_v0  ;;  %v1915_v12 = vmul.f32 %v11166_v0, %v16333_v42  ;;  %8493 = vmatprep.mubr.msk.bf16.mxu1 %vm808_vm0, %v1935_v20  ;;  %v16337_v20 = vld [vmem:[#allocation151_spill] sm:$0xff]  ;;  %v1922_v0 = vmul.f32 %v11017_v10, %v10858_v51  ;;  %v11211_v62 = vpop.f32.mrf.mxu0 }
 0x1a7   : > { %16338 = vst [vmem:[#allocation151_spill] sm:$0xff] %v11194_v22 }
 0x1a8   : > { %v1936_v43 = vpack.c.bf16 %v1916_v41, %v1915_v12  ;;  %3025 = vperm.xlu1 %9114, %v10506_v39   ;;  %v1920_v39 = vmul.f32 %v10992_v55, %v10849_v26  ;;  %v16339_v41 = vld [vmem:[#allocation115_spill] sm:$0xff]  ;;  %v11205_v55 = vpop.permute.xlu0 %2588  ;;  %v11226_v10 = vpop.f32.mrf.mxu0 }
 0x1a9   : > { %v11183_v53 = vpop.permute.xlu1 %1862  ;;  %8534 = vmatmul.mubr.msk.bf16.gmra.mxu0 %vm808_vm0, %v2225_v16  ;;  %v9271_v16 = vld [vmem:[%s9701_s18 + $0xd0] sm:$0xff]  ;;  %3931 = vperm.xlu0 %9138, %v16339_v41   ;;  %16342 = vst [vmem:[#allocation201_spill] sm:$0xff] %v11205_v55 }
 0x1aa   : > { %16336 = vst [vmem:[#allocation148_spill] sm:$0xff] %v11183_v53  ;;  %v1917_v23 = vmul.f32 %v11183_v53, %v16337_v20  ;;  %8494 = vmatmul.mubr.msk.bf16.gmra.mxu1 %vm808_vm0, %v1936_v43  ;;  %8537 = vmatprep.mubr.msk.bf16.mxu0 %vm808_vm0, %v2226_v9  ;;  %v2227_v28 = vpack.c.bf16 %v9270_v49, %v9271_v16  ;;  %v16341_v43 = vld [vmem:[#allocation162_spill] sm:$0xff]  ;;  %v16343_v49 = vld [vmem:[#allocation119_spill] sm:$0xff] }
 0x1ab   : > { %v16345_v16 = vld [vmem:[#allocation138_spill] sm:$0xff] }
 0x1ac   : > { %v1937_v12 = vpack.c.bf16 %v1918_v31, %v1917_v23  ;;  %9115 = vset.pattern.permute.xlu1 %v16229_v4  ;;  %v9272_v31 = vld [vmem:[%s9701_s18 + $0xe8] sm:$0xff]  ;;  %v9273_v23 = vld [vmem:[%s9701_s18 + $0xe0] sm:$0xff] }
 0x1ad   : > { %2584 = vperm.xlu1 %9115, %v16339_v41   ;;  %v11197_v18 = vpop.permute.xlu1 %1870  ;;  %v2228_v53 = vpack.c.bf16 %v9272_v31, %v9273_v23  ;;  %3943 = vperm.xlu0 %9138, %v16345_v16   ;;  %v16346_v31 = vld [vmem:[#allocation39_spill] sm:$0xff]  ;;  %v11224_v23 = vpop.permute.xlu0 %2604 }
 0x1ae   : > { %16340 = vst [vmem:[#allocation115_spill] sm:$0xff] %v11197_v18  ;;  %v1919_v9 = vmul.f32 %v11197_v18, %v16341_v43  ;;  %8497 = vmatprep.mubr.msk.bf16.mxu1 %vm808_vm0, %v1937_v12  ;;  %16347 = vst [vmem:[#allocation138_spill] sm:$0xff] %v11224_v23  ;;  %v9274_v18 = vld [vmem:[%s9701_s18 + $0xf0] sm:$0xff] }
 0x1b0   : > { %v1938_v56 = vpack.c.bf16 %v1920_v39, %v1919_v9  ;;  %v1924_v39 = vmul.f32 %v11056_v45, %v16346_v31 }
 0x1b1   : > { %2592 = vperm.xlu1 %9115, %v16343_v49   ;;  %v11214_v41 = vpop.permute.xlu1 %1878  ;;  %8538 = vmatmul.mubr.msk.bf16.gmra.mxu0 %vm808_vm0, %v2227_v28 }
 0x1b2   : > { %16344 = vst [vmem:[#allocation119_spill] sm:$0xff] %v11214_v41  ;;  %v1921_v12 = vmul.f32 %v11214_v41, %v10872_v50  ;;  %8498 = vmatmul.mubr.msk.bf16.gmra.mxu1 %vm808_vm0, %v1938_v56  ;;  %8541 = vmatprep.mubr.msk.bf16.mxu0 %vm808_vm0, %v2228_v53  ;;  %v9275_v41 = vld [vmem:[%s9701_s18 + $0xf8] sm:$0xff]  ;;  %v16349_v56 = vld [vmem:[#allocation40_spill] sm:$0xff]  ;;  %v16366_v50 = vld [vmem:[#allocation127_spill] sm:$0xff] }
 0x1b3   : > { %v2229_v57 = vpack.c.bf16 %v9275_v41, %v9274_v18  ;;  %3947 = vperm.xlu0 %9138, %v16350_v60   ;;  %v11247_v41 = vpop.permute.xlu0 %2620 }
 0x1b4   : > { %v1939_v9 = vpack.c.bf16 %v1922_v0, %v1921_v12  ;;  %v11237_v0 = vpop.f32.mrf.mxu0  ;;  %v16351_v12 = vld [vmem:[#allocation85_spill] sm:$0xff]  ;;  %16353 = vst [vmem:[#allocation203_spill] sm:$0xff] %v11247_v41 }
 0x1b5   : > { %2596 = vperm.xlu1 %9115, %v16345_v16   ;;  %v11229_v28 = vpop.permute.xlu1 %1886  ;;  %v2632_v22 = vmul.f32 %v11076_v44, %v16351_v12  ;;  %v16354_v16 = vld [vmem:[#allocation89_spill] sm:$0xff] }
 0x1b6   : > { %16348 = vst [vmem:[#allocation202_spill] sm:$0xff] %v11229_v28  ;;  %v1923_v53 = vmul.f32 %v11229_v28, %v16349_v56  ;;  %8501 = vmatprep.mubr.msk.bf16.mxu1 %vm808_vm0, %v1939_v9  ;;  %v16355_v9 = vld [vmem:[#allocation146_spill] sm:$0xff]  ;;  %v11252_v28 = vpop.f32.mrf.mxu0 }
 0x1b7   : > { %3959 = vperm.xlu0 %9138, %v16355_v9   ;;  %16356 = vst [vmem:[#allocation146_spill] sm:$0xff] %v11252_v28  ;;  %v16363_v28 = vld [vmem:[#allocation93_spill] sm:$0xff] }
 0x1b8   : > { %v1940_v45 = vpack.c.bf16 %v1924_v39, %v1923_v53  ;;  %v11263_v44 = vpop.f32.mrf.mxu0 }
 0x1b9   : > { %9116 = vset.pattern.permute.xlu1 %v16241_v11  ;;  %8542 = vmatmul.mubr.msk.bf16.gmra.mxu0 %vm808_vm0, %v2229_v57  ;;  %v11259_v57 = vpop.permute.xlu0 %2953 }
 0x1ba   : > { %3037 = vperm.xlu1 %9116, %v10921_v13   ;;  %v11244_v18 = vpop.permute.xlu1 %2504  ;;  %8502 = vmatmul.mubr.msk.bf16.gmra.mxu1 %vm808_vm0, %v1940_v45  ;;  %v16358_v13 = vld [vmem:[#allocation129_spill] sm:$0xff]  ;;  %v11261_v45 = vpop.f32.mrf.mxu1 }
 0x1bb   : > { %16352 = vst [vmem:[#allocation122_spill] sm:$0xff] %v11244_v18  ;;  %v2631_v39 = vmul.f32 %v11244_v18, %v16354_v16  ;;  %3963 = vperm.xlu0 %9138, %v16358_v13   ;;  %16359 = vst [vmem:[#allocation129_spill] sm:$0xff] %v11259_v57  ;;  %v11274_v31 = vpop.f32.mrf.mxu0 }
 0x1bc   : > { %16360 = vst [vmem:[#allocation205_spill] sm:$0xff] %v11261_v45  ;;  %v3080_v45 = vmul.f32 %v11259_v57, %v16303_v46  ;;  %v16370_v57 = vld [vmem:[#allocation59_spill] sm:$0xff] }
 0x1bd   : > { %v2663_v53 = vpack.c.bf16 %v2632_v22, %v2631_v39  ;;  %v8399_v22 = vpop.f32.mrf.mxu1  ;;  %v16362_v39 = vld [vmem:[#allocation92_spill] sm:$0xff]  ;;  %v11278_v56 = vpop.permute.xlu0 %2965 }
 0x1be   : > { %3041 = vperm.xlu1 %9116, %v16343_v49   ;;  %v11255_v7 = vpop.permute.xlu1 %2512 }
 0x1bf   : > { %16357 = vst [vmem:[#allocation204_spill] sm:$0xff] %v11255_v7  ;;  %8553 = vmatprep.mubr.msk.bf16.mxu1 %vm808_vm0, %v2663_v53  ;;  %v2633_v49 = vmul.f32 %v11255_v7, %v16362_v39  ;;  %v16364_v53 = vld [vmem:[#allocation152_spill] sm:$0xff]  ;;  %v1140_v41 = vpop.f32.mrf.mxu1 }
 0x1c0   : > { %3975 = vperm.xlu0 %9138, %v16364_v53   ;;  %16365 = vst [vmem:[#allocation152_spill] sm:$0xff] %v11278_v56 }
 0x1c2   : > { %9117 = vset.pattern.permute.xlu1 %v16229_v4  ;;  %v11266_v18 = vpop.permute.xlu1 %2516 }
 0x1c3   : > { %16361 = vst [vmem:[#allocation206_spill] sm:$0xff] %v11266_v18  ;;  %v2634_v16 = vmul.f32 %v11266_v18, %v16363_v28  ;;  %2600 = vperm.xlu1 %9117, %v16350_v60   ;;  %v11286_v18 = vpop.f32.mrf.mxu0  ;;  %v8400_v28 = vpop.f32.mrf.mxu1 }
 0x1c5   : > { %v2664_v12 = vpack.c.bf16 %v2634_v16, %v2633_v49  ;;  %v16368_v49 = vld [vmem:[#allocation56_spill] sm:$0xff] }
 0x1c6   : > { %v3083_v7 = vmul.f32 %v11278_v56, %v16368_v49 }
 0x1c7   : > { %2608 = vperm.xlu1 %9117, %v16366_v50   ;;  %v11281_v51 = vpop.permute.xlu1 %2957  ;;  %8554 = vmatmul.mubr.msk.bf16.vlgmr.msra.gmra.mxu1 %vm808_vm0, %v2664_v12  ;;  %v11296_v12 = vpop.f32.mrf.mxu0 }
 0x1c8   : > { %16367 = vst [vmem:[#allocation127_spill] sm:$0xff] %v11281_v51  ;;  %v3081_v60 = vmul.f32 %v11281_v51, %v16300_v1  ;;  %16371 = vst [vmem:[#allocation59_spill] sm:$0xff] %v11296_v12  ;;  %v16372_v1 = vld [vmem:[#allocation95_spill] sm:$0xff] }
 0x1c9   : > { %v2636_v51 = vmul.f32 %v11110_v8, %v16372_v1 }
 0x1ca   : > { %v3112_v16 = vpack.c.bf16 %v3081_v60, %v3080_v45  ;;  %v11300_v45 = vpop.f32.mrf.mxu1  ;;  %v16374_v60 = vld [vmem:[#allocation179_spill] sm:$0xff] }
 0x1cb   : > { %2612 = vperm.xlu1 %9117, %v16355_v9   ;;  %v11291_v46 = vpop.permute.xlu1 %2961  ;;  %16373 = vst [vmem:[#allocation207_spill] sm:$0xff] %v11300_v45 }
 0x1cc   : > { %16369 = vst [vmem:[#allocation56_spill] sm:$0xff] %v11291_v46  ;;  %v3082_v39 = vmul.f32 %v11291_v46, %v16370_v57  ;;  %8593 = vmatprep.mubr.msk.bf16.mxu0 %vm808_vm0, %v3112_v16  ;;  %v16376_v57 = vld [vmem:[#allocation98_spill] sm:$0xff] }
 0x1ce   : > { %v3113_v26 = vpack.c.bf16 %v3083_v7, %v3082_v39  ;;  %v8403_v7 = vpop.f32.mrf.mxu1 }
 0x1cf   : > { %9118 = vset.pattern.permute.xlu1 %v16241_v11 }
 0x1d0   : > { %3053 = vperm.xlu1 %9118, %v16374_v60   ;;  %v11304_v9 = vpop.permute.xlu1 %2520  ;;  %v8435_v49 = vpop.f32.mrf.mxu0  ;;  %8594 = vmatmul.mubr.msk.bf16.vlgmr.msra.gmra.mxu0 %vm808_vm0, %v3113_v26 }
 0x1d1   : > { %16375 = vst [vmem:[#allocation179_spill] sm:$0xff] %v11304_v9  ;;  %v2635_v16 = vmul.f32 %v11304_v9, %v16376_v57  ;;  %v11310_v12 = vadd.f32 %v8435_v49, %v11089_v27  ;;  %v1156_v26 = vpop.f32.mrf.mxu1  ;;  %v11322_v9 = vpop.permute.xlu0 %2969  ;;  %v16381_v49 = vld [vmem:[#allocation73_spill] sm:$0xff] }
 0x1d2   : > { %v1606_v39 = vpop.f32.mrf.mxu0  ;;  %16379 = vst [vmem:[#allocation210_spill] sm:$0xff] %v11322_v9 }
 0x1d3   : > { %v2665_v8 = vpack.c.bf16 %v2636_v51, %v2635_v16  ;;  %v11313_v56 = vadd.f32 %v1606_v39, %v11097_v36  ;;  %v1149_v51 = vadd.f32 %v8399_v22, %v16381_v49  ;;  %v16384_v39 = vld [vmem:[#allocation97_spill] sm:$0xff]  ;;  %v8404_v1 = vpop.f32.mrf.mxu1  ;;  %v16386_v49 = vld [vmem:[#allocation80_spill] sm:$0xff] }
 0x1d4   : > { %3057 = vperm.xlu1 %9118, %v16366_v50   ;;  %v11316_v60 = vpop.permute.xlu1 %2528  ;;  %v8436_v46 = vpop.f32.mrf.mxu0  ;;  %v16383_v50 = vld [vmem:[#allocation99_spill] sm:$0xff] }
 0x1d5   : > { %16377 = vst [vmem:[#allocation208_spill] sm:$0xff] %v11316_v60  ;;  %8557 = vmatprep.mubr.msk.bf16.mxu1 %vm808_vm0, %v2665_v8  ;;  %v11320_v45 = vadd.f32 %v8436_v46, %v11113_v63  ;;  %v2637_v16 = vmul.f32 %v11316_v60, %v16383_v50  ;;  %v16385_v63 = vld [vmem:[#allocation77_spill] sm:$0xff]  ;;  %v3084_v60 = vmul.f32 %v11322_v9, %v16313_v30  ;;  %v11343_v50 = vpop.permute.xlu0 %2981  ;;  %v16395_v9 = vld [vmem:[#allocation180_spill] sm:$0xff] }
 0x1d6   : > { %v11324_v27 = vpop.f32.mrf.mxu0  ;;  %v1141_v46 = vadd.f32 %v1140_v41, %v16385_v63  ;;  %16387 = vst [vmem:[#allocation77_spill] sm:$0xff] %v11343_v50  ;;  %v11349_v41 = vpop.f32.mrf.mxu1 }
 0x1d7   : > { %16378 = vst [vmem:[#allocation209_spill] sm:$0xff] %v11320_v45  ;;  %16380 = vst [vmem:[#allocation211_spill] sm:$0xff] %v11324_v27 }
 0x1d8   : > { %9119 = vset.pattern.permute.xlu1 %v16229_v4  ;;  %v11328_v36 = vpop.permute.xlu1 %2532  ;;  %v8439_v57 = vpop.f32.mrf.mxu0  ;;  %v1152_v4 = vadd.f32 %v8400_v28, %v16386_v49 }
 0x1d9   : > { %16382 = vst [vmem:[#allocation73_spill] sm:$0xff] %v11328_v36  ;;  %v2638_v8 = vmul.f32 %v11328_v36, %v16384_v39  ;;  %2616 = vperm.xlu1 %9119, %v16358_v13   ;;  %v11336_v43 = vadd.f32 %v8439_v57, %v1149_v51  ;;  %v16388_v39 = vld [vmem:[#allocation132_spill] sm:$0xff]  ;;  %v16391_v51 = vld [vmem:[#allocation69_spill] sm:$0xff]  ;;  %v8407_v63 = vpop.f32.mrf.mxu1 }
 0x1da   : > { %v1622_v22 = vpop.f32.mrf.mxu0  ;;  %16390 = vst [vmem:[#allocation132_spill] sm:$0xff] %v11349_v41 }
 0x1db   : > { %v2666_v27 = vpack.c.bf16 %v2638_v8, %v2637_v16  ;;  %v11339_v45 = vadd.f32 %v1622_v22, %v1141_v46  ;;  %v16393_v8 = vld [vmem:[#allocation174_spill] sm:$0xff]  ;;  %v3087_v22 = vmul.f32 %v11343_v50, %v16314_v33 }
 0x1dc   : > { %v8440_v36 = vpop.f32.mrf.mxu0  ;;  %v1165_v30 = vadd.f32 %v8403_v7, %v16393_v8  ;;  %v16396_v8 = vld [vmem:[#allocation183_spill] sm:$0xff]  ;;  %v16397_v50 = vld [vmem:[#allocation102_spill] sm:$0xff] }
 0x1dd   : > { %2624 = vperm.xlu1 %9119, %v16388_v39   ;;  %v11346_v13 = vpop.permute.xlu1 %2973  ;;  %8558 = vmatmul.mubr.msk.bf16.gmra.mxu1 %vm808_vm0, %v2666_v27  ;;  %v11351_v57 = vadd.f32 %v8440_v36, %v1152_v4  ;;  %v1157_v36 = vadd.f32 %v1156_v26, %v16395_v9  ;;  %v16398_v26 = vld [vmem:[#allocation182_spill] sm:$0xff] }
 0x1de   : > { %16389 = vst [vmem:[#allocation80_spill] sm:$0xff] %v11346_v13  ;;  %v3085_v28 = vmul.f32 %v11346_v13, %v16391_v51  ;;  %v11355_v16 = vpop.f32.mrf.mxu0 }
 0x1df   : > { %16392 = vst [vmem:[#allocation69_spill] sm:$0xff] %v11355_v16 }
 0x1e0   : > { %v3114_v46 = vpack.c.bf16 %v3085_v28, %v3084_v60  ;;  %v8443_v49 = vpop.f32.mrf.mxu0  ;;  %v1168_v60 = vadd.f32 %v8404_v1, %v16396_v8  ;;  %v1172_v28 = vpop.f32.mrf.mxu1  ;;  %v9168_v1 = vld [vmem:[%s15460_s2 + $0xf8] sm:$0xff]  }
 0x1e1   : > { %2628 = vperm.xlu1 %9119, %v16364_v53   ;;  %v11361_v27 = vpop.permute.xlu1 %2977  ;;  %v11364_v4 = vadd.f32 %v8443_v49, %v1165_v30  ;;  %v2640_v53 = vmul.f32 %v11131_v32, %v16397_v50  ;;  %v16400_v30 = vld [vmem:[#allocation106_spill] sm:$0xff]  ;;  %8625 = vmatprep.subr.bf16.mxu1 %v9168_v1 }
 0x1e2   : > { %16394 = vst [vmem:[#allocation174_spill] sm:$0xff] %v11361_v27  ;;  %v3086_v51 = vmul.f32 %v11361_v27, %v16316_v35  ;;  %8597 = vmatprep.mubr.msk.bf16.mxu0 %vm808_vm0, %v3114_v46  ;;  %v1638_v7 = vpop.f32.mrf.mxu0  ;;  %v16402_v49 = vld [vmem:[#allocation186_spill] sm:$0xff]  ;;  %8626 = vmatpush3.bf16.msra.mxu1 %v9168_v1 }
 0x1e3   : > { %v11370_v33 = vadd.f32 %v1638_v7, %v1157_v36  ;;  %v1181_v36 = vadd.f32 %v8407_v63, %v16402_v49  ;;  %v16403_v7 = vld [vmem:[#allocation189_spill] sm:$0xff] }
 0x1e4   : > { %v3115_v13 = vpack.c.bf16 %v3087_v22, %v3086_v51  ;;  %v8444_v41 = vpop.f32.mrf.mxu0  ;;  %v1173_v8 = vadd.f32 %v1172_v28, %v16403_v7 }
 0x1e5   : > { %9121 = vset.pattern.permute.xlu1 %v16241_v11  ;;  %v11375_v9 = vadd.f32 %v8444_v41, %v1168_v60  ;;  %v8408_v11 = vpop.f32.mrf.mxu1 }
 0x1e6   : > { %3069 = vperm.xlu1 %9121, %v16398_v26   ;;  %v11378_v35 = vpop.permute.xlu1 %2536  ;;  %8598 = vmatmul.mubr.msk.bf16.gmra.mxu0 %vm808_vm0, %v3115_v13  ;;  %v11386_v22 = vpop.f32.mrf.mxu0  ;;  %v9169_v26 = vld [vmem:[%s15460_s2 + $0xf0] sm:$0xff]   ;;  %v1184_v63 = vadd.f32 %v8408_v11, %v11046_v48  ;;  %v9170_v48 = vld [vmem:[%s15460_s2 + $0xe8] sm:$0xff]  }
 0x1e7   : > { %16399 = vst [vmem:[#allocation180_spill] sm:$0xff] %v11378_v35  ;;  %v2639_v46 = vmul.f32 %v11378_v35, %v16400_v30  ;;  %16401 = vst [vmem:[#allocation183_spill] sm:$0xff] %v11386_v22  ;;  %8627 = vmatprep.subr.bf16.mxu1 %v9169_v26  ;;  %v16409_v11 = vld [vmem:[#allocation107_spill] sm:$0xff] }
 0x1e8   : > { %v8447_v51 = vpop.f32.mrf.mxu0  ;;  %8628 = vmatpush3.bf16.msra.mxu1 %v9169_v26  ;;  %v9171_v26 = vld [vmem:[%s15460_s2 + $0x118] sm:$0xff]  }
 0x1e9   : > { %v2667_v41 = vpack.c.bf16 %v2640_v53, %v2639_v46  ;;  %v11390_v60 = vadd.f32 %v8447_v51, %v1181_v36  ;;  %v11400_v53 = vpop.f32.mrf.mxu1  ;;  %v11404_v46 = vpop.permute.xlu0 %2985  ;;  %v16407_v36 = vmov 7   ;;  %8629 = vmatprep.subr.bf16.mxu1 %v9170_v48  ;;  %8665 = vmatprep.subr.bf16.mxu0 %v9171_v26 }
 0x1ea   : > { %3073 = vperm.xlu1 %9121, %v16388_v39   ;;  %v11393_v13 = vpop.permute.xlu1 %2544  ;;  %v1654_v27 = vpop.f32.mrf.mxu0  ;;  %16405 = vst [vmem:[#allocation182_spill] sm:$0xff] %v11400_v53  ;;  %16406 = vst [vmem:[#allocation106_spill] sm:$0xff] %v11404_v46  ;;  %8666 = vmatpush3.bf16.msra.mxu0 %v9171_v26  ;;  %v9278_v53 = vld [vmem:[%s15458_s0 + $0x18] sm:$0xff] }
 0x1eb   : > { %16404 = vst [vmem:[#allocation102_spill] sm:$0xff] %v11393_v13  ;;  %8561 = vmatprep.mubr.msk.bf16.mxu1 %vm808_vm0, %v2667_v41  ;;  %v11402_v1 = vadd.f32 %v1654_v27, %v1173_v8  ;;  %v8411_v39 = vpop.f32.mrf.mxu1  ;;  %v2641_v27 = vmul.f32 %v11393_v13, %v16409_v11  ;;  %v16410_v41 = vld [vmem:[#allocation104_spill] sm:$0xff]  ;;  %v9276_v8 = vld [vmem:[%s15458_s0] sm:$0xff]  ;;  %v3088_v13 = vmul.f32 %v11404_v46, %v16320_v25 }
 0x1ec   : > { %v8448_v28 = vpop.f32.mrf.mxu0  ;;  %8630 = vmatpush3.bf16.msra.mxu1 %v9170_v48  ;;  %v9173_v25 = vld [vmem:[%s15460_s2 + $0x110] sm:$0xff]   ;;  %v1197_v26 = vadd.f32 %v8411_v39, %v11078_v6 }
 0x1ed   : > { %v11406_v49 = vadd.f32 %v8448_v28, %v1184_v63  ;;  %v1188_v28 = vpop.f32.mrf.mxu1  ;;  %v11435_v48 = vpop.permute.xlu0 %2997  ;;  %8667 = vmatprep.subr.bf16.mxu0 %v9173_v25 }
 0x1ee   : > { %9122 = vset.pattern.permute.xlu1 %v16407_v36  ;;  %v11409_v51 = vpop.permute.xlu1 %2548  ;;  %16412 = vst [vmem:[#allocation107_spill] sm:$0xff] %v11435_v48  ;;  %8668 = vmatpush3.bf16.msra.mxu0 %v9173_v25  ;;  %v1189_v6 = vadd.f32 %v1188_v28, %v11094_v54 }
 0x1ef   : > { %16408 = vst [vmem:[#allocation186_spill] sm:$0xff] %v11409_v51  ;;  %v2642_v7 = vmul.f32 %v11409_v51, %v16410_v41  ;;  %3402 = vperm.xlu1 %9122, %v9276_v8   ;;  %v9172_v51 = vld [vmem:[%s15460_s2 + $0xe0] sm:$0xff]   ;;  %v9277_v8 = vld [vmem:[%s15458_s0 + $0x10] sm:$0xff]  ;;  %v8412_v46 = vpop.f32.mrf.mxu1 }
 0x1f0   : > { %8631 = vmatprep.subr.bf16.mxu1 %v9172_v51 }
 0x1f1   : > { %v2668_v63 = vpack.c.bf16 %v2642_v7, %v2641_v27  ;;  %v11442_v7 = vpop.f32.mrf.mxu0  ;;  %8632 = vmatpush3.bf16.msra.mxu1 %v9172_v51  ;;  %v9174_v51 = vld [vmem:[%s15460_s2 + $0x108] sm:$0xff]  }
 0x1f2   : > { %16413 = vst [vmem:[#allocation104_spill] sm:$0xff] %v11442_v7  ;;  %8669 = vmatprep.subr.bf16.mxu0 %v9174_v51  ;;  %v16416_v7 = vmov 8  }
 0x1f3   : > { %3410 = vperm.xlu1 %9122, %v9277_v8   ;;  %v11432_v32 = vpop.permute.xlu1 %2989  ;;  %8562 = vmatmul.mubr.msk.bf16.gmra.mxu1 %vm808_vm0, %v2668_v63  ;;  %v3091_v63 = vmul.f32 %v11435_v48, %v10292_v37  ;;  %v16415_v48 = vld [vmem:[#allocation110_spill] sm:$0xff] }
 0x1f4   : > { %16411 = vst [vmem:[#allocation189_spill] sm:$0xff] %v11432_v32  ;;  %v3089_v27 = vmul.f32 %v11432_v32, %v10271_v24  ;;  %8670 = vmatpush3.bf16.msra.mxu0 %v9174_v51  ;;  %v2644_v32 = vmul.f32 %v11158_v15, %v16415_v48  ;;  %v11483_v51 = vpop.f32.mrf.mxu1  ;;  %v9282_v15 = vld [vmem:[%s15458_s0 + $0x38] sm:$0xff] }
 0x1f5   : > { %16420 = vst [vmem:[#allocation213_spill] sm:$0xff] %v11483_v51 }
 0x1f6   : > { %v3116_v35 = vpack.c.bf16 %v3089_v27, %v3088_v13 }
 0x1f7   : > { %3414 = vperm.xlu1 %9122, %v9278_v53   ;;  %v11450_v22 = vpop.permute.xlu1 %2993  ;;  %v8451_v24 = vpop.f32.mrf.mxu0  ;;  %v1200_v53 = vadd.f32 %v8412_v46, %v11118_v58  ;;  %v9279_v58 = vld [vmem:[%s15458_s0 + $0x8] sm:$0xff] }
 0x1f8   : > { %16414 = vst [vmem:[#allocation212_spill] sm:$0xff] %v11450_v22  ;;  %v3090_v13 = vmul.f32 %v11450_v22, %v10316_v29  ;;  %v11458_v39 = vadd.f32 %v8451_v24, %v1197_v26  ;;  %8601 = vmatprep.mubr.msk.bf16.mxu0 %vm808_vm0, %v3116_v35  ;;  %v9175_v29 = vld [vmem:[%s15460_s2 + $0x100] sm:$0xff]   ;;  %v16418_v46 = vld [vmem:[#allocation111_spill] sm:$0xff] }
 0x1f9   : > { %v1670_v37 = vpop.f32.mrf.mxu0  ;;  %8671 = vmatprep.subr.bf16.mxu0 %v9175_v29 }
 0x1fa   : > { %v3117_v25 = vpack.c.bf16 %v3091_v63, %v3090_v13  ;;  %v11462_v27 = vadd.f32 %v1670_v37, %v1189_v6  ;;  %8672 = vmatpush3.bf16.msra.mxu0 %v9175_v29  ;;  %v11485_v6 = vpop.permute.xlu0 %3001 }
 0x1fb   : > { %9124 = vset.pattern.permute.xlu1 %v16416_v7  ;;  %v8452_v54 = vpop.f32.mrf.mxu0  ;;  %16421 = vst [vmem:[#allocation214_spill] sm:$0xff] %v11485_v6 }
 0x1fc   : > { %v11470_v28 = vadd.f32 %v8452_v54, %v1200_v53  ;;  %3855 = vperm.xlu1 %9124, %v9279_v58   ;;  %v11475_v35 = vpop.permute.xlu1 %2552  ;;  %8602 = vmatmul.mubr.msk.bf16.gmra.mxu0 %vm808_vm0, %v3117_v25  ;;  %v16423_v53 = vld [vmem:[#allocation118_spill] sm:$0xff]  ;;  %v16424_v54 = vld [vmem:[#allocation116_spill] sm:$0xff] }
 0x1fd   : > { %16417 = vst [vmem:[#allocation110_spill] sm:$0xff] %v11475_v35  ;;  %v2643_v26 = vmul.f32 %v11475_v35, %v16418_v46 }
 0x1ff   : > { %v2669_v63 = vpack.c.bf16 %v2644_v32, %v2643_v26  ;;  %v3092_v26 = vmul.f32 %v11485_v6, %v10449_v34 }
 0x200   : > { %3859 = vperm.xlu1 %9124, %v9277_v8   ;;  %v11480_v24 = vpop.permute.xlu1 %2560  ;;  %v8415_v13 = vpop.f32.mrf.mxu1  ;;  %v9280_v8 = vld [vmem:[%s15458_s0 + $0x20] sm:$0xff] }
 0x201   : > { %16419 = vst [vmem:[#allocation111_spill] sm:$0xff] %v11480_v24  ;;  %8565 = vmatprep.mubr.msk.bf16.mxu1 %vm808_vm0, %v2669_v63  ;;  %v2645_v25 = vmul.f32 %v11480_v24, %v16423_v53  ;;  %v9281_v63 = vld [vmem:[%s15458_s0 + $0x30] sm:$0xff] }
 0x202   : > { %v1204_v58 = vpop.f32.mrf.mxu1 }
 0x203   : > { %v1205_v51 = vadd.f32 %v1204_v58, %v11164_v17 }
 0x204   : > { %9125 = vset.pattern.permute.xlu1 %v16407_v36  ;;  %v11488_v37 = vpop.permute.xlu1 %2564 }
 0x205   : > { %16422 = vst [vmem:[#allocation215_spill] sm:$0xff] %v11488_v37  ;;  %v2646_v32 = vmul.f32 %v11488_v37, %v16424_v54  ;;  %3418 = vperm.xlu1 %9125, %v9280_v8   ;;  %v11505_v37 = vpop.permute.xlu0 %3013  ;;  %v11509_v8 = vpop.f32.mrf.mxu0 }
 0x206   : > { %16426 = vst [vmem:[#allocation116_spill] sm:$0xff] %v11505_v37  ;;  %16427 = vst [vmem:[#allocation216_spill] sm:$0xff] %v11509_v8  ;;  %v3095_v6 = vmul.f32 %v11505_v37, %v10490_v47 }
 0x207   : > { %v2670_v29 = vpack.c.bf16 %v2646_v32, %v2645_v25  ;;  %v1213_v25 = vadd.f32 %v8415_v13, %v11148_v5  ;;  %v8416_v32 = vpop.f32.mrf.mxu1 }
 0x208   : > { %v1216_v47 = vadd.f32 %v8416_v32, %v11181_v52 }
 0x209   : > { %3426 = vperm.xlu1 %9125, %v9281_v63   ;;  %v11502_v22 = vpop.permute.xlu1 %3005  ;;  %8566 = vmatmul.mubr.msk.bf16.gmra.mxu1 %vm808_vm0, %v2670_v29  ;;  %v11539_v52 = vpop.permute.xlu0 %3017 }
 0x20a   : > { %16425 = vst [vmem:[#allocation118_spill] sm:$0xff] %v11502_v22  ;;  %v3093_v24 = vmul.f32 %v11502_v22, %v10475_v14  ;;  %16431 = vst [vmem:[#allocation218_spill] sm:$0xff] %v11539_v52 }
 0x20c   : > { %v3118_v34 = vpack.c.bf16 %v3093_v24, %v3092_v26  ;;  %v16429_v26 = vld [vmem:[#allocation125_spill] sm:$0xff] }
 0x20d   : > { %3430 = vperm.xlu1 %9125, %v9282_v15   ;;  %v11517_v29 = vpop.permute.xlu1 %3009  ;;  %v8455_v35 = vpop.f32.mrf.mxu0  ;;  %v2648_v15 = vmul.f32 %v11179_v21, %v16429_v26  ;;  %v9285_v21 = vld [vmem:[%s15458_s0 + $0x50] sm:$0xff] }
 0x20e   : > { %16428 = vst [vmem:[#allocation217_spill] sm:$0xff] %v11517_v29  ;;  %v3094_v14 = vmul.f32 %v11517_v29, %v10515_v2  ;;  %v11522_v22 = vadd.f32 %v8455_v35, %v1213_v25  ;;  %8605 = vmatprep.mubr.msk.bf16.mxu0 %vm808_vm0, %v3118_v34  ;;  %v9283_v2 = vld [vmem:[%s15458_s0 + $0x28] sm:$0xff]  ;;  %v11548_v32 = vpop.permute.xlu0 %3029  ;;  %v3096_v29 = vmul.f32 %v11539_v52, %v10599_v40 }
 0x20f   : > { %v1686_v5 = vpop.f32.mrf.mxu0  ;;  %16435 = vst [vmem:[#allocation220_spill] sm:$0xff] %v11548_v32  ;;  %v3099_v40 = vmul.f32 %v11548_v32, %v10637_v38 }
 0x210   : > { %v3119_v24 = vpack.c.bf16 %v3095_v6, %v3094_v14  ;;  %v11526_v13 = vadd.f32 %v1686_v5, %v1205_v51  ;;  %v16432_v51 = vld [vmem:[#allocation124_spill] sm:$0xff] }
 0x211   : > { %9126 = vset.pattern.permute.xlu1 %v16416_v7  ;;  %v8456_v37 = vpop.f32.mrf.mxu0  ;;  %v16437_v5 = vld [vmem:[#allocation136_spill] sm:$0xff] }
 0x212   : > { %v11531_v17 = vadd.f32 %v8456_v37, %v1216_v47  ;;  %3871 = vperm.xlu1 %9126, %v9283_v2   ;;  %v11536_v35 = vpop.permute.xlu1 %2568  ;;  %8606 = vmatmul.mubr.msk.bf16.gmra.mxu0 %vm808_vm0, %v3119_v24  ;;  %v11546_v37 = vpop.f32.mrf.mxu1  ;;  %v16438_v24 = vld [vmem:[#allocation134_spill] sm:$0xff] }
 0x213   : > { %16430 = vst [vmem:[#allocation125_spill] sm:$0xff] %v11536_v35  ;;  %v2647_v6 = vmul.f32 %v11536_v35, %v16432_v51  ;;  %16434 = vst [vmem:[#allocation219_spill] sm:$0xff] %v11546_v37  ;;  %v11560_v2 = vpop.permute.xlu0 %3033  ;;  %v9286_v37 = vld [vmem:[%s15458_s0 + $0x58] sm:$0xff] }
 0x214   : > { %16439 = vst [vmem:[#allocation136_spill] sm:$0xff] %v11560_v2 }
 0x215   : > { %v2671_v58 = vpack.c.bf16 %v2648_v15, %v2647_v6 }
 0x216   : > { %3875 = vperm.xlu1 %9126, %v9281_v63   ;;  %v11543_v25 = vpop.permute.xlu1 %2576  ;;  %v8419_v34 = vpop.f32.mrf.mxu1  ;;  %v9284_v63 = vld [vmem:[%s15458_s0 + $0x40] sm:$0xff] }
 0x217   : > { %16433 = vst [vmem:[#allocation124_spill] sm:$0xff] %v11543_v25  ;;  %8569 = vmatprep.mubr.msk.bf16.mxu1 %vm808_vm0, %v2671_v58  ;;  %v2649_v47 = vmul.f32 %v11543_v25, %v16437_v5  ;;  %v11577_v52 = vpop.permute.xlu0 %3045 }
 0x218   : > { %v1220_v58 = vpop.f32.mrf.mxu1  ;;  %16442 = vst [vmem:[#allocation223_spill] sm:$0xff] %v11577_v52 }
 0x21a   : > { %9127 = vset.pattern.permute.xlu1 %v16407_v36  ;;  %v11551_v14 = vpop.permute.xlu1 %2580 }
 0x21b   : > { %16436 = vst [vmem:[#allocation221_spill] sm:$0xff] %v11551_v14  ;;  %v2650_v15 = vmul.f32 %v11551_v14, %v16438_v24  ;;  %3434 = vperm.xlu1 %9127, %v9284_v63   ;;  %v11572_v63 = vpop.f32.mrf.mxu0 }
 0x21c   : > { %16441 = vst [vmem:[#allocation222_spill] sm:$0xff] %v11572_v63 }
 0x21d   : > { %v2672_v6 = vpack.c.bf16 %v2650_v15, %v2649_v47  ;;  %v1229_v47 = vadd.f32 %v8419_v34, %v11211_v62  ;;  %v8420_v15 = vpop.f32.mrf.mxu1 }
 0x21f   : > { %3442 = vperm.xlu1 %9127, %v9285_v21   ;;  %v11567_v25 = vpop.permute.xlu1 %3021  ;;  %8570 = vmatmul.mubr.msk.bf16.gmra.mxu1 %vm808_vm0, %v2672_v6 }
 0x220   : > { %16440 = vst [vmem:[#allocation134_spill] sm:$0xff] %v11567_v25  ;;  %v3097_v14 = vmul.f32 %v11567_v25, %v10618_v59  ;;  %v1221_v59 = vadd.f32 %v1220_v58, %v11226_v10  ;;  %v11593_v25 = vpop.permute.xlu0 %3049 }
 0x221   : > { %16444 = vst [vmem:[#allocation225_spill] sm:$0xff] %v11593_v25 }
 0x222   : > { %v3120_v35 = vpack.c.bf16 %v3097_v14, %v3096_v29  ;;  %v1232_v29 = vadd.f32 %v8420_v15, %v11237_v0  ;;  %v16447_v0 = vld [vmem:[#allocation141_spill] sm:$0xff] }
 0x223   : > { %3446 = vperm.xlu1 %9127, %v9286_v37   ;;  %v11582_v6 = vpop.permute.xlu1 %3025  ;;  %v8459_v8 = vpop.f32.mrf.mxu0  ;;  %v16445_v37 = vld [vmem:[#allocation142_spill] sm:$0xff] }
 0x224   : > { %16443 = vst [vmem:[#allocation224_spill] sm:$0xff] %v11582_v6  ;;  %v3098_v62 = vmul.f32 %v11582_v6, %v10655_v19  ;;  %v11587_v34 = vadd.f32 %v8459_v8, %v1229_v47  ;;  %8609 = vmatprep.mubr.msk.bf16.mxu0 %vm808_vm0, %v3120_v35  ;;  %v2652_v63 = vmul.f32 %v11205_v55, %v16445_v37  ;;  %v9287_v19 = vld [vmem:[%s15458_s0 + $0x48] sm:$0xff]  ;;  %v9289_v55 = vld [vmem:[%s15458_s0 + $0x70] sm:$0xff] }
 0x225   : > { %v1702_v38 = vpop.f32.mrf.mxu0  ;;  %v3100_v6 = vmul.f32 %v11560_v2, %v16333_v42  ;;  %v3103_v42 = vmul.f32 %v11577_v52, %v16334_v3 }
 0x226   : > { %v3121_v14 = vpack.c.bf16 %v3099_v40, %v3098_v62  ;;  %v11591_v32 = vadd.f32 %v1702_v38, %v1221_v59  ;;  %v11610_v40 = vpop.permute.xlu0 %3061  ;;  %v11613_v59 = vpop.f32.mrf.mxu1 }
 0x227   : > { %9128 = vset.pattern.permute.xlu1 %v16416_v7  ;;  %v8460_v10 = vpop.f32.mrf.mxu0  ;;  %16449 = vst [vmem:[#allocation227_spill] sm:$0xff] %v11610_v40  ;;  %16450 = vst [vmem:[#allocation228_spill] sm:$0xff] %v11613_v59  ;;  %v9290_v59 = vld [vmem:[%s15458_s0 + $0x78] sm:$0xff] }
 0x228   : > { %v11598_v58 = vadd.f32 %v8460_v10, %v1232_v29  ;;  %3887 = vperm.xlu1 %9128, %v9287_v19   ;;  %v11603_v8 = vpop.permute.xlu1 %2584  ;;  %8610 = vmatmul.mubr.msk.bf16.gmra.mxu0 %vm808_vm0, %v3121_v14  ;;  %v16452_v29 = vld [vmem:[#allocation155_spill] sm:$0xff]  ;;  %v16453_v10 = vld [vmem:[#allocation154_spill] sm:$0xff] }
 0x229   : > { %16446 = vst [vmem:[#allocation142_spill] sm:$0xff] %v11603_v8  ;;  %v2651_v35 = vmul.f32 %v11603_v8, %v16447_v0 }
 0x22a   : > { %v11625_v19 = vpop.permute.xlu0 %3065 }
 0x22b   : > { %v2673_v47 = vpack.c.bf16 %v2652_v63, %v2651_v35  ;;  %16454 = vst [vmem:[#allocation230_spill] sm:$0xff] %v11625_v19 }
 0x22c   : > { %3891 = vperm.xlu1 %9128, %v9285_v21   ;;  %v11608_v15 = vpop.permute.xlu1 %2592  ;;  %v8423_v62 = vpop.f32.mrf.mxu1  ;;  %v9288_v21 = vld [vmem:[%s15458_s0 + $0x60] sm:$0xff] }
 0x22d   : > { %16448 = vst [vmem:[#allocation226_spill] sm:$0xff] %v11608_v15  ;;  %8573 = vmatprep.mubr.msk.bf16.mxu1 %vm808_vm0, %v2673_v47  ;;  %v2653_v14 = vmul.f32 %v11608_v15, %v16452_v29 }
 0x22e   : > { %v1236_v47 = vpop.f32.mrf.mxu1  ;;  %v11642_v2 = vpop.permute.xlu0 %3077 }
 0x22f   : > { %16457 = vst [vmem:[#allocation233_spill] sm:$0xff] %v11642_v2 }
 0x230   : > { %9129 = vset.pattern.permute.xlu1 %v16407_v36  ;;  %v11616_v38 = vpop.permute.xlu1 %2596 }
 0x231   : > { %16451 = vst [vmem:[#allocation229_spill] sm:$0xff] %v11616_v38  ;;  %v2654_v63 = vmul.f32 %v11616_v38, %v16453_v10  ;;  %3450 = vperm.xlu1 %9129, %v9288_v21   ;;  %v11637_v21 = vpop.f32.mrf.mxu0 }
 0x232   : > { %16456 = vst [vmem:[#allocation232_spill] sm:$0xff] %v11637_v21 }
 0x233   : > { %v2674_v35 = vpack.c.bf16 %v2654_v63, %v2653_v14  ;;  %v1245_v14 = vadd.f32 %v8423_v62, %v11263_v44  ;;  %v8424_v63 = vpop.f32.mrf.mxu1 }
 0x235   : > { %3458 = vperm.xlu1 %9129, %v9289_v55   ;;  %v11632_v15 = vpop.permute.xlu1 %3037  ;;  %8574 = vmatmul.mubr.msk.bf16.gmra.mxu1 %vm808_vm0, %v2674_v35 }
 0x236   : > { %16455 = vst [vmem:[#allocation231_spill] sm:$0xff] %v11632_v15  ;;  %v3101_v38 = vmul.f32 %v11632_v15, %v16331_v61  ;;  %v1237_v61 = vadd.f32 %v1236_v47, %v11274_v31  ;;  %v16459_v15 = vld [vmem:[#allocation160_spill] sm:$0xff] }
 0x238   : > { %v3122_v8 = vpack.c.bf16 %v3101_v38, %v3100_v6  ;;  %v1248_v6 = vadd.f32 %v8424_v63, %v11286_v18  ;;  %v11669_v18 = vpop.permute.xlu0 %3406  ;;  %v11675_v63 = vpop.f32.mrf.mxu1 }
 0x239   : > { %3462 = vperm.xlu1 %9129, %v9290_v59   ;;  %v11647_v35 = vpop.permute.xlu1 %3041  ;;  %v8463_v16 = vpop.f32.mrf.mxu0  ;;  %v2656_v59 = vmul.f32 %v11224_v23, %v16459_v15  ;;  %16461 = vst [vmem:[#allocation236_spill] sm:$0xff] %v11669_v18  ;;  %16464 = vst [vmem:[#allocation238_spill] sm:$0xff] %v11675_v63 }
 0x23a   : > { %16458 = vst [vmem:[#allocation234_spill] sm:$0xff] %v11647_v35  ;;  %v3102_v44 = vmul.f32 %v11647_v35, %v16337_v20  ;;  %v11652_v62 = vadd.f32 %v8463_v16, %v1245_v14  ;;  %8613 = vmatprep.mubr.msk.bf16.mxu0 %vm808_vm0, %v3122_v8  ;;  %v9291_v20 = vld [vmem:[%s15458_s0 + $0x68] sm:$0xff] }
 0x23b   : > { %v1718_v3 = vpop.f32.mrf.mxu0  ;;  %v16462_v8 = vld [vmem:[#allocation159_spill] sm:$0xff] }
 0x23c   : > { %v3123_v38 = vpack.c.bf16 %v3103_v42, %v3102_v44  ;;  %v11656_v52 = vadd.f32 %v1718_v3, %v1237_v61 }
 0x23d   : > { %9130 = vset.pattern.permute.xlu1 %v16416_v7  ;;  %v8464_v21 = vpop.f32.mrf.mxu0 }
 0x23e   : > { %v11661_v31 = vadd.f32 %v8464_v21, %v1248_v6  ;;  %3903 = vperm.xlu1 %9130, %v9291_v20   ;;  %v11666_v16 = vpop.permute.xlu1 %2600  ;;  %8614 = vmatmul.mubr.msk.bf16.gmra.mxu0 %vm808_vm0, %v3123_v38  ;;  %v11681_v20 = vpop.permute.xlu0 %3422 }
 0x23f   : > { %16460 = vst [vmem:[#allocation235_spill] sm:$0xff] %v11666_v16  ;;  %v2655_v47 = vmul.f32 %v11666_v16, %v16462_v8  ;;  %v11673_v14 = vpop.f32.mrf.mxu0 }
 0x240   : > { %16463 = vst [vmem:[#allocation237_spill] sm:$0xff] %v11673_v14 }
 0x241   : > { %v2675_v21 = vpack.c.bf16 %v2656_v59, %v2655_v47  ;;  %v8515_v42 = vpop.f32.mrf.mxu0  ;;  %v16467_v47 = vld [vmem:[#allocation169_spill] sm:$0xff] }
 0x242   : > { %3907 = vperm.xlu1 %9130, %v9289_v55   ;;  %v11677_v61 = vpop.permute.xlu1 %2608  ;;  %v8475_v44 = vpop.f32.mrf.mxu1 }
 0x243   : > { %16465 = vst [vmem:[#allocation239_spill] sm:$0xff] %v11677_v61  ;;  %v2184_v3 = vadd.f32 %v8475_v44, %v11310_v12  ;;  %8577 = vmatprep.mubr.msk.bf16.mxu1 %vm808_vm0, %v2675_v21  ;;  %v2344_v6 = vpop.f32.mrf.mxu0  ;;  %v2657_v14 = vmul.f32 %v11677_v61, %v16467_v47  ;;  %v16468_v12 = vld [vmem:[#allocation168_spill] sm:$0xff]  ;;  %v16469_v44 = vld [vmem:[#allocation209_spill] sm:$0xff]  ;;  %v16472_v47 = vld [vmem:[#allocation162_spill] sm:$0xff] }
 0x244   : > { %v2055_v38 = vpop.f32.mrf.mxu1 }
 0x245   : > { %v2182_v35 = vadd.f32 %v2055_v38, %v11313_v56  ;;  %v11684_v23 = vadd.f32 %v8515_v42, %v2184_v3  ;;  %v8516_v16 = vpop.f32.mrf.mxu0  ;;  %v9292_v56 = vld [vmem:[%s15458_s0 + $0x80] sm:$0xff] }
 0x246   : > { %9131 = vset.pattern.permute.xlu1 %v16407_v36  ;;  %v11687_v59 = vpop.permute.xlu1 %2612  ;;  %v8476_v55 = vpop.f32.mrf.mxu1 }
 0x247   : > { %16466 = vst [vmem:[#allocation240_spill] sm:$0xff] %v11687_v59  ;;  %v2658_v21 = vmul.f32 %v11687_v59, %v16468_v12  ;;  %v2185_v63 = vadd.f32 %v8476_v55, %v16469_v44  ;;  %v11694_v8 = vadd.f32 %v2344_v6, %v2182_v35  ;;  %3466 = vperm.xlu1 %9131, %v9292_v56   ;;  %v11699_v42 = vpop.f32.mrf.mxu0  ;;  %v11707_v55 = vpop.permute.xlu0 %3438  ;;  %v9293_v6 = vld [vmem:[%s15458_s0 + $0x90] sm:$0xff] }
 0x248   : > { %16470 = vst [vmem:[#allocation209_spill] sm:$0xff] %v11699_v42  ;;  %v11701_v3 = vpop.f32.mrf.mxu1  ;;  %v3104_v59 = vmul.f32 %v11593_v25, %v16472_v47 }
 0x249   : > { %16471 = vst [vmem:[#allocation241_spill] sm:$0xff] %v11701_v3  ;;  %v2676_v38 = vpack.c.bf16 %v2658_v21, %v2657_v14  ;;  %v11703_v15 = vadd.f32 %v8516_v16, %v2185_v63  ;;  %v8519_v61 = vpop.f32.mrf.mxu0  ;;  %v16474_v14 = vld [vmem:[#allocation163_spill] sm:$0xff] }
 0x24a   : > { %v8479_v12 = vpop.f32.mrf.mxu1 }
 0x24b   : > { %v2188_v35 = vadd.f32 %v8479_v12, %v11336_v43  ;;  %3474 = vperm.xlu1 %9131, %v9293_v6   ;;  %v11713_v44 = vpop.permute.xlu1 %3053  ;;  %8578 = vmatmul.mubr.msk.bf16.gmra.mxu1 %vm808_vm0, %v2676_v38  ;;  %v2360_v16 = vpop.f32.mrf.mxu0  ;;  %v16475_v12 = vld [vmem:[#allocation35_spill] sm:$0xff]  ;;  %v9294_v38 = vld [vmem:[%s15458_s0 + $0x98] sm:$0xff] }
 0x24c   : > { %16473 = vst [vmem:[#allocation162_spill] sm:$0xff] %v11713_v44  ;;  %v3105_v63 = vmul.f32 %v11713_v44, %v16474_v14  ;;  %v2071_v21 = vpop.f32.mrf.mxu1  ;;  %v3107_v42 = vmul.f32 %v11610_v40, %v16475_v12  ;;  %v16482_v12 = vld [vmem:[#allocation203_spill] sm:$0xff] }
 0x24d   : > { %v2186_v47 = vadd.f32 %v2071_v21, %v11339_v45  ;;  %v11719_v56 = vadd.f32 %v8519_v61, %v2188_v35  ;;  %v8520_v25 = vpop.f32.mrf.mxu0  ;;  %v16478_v61 = vld [vmem:[#allocation165_spill] sm:$0xff] }
 0x24e   : > { %v3124_v43 = vpack.c.bf16 %v3105_v63, %v3104_v59  ;;  %v8480_v3 = vpop.f32.mrf.mxu1 }
 0x24f   : > { %v2189_v10 = vadd.f32 %v8480_v3, %v11351_v57  ;;  %v11724_v29 = vadd.f32 %v2360_v16, %v2186_v47  ;;  %3478 = vperm.xlu1 %9131, %v9294_v38   ;;  %v11729_v14 = vpop.permute.xlu1 %3057  ;;  %v11731_v45 = vpop.f32.mrf.mxu0  ;;  %v16481_v47 = vld [vmem:[#allocation176_spill] sm:$0xff] }
 0x250   : > { %16476 = vst [vmem:[#allocation163_spill] sm:$0xff] %v11729_v14  ;;  %16477 = vst [vmem:[#allocation35_spill] sm:$0xff] %v11731_v45  ;;  %v3106_v59 = vmul.f32 %v11729_v14, %v16478_v61  ;;  %v11735_v35 = vpop.f32.mrf.mxu1  ;;  %8617 = vmatprep.mubr.msk.bf16.mxu0 %vm808_vm0, %v3124_v43  ;;  %v11740_v3 = vpop.permute.xlu0 %3454  ;;  %v2660_v38 = vmul.f32 %v16482_v12, %v16481_v47  ;;  %v9295_v61 = vld [vmem:[%s15458_s0 + $0x88] sm:$0xff] }
 0x251   : > { %16479 = vst [vmem:[#allocation165_spill] sm:$0xff] %v11735_v35  ;;  %v11738_v63 = vadd.f32 %v8520_v25, %v2189_v10  ;;  %v8523_v57 = vpop.f32.mrf.mxu0  ;;  %16480 = vst [vmem:[#allocation242_spill] sm:$0xff] %v11740_v3 }
 0x252   : > { %v3125_v16 = vpack.c.bf16 %v3107_v42, %v3106_v59  ;;  %v8483_v21 = vpop.f32.mrf.mxu1  ;;  %v16484_v42 = vld [vmem:[#allocation175_spill] sm:$0xff] }
 0x253   : > { %v2192_v40 = vadd.f32 %v8483_v21, %v11364_v4  ;;  %9132 = vset.pattern.permute.xlu1 %v16416_v7  ;;  %v2376_v44 = vpop.f32.mrf.mxu0 }
 0x254   : > { %3919 = vperm.xlu1 %9132, %v9295_v61   ;;  %v11749_v25 = vpop.permute.xlu1 %2616  ;;  %v2087_v10 = vpop.f32.mrf.mxu1  ;;  %8618 = vmatmul.mubr.msk.bf16.gmra.mxu0 %vm808_vm0, %v3125_v16 }
 0x255   : > { %16483 = vst [vmem:[#allocation243_spill] sm:$0xff] %v11749_v25  ;;  %v2659_v43 = vmul.f32 %v11749_v25, %v16484_v42  ;;  %v2190_v59 = vadd.f32 %v2087_v10, %v11370_v33  ;;  %v11755_v14 = vadd.f32 %v8523_v57, %v2192_v40  ;;  %v8524_v4 = vpop.f32.mrf.mxu0  ;;  %v11762_v47 = vpop.permute.xlu0 %3470  ;;  %v16490_v10 = vld [vmem:[#allocation87_spill] sm:$0xff] }
 0x256   : > { %v8484_v21 = vpop.f32.mrf.mxu1  ;;  %16486 = vst [vmem:[#allocation245_spill] sm:$0xff] %v11762_v47 }
 0x257   : > { %v2677_v12 = vpack.c.bf16 %v2660_v38, %v2659_v43  ;;  %v2193_v45 = vadd.f32 %v8484_v21, %v11375_v9  ;;  %v11758_v35 = vadd.f32 %v2376_v44, %v2190_v59  ;;  %v11760_v61 = vpop.f32.mrf.mxu0  ;;  %v16491_v43 = vld [vmem:[#allocation88_spill] sm:$0xff] }
 0x258   : > { %16485 = vst [vmem:[#allocation244_spill] sm:$0xff] %v11760_v61  ;;  %3923 = vperm.xlu1 %9132, %v9293_v6   ;;  %v11764_v16 = vpop.permute.xlu1 %2624  ;;  %v11766_v0 = vpop.f32.mrf.mxu1 }
 0x259   : > { %16487 = vst [vmem:[#allocation246_spill] sm:$0xff] %v11764_v16  ;;  %16488 = vst [vmem:[#allocation247_spill] sm:$0xff] %v11766_v0  ;;  %v11768_v25 = vadd.f32 %v8524_v4, %v2193_v45  ;;  %8581 = vmatprep.mubr.msk.bf16.mxu1 %vm808_vm0, %v2677_v12  ;;  %v8527_v33 = vpop.f32.mrf.mxu0  ;;  %v2661_v6 = vmul.f32 %v11764_v16, %v16490_v10  ;;  %v11785_v21 = vpop.permute.xlu0 %3486 }
 0x25a   : > { %v8487_v40 = vpop.f32.mrf.mxu1  ;;  %16492 = vst [vmem:[#allocation249_spill] sm:$0xff] %v11785_v21 }
 0x25b   : > { %v2196_v57 = vadd.f32 %v8487_v40, %v11390_v60  ;;  %v2392_v9 = vpop.f32.mrf.mxu0  ;;  %v9296_v60 = vld [vmem:[%s15458_s0 + $0xa0] sm:$0xff] }
 0x25c   : > { %9133 = vset.pattern.permute.xlu1 %v16407_v36  ;;  %v11773_v44 = vpop.permute.xlu1 %2628  ;;  %v2103_v38 = vpop.f32.mrf.mxu1 }
 0x25d   : > { %16489 = vst [vmem:[#allocation248_spill] sm:$0xff] %v11773_v44  ;;  %v2662_v59 = vmul.f32 %v11773_v44, %v16491_v43  ;;  %v2194_v45 = vadd.f32 %v2103_v38, %v11402_v1  ;;  %v11780_v4 = vadd.f32 %v8527_v33, %v2196_v57  ;;  %3482 = vperm.xlu1 %9133, %v9296_v60   ;;  %v8528_v12 = vpop.f32.mrf.mxu0  ;;  %v16494_v44 = vld [vmem:[#allocation40_spill] sm:$0xff] }
 0x25e   : > { %v8488_v40 = vpop.f32.mrf.mxu1  ;;  %v3108_v1 = vmul.f32 %v11625_v19, %v16494_v44  ;;  %v9297_v38 = vld [vmem:[%s15458_s0 + $0xb0] sm:$0xff] }
 0x25f   : > { %v2678_v61 = vpack.c.bf16 %v2662_v59, %v2661_v6  ;;  %v2197_v0 = vadd.f32 %v8488_v40, %v11406_v49  ;;  %v11788_v16 = vadd.f32 %v2392_v9, %v2194_v45  ;;  %v11790_v10 = vpop.f32.mrf.mxu0  ;;  %v16497_v9 = vld [vmem:[#allocation39_spill] sm:$0xff]  ;;  %v11807_v40 = vpop.permute.xlu0 %3502 }
 0x260   : > { %16493 = vst [vmem:[#allocation250_spill] sm:$0xff] %v11790_v10  ;;  %v11794_v33 = vpop.f32.mrf.mxu1  ;;  %16498 = vst [vmem:[#allocation39_spill] sm:$0xff] %v11807_v40 }
 0x261   : > { %16495 = vst [vmem:[#allocation40_spill] sm:$0xff] %v11794_v33  ;;  %v11796_v57 = vadd.f32 %v8528_v12, %v2197_v0  ;;  %3490 = vperm.xlu1 %9133, %v9297_v38   ;;  %v11801_v60 = vpop.permute.xlu1 %3069  ;;  %8582 = vmatmul.mubr.msk.bf16.gmra.mxu1 %vm808_vm0, %v2678_v61  ;;  %v8531_v49 = vpop.f32.mrf.mxu0  ;;  %v16499_v0 = vld [vmem:[#allocation44_spill] sm:$0xff]  ;;  %v9298_v61 = vld [vmem:[%s15458_s0 + $0xb8] sm:$0xff] }
 0x262   : > { %16496 = vst [vmem:[#allocation251_spill] sm:$0xff] %v11801_v60  ;;  %v3109_v6 = vmul.f32 %v11801_v60, %v16497_v9  ;;  %v8491_v59 = vpop.f32.mrf.mxu1  ;;  %v3111_v12 = vmul.f32 %v11642_v2, %v16499_v0 }
 0x263   : > { %v2200_v44 = vadd.f32 %v8491_v59, %v11458_v39  ;;  %v2408_v45 = vpop.f32.mrf.mxu0  ;;  %v16501_v59 = vld [vmem:[#allocation43_spill] sm:$0xff] }
 0x264   : > { %v3126_v19 = vpack.c.bf16 %v3109_v6, %v3108_v1  ;;  %v2119_v10 = vpop.f32.mrf.mxu1 }
 0x265   : > { %v2198_v33 = vadd.f32 %v2119_v10, %v11462_v27  ;;  %v11812_v43 = vadd.f32 %v8531_v49, %v2200_v44  ;;  %3494 = vperm.xlu1 %9133, %v9298_v61   ;;  %v11817_v9 = vpop.permute.xlu1 %3073  ;;  %v8532_v39 = vpop.f32.mrf.mxu0  ;;  %v9299_v44 = vld [vmem:[%s9701_s18 + $0x18] sm:$0xff] }
 0x266   : > { %16500 = vst [vmem:[#allocation44_spill] sm:$0xff] %v11817_v9  ;;  %v3110_v60 = vmul.f32 %v11817_v9, %v16501_v59  ;;  %v8492_v42 = vpop.f32.mrf.mxu1  ;;  %8621 = vmatprep.mubr.msk.bf16.mxu0 %vm808_vm0, %v3126_v19  ;;  %v3530_v0 = vmul.f32 %v9299_v44, %v11669_v18  ;;  %v11834_v9 = vpop.permute.xlu0 %3518 }
 0x267   : > { %v2201_v1 = vadd.f32 %v8492_v42, %v11470_v28  ;;  %v11823_v27 = vadd.f32 %v2408_v45, %v2198_v33  ;;  %v11825_v10 = vpop.f32.mrf.mxu0  ;;  %16504 = vst [vmem:[#allocation253_spill] sm:$0xff] %v11834_v9  ;;  %v9300_v28 = vld [vmem:[%s15458_s0 + $0xa8] sm:$0xff]  ;;  %v9301_v33 = vld [vmem:[%s9701_s18 + $0x10] sm:$0xff] }
 0x268   : > { %16502 = vst [vmem:[#allocation43_spill] sm:$0xff] %v11825_v10  ;;  %v3127_v49 = vpack.c.bf16 %v3111_v12, %v3110_v60  ;;  %v11827_v6 = vpop.f32.mrf.mxu1 }
 0x269   : > { %16503 = vst [vmem:[#allocation252_spill] sm:$0xff] %v11827_v6  ;;  %v11831_v61 = vadd.f32 %v8532_v39, %v2201_v1  ;;  %9134 = vset.pattern.permute.xlu1 %v16416_v7  ;;  %v8535_v59 = vpop.f32.mrf.mxu0 }
 0x26a   : > { %3935 = vperm.xlu1 %9134, %v9300_v28   ;;  %v11839_v19 = vpop.permute.xlu1 %3402  ;;  %v8495_v42 = vpop.f32.mrf.mxu1  ;;  %8622 = vmatmul.mubr.msk.bf16.gmra.mxu0 %vm808_vm0, %v3127_v49 }
 0x26b   : > { %16505 = vst [vmem:[#allocation254_spill] sm:$0xff] %v11839_v19  ;;  %v3529_v60 = vmul.f32 %v9301_v33, %v11839_v19  ;;  %v2204_v45 = vadd.f32 %v8495_v42, %v11522_v22  ;;  %v2424_v12 = vpop.f32.mrf.mxu0 }
 0x26c   : > { %v2135_v39 = vpop.f32.mrf.mxu1 }
 0x26d   : > { %v3561_v1 = vpack.c.bf16 %v3530_v0, %v3529_v60  ;;  %v2202_v44 = vadd.f32 %v2135_v39, %v11526_v13  ;;  %v11846_v2 = vadd.f32 %v8535_v59, %v2204_v45  ;;  %v8536_v10 = vpop.f32.mrf.mxu0  ;;  %v11858_v13 = vpop.permute.xlu0 %3851  ;;  %v9302_v60 = vld [vmem:[%s9701_s18 + $0x20] sm:$0xff] }
 0x26e   : > { %3939 = vperm.xlu1 %9134, %v9297_v38   ;;  %v11848_v28 = vpop.permute.xlu1 %3410  ;;  %v8496_v6 = vpop.f32.mrf.mxu1  ;;  %16509 = vst [vmem:[#allocation258_spill] sm:$0xff] %v11858_v13  ;;  %v9304_v39 = vld [vmem:[%s15458_s0 + $0xc0] sm:$0xff] }
 0x26f   : > { %16506 = vst [vmem:[#allocation255_spill] sm:$0xff] %v11848_v28  ;;  %v2205_v49 = vadd.f32 %v8496_v6, %v11531_v17  ;;  %v11851_v18 = vadd.f32 %v2424_v12, %v2202_v44  ;;  %8633 = vmatprep.mubr.msk.bf16.mxu1 %vm808_vm0, %v3561_v1  ;;  %v11854_v22 = vpop.f32.mrf.mxu0  ;;  %v3531_v17 = vmul.f32 %v9302_v60, %v11848_v28  ;;  %v9303_v6 = vld [vmem:[%s9701_s18 + $0x28] sm:$0xff]  ;;  %v16511_v60 = vld [vmem:[#allocation92_spill] sm:$0xff] }
 0x270   : > { %16507 = vst [vmem:[#allocation256_spill] sm:$0xff] %v11854_v22  ;;  %v11856_v0 = vpop.f32.mrf.mxu1  ;;  %v3978_v28 = vmul.f32 %v11858_v13, %v16511_v60 }
 0x271   : > { %16508 = vst [vmem:[#allocation257_spill] sm:$0xff] %v11856_v0  ;;  %v11860_v59 = vadd.f32 %v8536_v10, %v2205_v49  ;;  %v8539_v42 = vpop.f32.mrf.mxu0 }
 0x272   : > { %9135 = vset.pattern.permute.xlu1 %v16407_v36  ;;  %v11863_v38 = vpop.permute.xlu1 %3414  ;;  %v8499_v33 = vpop.f32.mrf.mxu1 }
 0x273   : > { %16510 = vst [vmem:[#allocation259_spill] sm:$0xff] %v11863_v38  ;;  %v3532_v45 = vmul.f32 %v9303_v6, %v11863_v38  ;;  %v2208_v12 = vadd.f32 %v8499_v33, %v11587_v34  ;;  %3498 = vperm.xlu1 %9135, %v9304_v39   ;;  %v2440_v10 = vpop.f32.mrf.mxu0  ;;  %v11878_v6 = vpop.permute.xlu0 %3863  ;;  %v9305_v39 = vld [vmem:[%s15458_s0 + $0xd0] sm:$0xff] }
 0x274   : > { %v2151_v1 = vpop.f32.mrf.mxu1  ;;  %16512 = vst [vmem:[#allocation92_spill] sm:$0xff] %v11878_v6 }
 0x275   : > { %v3562_v44 = vpack.c.bf16 %v3532_v45, %v3531_v17  ;;  %v2206_v49 = vadd.f32 %v2151_v1, %v11591_v32  ;;  %v11874_v22 = vadd.f32 %v8539_v42, %v2208_v12  ;;  %v8540_v0 = vpop.f32.mrf.mxu0  ;;  %v16515_v42 = vld [vmem:[#allocation93_spill] sm:$0xff] }
 0x276   : > { %v8500_v19 = vpop.f32.mrf.mxu1 }
 0x277   : > { %v2209_v34 = vadd.f32 %v8500_v19, %v11598_v58  ;;  %v11881_v33 = vadd.f32 %v2440_v10, %v2206_v49  ;;  %3506 = vperm.xlu1 %9135, %v9305_v39   ;;  %v11886_v17 = vpop.permute.xlu1 %3855  ;;  %8634 = vmatmul.mubr.msk.bf16.vlgmr.msra.gmra.mxu1 %vm808_vm0, %v3562_v44  ;;  %v11889_v32 = vpop.f32.mrf.mxu0  ;;  %v16517_v49 = vld [vmem:[#allocation95_spill] sm:$0xff]  ;;  %v9306_v44 = vld [vmem:[%s15458_s0 + $0xd8] sm:$0xff] }
 0x278   : > { %16513 = vst [vmem:[#allocation260_spill] sm:$0xff] %v11886_v17  ;;  %16514 = vst [vmem:[#allocation261_spill] sm:$0xff] %v11889_v32  ;;  %v3979_v45 = vmul.f32 %v11886_v17, %v16515_v42  ;;  %v11893_v12 = vpop.f32.mrf.mxu1  ;;  %v3981_v60 = vmul.f32 %v11878_v6, %v16517_v49  ;;  %v9307_v17 = vld [vmem:[%s9701_s18 + $0x38] sm:$0xff] }
 0x279   : > { %16516 = vst [vmem:[#allocation93_spill] sm:$0xff] %v11893_v12  ;;  %v11895_v1 = vadd.f32 %v8540_v0, %v2209_v34  ;;  %v8543_v58 = vpop.f32.mrf.mxu0  ;;  %v16518_v12 = vld [vmem:[#allocation98_spill] sm:$0xff] }
 0x27a   : > { %v4010_v19 = vpack.c.bf16 %v3979_v45, %v3978_v28  ;;  %v8503_v10 = vpop.f32.mrf.mxu1 }
 0x27b   : > { %v2212_v13 = vadd.f32 %v8503_v10, %v11652_v62  ;;  %3510 = vperm.xlu1 %9135, %v9306_v44   ;;  %v11903_v32 = vpop.permute.xlu1 %3859  ;;  %v2456_v42 = vpop.f32.mrf.mxu0  ;;  %v3534_v44 = vmul.f32 %v9307_v17, %v11681_v20 }
 0x27c   : > { %v3980_v0 = vmul.f32 %v11903_v32, %v16518_v12  ;;  %v2167_v34 = vpop.f32.mrf.mxu1  ;;  %8673 = vmatprep.mubr.msk.bf16.mxu0 %vm808_vm0, %v4010_v19  ;;  %v9308_v12 = vld [vmem:[%s15458_s0 + $0xc8] sm:$0xff] }
 0x27d   : > { %v2210_v28 = vadd.f32 %v2167_v34, %v11656_v52  ;;  %v11909_v45 = vadd.f32 %v8543_v58, %v2212_v13  ;;  %v8544_v49 = vpop.f32.mrf.mxu0  ;;  %v9309_v13 = vld [vmem:[%s9701_s18 + $0x30] sm:$0xff] }
 0x27e   : > { %v4011_v62 = vpack.c.bf16 %v3981_v60, %v3980_v0  ;;  %v8504_v10 = vpop.f32.mrf.mxu1  ;;  %v11932_v0 = vpop.permute.xlu0 %3867 }
 0x27f   : > { %v2213_v6 = vadd.f32 %v8504_v10, %v11661_v31  ;;  %v11914_v38 = vadd.f32 %v2456_v42, %v2210_v28  ;;  %9136 = vset.pattern.permute.xlu1 %v16416_v7  ;;  %v9311_v10 = vld [vmem:[%s9701_s18 + $0x48] sm:$0xff] }
 0x280   : > { %3951 = vperm.xlu1 %9136, %v9308_v12   ;;  %v11920_v52 = vpop.permute.xlu1 %3418  ;;  %8674 = vmatmul.mubr.msk.bf16.vlgmr.msra.gmra.mxu0 %vm808_vm0, %v4011_v62  ;;  %v11929_v60 = vpop.f32.mrf.mxu1  ;;  %v9310_v62 = vld [vmem:[%s9701_s18 + $0x40] sm:$0xff] }
 0x281   : > { %v3533_v17 = vmul.f32 %v9309_v13, %v11920_v52  ;;  %v11925_v58 = vadd.f32 %v8544_v49, %v2213_v6  ;;  %16520 = vst [vmem:[#allocation98_spill] sm:$0xff] %v11929_v60  ;;  %v9312_v49 = vld [vmem:[%s15458_s0 + $0xe0] sm:$0xff]  ;;  %v9319_v60 = vld [vmem:[%s9701_s18 + $0x68] sm:$0xff] }
 0x283   : > { %16519 = vst [vmem:[#allocation95_spill] sm:$0xff] %v11925_v58  ;;  %v3563_v31 = vpack.c.bf16 %v3534_v44, %v3533_v17  ;;  %v16521_v17 = vld [vmem:[#allocation99_spill] sm:$0xff] }
 0x284   : > { %3955 = vperm.xlu1 %9136, %v9305_v39   ;;  %v11927_v19 = vpop.permute.xlu1 %3426 }
 0x285   : > { %8637 = vmatprep.mubr.msk.bf16.mxu1 %vm808_vm0, %v3563_v31  ;;  %v3535_v6 = vmul.f32 %v9310_v62, %v11927_v19  ;;  %v3982_v31 = vmul.f32 %v11932_v0, %v16521_v17  ;;  %v9314_v17 = vld [vmem:[%s15458_s0 + $0xf8] sm:$0xff] }
 0x287   : > { %v8555_v42 = vpop.f32.mrf.mxu1 }
 0x288   : > { %v2922_v34 = vadd.f32 %v8555_v42, %v11684_v23  ;;  %9137 = vset.pattern.permute.xlu1 %v16407_v36  ;;  %v11936_v28 = vpop.permute.xlu1 %3430  ;;  %v9313_v42 = vld [vmem:[%s15458_s0 + $0xf0] sm:$0xff] }
 0x289   : > { %v3536_v39 = vmul.f32 %v9311_v10, %v11936_v28  ;;  %3514 = vperm.xlu1 %9137, %v9312_v49   ;;  %v2793_v44 = vpop.f32.mrf.mxu1  ;;  %v11955_v10 = vpop.permute.xlu0 %3879 }
 0x28a   : > { %v2920_v12 = vadd.f32 %v2793_v44, %v11694_v8  ;;  %16523 = vst [vmem:[#allocation262_spill] sm:$0xff] %v11955_v10  ;;  %v11957_v8 = vpop.f32.mrf.mxu0  ;;  %v3985_v44 = vmul.f32 %v11955_v10, %v16397_v50 }
 0x28b   : > { %v3564_v13 = vpack.c.bf16 %v3536_v39, %v3535_v6  ;;  %v8556_v23 = vpop.f32.mrf.mxu1  ;;  %16524 = vst [vmem:[#allocation263_spill] sm:$0xff] %v11957_v8  ;;  %v16525_v6 = vld [vmem:[#allocation97_spill] sm:$0xff] }
 0x28c   : > { %v2923_v36 = vadd.f32 %v8556_v23, %v11703_v15 }
 0x28d   : > { %3522 = vperm.xlu1 %9137, %v9313_v42   ;;  %v11952_v62 = vpop.permute.xlu1 %3871  ;;  %8638 = vmatmul.mubr.msk.bf16.gmra.mxu1 %vm808_vm0, %v3564_v13 }
 0x28e   : > { %16522 = vst [vmem:[#allocation99_spill] sm:$0xff] %v11952_v62  ;;  %v3983_v15 = vmul.f32 %v11952_v62, %v16525_v6 }
 0x290   : > { %v4012_v39 = vpack.c.bf16 %v3983_v15, %v3982_v31  ;;  %v8595_v49 = vpop.f32.mrf.mxu0 }
 0x291   : > { %v11963_v23 = vadd.f32 %v8595_v49, %v2922_v34  ;;  %3526 = vperm.xlu1 %9137, %v9314_v17   ;;  %v11968_v13 = vpop.permute.xlu1 %3875  ;;  %v9315_v34 = vld [vmem:[%s9701_s18 + $0x58] sm:$0xff]  ;;  %v9316_v17 = vld [vmem:[%s15458_s0 + $0xe8] sm:$0xff] }
 0x292   : > { %16526 = vst [vmem:[#allocation97_spill] sm:$0xff] %v11968_v13  ;;  %v3984_v58 = vmul.f32 %v11968_v13, %v16400_v30  ;;  %v3242_v8 = vpop.f32.mrf.mxu0  ;;  %8677 = vmatprep.mubr.msk.bf16.mxu0 %vm808_vm0, %v4012_v39  ;;  %v3538_v15 = vmul.f32 %v9315_v34, %v11707_v55  ;;  %v11990_v39 = vpop.f32.mrf.mxu1 }
 0x293   : > { %v11973_v31 = vadd.f32 %v3242_v8, %v2920_v12 }
 0x294   : > { %v4013_v6 = vpack.c.bf16 %v3985_v44, %v3984_v58  ;;  %v8596_v50 = vpop.f32.mrf.mxu0  ;;  %v9317_v58 = vld [vmem:[%s9701_s18 + $0x50] sm:$0xff]  ;;  %v11993_v44 = vpop.permute.xlu0 %3883 }
 0x295   : > { %v11977_v49 = vadd.f32 %v8596_v50, %v2923_v36  ;;  %9139 = vset.pattern.permute.xlu1 %v16416_v7  ;;  %16528 = vst [vmem:[#allocation265_spill] sm:$0xff] %v11993_v44  ;;  %v3986_v13 = vmul.f32 %v11993_v44, %v16409_v11 }
 0x296   : > { %3967 = vperm.xlu1 %9139, %v9316_v17   ;;  %v11983_v30 = vpop.permute.xlu1 %3434  ;;  %8678 = vmatmul.mubr.msk.bf16.gmra.mxu0 %vm808_vm0, %v4013_v6  ;;  %v9318_v17 = vld [vmem:[%s9701_s18 + $0x60] sm:$0xff] }
 0x297   : > { %v3537_v12 = vmul.f32 %v9317_v58, %v11983_v30 }
 0x299   : > { %v3565_v8 = vpack.c.bf16 %v3538_v15, %v3537_v12 }
 0x29a   : > { %3971 = vperm.xlu1 %9139, %v9313_v42   ;;  %v11988_v36 = vpop.permute.xlu1 %3442 }
 0x29b   : > { %16527 = vst [vmem:[#allocation264_spill] sm:$0xff] %v11988_v36  ;;  %8641 = vmatprep.mubr.msk.bf16.mxu1 %vm808_vm0, %v3565_v8  ;;  %v3539_v6 = vmul.f32 %v9318_v17, %v11988_v36  ;;  %v16636_v36 = vld [vmem:[#allocation129_spill] sm:$0xff] }
 0x29d   : > { %v8559_v7 = vpop.f32.mrf.mxu1 }
 0x29e   : > { %v2926_v50 = vadd.f32 %v8559_v7, %v11719_v56  ;;  %v11996_v34 = vpop.permute.xlu1 %3446  ;;  %v12009_v56 = vpop.permute.xlu0 %3895 }
 0x29f   : > { %16529 = vst [vmem:[#allocation266_spill] sm:$0xff] %v11996_v34  ;;  %v3540_v15 = vmul.f32 %v9319_v60, %v11996_v34  ;;  %v2809_v42 = vpop.f32.mrf.mxu1  ;;  %16531 = vst [vmem:[#allocation268_spill] sm:$0xff] %v12009_v56  ;;  %v12011_v7 = vpop.f32.mrf.mxu0 }
 0x2a0   : > { %v2924_v58 = vadd.f32 %v2809_v42, %v11724_v29 }
 0x2a1   : > { %v3566_v12 = vpack.c.bf16 %v3540_v15, %v3539_v6  ;;  %v8560_v10 = vpop.f32.mrf.mxu1 }
 0x2a2   : > { %v2927_v8 = vadd.f32 %v8560_v10, %v11738_v63  ;;  %v3989_v63 = vmul.f32 %v12009_v56, %v16415_v48 }
 0x2a3   : > { %v12006_v62 = vpop.permute.xlu1 %3887  ;;  %8642 = vmatmul.mubr.msk.bf16.gmra.mxu1 %vm808_vm0, %v3566_v12 }
 0x2a4   : > { %16530 = vst [vmem:[#allocation267_spill] sm:$0xff] %v12006_v62  ;;  %v3987_v60 = vmul.f32 %v12006_v62, %v16410_v41 }
 0x2a6   : > { %v4014_v29 = vpack.c.bf16 %v3987_v60, %v3986_v13  ;;  %v8599_v17 = vpop.f32.mrf.mxu0  ;;  %v9320_v13 = vld [vmem:[%s9701_s18 + $0x78] sm:$0xff] }
 0x2a7   : > { %v12017_v10 = vadd.f32 %v8599_v17, %v2926_v50  ;;  %v12019_v11 = vpop.permute.xlu1 %3891  ;;  %v3542_v60 = vmul.f32 %v9320_v13, %v11740_v3  ;;  %v9321_v17 = vld [vmem:[%s9701_s18 + $0x70] sm:$0xff]  ;;  %v9323_v13 = vld [vmem:[%s9701_s18 + $0x88] sm:$0xff]  ;;  %v16620_v3 = vld [vmem:[#allocation254_spill] sm:$0xff] }
 0x2a8   : > { %16532 = vst [vmem:[#allocation269_spill] sm:$0xff] %v12019_v11  ;;  %v3988_v6 = vmul.f32 %v12019_v11, %v16418_v46  ;;  %v3258_v15 = vpop.f32.mrf.mxu0  ;;  %8681 = vmatprep.mubr.msk.bf16.mxu0 %vm808_vm0, %v4014_v29  ;;  %v12047_v11 = vpop.permute.xlu0 %3899 }
 0x2a9   : > { %v12024_v42 = vadd.f32 %v3258_v15, %v2924_v58  ;;  %v12037_v58 = vpop.f32.mrf.mxu1  ;;  %16536 = vst [vmem:[#allocation273_spill] sm:$0xff] %v12047_v11 }
 0x2aa   : > { %v4015_v12 = vpack.c.bf16 %v3989_v63, %v3988_v6  ;;  %v8600_v41 = vpop.f32.mrf.mxu0 }
 0x2ab   : > { %v12028_v48 = vadd.f32 %v8600_v41, %v2927_v8  ;;  %v9322_v8 = vld [vmem:[%s9701_s18 + $0x80] sm:$0xff] }
 0x2ac   : > { %v12030_v50 = vpop.permute.xlu1 %3450  ;;  %8682 = vmatmul.mubr.msk.bf16.gmra.mxu0 %vm808_vm0, %v4015_v12 }
 0x2ad   : > { %16533 = vst [vmem:[#allocation270_spill] sm:$0xff] %v12030_v50  ;;  %v3541_v46 = vmul.f32 %v9321_v17, %v12030_v50 }
 0x2af   : > { %v3567_v56 = vpack.c.bf16 %v3542_v60, %v3541_v46 }
 0x2b0   : > { %v12035_v29 = vpop.permute.xlu1 %3458 }
 0x2b1   : > { %16534 = vst [vmem:[#allocation271_spill] sm:$0xff] %v12035_v29  ;;  %8645 = vmatprep.mubr.msk.bf16.mxu1 %vm808_vm0, %v3567_v56  ;;  %v3543_v41 = vmul.f32 %v9322_v8, %v12035_v29  ;;  %v3990_v56 = vmul.f32 %v12047_v11, %v16423_v53  ;;  %v12056_v8 = vpop.f32.mrf.mxu0 }
 0x2b3   : > { %v8563_v63 = vpop.f32.mrf.mxu1 }
 0x2b4   : > { %v2930_v6 = vadd.f32 %v8563_v63, %v11755_v14  ;;  %v12041_v15 = vpop.permute.xlu1 %3462 }
 0x2b5   : > { %16535 = vst [vmem:[#allocation272_spill] sm:$0xff] %v12041_v15  ;;  %v3544_v12 = vmul.f32 %v9323_v13, %v12041_v15  ;;  %v2825_v60 = vpop.f32.mrf.mxu1  ;;  %v12060_v15 = vpop.permute.xlu0 %3911 }
 0x2b6   : > { %v2928_v17 = vadd.f32 %v2825_v60, %v11758_v35  ;;  %16538 = vst [vmem:[#allocation275_spill] sm:$0xff] %v12060_v15 }
 0x2b7   : > { %v3568_v46 = vpack.c.bf16 %v3544_v12, %v3543_v41  ;;  %v8564_v62 = vpop.f32.mrf.mxu1  ;;  %v3993_v41 = vmul.f32 %v12060_v15, %v16429_v26  ;;  %v9324_v26 = vld [vmem:[%s9701_s18 + $0x98] sm:$0xff] }
 0x2b8   : > { %v2931_v14 = vadd.f32 %v8564_v62, %v11768_v25 }
 0x2b9   : > { %v12053_v63 = vpop.permute.xlu1 %3903  ;;  %8646 = vmatmul.mubr.msk.bf16.gmra.mxu1 %vm808_vm0, %v3568_v46 }
 0x2ba   : > { %16537 = vst [vmem:[#allocation274_spill] sm:$0xff] %v12053_v63  ;;  %v3991_v13 = vmul.f32 %v12053_v63, %v16424_v54 }
 0x2bc   : > { %v4016_v35 = vpack.c.bf16 %v3991_v13, %v3990_v56  ;;  %v8603_v53 = vpop.f32.mrf.mxu0 }
 0x2bd   : > { %v12064_v12 = vadd.f32 %v8603_v53, %v2930_v6  ;;  %v12066_v25 = vpop.permute.xlu1 %3907  ;;  %v3546_v6 = vmul.f32 %v9324_v26, %v11762_v47  ;;  %v9325_v53 = vld [vmem:[%s9701_s18 + $0x90] sm:$0xff]  ;;  %v9327_v26 = vld [vmem:[%s9701_s18 + $0xa8] sm:$0xff] }
 0x2be   : > { %16539 = vst [vmem:[#allocation276_spill] sm:$0xff] %v12066_v25  ;;  %v3992_v62 = vmul.f32 %v12066_v25, %v16432_v51  ;;  %v3274_v60 = vpop.f32.mrf.mxu0  ;;  %8685 = vmatprep.mubr.msk.bf16.mxu0 %vm808_vm0, %v4016_v35 }
 0x2bf   : > { %v12071_v54 = vadd.f32 %v3274_v60, %v2928_v17  ;;  %v12084_v17 = vpop.f32.mrf.mxu1  ;;  %v9326_v60 = vld [vmem:[%s9701_s18 + $0xa0] sm:$0xff] }
 0x2c0   : > { %v4017_v46 = vpack.c.bf16 %v3993_v41, %v3992_v62  ;;  %v8604_v63 = vpop.f32.mrf.mxu0  ;;  %v12090_v62 = vpop.permute.xlu0 %3915 }
 0x2c1   : > { %v12073_v56 = vadd.f32 %v8604_v63, %v2931_v14  ;;  %16543 = vst [vmem:[#allocation280_spill] sm:$0xff] %v12090_v62 }
 0x2c2   : > { %v12075_v13 = vpop.permute.xlu1 %3466  ;;  %8686 = vmatmul.mubr.msk.bf16.gmra.mxu0 %vm808_vm0, %v4017_v46  ;;  %v12103_v29 = vpop.f32.mrf.mxu0 }
 0x2c3   : > { %16540 = vst [vmem:[#allocation277_spill] sm:$0xff] %v12075_v13  ;;  %v3545_v51 = vmul.f32 %v9325_v53, %v12075_v13  ;;  %v16618_v13 = vld [vmem:[#allocation52_spill] sm:$0xff] }
 0x2c5   : > { %v3569_v15 = vpack.c.bf16 %v3546_v6, %v3545_v51 }
 0x2c6   : > { %v12082_v35 = vpop.permute.xlu1 %3474 }
 0x2c7   : > { %16541 = vst [vmem:[#allocation278_spill] sm:$0xff] %v12082_v35  ;;  %8649 = vmatprep.mubr.msk.bf16.mxu1 %vm808_vm0, %v3569_v15  ;;  %v3547_v46 = vmul.f32 %v9326_v60, %v12082_v35  ;;  %v3994_v15 = vmul.f32 %v12090_v62, %v16437_v5 }
 0x2c9   : > { %v8567_v14 = vpop.f32.mrf.mxu1 }
 0x2ca   : > { %v2934_v63 = vadd.f32 %v8567_v14, %v11780_v4  ;;  %v12088_v41 = vpop.permute.xlu1 %3478 }
 0x2cb   : > { %16542 = vst [vmem:[#allocation279_spill] sm:$0xff] %v12088_v41  ;;  %v3548_v53 = vmul.f32 %v9327_v26, %v12088_v41  ;;  %v2841_v6 = vpop.f32.mrf.mxu1  ;;  %v12107_v26 = vpop.permute.xlu0 %3927 }
 0x2cc   : > { %v2932_v51 = vadd.f32 %v2841_v6, %v11788_v16  ;;  %16545 = vst [vmem:[#allocation282_spill] sm:$0xff] %v12107_v26  ;;  %v3997_v16 = vmul.f32 %v12107_v26, %v16445_v37 }
 0x2cd   : > { %v3570_v25 = vpack.c.bf16 %v3548_v53, %v3547_v46  ;;  %v8568_v47 = vpop.f32.mrf.mxu1 }
 0x2ce   : > { %v2935_v4 = vadd.f32 %v8568_v47, %v11796_v57  ;;  %v16547_v57 = vld [vmem:[#allocation141_spill] sm:$0xff] }
 0x2cf   : > { %v12100_v14 = vpop.permute.xlu1 %3919  ;;  %8650 = vmatmul.mubr.msk.bf16.gmra.mxu1 %vm808_vm0, %v3570_v25 }
 0x2d0   : > { %16544 = vst [vmem:[#allocation281_spill] sm:$0xff] %v12100_v14  ;;  %v3995_v60 = vmul.f32 %v12100_v14, %v16438_v24 }
 0x2d2   : > { %v4018_v46 = vpack.c.bf16 %v3995_v60, %v3994_v15  ;;  %v8607_v5 = vpop.f32.mrf.mxu0  ;;  %v9329_v60 = vld [vmem:[%s9701_s18 + $0xb0] sm:$0xff] }
 0x2d3   : > { %v12111_v53 = vadd.f32 %v8607_v5, %v2934_v63  ;;  %v12113_v47 = vpop.permute.xlu1 %3923  ;;  %v9328_v63 = vld [vmem:[%s9701_s18 + $0xb8] sm:$0xff] }
 0x2d4   : > { %16546 = vst [vmem:[#allocation283_spill] sm:$0xff] %v12113_v47  ;;  %v3996_v25 = vmul.f32 %v12113_v47, %v16547_v57  ;;  %v3290_v6 = vpop.f32.mrf.mxu0  ;;  %8689 = vmatprep.mubr.msk.bf16.mxu0 %vm808_vm0, %v4018_v46  ;;  %v3550_v15 = vmul.f32 %v9328_v63, %v11785_v21 }
 0x2d5   : > { %v12118_v24 = vadd.f32 %v3290_v6, %v2932_v51  ;;  %v12131_v51 = vpop.f32.mrf.mxu1  ;;  %v9331_v6 = vld [vmem:[%s9701_s18 + $0xc8] sm:$0xff] }
 0x2d6   : > { %v4019_v14 = vpack.c.bf16 %v3997_v16, %v3996_v25  ;;  %v8608_v41 = vpop.f32.mrf.mxu0  ;;  %v9330_v25 = vld [vmem:[%s9701_s18 + $0xc0] sm:$0xff] }
 0x2d7   : > { %v12120_v35 = vadd.f32 %v8608_v41, %v2935_v4 }
 0x2d8   : > { %v12122_v37 = vpop.permute.xlu1 %3482  ;;  %8690 = vmatmul.mubr.msk.bf16.gmra.mxu0 %vm808_vm0, %v4019_v14 }
 0x2d9   : > { %16548 = vst [vmem:[#allocation141_spill] sm:$0xff] %v12122_v37  ;;  %v3549_v5 = vmul.f32 %v9329_v60, %v12122_v37  ;;  %v12142_v60 = vpop.permute.xlu0 %3931 }
 0x2da   : > { %16551 = vst [vmem:[#allocation286_spill] sm:$0xff] %v12142_v60 }
 0x2db   : > { %v3571_v57 = vpack.c.bf16 %v3550_v15, %v3549_v5 }
 0x2dc   : > { %v12129_v46 = vpop.permute.xlu1 %3490 }
 0x2dd   : > { %16549 = vst [vmem:[#allocation284_spill] sm:$0xff] %v12129_v46  ;;  %8653 = vmatprep.mubr.msk.bf16.mxu1 %vm808_vm0, %v3571_v57  ;;  %v3551_v14 = vmul.f32 %v9330_v25, %v12129_v46  ;;  %v12150_v25 = vpop.f32.mrf.mxu0  ;;  %v16554_v46 = vld [vmem:[#allocation154_spill] sm:$0xff] }
 0x2df   : > { %v8571_v41 = vpop.f32.mrf.mxu1 }
 0x2e0   : > { %v2938_v4 = vadd.f32 %v8571_v41, %v11812_v43  ;;  %v12135_v16 = vpop.permute.xlu1 %3494  ;;  %v16553_v43 = vld [vmem:[#allocation155_spill] sm:$0xff] }
 0x2e1   : > { %16550 = vst [vmem:[#allocation285_spill] sm:$0xff] %v12135_v16  ;;  %v3552_v63 = vmul.f32 %v9331_v6, %v12135_v16  ;;  %v2857_v26 = vpop.f32.mrf.mxu1  ;;  %v3998_v41 = vmul.f32 %v12142_v60, %v16553_v43  ;;  %v16559_v16 = vld [vmem:[#allocation159_spill] sm:$0xff] }
 0x2e2   : > { %v2936_v15 = vadd.f32 %v2857_v26, %v11823_v27 }
 0x2e3   : > { %v3572_v5 = vpack.c.bf16 %v3552_v63, %v3551_v14  ;;  %v8572_v47 = vpop.f32.mrf.mxu1  ;;  %v12154_v14 = vpop.permute.xlu0 %3943 }
 0x2e4   : > { %v2939_v57 = vadd.f32 %v8572_v47, %v11831_v61  ;;  %16555 = vst [vmem:[#allocation155_spill] sm:$0xff] %v12154_v14  ;;  %v16558_v47 = vld [vmem:[#allocation160_spill] sm:$0xff] }
 0x2e5   : > { %v12145_v21 = vpop.permute.xlu1 %3935  ;;  %8654 = vmatmul.mubr.msk.bf16.gmra.mxu1 %vm808_vm0, %v3572_v5  ;;  %v4001_v5 = vmul.f32 %v12154_v14, %v16558_v47  ;;  %v9333_v14 = vld [vmem:[%s9701_s18 + $0xd0] sm:$0xff] }
 0x2e6   : > { %16552 = vst [vmem:[#allocation287_spill] sm:$0xff] %v12145_v21  ;;  %v3999_v6 = vmul.f32 %v12145_v21, %v16554_v46 }
 0x2e8   : > { %v4020_v27 = vpack.c.bf16 %v3999_v6, %v3998_v41  ;;  %v8611_v26 = vpop.f32.mrf.mxu0 }
 0x2e9   : > { %v12156_v63 = vadd.f32 %v8611_v26, %v2938_v4  ;;  %v12158_v61 = vpop.permute.xlu1 %3939  ;;  %v9332_v26 = vld [vmem:[%s9701_s18 + $0xd8] sm:$0xff] }
 0x2ea   : > { %16557 = vst [vmem:[#allocation288_spill] sm:$0xff] %v12158_v61  ;;  %v4000_v43 = vmul.f32 %v12158_v61, %v16559_v16  ;;  %v3306_v60 = vpop.f32.mrf.mxu0  ;;  %8693 = vmatprep.mubr.msk.bf16.mxu0 %vm808_vm0, %v4020_v27  ;;  %v3554_v47 = vmul.f32 %v9332_v26, %v11807_v40 }
 0x2eb   : > { %16556 = vst [vmem:[#allocation154_spill] sm:$0xff] %v12156_v63  ;;  %v12165_v46 = vadd.f32 %v3306_v60, %v2936_v15  ;;  %v12178_v15 = vpop.f32.mrf.mxu1  ;;  %v16634_v63 = vld [vmem:[#allocation86_spill] sm:$0xff] }
 0x2ec   : > { %v4021_v41 = vpack.c.bf16 %v4001_v5, %v4000_v43  ;;  %v8612_v6 = vpop.f32.mrf.mxu0  ;;  %v9334_v43 = vld [vmem:[%s9701_s18 + $0xe0] sm:$0xff] }
 0x2ed   : > { %16560 = vst [vmem:[#allocation160_spill] sm:$0xff] %v12165_v46  ;;  %v12167_v21 = vadd.f32 %v8612_v6, %v2939_v57  ;;  %v9335_v6 = vld [vmem:[%s9701_s18 + $0xe8] sm:$0xff]  ;;  %v16631_v46 = vld [vmem:[#allocation122_spill] sm:$0xff] }
 0x2ee   : > { %v12169_v4 = vpop.permute.xlu1 %3498  ;;  %8694 = vmatmul.mubr.msk.bf16.gmra.mxu0 %vm808_vm0, %v4021_v41 }
 0x2ef   : > { %16561 = vst [vmem:[#allocation159_spill] sm:$0xff] %v12167_v21  ;;  %16562 = vst [vmem:[#allocation289_spill] sm:$0xff] %v12169_v4  ;;  %v3553_v16 = vmul.f32 %v9333_v14, %v12169_v4 }
 0x2f1   : > { %v3573_v61 = vpack.c.bf16 %v3554_v47, %v3553_v16  ;;  %v12189_v47 = vpop.permute.xlu0 %3947 }
 0x2f2   : > { %v12176_v27 = vpop.permute.xlu1 %3506  ;;  %16565 = vst [vmem:[#allocation292_spill] sm:$0xff] %v12189_v47 }
 0x2f3   : > { %16563 = vst [vmem:[#allocation290_spill] sm:$0xff] %v12176_v27  ;;  %8657 = vmatprep.mubr.msk.bf16.mxu1 %vm808_vm0, %v3573_v61  ;;  %v3555_v41 = vmul.f32 %v9334_v43, %v12176_v27  ;;  %v12197_v43 = vpop.f32.mrf.mxu0  ;;  %v16568_v27 = vld [vmem:[#allocation168_spill] sm:$0xff] }
 0x2f5   : > { %v8575_v60 = vpop.f32.mrf.mxu1 }
 0x2f6   : > { %v2942_v57 = vadd.f32 %v8575_v60, %v11846_v2  ;;  %v12182_v5 = vpop.permute.xlu1 %3510  ;;  %v16567_v2 = vld [vmem:[#allocation169_spill] sm:$0xff] }
 0x2f7   : > { %16564 = vst [vmem:[#allocation291_spill] sm:$0xff] %v12182_v5  ;;  %v3556_v26 = vmul.f32 %v9335_v6, %v12182_v5  ;;  %v2873_v40 = vpop.f32.mrf.mxu1  ;;  %v4002_v60 = vmul.f32 %v12189_v47, %v16567_v2  ;;  %v16573_v5 = vld [vmem:[#allocation175_spill] sm:$0xff] }
 0x2f8   : > { %v2940_v14 = vadd.f32 %v2873_v40, %v11851_v18 }
 0x2f9   : > { %v3574_v16 = vpack.c.bf16 %v3556_v26, %v3555_v41  ;;  %v8576_v4 = vpop.f32.mrf.mxu1  ;;  %v12201_v41 = vpop.permute.xlu0 %3959 }
 0x2fa   : > { %v2943_v61 = vadd.f32 %v8576_v4, %v11860_v59  ;;  %16569 = vst [vmem:[#allocation169_spill] sm:$0xff] %v12201_v41  ;;  %v16572_v4 = vld [vmem:[#allocation176_spill] sm:$0xff] }
 0x2fb   : > { %v12192_v62 = vpop.permute.xlu1 %3951  ;;  %8658 = vmatmul.mubr.msk.bf16.gmra.mxu1 %vm808_vm0, %v3574_v16  ;;  %v4005_v16 = vmul.f32 %v12201_v41, %v16572_v4  ;;  %v9337_v41 = vld [vmem:[%s9701_s18 + $0xf0] sm:$0xff] }
 0x2fc   : > { %16566 = vst [vmem:[#allocation293_spill] sm:$0xff] %v12192_v62  ;;  %v4003_v6 = vmul.f32 %v12192_v62, %v16568_v27 }
 0x2fe   : > { %v4022_v18 = vpack.c.bf16 %v4003_v6, %v4002_v60  ;;  %v8615_v40 = vpop.f32.mrf.mxu0 }
 0x2ff   : > { %v12203_v26 = vadd.f32 %v8615_v40, %v2942_v57  ;;  %v12205_v59 = vpop.permute.xlu1 %3955  ;;  %v9336_v40 = vld [vmem:[%s9701_s18 + $0xf8] sm:$0xff] }
 0x300   : > { %16571 = vst [vmem:[#allocation294_spill] sm:$0xff] %v12205_v59  ;;  %v4004_v2 = vmul.f32 %v12205_v59, %v16573_v5  ;;  %v3322_v47 = vpop.f32.mrf.mxu0  ;;  %8697 = vmatprep.mubr.msk.bf16.mxu0 %vm808_vm0, %v4022_v18  ;;  %v3558_v4 = vmul.f32 %v9336_v40, %v11834_v9  ;;  %v9339_v40 = vld [vmem:[%s9701_s18 + $0x8] sm:$0xff] }
 0x301   : > { %16570 = vst [vmem:[#allocation168_spill] sm:$0xff] %v12203_v26  ;;  %v12212_v27 = vadd.f32 %v3322_v47, %v2940_v14  ;;  %v12225_v14 = vpop.f32.mrf.mxu1 }
 0x302   : > { %v4023_v60 = vpack.c.bf16 %v4005_v16, %v4004_v2  ;;  %v8616_v6 = vpop.f32.mrf.mxu0  ;;  %16577 = vst [vmem:[#allocation296_spill] sm:$0xff] %v12225_v14  ;;  %v12231_v2 = vpop.permute.xlu0 %3963 }
 0x303   : > { %16574 = vst [vmem:[#allocation176_spill] sm:$0xff] %v12212_v27  ;;  %v12214_v62 = vadd.f32 %v8616_v6, %v2943_v61  ;;  %16578 = vst [vmem:[#allocation297_spill] sm:$0xff] %v12231_v2 }
 0x304   : > { %v12216_v57 = vpop.permute.xlu1 %3514  ;;  %8698 = vmatmul.mubr.msk.bf16.gmra.mxu0 %vm808_vm0, %v4023_v60  ;;  %v9338_v60 = vld [vmem:[%s9701_s18] sm:$0xff] }
 0x305   : > { %16575 = vst [vmem:[#allocation175_spill] sm:$0xff] %v12214_v62  ;;  %16576 = vst [vmem:[#allocation295_spill] sm:$0xff] %v12216_v57  ;;  %v3557_v5 = vmul.f32 %v9337_v41, %v12216_v57  ;;  %v12244_v62 = vpop.f32.mrf.mxu0 }
 0x307   : > { %v3575_v59 = vpack.c.bf16 %v3558_v4, %v3557_v5 }
 0x308   : > { %v12223_v18 = vpop.permute.xlu1 %3522 }
 0x309   : > { %8661 = vmatprep.mubr.msk.bf16.mxu1 %vm808_vm0, %v3575_v59  ;;  %v3559_v6 = vmul.f32 %v9338_v60, %v12223_v18  ;;  %v16582_v60 = vld [vmem:[#allocation88_spill] sm:$0xff] }
 0x30b   : > { %v8579_v47 = vpop.f32.mrf.mxu1 }
 0x30c   : > { %v2946_v61 = vadd.f32 %v8579_v47, %v11874_v22  ;;  %v12229_v16 = vpop.permute.xlu1 %3526  ;;  %v16580_v22 = vld [vmem:[#allocation87_spill] sm:$0xff] }
 0x30d   : > { %v3560_v41 = vmul.f32 %v9339_v40, %v12229_v16  ;;  %v2889_v4 = vpop.f32.mrf.mxu1  ;;  %v4006_v47 = vmul.f32 %v12231_v2, %v16580_v22  ;;  %16581 = vst [vmem:[#allocation87_spill] sm:$0xff] %v12244_v62  ;;  %v12248_v40 = vpop.permute.xlu0 %3975 }
 0x30e   : > { %v2944_v5 = vadd.f32 %v2889_v4, %v11881_v33 }
 0x30f   : > { %v3576_v9 = vpack.c.bf16 %v3560_v41, %v3559_v6  ;;  %v8580_v57 = vpop.f32.mrf.mxu1 }
 0x310   : > { %v2947_v59 = vadd.f32 %v8580_v57, %v11895_v1  ;;  %v16584_v1 = vld [vmem:[#allocation85_spill] sm:$0xff] }
 0x311   : > { %v12239_v37 = vpop.permute.xlu1 %3967  ;;  %8662 = vmatmul.mubr.msk.bf16.gmra.mxu1 %vm808_vm0, %v3576_v9  ;;  %v4009_v57 = vmul.f32 %v12248_v40, %v16584_v1  ;;  %v16585_v9 = vld [vmem:[#allocation89_spill] sm:$0xff] }
 0x312   : > { %16579 = vst [vmem:[#allocation298_spill] sm:$0xff] %v12239_v37  ;;  %v4007_v27 = vmul.f32 %v12239_v37, %v16582_v60 }
 0x314   : > { %v4024_v26 = vpack.c.bf16 %v4007_v27, %v4006_v47  ;;  %v8619_v33 = vpop.f32.mrf.mxu0  ;;  %v12264_v27 = vpop.f32.mrf.mxu1 }
 0x315   : > { %v12250_v6 = vadd.f32 %v8619_v33, %v2946_v61  ;;  %v12252_v41 = vpop.permute.xlu1 %3971  ;;  %16588 = vst [vmem:[#allocation299_spill] sm:$0xff] %v12264_v27 }
 0x316   : > { %v4008_v4 = vmul.f32 %v12252_v41, %v16585_v9  ;;  %v3338_v22 = vpop.f32.mrf.mxu0  ;;  %8701 = vmatprep.mubr.msk.bf16.mxu0 %vm808_vm0, %v4024_v26  ;;  %v9176_v26 = vld [vmem:[%s15462_s4 + $0x38] sm:$0xff]  }
 0x317   : > { %16583 = vst [vmem:[#allocation88_spill] sm:$0xff] %v12250_v6  ;;  %v12259_v2 = vadd.f32 %v3338_v22, %v2944_v5  ;;  %8705 = vmatprep.subr.bf16.mxu1 %v9176_v26  ;;  %v16595_v22 = vld [vmem:[#allocation205_spill] sm:$0xff] }
 0x318   : > { %v4025_v60 = vpack.c.bf16 %v4009_v57, %v4008_v4  ;;  %v8620_v37 = vpop.f32.mrf.mxu0  ;;  %8706 = vmatpush3.bf16.msra.mxu1 %v9176_v26 }
 0x319   : > { %16586 = vst [vmem:[#allocation85_spill] sm:$0xff] %v12259_v2  ;;  %v12261_v11 = vadd.f32 %v8620_v37, %v2947_v59 }
 0x31a   : > { %8702 = vmatmul.mubr.msk.bf16.gmra.mxu0 %vm808_vm0, %v4025_v60  ;;  %v12268_v9 = vpop.f32.mrf.mxu0 }
 0x31b   : > { %16587 = vst [vmem:[#allocation89_spill] sm:$0xff] %v12261_v11  ;;  %16589 = vst [vmem:[#allocation300_spill] sm:$0xff] %v12268_v9 }
 0x321   : > { %v8583_v61 = vpop.f32.mrf.mxu1 }
 0x322   : > { %v2950_v47 = vadd.f32 %v8583_v61, %v11909_v45  ;;  %v16596_v61 = vld [vmem:[#allocation211_spill] sm:$0xff] }
 0x323   : > { %v2905_v33 = vpop.f32.mrf.mxu1 }
 0x324   : > { %v2948_v1 = vadd.f32 %v2905_v33, %v11914_v38  ;;  %v16594_v38 = vld [vmem:[#allocation161_spill] sm:$0xff] }
 0x325   : > { %v12277_v57 = vpop.f32.mrf.mxu1  ;;  %v1128_v60 = vadd.f32 %v16595_v22, %v16594_v38 }
 0x326   : > { %16592 = vst [vmem:[#allocation303_spill] sm:$0xff] %v12277_v57 }
 0x327   : > { %v12279_v45 = vpop.f32.mrf.mxu1  ;;  %v1734_v33 = vadd.f32 %v16596_v61, %v1128_v60  ;;  %v12297_v60 = vld [vmem:[%s15461_s3] ss:$0 sm:$0xff] }
 0x328   : > { %16593 = vst [vmem:[#allocation304_spill] sm:$0xff] %v12279_v45 }
 0x32a   : > { %v8623_v6 = vpop.f32.mrf.mxu0 }
 0x32b   : > { %v12273_v5 = vadd.f32 %v8623_v6, %v2950_v47  ;;  %v16598_v6 = vld [vmem:[#allocation241_spill] sm:$0xff] }
 0x32c   : > { %v3354_v37 = vpop.f32.mrf.mxu0  ;;  %v2183_v47 = vadd.f32 %v16598_v6, %v1734_v33 }
 0x32d   : > { %16590 = vst [vmem:[#allocation301_spill] sm:$0xff] %v12273_v5  ;;  %v12275_v59 = vadd.f32 %v3354_v37, %v2948_v1  ;;  %v9177_v1 = vld [vmem:[%s15462_s4 + $0x30] sm:$0xff]   ;;  %v16600_v5 = vld [vmem:[#allocation209_spill] sm:$0xff] }
 0x32e   : > { %v12284_v11 = vpop.f32.mrf.mxu0  ;;  %8707 = vmatprep.subr.bf16.mxu1 %v9177_v1  ;;  %v2472_v38 = vadd.f32 %v16600_v5, %v2183_v47 }
 0x32f   : > { %16591 = vst [vmem:[#allocation302_spill] sm:$0xff] %v12275_v59  ;;  %16597 = vst [vmem:[#allocation161_spill] sm:$0xff] %v12284_v11  ;;  %8708 = vmatpush3.bf16.msra.mxu1 %v9177_v1 }
 0x330   : > { %v12290_v26 = vpop.f32.mrf.mxu0  ;;  %v2921_v6 = vadd.f32 %v11990_v39, %v2472_v38  ;;  %v16604_v38 = vld [vmem:[#allocation7_spill] sm:$0xff] }
 0x331   : > { %16599 = vst [vmem:[#allocation205_spill] sm:$0xff] %v12290_v26 }
 0x332   : > { %v3370_v5 = vadd.f32 %v12011_v7, %v2921_v6 }
 0x337   : > { %v8635_v4 = vpop.f32.mrf.mxu1 }
 0x338   : > { %v3820_v37 = vadd.f32 %v8635_v4, %v11963_v23 }
 0x339   : > { %v3691_v2 = vpop.f32.mrf.mxu1 }
 0x33a   : > { %v3818_v61 = vadd.f32 %v3691_v2, %v11973_v31 }
 0x33b   : > { %v8636_v59 = vpop.f32.mrf.mxu1 }
 0x33c   : > { %v3821_v26 = vadd.f32 %v8636_v59, %v11977_v49 }
 0x33d   : > { %v3694_v45 = vpop.f32.mrf.mxu1 }
 0x33e   : > { %v3819_v9 = vadd.f32 %v3694_v45, %v3370_v5  ;;  %v16614_v5 = vld [vmem:[#allocation132_spill] sm:$0xff] }
 0x340   : > { %v8675_v22 = vpop.f32.mrf.mxu0 }
 0x341   : > { %v4269_v33 = vadd.f32 %v8675_v22, %v3820_v37 }
 0x342   : > { %v4140_v11 = vpop.f32.mrf.mxu0 }
 0x343   : > { %v4308_v23 = vadd.f32 %v12297_v60, %v4269_v33  ;;  %v4267_v4 = vadd.f32 %v4140_v11, %v3818_v61  ;;  %v16608_v33 = vld [vmem:[#allocation172_spill] sm:$0xff] }
 0x344   : > { %v8676_v47 = vpop.f32.mrf.mxu0 }
 0x345   : > { %v12304_v1 = vmax.f32 %v4308_v23, 0.0  ;;  %v4270_v57 = vadd.f32 %v8676_v47, %v3821_v26  ;;  %v4306_v27 = vadd.f32 %v12297_v60, %v4267_v4  ;;  %v17118_v47 = vld [vmem:[#allocation202_spill] sm:$0xff] }
 0x346   : > { %v4143_v31 = vpop.f32.mrf.mxu0 }
 0x347   : > { %16601 = vst [vmem:[#allocation211_spill] sm:$0xff] %v12304_v1  ;;  %v4309_v2 = vadd.f32 %v12297_v60, %v4270_v57  ;;  %v4268_v39 = vadd.f32 %v4143_v31, %v3819_v9  ;;  %v4372_v37 = vrot.slane %v12304_v1, 7  ;;  %v5014_v59 = vrot.slane %v12304_v1, 1  ;;  %v16606_v57 = vld [vmem:[#allocation6_spill] sm:$0xff]  ;;  %v16613_v9 = vld [vmem:[#allocation55_spill] sm:$0xff] }
 0x348   : > { %v12312_v11 = vmax.f32 %v4306_v27, 0.0  ;;  %v12317_v26 = vmul.f32 %v12304_v1, %v16604_v38  ;;  %v16609_v27 = vld [vmem:[#allocation207_spill] sm:$0xff] }
 0x349   : > { %v12309_v49 = vmax.f32 %v4309_v2, 0.0  ;;  %v4307_v7 = vadd.f32 %v12297_v60, %v4268_v39  ;;  %v1144_v6 = vadd.f32 %v16609_v27, %v16608_v33  ;;  %v16612_v39 = vld [vmem:[#allocation69_spill] sm:$0xff]  ;;  %v9178_v27 = vld [vmem:[%s15462_s4 + $0x28] sm:$0xff]  }
 0x34a   : > { %16603 = vst [vmem:[#allocation209_spill] sm:$0xff] %v12312_v11  ;;  %16605 = vst [vmem:[#allocation7_spill] sm:$0xff] %v12317_v26  ;;  %v16615_v26 = vld [vmem:[#allocation165_spill] sm:$0xff]  ;;  %8709 = vmatprep.subr.bf16.mxu1 %v9178_v27 }
 0x34b   : > { %16602 = vst [vmem:[#allocation241_spill] sm:$0xff] %v12309_v49  ;;  %v15855_v45 = vrot.slane %v12309_v49, 7  ;;  %v15858_v22 = vrot.slane %v12309_v49, 1  ;;  %v12325_v61 = vmul.f32 %v12309_v49, %v16606_v57  ;;  %v12329_v23 = vmax.f32 %v4307_v7, 0.0  ;;  %8710 = vmatpush3.bf16.msra.mxu1 %v9178_v27 }
 0x34c   : > { %v1738_v38 = vadd.f32 %v16612_v39, %v1144_v6  ;;  %v15861_v7 = vrot.slane %v12312_v11, 1  ;;  %v16616_v39 = vld [vmem:[#allocation50_spill] sm:$0xff] }
 0x34d   : > { %16607 = vst [vmem:[#allocation6_spill] sm:$0xff] %v12325_v61  ;;  %16610 = vst [vmem:[#allocation172_spill] sm:$0xff] %v12329_v23  ;;  %v8639_v4 = vpop.f32.mrf.mxu1  ;;  %v4430_v31 = vsel %vm319_vm1, %v4372_v37, %v15855_v45  ;;  %v12341_v2 = vsel %vm1283_vm2, %v5014_v59, %v15858_v22  ;;  %v5013_v33 = vrot.slane %v12329_v23, 1  ;;  %v1160_v45 = vadd.f32 %v16614_v5, %v16613_v9 }
 0x34e   : > { %v2187_v61 = vadd.f32 %v16615_v26, %v1738_v38  ;;  %v12367_v9 = vmul.f32 %v12304_v1, %v16620_v3  ;;  %v16622_v26 = vld [vmem:[#allocation236_spill] sm:$0xff]  ;;  %v16624_v5 = vrot.slane %v12329_v23, 7  ;;  %v16628_v1 = vld [vmem:[#allocation47_spill] sm:$0xff] }
 0x34f   : > { %v5073_v22 = vsel %vm1283_vm2, %v5013_v33, %v5014_v59  ;;  %v5074_v6 = vsel %vm1283_vm2, %v15861_v7, %v5013_v33  ;;  %v3707_v14 = vpop.f32.mrf.mxu1  ;;  %v12371_v59 = vmul.f32 %v12309_v49, %v16622_v26  ;;  %v16625_v33 = vld [vmem:[#allocation57_spill] sm:$0xff]  ;;  %v16638_v3 = vld [vmem:[#allocation127_spill] sm:$0xff] }
 0x350   : > { %v12360_v57 = vmul.f32 %v5074_v6, %v16616_v39  ;;  %v12363_v62 = vmul.f32 %v5073_v22, %v16618_v13  ;;  %16621 = vst [vmem:[#allocation69_spill] sm:$0xff] %v12367_v9  ;;  %v4431_v38 = vsel %vm319_vm1, %v16624_v5, %v4372_v37  ;;  %v12378_v39 = vmul.f32 %v4430_v31, %v16625_v33  ;;  %v16626_v13 = vld [vmem:[#allocation130_spill] sm:$0xff]  ;;  %v16629_v26 = vld [vmem:[#allocation185_spill] sm:$0xff]  ;;  %v16633_v5 = vld [vmem:[#allocation35_spill] sm:$0xff] }
 0x351   : > { %16623 = vst [vmem:[#allocation55_spill] sm:$0xff] %v12371_v59  ;;  %v12381_v7 = vmul.f32 %v4430_v31, %v16626_v13  ;;  %v12386_v34 = vmul.f32 %v4431_v38, %v16628_v1  ;;  %v12389_v21 = vmul.f32 %v4431_v38, %v16629_v26  ;;  %v12394_v37 = vmul.f32 %v5074_v6, %v16631_v46  ;;  %v8640_v50 = vpop.f32.mrf.mxu1 }
 0x352   : > { %16617 = vst [vmem:[#allocation207_spill] sm:$0xff] %v12360_v57  ;;  %16619 = vst [vmem:[#allocation32_spill] sm:$0xff] %v12363_v62  ;;  %v2476_v33 = vadd.f32 %v16633_v5, %v2187_v61  ;;  %v12398_v13 = vmul.f32 %v5073_v22, %v16634_v63  ;;  %v12401_v44 = vmul.f32 %v4431_v38, %v16636_v36  ;;  %v16644_v36 = vld [vmem:[#allocation183_spill] sm:$0xff]  ;;  %v16757_v57 = vld [vmem:[#allocation73_spill] sm:$0xff] }
 0x353   : > { %16627 = vst [vmem:[#allocation132_spill] sm:$0xff] %v12381_v7  ;;  %16630 = vst [vmem:[#allocation165_spill] sm:$0xff] %v12389_v21  ;;  %v12404_v1 = vmul.f32 %v4430_v31, %v16638_v3  ;;  %v3824_v26 = vadd.f32 %v8639_v4, %v12017_v10  ;;  %v12419_v10 = vmul.f32 %v12312_v11, %v12223_v18  ;;  %v9179_v18 = vld [vmem:[%s15462_s4 + $0x20] sm:$0xff]   ;;  %v16677_v21 = vld [vmem:[#allocation49_spill] sm:$0xff] }
 0x354   : > { %16632 = vst [vmem:[#allocation50_spill] sm:$0xff] %v12394_v37  ;;  %16635 = vst [vmem:[#allocation52_spill] sm:$0xff] %v12398_v13  ;;  %v12423_v4 = vmul.f32 %v12329_v23, %v12229_v16  ;;  %v3822_v38 = vadd.f32 %v3707_v14, %v12024_v42  ;;  %v12427_v5 = vmul.f32 %v5074_v6, %v12252_v41  ;;  %v3710_v14 = vpop.f32.mrf.mxu1  ;;  %8711 = vmatprep.subr.bf16.mxu1 %v9179_v18  ;;  %v16680_v37 = vld [vmem:[#allocation51_spill] sm:$0xff] }
 0x355   : > { %16637 = vst [vmem:[#allocation254_spill] sm:$0xff] %v12401_v44  ;;  %16639 = vst [vmem:[#allocation236_spill] sm:$0xff] %v12404_v1  ;;  %v12430_v61 = vmul.f32 %v5073_v22, %v12248_v40  ;;  %v1742_v46 = vadd.f32 %v16644_v36, %v1160_v45  ;;  %v2925_v31 = vadd.f32 %v12037_v58, %v2476_v33  ;;  %v16645_v45 = vld [vmem:[#allocation247_spill] sm:$0xff]  ;;  %8712 = vmatpush3.bf16.msra.mxu1 %v9179_v18  ;;  %v9180_v18 = vld [vmem:[%s15462_s4 + $0x18] sm:$0xff]  }
 0x356   : > { %v8679_v63 = vpop.f32.mrf.mxu0  ;;  %16640 = vst [vmem:[#allocation57_spill] sm:$0xff] %v12419_v10  ;;  %16641 = vst [vmem:[#allocation130_spill] sm:$0xff] %v12423_v4  ;;  %v3825_v42 = vadd.f32 %v8640_v50, %v12028_v48  ;;  %v16648_v48 = vld [vmem:[#allocation197_spill] sm:$0xff]  ;;  %8745 = vmatprep.subr.bf16.mxu0 %v9180_v18  ;;  %v16672_v44 = vld [vmem:[#allocation259_spill] sm:$0xff] }
 0x357   : > { %v4273_v3 = vadd.f32 %v8679_v63, %v3824_v26  ;;  %16642 = vst [vmem:[#allocation47_spill] sm:$0xff] %v12427_v5  ;;  %16643 = vst [vmem:[#allocation185_spill] sm:$0xff] %v12430_v61  ;;  %v2191_v22 = vadd.f32 %v16645_v45, %v1742_v46  ;;  %v3374_v58 = vadd.f32 %v12056_v8, %v2925_v31  ;;  %v16646_v26 = vld [vmem:[#allocation74_spill] sm:$0xff]  ;;  %v16649_v50 = vld [vmem:[#allocation213_spill] sm:$0xff]  ;;  %8746 = vmatpush3.bf16.msra.mxu0 %v9180_v18 }
 0x358   : > { %v4156_v27 = vpop.f32.mrf.mxu0  ;;  %v16647_v63 = vld [vmem:[#allocation182_spill] sm:$0xff]  ;;  %v16651_v5 = vld [vmem:[#allocation104_spill] sm:$0xff] }
 0x359   : > { %v4312_v41 = vadd.f32 %v12297_v60, %v4273_v3  ;;  %v4271_v6 = vadd.f32 %v4156_v27, %v3822_v38  ;;  %v1176_v36 = vadd.f32 %v16647_v63, %v16646_v26  ;;  %v1192_v3 = vadd.f32 %v16649_v50, %v16648_v48  ;;  %v16653_v31 = vld [vmem:[#allocation216_spill] sm:$0xff]  ;;  %v16659_v48 = vld [vmem:[#allocation11_spill] sm:$0xff] }
 0x35a   : > { %v8680_v33 = vpop.f32.mrf.mxu0  ;;  %v3823_v27 = vadd.f32 %v3710_v14, %v3374_v58  ;;  %v16654_v26 = vld [vmem:[#allocation244_spill] sm:$0xff] }
 0x35b   : > { %v4310_v16 = vadd.f32 %v12297_v60, %v4271_v6  ;;  %v4274_v10 = vadd.f32 %v8680_v33, %v3825_v42  ;;  %v12450_v38 = vmax.f32 %v4312_v41, 0.0  ;;  %v1746_v46 = vadd.f32 %v16651_v5, %v1176_v36  ;;  %v16655_v14 = vld [vmem:[#allocation40_spill] sm:$0xff] }
 0x35c   : > { %v4159_v40 = vpop.f32.mrf.mxu0  ;;  %v12457_v61 = vadd.f32 %v16653_v31, %v1192_v3  ;;  %v2480_v6 = vadd.f32 %v16654_v26, %v2191_v22  ;;  %v16660_v3 = vld [vmem:[#allocation10_spill] sm:$0xff]  ;;  %v9181_v26 = vld [vmem:[%s15462_s4 + $0x10] sm:$0xff]  }
 0x35d   : > { %16650 = vst [vmem:[#allocation122_spill] sm:$0xff] %v12450_v38  ;;  %v12453_v45 = vmax.f32 %v4310_v16, 0.0  ;;  %v4313_v8 = vadd.f32 %v12297_v60, %v4274_v10  ;;  %v4272_v42 = vadd.f32 %v4159_v40, %v3823_v27  ;;  %v12464_v41 = vadd.f32 %v16655_v14, %v1746_v46  ;;  %v16657_v40 = vld [vmem:[#allocation62_spill] sm:$0xff]  ;;  %v16664_v18 = vld [vmem:[#allocation204_spill] sm:$0xff]  ;;  %8747 = vmatprep.subr.bf16.mxu0 %v9181_v26 }
 0x35e   : > { %v2929_v10 = vadd.f32 %v12084_v17, %v2480_v6  ;;  %v4376_v33 = vrot.slane %v12450_v38, 7  ;;  %v12475_v63 = vmul.f32 %v12341_v2, %v16657_v40  ;;  %v12480_v50 = vmul.f32 %v12450_v38, %v16659_v48  ;;  %8748 = vmatpush3.bf16.msra.mxu0 %v9181_v26  ;;  %v16674_v1 = vld [vmem:[#allocation60_spill] sm:$0xff] }
 0x35f   : > { %16652 = vst [vmem:[#allocation35_spill] sm:$0xff] %v12453_v45  ;;  %v4374_v58 = vrot.slane %v12453_v45, 7  ;;  %v5016_v5 = vrot.slane %v12453_v45, 1  ;;  %v12468_v16 = vmax.f32 %v4313_v8, 0.0  ;;  %v4311_v22 = vadd.f32 %v12297_v60, %v4272_v42  ;;  %v16675_v26 = vld [vmem:[#allocation56_spill] sm:$0xff] }
 0x360   : > { %16658 = vst [vmem:[#allocation129_spill] sm:$0xff] %v12475_v63  ;;  %v16661_v17 = vrot.slane %v12309_v49, 7  ;;  %v5018_v8 = vrot.slane %v12450_v38, 1  ;;  %v16663_v6 = vrot.slane %v12309_v49, 1  ;;  %v12504_v14 = vmul.f32 %v12341_v2, %v16664_v18  ;;  %v16670_v18 = vld [vmem:[#allocation255_spill] sm:$0xff] }
 0x361   : > { %16656 = vst [vmem:[#allocation86_spill] sm:$0xff] %v12468_v16  ;;  %v15874_v36 = vrot.slane %v12468_v16, 7  ;;  %v12484_v27 = vmul.f32 %v12468_v16, %v16660_v3  ;;  %v12491_v31 = vmax.f32 %v4311_v22, 0.0  ;;  %v16666_v3 = vld [vmem:[#allocation94_spill] sm:$0xff]  ;;  %v12524_v9 = vmul.f32 %v12453_v45, %v16670_v18  ;;  %v16678_v18 = vld [vmem:[#allocation152_spill] sm:$0xff] }
 0x362   : > { %v4429_v46 = vsel %vm319_vm1, %v16661_v17, %v4374_v58  ;;  %v12500_v42 = vsel %vm1283_vm2, %v16663_v6, %v5016_v5  ;;  %16665 = vst [vmem:[#allocation183_spill] sm:$0xff] %v12504_v14  ;;  %v16668_v6 = vld [vmem:[#allocation206_spill] sm:$0xff] }
 0x363   : > { %16662 = vst [vmem:[#allocation127_spill] sm:$0xff] %v12491_v31  ;;  %v8643_v40 = vpop.f32.mrf.mxu1  ;;  %v12512_v22 = vsel %vm319_vm1, %v4376_v33, %v15874_v36  ;;  %v12516_v17 = vmul.f32 %v12500_v42, %v16666_v3  ;;  %v12520_v4 = vmul.f32 %v12500_v42, %v16668_v6  ;;  %16671 = vst [vmem:[#allocation182_spill] sm:$0xff] %v12524_v9  ;;  %v4375_v48 = vrot.slane %v12491_v31, 7 }
 0x364   : > { %v5017_v59 = vrot.slane %v12491_v31, 1  ;;  %v12530_v36 = vmul.f32 %v12491_v31, %v16672_v44  ;;  %v12534_v49 = vmul.f32 %v4429_v46, %v16674_v1  ;;  %v9182_v44 = vld [vmem:[%s15462_s4 + $0x8] sm:$0xff]   ;;  %v12548_v13 = vmul.f32 %v4429_v46, %v16675_v26 }
 0x365   : > { %16667 = vst [vmem:[#allocation247_spill] sm:$0xff] %v12516_v17  ;;  %16669 = vst [vmem:[#allocation74_spill] sm:$0xff] %v12520_v4  ;;  %v4428_v3 = vsel %vm319_vm1, %v4374_v58, %v4375_v48  ;;  %v4427_v1 = vsel %vm319_vm1, %v4375_v48, %v4376_v33  ;;  %v3723_v6 = vpop.f32.mrf.mxu1  ;;  %v3378_v58 = vadd.f32 %v12103_v29, %v2929_v10  ;;  %8749 = vmatprep.subr.bf16.mxu0 %v9182_v44  ;;  %v16682_v26 = vld [vmem:[#allocation187_spill] sm:$0xff] }
 0x366   : > { %16673 = vst [vmem:[#allocation197_spill] sm:$0xff] %v12530_v36  ;;  %16676 = vst [vmem:[#allocation213_spill] sm:$0xff] %v12548_v13  ;;  %v12553_v7 = vmul.f32 %v4428_v3, %v16677_v21  ;;  %v12556_v14 = vmul.f32 %v4428_v3, %v16678_v18  ;;  %v12559_v9 = vmul.f32 %v4427_v1, %v16680_v37  ;;  %v16681_v36 = vld [vmem:[#allocation71_spill] sm:$0xff]  ;;  %8750 = vmatpush3.bf16.msra.mxu0 %v9182_v44  ;;  %v9183_v37 = vld [vmem:[%s15462_s4 + $0x58] sm:$0xff]  }
 0x367   : > { %v12563_v4 = vmul.f32 %v12512_v22, %v16681_v36  ;;  %v12567_v63 = vmul.f32 %v4429_v46, %v16682_v26  ;;  %v16684_v33 = vld [vmem:[#allocation135_spill] sm:$0xff]  ;;  %v5069_v21 = vsel %vm1283_vm2, %v5017_v59, %v5018_v8  ;;  %v5070_v46 = vsel %vm1283_vm2, %v5016_v5, %v5017_v59  ;;  %v9184_v18 = vld [vmem:[%s15462_s4] sm:$0xff]   ;;  %v16686_v26 = vld [vmem:[#allocation64_spill] sm:$0xff]  ;;  %v8644_v13 = vpop.f32.mrf.mxu1  ;;  %8785 = vmatprep.subr.bf16.mxu1 %v9183_v37 }
 0x368   : > { %16679 = vst [vmem:[#allocation104_spill] sm:$0xff] %v12556_v14  ;;  %v12570_v48 = vmul.f32 %v4428_v3, %v16684_v33  ;;  %v3828_v3 = vadd.f32 %v8643_v40, %v12064_v12  ;;  %v12592_v33 = vmul.f32 %v5070_v46, %v16686_v26  ;;  %v16688_v36 = vld [vmem:[#allocation66_spill] sm:$0xff]  ;;  %v12598_v10 = vmul.f32 %v5070_v46, %v11903_v32  ;;  %v16691_v59 = vld [vmem:[#allocation92_spill] sm:$0xff]  ;;  %v16696_v37 = vld [vmem:[#allocation139_spill] sm:$0xff] }
 0x369   : > { %16683 = vst [vmem:[#allocation216_spill] sm:$0xff] %v12567_v63  ;;  %v12595_v29 = vmul.f32 %v5069_v21, %v16688_v36  ;;  %v12601_v12 = vmul.f32 %v5069_v21, %v16691_v59  ;;  %v16693_v5 = vrot.slane %v12468_v16, 1  ;;  %v16694_v44 = vld [vmem:[#allocation190_spill] sm:$0xff]  ;;  %v3826_v36 = vadd.f32 %v3723_v6, %v12071_v54  ;;  %8751 = vmatprep.subr.bf16.mxu0 %v9184_v18 }
 0x36a   : > { %16685 = vst [vmem:[#allocation244_spill] sm:$0xff] %v12570_v48  ;;  %16687 = vst [vmem:[#allocation40_spill] sm:$0xff] %v12592_v33  ;;  %v12610_v26 = vmul.f32 %v4427_v1, %v16694_v44  ;;  %v12617_v59 = vmul.f32 %v12512_v22, %v16696_v37  ;;  %8752 = vmatpush3.bf16.msra.mxu0 %v9184_v18  ;;  %v16698_v44 = vld [vmem:[#allocation179_spill] sm:$0xff]  ;;  %v16700_v54 = vld [vmem:[#allocation194_spill] sm:$0xff]  ;;  %v3829_v32 = vadd.f32 %v8644_v13, %v12073_v56  ;;  %v3726_v18 = vpop.f32.mrf.mxu1 }
 0x36b   : > { %16689 = vst [vmem:[#allocation62_spill] sm:$0xff] %v12595_v29  ;;  %16690 = vst [vmem:[#allocation11_spill] sm:$0xff] %v12598_v10  ;;  %v12607_v40 = vsel %vm1283_vm2, %v5018_v8, %v16693_v5  ;;  %v12624_v5 = vmul.f32 %v5070_v46, %v16698_v44  ;;  %v12627_v6 = vmul.f32 %v5069_v21, %v16700_v54  ;;  %v16704_v44 = vld [vmem:[#allocation80_spill] sm:$0xff] }
 0x36c   : > { %16692 = vst [vmem:[#allocation10_spill] sm:$0xff] %v12601_v12  ;;  %16695 = vst [vmem:[#allocation204_spill] sm:$0xff] %v12610_v26  ;;  %v8683_v14 = vpop.f32.mrf.mxu0  ;;  %v12642_v56 = vmul.f32 %v12512_v22, %v16704_v44  ;;  %v12646_v54 = vmul.f32 %v12450_v38, %v11920_v52  ;;  %v16712_v22 = vld [vmem:[#allocation250_spill] sm:$0xff]  ;;  %v3827_v37 = vadd.f32 %v3726_v18, %v3378_v58  ;;  %v16726_v12 = vld [vmem:[#allocation79_spill] sm:$0xff] }
 0x36d   : > { %16697 = vst [vmem:[#allocation94_spill] sm:$0xff] %v12617_v59  ;;  %v4277_v48 = vadd.f32 %v8683_v14, %v3828_v3  ;;  %16699 = vst [vmem:[#allocation206_spill] sm:$0xff] %v12624_v5  ;;  %v16702_v14 = vld [vmem:[#allocation210_spill] sm:$0xff]  ;;  %v2484_v44 = vadd.f32 %v16712_v22, %v12464_v41  ;;  %v16719_v22 = vld [vmem:[#allocation252_spill] sm:$0xff] }
 0x36e   : > { %16701 = vst [vmem:[#allocation255_spill] sm:$0xff] %v12627_v6  ;;  %v4172_v33 = vpop.f32.mrf.mxu0  ;;  %v12635_v3 = vmul.f32 %v4427_v1, %v16702_v14  ;;  %16705 = vst [vmem:[#allocation60_spill] sm:$0xff] %v12642_v56  ;;  %v12650_v1 = vmul.f32 %v12468_v16, %v11681_v20  ;;  %v16708_v14 = vld [vmem:[#allocation258_spill] sm:$0xff]  ;;  %v16736_v56 = vld [vmem:[#allocation75_spill] sm:$0xff] }
 0x36f   : > { %v4316_v8 = vadd.f32 %v12297_v60, %v4277_v48  ;;  %v4275_v46 = vadd.f32 %v4172_v33, %v3826_v36  ;;  %16706 = vst [vmem:[#allocation56_spill] sm:$0xff] %v12646_v54  ;;  %v12654_v48 = vmul.f32 %v12341_v2, %v16708_v14  ;;  %v16710_v33 = vld [vmem:[#allocation260_spill] sm:$0xff]  ;;  %v2933_v14 = vadd.f32 %v12131_v51, %v2484_v44  ;;  %v16717_v58 = vld [vmem:[#allocation146_spill] sm:$0xff] }
 0x370   : > { %16703 = vst [vmem:[#allocation259_spill] sm:$0xff] %v12635_v3  ;;  %v8684_v13 = vpop.f32.mrf.mxu0  ;;  %16707 = vst [vmem:[#allocation49_spill] sm:$0xff] %v12650_v1  ;;  %v12658_v36 = vmul.f32 %v12500_v42, %v16710_v33  ;;  %v12685_v2 = vadd.f32 %v16719_v22, %v12457_v61  ;;  %v16731_v54 = vld [vmem:[#allocation100_spill] sm:$0xff]  ;;  %v16743_v59 = vld [vmem:[#allocation54_spill] sm:$0xff] }
 0x371   : > { %16709 = vst [vmem:[#allocation152_spill] sm:$0xff] %v12654_v48  ;;  %v4314_v63 = vadd.f32 %v12297_v60, %v4275_v46  ;;  %v4278_v21 = vadd.f32 %v8684_v13, %v3829_v32  ;;  %v12665_v20 = vmax.f32 %v4316_v8, 0.0  ;;  %v16715_v32 = vld [vmem:[#allocation151_spill] sm:$0xff]  ;;  %v16718_v8 = vld [vmem:[#allocation228_spill] sm:$0xff]  ;;  %v12688_v42 = vadd.f32 %v12150_v25, %v2933_v14 }
 0x372   : > { %16711 = vst [vmem:[#allocation51_spill] sm:$0xff] %v12658_v36  ;;  %v4175_v10 = vpop.f32.mrf.mxu0  ;;  %v16716_v46 = vld [vmem:[#allocation219_spill] sm:$0xff]  ;;  %v12681_v18 = vadd.f32 %v16718_v8, %v16717_v58  ;;  %v16728_v25 = vld [vmem:[#allocation208_spill] sm:$0xff] }
 0x373   : > { %16713 = vst [vmem:[#allocation71_spill] sm:$0xff] %v12665_v20  ;;  %v12672_v33 = vmax.f32 %v4314_v63, 0.0  ;;  %v4317_v41 = vadd.f32 %v12297_v60, %v4278_v21  ;;  %v12677_v13 = vadd.f32 %v16716_v46, %v16715_v32  ;;  %v4276_v52 = vadd.f32 %v4175_v10, %v3827_v37  ;;  %v16721_v58 = vld [vmem:[#allocation15_spill] sm:$0xff]  ;;  %v16722_v37 = vld [vmem:[#allocation14_spill] sm:$0xff] }
 0x374   : > { %v4380_v44 = vrot.slane %v12665_v20, 7  ;;  %v5022_v32 = vrot.slane %v12665_v20, 1  ;;  %v12699_v61 = vmul.f32 %v12665_v20, %v16721_v58  ;;  %v12719_v10 = vmul.f32 %v12607_v40, %v16726_v12 }
 0x375   : > { %16714 = vst [vmem:[#allocation187_spill] sm:$0xff] %v12672_v33  ;;  %v4378_v51 = vrot.slane %v12672_v33, 7  ;;  %v5020_v63 = vrot.slane %v12672_v33, 1  ;;  %v12692_v21 = vmax.f32 %v4317_v41, 0.0  ;;  %v4315_v46 = vadd.f32 %v12297_v60, %v4276_v52 }
 0x376   : > { %v16723_v41 = vrot.slane %v12468_v16, 7  ;;  %v16725_v52 = vrot.slane %v12468_v16, 1  ;;  %16727 = vst [vmem:[#allocation66_spill] sm:$0xff] %v12719_v10  ;;  %v12744_v36 = vmul.f32 %v12665_v20, %v11983_v30  ;;  %v16738_v16 = vld [vmem:[#allocation67_spill] sm:$0xff]  ;;  %v12760_v6 = vmul.f32 %v12672_v33, %v11927_v19 }
 0x377   : > { %16720 = vst [vmem:[#allocation135_spill] sm:$0xff] %v12692_v21  ;;  %v12705_v14 = vmul.f32 %v12692_v21, %v16722_v37  ;;  %v12711_v22 = vmax.f32 %v4315_v46, 0.0  ;;  %v12723_v37 = vmul.f32 %v12607_v40, %v16728_v25  ;;  %v16730_v46 = vrot.slane %v12692_v21, 7 }
 0x378   : > { %v4425_v8 = vsel %vm319_vm1, %v16723_v41, %v4378_v51  ;;  %v5067_v58 = vsel %vm1283_vm2, %v16725_v52, %v5020_v63  ;;  %v16733_v52 = vrot.slane %v12692_v21, 1  ;;  %16734 = vst [vmem:[#allocation139_spill] sm:$0xff] %v12744_v36  ;;  %16740 = vst [vmem:[#allocation80_spill] sm:$0xff] %v12760_v6  ;;  %v16805_v6 = vld [vmem:[#allocation265_spill] sm:$0xff] }
 0x379   : > { %16724 = vst [vmem:[#allocation64_spill] sm:$0xff] %v12711_v22  ;;  %16729 = vst [vmem:[#allocation92_spill] sm:$0xff] %v12723_v37  ;;  %v8647_v48 = vpop.f32.mrf.mxu1  ;;  %v4422_v41 = vsel %vm319_vm1, %v4380_v44, %v16730_v46  ;;  %v12732_v1 = vmul.f32 %v5067_v58, %v16731_v54  ;;  %v4379_v25 = vrot.slane %v12711_v22, 7  ;;  %v5021_v3 = vrot.slane %v12711_v22, 1  ;;  %v16816_v37 = vld [vmem:[#allocation61_spill] sm:$0xff] }
 0x37a   : > { %v12738_v12 = vsel %vm1283_vm2, %v5022_v32, %v16733_v52  ;;  %v12748_v46 = vmul.f32 %v12607_v40, %v11932_v0  ;;  %v12751_v38 = vmul.f32 %v4425_v8, %v16736_v56  ;;  %v12756_v5 = vmul.f32 %v4425_v8, %v16738_v16  ;;  %v16741_v56 = vld [vmem:[#allocation91_spill] sm:$0xff]  ;;  %v16745_v16 = vld [vmem:[#allocation58_spill] sm:$0xff] }
 0x37b   : > { %16732 = vst [vmem:[#allocation190_spill] sm:$0xff] %v12732_v1  ;;  %v3739_v54 = vpop.f32.mrf.mxu1  ;;  %v3832_v30 = vadd.f32 %v8647_v48, %v12111_v53  ;;  %v4424_v0 = vsel %vm319_vm1, %v4378_v51, %v4379_v25  ;;  %v4423_v40 = vsel %vm319_vm1, %v4379_v25, %v4380_v44  ;;  %v12768_v26 = vmul.f32 %v4422_v41, %v16741_v56  ;;  %v16747_v1 = vld [vmem:[#allocation145_spill] sm:$0xff]  ;;  %v16749_v51 = vld [vmem:[#allocation84_spill] sm:$0xff]  ;;  %v16751_v25 = vld [vmem:[#allocation191_spill] sm:$0xff] }
 0x37c   : > { %16735 = vst [vmem:[#allocation179_spill] sm:$0xff] %v12748_v46  ;;  %16737 = vst [vmem:[#allocation194_spill] sm:$0xff] %v12751_v38  ;;  %v12771_v52 = vmul.f32 %v4424_v0, %v16743_v59  ;;  %v12774_v10 = vmul.f32 %v4423_v40, %v16745_v16  ;;  %v12777_v19 = vmul.f32 %v4424_v0, %v16747_v1  ;;  %v16753_v59 = vld [vmem:[#allocation150_spill] sm:$0xff]  ;;  %v16759_v1 = vld [vmem:[#allocation180_spill] sm:$0xff] }
 0x37d   : > { %16739 = vst [vmem:[#allocation210_spill] sm:$0xff] %v12756_v5  ;;  %16742 = vst [vmem:[#allocation258_spill] sm:$0xff] %v12768_v26  ;;  %v5065_v53 = vsel %vm1283_vm2, %v5021_v3, %v5022_v32  ;;  %v5066_v48 = vsel %vm1283_vm2, %v5020_v63, %v5021_v3  ;;  %v12787_v56 = vmul.f32 %v4423_v40, %v16751_v25  ;;  %v8648_v16 = vpop.f32.mrf.mxu1  ;;  %v16755_v3 = vld [vmem:[#allocation82_spill] sm:$0xff]  ;;  %v16761_v32 = vld [vmem:[#allocation196_spill] sm:$0xff] }
 0x37e   : > { %16744 = vst [vmem:[#allocation260_spill] sm:$0xff] %v12771_v52  ;;  %16746 = vst [vmem:[#allocation250_spill] sm:$0xff] %v12774_v10  ;;  %v12784_v44 = vmul.f32 %v5065_v53, %v16749_v51  ;;  %v12790_v29 = vmul.f32 %v4422_v41, %v16753_v59  ;;  %v12799_v63 = vmul.f32 %v5066_v48, %v16755_v3  ;;  %v16908_v26 = vld [vmem:[#allocation215_spill] sm:$0xff]  ;;  %v17059_v52 = vld [vmem:[#allocation229_spill] sm:$0xff] }
 0x37f   : > { %16748 = vst [vmem:[#allocation151_spill] sm:$0xff] %v12777_v19  ;;  %16752 = vst [vmem:[#allocation146_spill] sm:$0xff] %v12787_v56  ;;  %v3830_v51 = vadd.f32 %v3739_v54, %v12118_v24  ;;  %v12807_v62 = vmul.f32 %v5067_v58, %v16757_v57  ;;  %v12812_v10 = vmul.f32 %v5066_v48, %v16759_v1  ;;  %v16763_v57 = vld [vmem:[#allocation174_spill] sm:$0xff]  ;;  %v16769_v24 = vld [vmem:[#allocation189_spill] sm:$0xff] }
 0x380   : > { %16750 = vst [vmem:[#allocation219_spill] sm:$0xff] %v12784_v44  ;;  %16754 = vst [vmem:[#allocation228_spill] sm:$0xff] %v12790_v29  ;;  %v12815_v3 = vmul.f32 %v5065_v53, %v16761_v32  ;;  %v3833_v54 = vadd.f32 %v8648_v16, %v12120_v35  ;;  %v12823_v56 = vmul.f32 %v4425_v8, %v16763_v57  ;;  %v16765_v29 = vld [vmem:[#allocation77_spill] sm:$0xff] }
 0x381   : > { %16756 = vst [vmem:[#allocation252_spill] sm:$0xff] %v12799_v63  ;;  %16758 = vst [vmem:[#allocation15_spill] sm:$0xff] %v12807_v62  ;;  %v12826_v17 = vmul.f32 %v4424_v0, %v16765_v29  ;;  %v16767_v63 = vld [vmem:[#allocation106_spill] sm:$0xff]  ;;  %v12834_v20 = vmul.f32 %v4422_v41, %v16769_v24  ;;  %v12840_v8 = vmul.f32 %v12711_v22, %v11936_v28  ;;  %v16775_v24 = vld [vmem:[#allocation97_spill] sm:$0xff] }
 0x382   : > { %16760 = vst [vmem:[#allocation14_spill] sm:$0xff] %v12812_v10  ;;  %16762 = vst [vmem:[#allocation79_spill] sm:$0xff] %v12815_v3  ;;  %v8687_v25 = vpop.f32.mrf.mxu0  ;;  %v12831_v44 = vmul.f32 %v4423_v40, %v16767_v63  ;;  %v12844_v29 = vmul.f32 %v12692_v21, %v11707_v55  ;;  %v3742_v40 = vpop.f32.mrf.mxu1  ;;  %v12853_v57 = vmul.f32 %v5066_v48, %v16775_v24  ;;  %v16781_v28 = vld [vmem:[#allocation232_spill] sm:$0xff] }
 0x383   : > { %16764 = vst [vmem:[#allocation208_spill] sm:$0xff] %v12823_v56  ;;  %16766 = vst [vmem:[#allocation100_spill] sm:$0xff] %v12826_v17  ;;  %v4281_v1 = vadd.f32 %v8687_v25, %v3832_v30  ;;  %v16773_v30 = vld [vmem:[#allocation99_spill] sm:$0xff]  ;;  %v1758_v59 = vadd.f32 %v16781_v28, %v12681_v18  ;;  %v3831_v55 = vadd.f32 %v3742_v40, %v12688_v42  ;;  %v16787_v42 = vld [vmem:[#allocation93_spill] sm:$0xff] }
 0x384   : > { %16768 = vst [vmem:[#allocation75_spill] sm:$0xff] %v12831_v44  ;;  %16770 = vst [vmem:[#allocation67_spill] sm:$0xff] %v12834_v20  ;;  %v4188_v35 = vpop.f32.mrf.mxu0  ;;  %v12847_v0 = vmul.f32 %v5067_v58, %v16773_v30  ;;  %v16777_v30 = vld [vmem:[#allocation262_spill] sm:$0xff]  ;;  %v16809_v20 = vld [vmem:[#allocation192_spill] sm:$0xff] }
 0x385   : > { %16771 = vst [vmem:[#allocation91_spill] sm:$0xff] %v12840_v8  ;;  %16772 = vst [vmem:[#allocation54_spill] sm:$0xff] %v12844_v29  ;;  %v4320_v63 = vadd.f32 %v12297_v60, %v4281_v1  ;;  %v4279_v41 = vadd.f32 %v4188_v35, %v3830_v51  ;;  %v12862_v32 = vmul.f32 %v5065_v53, %v16777_v30  ;;  %v16779_v51 = vld [vmem:[#allocation222_spill] sm:$0xff]  ;;  %v16780_v35 = vld [vmem:[#allocation43_spill] sm:$0xff] }
 0x386   : > { %16774 = vst [vmem:[#allocation58_spill] sm:$0xff] %v12847_v0  ;;  %16776 = vst [vmem:[#allocation145_spill] sm:$0xff] %v12853_v57  ;;  %v8688_v16 = vpop.f32.mrf.mxu0  ;;  %v1754_v1 = vadd.f32 %v16779_v51, %v12677_v13  ;;  %v2488_v48 = vadd.f32 %v16780_v35, %v12685_v2  ;;  %v16784_v51 = vld [vmem:[#allocation59_spill] sm:$0xff]  ;;  %v12888_v40 = vadd.f32 %v16787_v42, %v1758_v59  ;;  %v16794_v42 = vrot.slane %v12692_v21, 1  ;;  %v16803_v29 = vld [vmem:[#allocation270_spill] sm:$0xff] }
 0x387   : > { %16778 = vst [vmem:[#allocation84_spill] sm:$0xff] %v12862_v32  ;;  %v4318_v24 = vadd.f32 %v12297_v60, %v4279_v41  ;;  %v4282_v25 = vadd.f32 %v8688_v16, %v3833_v54  ;;  %v12872_v36 = vmax.f32 %v4320_v63, 0.0  ;;  %v16785_v41 = vld [vmem:[#allocation238_spill] sm:$0xff]  ;;  %v16786_v16 = vld [vmem:[#allocation257_spill] sm:$0xff]  ;;  %v16800_v32 = vld [vmem:[#allocation103_spill] sm:$0xff] }
 0x388   : > { %v4191_v58 = vpop.f32.mrf.mxu0  ;;  %v2937_v30 = vadd.f32 %v12178_v15, %v2488_v48  ;;  %v12882_v54 = vadd.f32 %v16785_v41, %v16784_v51  ;;  %v12885_v18 = vadd.f32 %v16786_v16, %v1754_v1  ;;  %v16789_v51 = vld [vmem:[#allocation19_spill] sm:$0xff]  ;;  %v16807_v8 = vld [vmem:[#allocation96_spill] sm:$0xff] }
 0x389   : > { %16782 = vst [vmem:[#allocation191_spill] sm:$0xff] %v12872_v36  ;;  %v12877_v13 = vmax.f32 %v4318_v24, 0.0  ;;  %v4321_v2 = vadd.f32 %v12297_v60, %v4282_v25  ;;  %v4280_v63 = vadd.f32 %v4191_v58, %v3831_v55  ;;  %v4384_v25 = vrot.slane %v12872_v36, 7  ;;  %v16791_v58 = vld [vmem:[#allocation18_spill] sm:$0xff]  ;;  %v16811_v17 = vld [vmem:[#allocation264_spill] sm:$0xff] }
 0x38a   : > { %v12891_v28 = vadd.f32 %v12197_v43, %v2937_v30  ;;  %v5026_v24 = vrot.slane %v12872_v36, 1  ;;  %v12902_v59 = vmul.f32 %v12872_v36, %v16789_v51  ;;  %v16795_v51 = vld [vmem:[#allocation101_spill] sm:$0xff]  ;;  %v16797_v43 = vld [vmem:[#allocation102_spill] sm:$0xff]  ;;  %v12947_v57 = vmul.f32 %v12872_v36, %v16803_v29 }
 0x38b   : > { %16783 = vst [vmem:[#allocation150_spill] sm:$0xff] %v12877_v13  ;;  %v4382_v15 = vrot.slane %v12877_v13, 7  ;;  %v5024_v35 = vrot.slane %v12877_v13, 1  ;;  %v12895_v48 = vmax.f32 %v4321_v2, 0.0  ;;  %v4319_v1 = vadd.f32 %v12297_v60, %v4280_v63  ;;  %v16813_v29 = vld [vmem:[#allocation154_spill] sm:$0xff] }
 0x38c   : > { %16790 = vst [vmem:[#allocation73_spill] sm:$0xff] %v12902_v59  ;;  %v16793_v2 = vrot.slane %v12692_v21, 7  ;;  %v12922_v53 = vmul.f32 %v12738_v12, %v16795_v51  ;;  %16804 = vst [vmem:[#allocation106_spill] sm:$0xff] %v12947_v57  ;;  %v12963_v21 = vmul.f32 %v12877_v13, %v16811_v17  ;;  %v16831_v59 = vld [vmem:[#allocation186_spill] sm:$0xff]  ;;  %v16877_v57 = vld [vmem:[#allocation109_spill] sm:$0xff] }
 0x38d   : > { %16788 = vst [vmem:[#allocation82_spill] sm:$0xff] %v12895_v48  ;;  %v12908_v30 = vmul.f32 %v12895_v48, %v16791_v58  ;;  %v12914_v16 = vmax.f32 %v4319_v1, 0.0  ;;  %v5063_v63 = vsel %vm1283_vm2, %v16794_v42, %v5024_v35  ;;  %v12926_v58 = vmul.f32 %v12738_v12, %v16797_v43 }
 0x38e   : > { %v4421_v41 = vsel %vm319_vm1, %v16793_v2, %v4382_v15  ;;  %16796 = vst [vmem:[#allocation196_spill] sm:$0xff] %v12922_v53  ;;  %v16799_v1 = vrot.slane %v12895_v48, 7  ;;  %v12935_v46 = vmul.f32 %v5063_v63, %v16800_v32  ;;  %v16802_v42 = vrot.slane %v12895_v48, 1  ;;  %16812 = vst [vmem:[#allocation262_spill] sm:$0xff] %v12963_v21  ;;  %v16820_v53 = vld [vmem:[#allocation156_spill] sm:$0xff] }
 0x38f   : > { %16792 = vst [vmem:[#allocation180_spill] sm:$0xff] %v12908_v30  ;;  %16798 = vst [vmem:[#allocation174_spill] sm:$0xff] %v12926_v58  ;;  %v8651_v55 = vpop.f32.mrf.mxu1  ;;  %v4383_v43 = vrot.slane %v12914_v16, 7  ;;  %v5025_v0 = vrot.slane %v12914_v16, 1  ;;  %v12954_v44 = vmul.f32 %v4421_v41, %v16807_v8  ;;  %v12959_v56 = vmul.f32 %v4421_v41, %v16809_v20  ;;  %v16814_v8 = vld [vmem:[#allocation112_spill] sm:$0xff]  ;;  %v16818_v20 = vld [vmem:[#allocation63_spill] sm:$0xff] }
 0x390   : > { %v4418_v2 = vsel %vm319_vm1, %v4384_v25, %v16799_v1  ;;  %16801 = vst [vmem:[#allocation77_spill] sm:$0xff] %v12935_v46  ;;  %v12941_v51 = vsel %vm1283_vm2, %v5026_v24, %v16802_v42  ;;  %v12951_v1 = vmul.f32 %v12738_v12, %v16805_v6  ;;  %v3836_v10 = vadd.f32 %v8651_v55, %v16813_v29  ;;  %v16822_v29 = vld [vmem:[#allocation108_spill] sm:$0xff]  ;;  %v16888_v58 = vld [vmem:[#allocation271_spill] sm:$0xff] }
 0x391   : > { %v3755_v32 = vpop.f32.mrf.mxu1  ;;  %16808 = vst [vmem:[#allocation99_spill] sm:$0xff] %v12954_v44  ;;  %16810 = vst [vmem:[#allocation97_spill] sm:$0xff] %v12959_v56  ;;  %v4420_v6 = vsel %vm319_vm1, %v4382_v15, %v4383_v43  ;;  %v4419_v12 = vsel %vm319_vm1, %v4383_v43, %v4384_v25  ;;  %v12971_v3 = vmul.f32 %v4418_v2, %v16814_v8  ;;  %v16824_v43 = vld [vmem:[#allocation193_spill] sm:$0xff]  ;;  %v16840_v56 = vld [vmem:[#allocation107_spill] sm:$0xff] }
 0x392   : > { %16806 = vst [vmem:[#allocation189_spill] sm:$0xff] %v12951_v1  ;;  %v12974_v42 = vmul.f32 %v4420_v6, %v16816_v37  ;;  %v12977_v62 = vmul.f32 %v4419_v12, %v16818_v20  ;;  %v12980_v17 = vmul.f32 %v4420_v6, %v16820_v53  ;;  %v5061_v55 = vsel %vm1283_vm2, %v5025_v0, %v5026_v24  ;;  %v16826_v37 = vld [vmem:[#allocation158_spill] sm:$0xff]  ;;  %v16835_v24 = vld [vmem:[#allocation200_spill] sm:$0xff] }
 0x393   : > { %16815 = vst [vmem:[#allocation222_spill] sm:$0xff] %v12971_v3  ;;  %v5062_v15 = vsel %vm1283_vm2, %v5024_v35, %v5025_v0  ;;  %v12987_v25 = vmul.f32 %v5061_v55, %v16822_v29  ;;  %v12990_v8 = vmul.f32 %v4419_v12, %v16824_v43  ;;  %v12993_v46 = vmul.f32 %v4418_v2, %v16826_v37  ;;  %v8652_v20 = vpop.f32.mrf.mxu1  ;;  %v16828_v0 = vld [vmem:[#allocation105_spill] sm:$0xff]  ;;  %v16830_v29 = vld [vmem:[#allocation160_spill] sm:$0xff]  ;;  %v16833_v53 = vld [vmem:[#allocation110_spill] sm:$0xff] }
 0x394   : > { %16817 = vst [vmem:[#allocation43_spill] sm:$0xff] %v12974_v42  ;;  %16819 = vst [vmem:[#allocation232_spill] sm:$0xff] %v12977_v62  ;;  %v13002_v35 = vmul.f32 %v5062_v15, %v16828_v0  ;;  %v3834_v19 = vadd.f32 %v3755_v32, %v16830_v29  ;;  %v13010_v30 = vmul.f32 %v5063_v63, %v16831_v59  ;;  %v16837_v29 = vld [vmem:[#allocation159_spill] sm:$0xff]  ;;  %v16838_v59 = vld [vmem:[#allocation212_spill] sm:$0xff] }
 0x395   : > { %16821 = vst [vmem:[#allocation59_spill] sm:$0xff] %v12980_v17  ;;  %16823 = vst [vmem:[#allocation238_spill] sm:$0xff] %v12987_v25  ;;  %v13015_v62 = vmul.f32 %v5062_v15, %v16833_v53  ;;  %v13018_v0 = vmul.f32 %v5061_v55, %v16835_v24  ;;  %v3837_v43 = vadd.f32 %v8652_v20, %v16837_v29  ;;  %v16844_v32 = vld [vmem:[#allocation118_spill] sm:$0xff]  ;;  %v16859_v1 = vld [vmem:[#allocation296_spill] sm:$0xff] }
 0x396   : > { %16825 = vst [vmem:[#allocation257_spill] sm:$0xff] %v12990_v8  ;;  %16827 = vst [vmem:[#allocation93_spill] sm:$0xff] %v12993_v46  ;;  %v13026_v46 = vmul.f32 %v4421_v41, %v16838_v59  ;;  %v13029_v5 = vmul.f32 %v4420_v6, %v16840_v56  ;;  %v13037_v36 = vmul.f32 %v4418_v2, %v16844_v32  ;;  %v16846_v37 = vld [vmem:[#allocation266_spill] sm:$0xff]  ;;  %v16850_v6 = vld [vmem:[#allocation267_spill] sm:$0xff] }
 0x397   : > { %16829 = vst [vmem:[#allocation19_spill] sm:$0xff] %v13002_v35  ;;  %16832 = vst [vmem:[#allocation18_spill] sm:$0xff] %v13010_v30  ;;  %v16842_v35 = vld [vmem:[#allocation214_spill] sm:$0xff]  ;;  %v13043_v41 = vmul.f32 %v12914_v16, %v16846_v37  ;;  %v16852_v59 = vld [vmem:[#allocation269_spill] sm:$0xff] }
 0x398   : > { %16834 = vst [vmem:[#allocation101_spill] sm:$0xff] %v13015_v62  ;;  %16836 = vst [vmem:[#allocation102_spill] sm:$0xff] %v13018_v0  ;;  %v8691_v8 = vpop.f32.mrf.mxu0  ;;  %v13034_v25 = vmul.f32 %v4419_v12, %v16842_v35  ;;  %v16848_v56 = vld [vmem:[#allocation242_spill] sm:$0xff]  ;;  %v3758_v12 = vpop.f32.mrf.mxu1  ;;  %v13056_v29 = vmul.f32 %v5062_v15, %v16852_v59  ;;  %v16857_v59 = vld [vmem:[#allocation237_spill] sm:$0xff] }
 0x399   : > { %16839 = vst [vmem:[#allocation103_spill] sm:$0xff] %v13026_v46  ;;  %16841 = vst [vmem:[#allocation270_spill] sm:$0xff] %v13029_v5  ;;  %v4285_v53 = vadd.f32 %v8691_v8, %v3836_v10  ;;  %v13047_v10 = vmul.f32 %v12895_v48, %v16848_v56  ;;  %v13050_v8 = vmul.f32 %v5063_v63, %v16850_v6  ;;  %v16854_v6 = vld [vmem:[#allocation268_spill] sm:$0xff]  ;;  %v16884_v5 = vld [vmem:[#allocation114_spill] sm:$0xff] }
 0x39a   : > { %16843 = vst [vmem:[#allocation265_spill] sm:$0xff] %v13034_v25  ;;  %16845 = vst [vmem:[#allocation96_spill] sm:$0xff] %v13037_v36  ;;  %v4204_v20 = vpop.f32.mrf.mxu0  ;;  %v13065_v46 = vmul.f32 %v5061_v55, %v16854_v6  ;;  %v1762_v32 = vadd.f32 %v16857_v59, %v12882_v54  ;;  %v3835_v37 = vadd.f32 %v3758_v12, %v12891_v28  ;;  %v13091_v12 = vld [vmem:[%s15462_s4 + $0x78] sm:$0xff]   ;;  %v16886_v62 = vld [vmem:[#allocation195_spill] sm:$0xff] }
 0x39b   : > { %16847 = vst [vmem:[#allocation192_spill] sm:$0xff] %v13043_v41  ;;  %16849 = vst [vmem:[#allocation264_spill] sm:$0xff] %v13047_v10  ;;  %v4324_v35 = vadd.f32 %v12297_v60, %v4285_v53  ;;  %v4283_v2 = vadd.f32 %v4204_v20, %v3834_v19  ;;  %v16856_v19 = vld [vmem:[#allocation256_spill] sm:$0xff]  ;;  %8825 = vmatprep.subr.bf16.mxu0 %v13091_v12  ;;  %v16880_v25 = vld [vmem:[#allocation277_spill] sm:$0xff] }
 0x39c   : > { %16851 = vst [vmem:[#allocation154_spill] sm:$0xff] %v13050_v8  ;;  %16853 = vst [vmem:[#allocation112_spill] sm:$0xff] %v13056_v29  ;;  %v8692_v24 = vpop.f32.mrf.mxu0  ;;  %v2492_v53 = vadd.f32 %v16856_v19, %v12885_v18  ;;  %v16872_v29 = vld [vmem:[#allocation120_spill] sm:$0xff]  ;;  %v16882_v36 = vld [vmem:[#allocation273_spill] sm:$0xff] }
 0x39d   : > { %16855 = vst [vmem:[#allocation61_spill] sm:$0xff] %v13065_v46  ;;  %v4322_v20 = vadd.f32 %v12297_v60, %v4283_v2  ;;  %v4286_v15 = vadd.f32 %v8692_v24, %v3837_v43  ;;  %v13073_v21 = vmax.f32 %v4324_v35, 0.0  ;;  %v16861_v2 = vld [vmem:[#allocation261_spill] sm:$0xff]  ;;  %v16862_v24 = vld [vmem:[#allocation98_spill] sm:$0xff]  ;;  %v16863_v35 = vld [vmem:[#allocation87_spill] sm:$0xff]  ;;  %v13126_v59 = vmul.f32 %v12941_v51, %v16872_v29 }
 0x39e   : > { %v4207_v56 = vpop.f32.mrf.mxu0  ;;  %v2941_v55 = vadd.f32 %v16859_v1, %v2492_v53  ;;  %v13083_v43 = vadd.f32 %v16861_v2, %v12888_v40  ;;  %v13086_v54 = vadd.f32 %v16862_v24, %v1762_v32  ;;  %v16867_v2 = vld [vmem:[#allocation22_spill] sm:$0xff]  ;;  %v16869_v24 = vrot.slane %v12895_v48, 7 }
 0x39f   : > { %16858 = vst [vmem:[#allocation63_spill] sm:$0xff] %v13073_v21  ;;  %v13078_v6 = vmax.f32 %v4322_v20, 0.0  ;;  %v4325_v18 = vadd.f32 %v12297_v60, %v4286_v15  ;;  %v4284_v28 = vadd.f32 %v4207_v56, %v3835_v37  ;;  %v4388_v40 = vrot.slane %v13073_v21, 7  ;;  %v16865_v56 = vld [vmem:[#allocation23_spill] sm:$0xff]  ;;  %16873 = vst [vmem:[#allocation160_spill] sm:$0xff] %v13126_v59 }
 0x3a0   : > { %v13094_v19 = vadd.f32 %v16863_v35, %v2941_v55  ;;  %v5030_v32 = vrot.slane %v13073_v21, 1  ;;  %v13105_v15 = vmul.f32 %v13073_v21, %v16865_v56  ;;  %v16871_v56 = vrot.slane %v12895_v48, 1  ;;  %v16874_v55 = vld [vmem:[#allocation111_spill] sm:$0xff] }
 0x3a1   : > { %16860 = vst [vmem:[#allocation156_spill] sm:$0xff] %v13078_v6  ;;  %v4386_v1 = vrot.slane %v13078_v6, 7  ;;  %v5028_v53 = vrot.slane %v13078_v6, 1  ;;  %v13098_v20 = vmax.f32 %v4325_v18, 0.0  ;;  %v4323_v37 = vadd.f32 %v12297_v60, %v4284_v28 }
 0x3a2   : > { %16866 = vst [vmem:[#allocation193_spill] sm:$0xff] %v13105_v15  ;;  %v13151_v8 = vmul.f32 %v13073_v21, %v16880_v25  ;;  %v13167_v30 = vmul.f32 %v13078_v6, %v16888_v58  ;;  %v16890_v25 = vld [vmem:[#allocation168_spill] sm:$0xff]  ;;  %v16985_v6 = vld [vmem:[#allocation221_spill] sm:$0xff] }
 0x3a3   : > { %16864 = vst [vmem:[#allocation108_spill] sm:$0xff] %v13098_v20  ;;  %v13112_v18 = vmul.f32 %v13098_v20, %v16867_v2  ;;  %v4417_v35 = vsel %vm319_vm1, %v16869_v24, %v4386_v1  ;;  %v13118_v28 = vmax.f32 %v4323_v37, 0.0  ;;  %v5059_v63 = vsel %vm1283_vm2, %v16871_v56, %v5028_v53 }
 0x3a4   : > { %v13130_v2 = vmul.f32 %v12941_v51, %v16874_v55  ;;  %v16876_v37 = vrot.slane %v13098_v20, 7  ;;  %v13139_v10 = vmul.f32 %v5059_v63, %v16877_v57  ;;  %v16879_v56 = vrot.slane %v13098_v20, 1  ;;  %16881 = vst [vmem:[#allocation200_spill] sm:$0xff] %v13151_v8  ;;  %16889 = vst [vmem:[#allocation214_spill] sm:$0xff] %v13167_v30  ;;  %v16935_v8 = vld [vmem:[#allocation263_spill] sm:$0xff] }
 0x3a5   : > { %16868 = vst [vmem:[#allocation158_spill] sm:$0xff] %v13112_v18  ;;  %16870 = vst [vmem:[#allocation105_spill] sm:$0xff] %v13118_v28  ;;  %v8655_v46 = vpop.f32.mrf.mxu1  ;;  %v4387_v55 = vrot.slane %v13118_v28, 7  ;;  %v5029_v41 = vrot.slane %v13118_v28, 1  ;;  %v13158_v48 = vmul.f32 %v4417_v35, %v16884_v5  ;;  %v13163_v0 = vmul.f32 %v4417_v35, %v16886_v62  ;;  %v16891_v5 = vld [vmem:[#allocation131_spill] sm:$0xff]  ;;  %v16893_v18 = vld [vmem:[#allocation65_spill] sm:$0xff] }
 0x3a6   : > { %16875 = vst [vmem:[#allocation186_spill] sm:$0xff] %v13130_v2  ;;  %v4414_v24 = vsel %vm319_vm1, %v4388_v40, %v16876_v37  ;;  %16878 = vst [vmem:[#allocation110_spill] sm:$0xff] %v13139_v10  ;;  %v13145_v29 = vsel %vm1283_vm2, %v5030_v32, %v16879_v56  ;;  %v13155_v37 = vmul.f32 %v12941_v51, %v16882_v36  ;;  %v16895_v62 = vld [vmem:[#allocation68_spill] sm:$0xff]  ;;  %v16965_v2 = vld [vmem:[#allocation278_spill] sm:$0xff] }
 0x3a7   : > { %v3771_v57 = vpop.f32.mrf.mxu1  ;;  %16885 = vst [vmem:[#allocation212_spill] sm:$0xff] %v13158_v48  ;;  %16887 = vst [vmem:[#allocation107_spill] sm:$0xff] %v13163_v0  ;;  %v3840_v17 = vadd.f32 %v8655_v46, %v16890_v25  ;;  %v4416_v36 = vsel %vm319_vm1, %v4386_v1, %v4387_v55  ;;  %v4415_v51 = vsel %vm319_vm1, %v4387_v55, %v4388_v40  ;;  %v16897_v10 = vld [vmem:[#allocation36_spill] sm:$0xff]  ;;  %v16901_v55 = vld [vmem:[#allocation198_spill] sm:$0xff] }
 0x3a8   : > { %16883 = vst [vmem:[#allocation159_spill] sm:$0xff] %v13155_v37  ;;  %v13175_v15 = vmul.f32 %v4414_v24, %v16891_v5  ;;  %v13178_v56 = vmul.f32 %v4416_v36, %v16893_v18  ;;  %v13181_v59 = vmul.f32 %v4415_v51, %v16895_v62  ;;  %v13184_v58 = vmul.f32 %v4416_v36, %v16897_v10  ;;  %v16899_v25 = vld [vmem:[#allocation128_spill] sm:$0xff]  ;;  %v16903_v18 = vld [vmem:[#allocation166_spill] sm:$0xff]  ;;  %v16910_v10 = vld [vmem:[#allocation125_spill] sm:$0xff] }
 0x3a9   : > { %v5057_v46 = vsel %vm1283_vm2, %v5029_v41, %v5030_v32  ;;  %v5058_v1 = vsel %vm1283_vm2, %v5028_v53, %v5029_v41  ;;  %v13194_v5 = vmul.f32 %v4415_v51, %v16901_v55  ;;  %v13197_v3 = vmul.f32 %v4414_v24, %v16903_v18  ;;  %v8656_v62 = vpop.f32.mrf.mxu1  ;;  %v16905_v41 = vld [vmem:[#allocation123_spill] sm:$0xff]  ;;  %v16917_v0 = vld [vmem:[#allocation116_spill] sm:$0xff] }
 0x3aa   : > { %16892 = vst [vmem:[#allocation118_spill] sm:$0xff] %v13175_v15  ;;  %16894 = vst [vmem:[#allocation266_spill] sm:$0xff] %v13178_v56  ;;  %v13191_v40 = vmul.f32 %v5057_v46, %v16899_v25  ;;  %v13206_v53 = vmul.f32 %v5058_v1, %v16905_v41  ;;  %v16907_v25 = vld [vmem:[#allocation176_spill] sm:$0xff]  ;;  %v13214_v38 = vmul.f32 %v5059_v63, %v16908_v26  ;;  %v16912_v32 = vld [vmem:[#allocation143_spill] sm:$0xff] }
 0x3ab   : > { %16896 = vst [vmem:[#allocation242_spill] sm:$0xff] %v13181_v59  ;;  %16898 = vst [vmem:[#allocation267_spill] sm:$0xff] %v13184_v58  ;;  %v3838_v42 = vadd.f32 %v3771_v57, %v16907_v25  ;;  %v13219_v59 = vmul.f32 %v5058_v1, %v16910_v10  ;;  %v13222_v41 = vmul.f32 %v5057_v46, %v16912_v32  ;;  %v16914_v25 = vld [vmem:[#allocation175_spill] sm:$0xff]  ;;  %v16915_v26 = vld [vmem:[#allocation217_spill] sm:$0xff] }
 0x3ac   : > { %16900 = vst [vmem:[#allocation269_spill] sm:$0xff] %v13191_v40  ;;  %16902 = vst [vmem:[#allocation268_spill] sm:$0xff] %v13194_v5  ;;  %v3841_v55 = vadd.f32 %v8656_v62, %v16914_v25  ;;  %v13233_v44 = vmul.f32 %v4416_v36, %v16917_v0  ;;  %v16921_v57 = vld [vmem:[#allocation134_spill] sm:$0xff]  ;;  %v16923_v18 = vld [vmem:[#allocation272_spill] sm:$0xff] }
 0x3ad   : > { %16904 = vst [vmem:[#allocation256_spill] sm:$0xff] %v13197_v3  ;;  %16906 = vst [vmem:[#allocation237_spill] sm:$0xff] %v13206_v53  ;;  %v13230_v3 = vmul.f32 %v4417_v35, %v16915_v26  ;;  %v16919_v53 = vld [vmem:[#allocation218_spill] sm:$0xff]  ;;  %v13241_v21 = vmul.f32 %v4414_v24, %v16921_v57  ;;  %v13247_v35 = vmul.f32 %v13118_v28, %v16923_v18  ;;  %v16925_v0 = vld [vmem:[#allocation245_spill] sm:$0xff] }
 0x3ae   : > { %16909 = vst [vmem:[#allocation296_spill] sm:$0xff] %v13214_v38  ;;  %16911 = vst [vmem:[#allocation261_spill] sm:$0xff] %v13219_v59  ;;  %v8695_v5 = vpop.f32.mrf.mxu0  ;;  %v13238_v40 = vmul.f32 %v4415_v51, %v16919_v53  ;;  %v16927_v36 = vld [vmem:[#allocation274_spill] sm:$0xff]  ;;  %v3774_v51 = vpop.f32.mrf.mxu1  ;;  %v16929_v26 = vld [vmem:[#allocation276_spill] sm:$0xff] }
 0x3af   : > { %16913 = vst [vmem:[#allocation98_spill] sm:$0xff] %v13222_v41  ;;  %16916 = vst [vmem:[#allocation87_spill] sm:$0xff] %v13230_v3  ;;  %v4289_v10 = vadd.f32 %v8695_v5, %v3840_v17  ;;  %v13251_v17 = vmul.f32 %v13098_v20, %v16925_v0  ;;  %v13254_v5 = vmul.f32 %v5059_v63, %v16927_v36  ;;  %v16931_v36 = vld [vmem:[#allocation275_spill] sm:$0xff] }
 0x3b0   : > { %16918 = vst [vmem:[#allocation23_spill] sm:$0xff] %v13233_v44  ;;  %16920 = vst [vmem:[#allocation22_spill] sm:$0xff] %v13238_v40  ;;  %v4220_v62 = vpop.f32.mrf.mxu0  ;;  %v13260_v25 = vmul.f32 %v5058_v1, %v16929_v26  ;;  %v13269_v3 = vmul.f32 %v5057_v46, %v16931_v36  ;;  %v3839_v26 = vadd.f32 %v3774_v51, %v13094_v19  ;;  %v16939_v36 = vld [vmem:[#allocation303_spill] sm:$0xff]  ;;  %v16957_v40 = vld [vmem:[#allocation141_spill] sm:$0xff] }
 0x3b1   : > { %16922 = vst [vmem:[#allocation120_spill] sm:$0xff] %v13241_v21  ;;  %16924 = vst [vmem:[#allocation111_spill] sm:$0xff] %v13247_v35  ;;  %v4328_v53 = vadd.f32 %v12297_v60, %v4289_v10  ;;  %v4287_v24 = vadd.f32 %v4220_v62, %v3838_v42  ;;  %v16933_v62 = vld [vmem:[#allocation299_spill] sm:$0xff]  ;;  %v13281_v63 = vadd.f32 %v16935_v8, %v13086_v54  ;;  %v16959_v21 = vld [vmem:[#allocation280_spill] sm:$0xff] }
 0x3b2   : > { %16926 = vst [vmem:[#allocation109_spill] sm:$0xff] %v13251_v17  ;;  %16928 = vst [vmem:[#allocation277_spill] sm:$0xff] %v13254_v5  ;;  %v8696_v32 = vpop.f32.mrf.mxu0  ;;  %v2945_v1 = vadd.f32 %v16933_v62, %v13083_v43  ;;  %v16938_v43 = vld [vmem:[#allocation95_spill] sm:$0xff]  ;;  %v16940_v62 = vld [vmem:[#allocation4_spill] sm:$0xff] }
 0x3b3   : > { %16930 = vst [vmem:[#allocation273_spill] sm:$0xff] %v13260_v25  ;;  %16932 = vst [vmem:[#allocation114_spill] sm:$0xff] %v13269_v3  ;;  %v4326_v42 = vadd.f32 %v12297_v60, %v4287_v24  ;;  %v4290_v10 = vadd.f32 %v8696_v32, %v3841_v55  ;;  %v13275_v57 = vmax.f32 %v4328_v53, 0.0  ;;  %v16937_v55 = vld [vmem:[#allocation300_spill] sm:$0xff]  ;;  %v13291_v19 = vadd.f32 %v16939_v36, %v16938_v43  ;;  %v16942_v43 = vld [vmem:[#allocation27_spill] sm:$0xff] }
 0x3b4   : > { %v4223_v18 = vpop.f32.mrf.mxu0  ;;  %v13287_v32 = vadd.f32 %v16937_v55, %v2945_v1  ;;  %v13296_v0 = vmul.f32 %v12329_v23, %v16940_v62  ;;  %v16944_v62 = vld [vmem:[#allocation26_spill] sm:$0xff]  ;;  %v16954_v17 = vld [vmem:[#allocation113_spill] sm:$0xff]  ;;  %v16963_v59 = vld [vmem:[#allocation199_spill] sm:$0xff] }
 0x3b5   : > { %16934 = vst [vmem:[#allocation195_spill] sm:$0xff] %v13275_v57  ;;  %v13283_v46 = vmax.f32 %v4326_v42, 0.0  ;;  %v4329_v24 = vadd.f32 %v12297_v60, %v4290_v10  ;;  %v4288_v53 = vadd.f32 %v4223_v18, %v3839_v26  ;;  %v4392_v10 = vrot.slane %v13275_v57, 7  ;;  %v16951_v26 = vld [vmem:[#allocation124_spill] sm:$0xff]  ;;  %v16961_v44 = vld [vmem:[#allocation133_spill] sm:$0xff] }
 0x3b6   : > { %v5034_v1 = vrot.slane %v13275_v57, 1  ;;  %v13307_v36 = vmul.f32 %v13275_v57, %v16942_v43  ;;  %v16949_v43 = vld [vmem:[#allocation137_spill] sm:$0xff]  ;;  %v13352_v5 = vmul.f32 %v13275_v57, %v16957_v40  ;;  %v16967_v40 = vld [vmem:[#allocation88_spill] sm:$0xff] }
 0x3b7   : > { %16936 = vst [vmem:[#allocation271_spill] sm:$0xff] %v13283_v46  ;;  %v4390_v8 = vrot.slane %v13283_v46, 7  ;;  %v5032_v54 = vrot.slane %v13283_v46, 1  ;;  %v13300_v42 = vmax.f32 %v4329_v24, 0.0  ;;  %v4327_v55 = vadd.f32 %v12297_v60, %v4288_v53 }
 0x3b8   : > { %16943 = vst [vmem:[#allocation131_spill] sm:$0xff] %v13307_v36  ;;  %v16946_v24 = vrot.slane %v13098_v20, 7  ;;  %v16948_v60 = vrot.slane %v13098_v20, 1  ;;  %v13327_v18 = vmul.f32 %v13145_v29, %v16949_v43  ;;  %16958 = vst [vmem:[#allocation166_spill] sm:$0xff] %v13352_v5  ;;  %v13368_v38 = vmul.f32 %v13283_v46, %v16965_v2 }
 0x3b9   : > { %16941 = vst [vmem:[#allocation168_spill] sm:$0xff] %v13300_v42  ;;  %v13313_v51 = vmul.f32 %v13300_v42, %v16944_v62  ;;  %v13319_v3 = vmax.f32 %v4327_v55, 0.0  ;;  %v13331_v62 = vmul.f32 %v13145_v29, %v16951_v26  ;;  %v16953_v55 = vrot.slane %v13300_v42, 7 }
 0x3ba   : > { %v4413_v25 = vsel %vm319_vm1, %v16946_v24, %v4390_v8  ;;  %v5055_v53 = vsel %vm1283_vm2, %v16948_v60, %v5032_v54  ;;  %16950 = vst [vmem:[#allocation36_spill] sm:$0xff] %v13327_v18  ;;  %v16956_v60 = vrot.slane %v13300_v42, 1  ;;  %16966 = vst [vmem:[#allocation125_spill] sm:$0xff] %v13368_v38 }
 0x3bb   : > { %16945 = vst [vmem:[#allocation65_spill] sm:$0xff] %v13313_v51  ;;  %16947 = vst [vmem:[#allocation68_spill] sm:$0xff] %v13319_v3  ;;  %v8659_v37 = vpop.f32.mrf.mxu1  ;;  %v4410_v24 = vsel %vm319_vm1, %v4392_v10, %v16953_v55  ;;  %v13340_v30 = vmul.f32 %v5055_v53, %v16954_v17  ;;  %v4391_v26 = vrot.slane %v13319_v3, 7  ;;  %v5033_v35 = vrot.slane %v13319_v3, 1  ;;  %v16970_v51 = vld [vmem:[#allocation72_spill] sm:$0xff] }
 0x3bc   : > { %16952 = vst [vmem:[#allocation128_spill] sm:$0xff] %v13331_v62  ;;  %v13346_v43 = vsel %vm1283_vm2, %v5034_v1, %v16956_v60  ;;  %v13356_v55 = vmul.f32 %v13145_v29, %v16959_v21  ;;  %v13359_v20 = vmul.f32 %v4413_v25, %v16961_v44  ;;  %v13364_v41 = vmul.f32 %v4413_v25, %v16963_v59  ;;  %v16968_v44 = vld [vmem:[#allocation149_spill] sm:$0xff]  ;;  %v16972_v59 = vld [vmem:[#allocation76_spill] sm:$0xff] }
 0x3bd   : > { %16955 = vst [vmem:[#allocation198_spill] sm:$0xff] %v13340_v30  ;;  %v3787_v17 = vpop.f32.mrf.mxu1  ;;  %v3844_v58 = vadd.f32 %v8659_v37, %v16967_v40  ;;  %v4412_v21 = vsel %vm319_vm1, %v4390_v8, %v4391_v26  ;;  %v4411_v29 = vsel %vm319_vm1, %v4391_v26, %v4392_v10  ;;  %v13376_v36 = vmul.f32 %v4410_v24, %v16968_v44  ;;  %v16974_v30 = vld [vmem:[#allocation171_spill] sm:$0xff]  ;;  %v16976_v40 = vld [vmem:[#allocation144_spill] sm:$0xff]  ;;  %v17038_v62 = vld [vmem:[#allocation153_spill] sm:$0xff] }
 0x3be   : > { %16960 = vst [vmem:[#allocation123_spill] sm:$0xff] %v13356_v55  ;;  %16962 = vst [vmem:[#allocation176_spill] sm:$0xff] %v13359_v20  ;;  %v13379_v60 = vmul.f32 %v4412_v21, %v16970_v51  ;;  %v13382_v18 = vmul.f32 %v4411_v29, %v16972_v59  ;;  %v13385_v2 = vmul.f32 %v4412_v21, %v16974_v30  ;;  %v16978_v26 = vld [vmem:[#allocation147_spill] sm:$0xff]  ;;  %v16980_v51 = vld [vmem:[#allocation177_spill] sm:$0xff] }
 0x3bf   : > { %16964 = vst [vmem:[#allocation215_spill] sm:$0xff] %v13364_v41  ;;  %16969 = vst [vmem:[#allocation143_spill] sm:$0xff] %v13376_v36  ;;  %v5053_v37 = vsel %vm1283_vm2, %v5033_v35, %v5034_v1  ;;  %v5054_v8 = vsel %vm1283_vm2, %v5032_v54, %v5033_v35  ;;  %v13395_v44 = vmul.f32 %v4411_v29, %v16978_v26  ;;  %v8660_v59 = vpop.f32.mrf.mxu1  ;;  %v16982_v35 = vld [vmem:[#allocation140_spill] sm:$0xff]  ;;  %v16987_v30 = vld [vmem:[#allocation142_spill] sm:$0xff] }
 0x3c0   : > { %16971 = vst [vmem:[#allocation175_spill] sm:$0xff] %v13379_v60  ;;  %16973 = vst [vmem:[#allocation217_spill] sm:$0xff] %v13382_v18  ;;  %v13392_v10 = vmul.f32 %v5053_v37, %v16976_v40  ;;  %v13398_v15 = vmul.f32 %v4410_v24, %v16980_v51  ;;  %v13407_v54 = vmul.f32 %v5054_v8, %v16982_v35  ;;  %v16984_v40 = vld [vmem:[#allocation85_spill] sm:$0xff]  ;;  %v16994_v41 = vld [vmem:[#allocation220_spill] sm:$0xff] }
 0x3c1   : > { %16975 = vst [vmem:[#allocation116_spill] sm:$0xff] %v13385_v2  ;;  %16979 = vst [vmem:[#allocation134_spill] sm:$0xff] %v13395_v44  ;;  %v3842_v56 = vadd.f32 %v3787_v17, %v16984_v40  ;;  %v13415_v28 = vmul.f32 %v5055_v53, %v16985_v6  ;;  %v13420_v18 = vmul.f32 %v5054_v8, %v16987_v30  ;;  %v16989_v1 = vld [vmem:[#allocation201_spill] sm:$0xff]  ;;  %v16992_v6 = vld [vmem:[#allocation224_spill] sm:$0xff] }
 0x3c2   : > { %16977 = vst [vmem:[#allocation218_spill] sm:$0xff] %v13392_v10  ;;  %16981 = vst [vmem:[#allocation272_spill] sm:$0xff] %v13398_v15  ;;  %v13423_v35 = vmul.f32 %v5053_v37, %v16989_v1  ;;  %v16991_v40 = vld [vmem:[#allocation89_spill] sm:$0xff]  ;;  %v13431_v15 = vmul.f32 %v4413_v25, %v16992_v6  ;;  %v13434_v48 = vmul.f32 %v4412_v21, %v16994_v41  ;;  %v16998_v17 = vld [vmem:[#allocation231_spill] sm:$0xff] }
 0x3c3   : > { %16983 = vst [vmem:[#allocation245_spill] sm:$0xff] %v13407_v54  ;;  %16986 = vst [vmem:[#allocation274_spill] sm:$0xff] %v13415_v28  ;;  %v3845_v26 = vadd.f32 %v8660_v59, %v16991_v40  ;;  %v16996_v54 = vld [vmem:[#allocation136_spill] sm:$0xff]  ;;  %v13442_v57 = vmul.f32 %v4410_v24, %v16998_v17  ;;  %v17000_v51 = vld [vmem:[#allocation279_spill] sm:$0xff] }
 0x3c4   : > { %16988 = vst [vmem:[#allocation276_spill] sm:$0xff] %v13420_v18  ;;  %16990 = vst [vmem:[#allocation275_spill] sm:$0xff] %v13423_v35  ;;  %v8699_v44 = vpop.f32.mrf.mxu0  ;;  %v13439_v10 = vmul.f32 %v4411_v29, %v16996_v54  ;;  %v13448_v25 = vmul.f32 %v13319_v3, %v17000_v51  ;;  %v17002_v41 = vld [vmem:[#allocation249_spill] sm:$0xff]  ;;  %v3790_v29 = vpop.f32.mrf.mxu1  ;;  %v13460_v24 = vld [vmem:[%s15461_s3] ss:$0 sm:$0xff] }
 0x3c5   : > { %16993 = vst [vmem:[#allocation299_spill] sm:$0xff] %v13431_v15  ;;  %16995 = vst [vmem:[#allocation263_spill] sm:$0xff] %v13434_v48  ;;  %v4293_v30 = vadd.f32 %v8699_v44, %v3844_v58  ;;  %v13452_v58 = vmul.f32 %v13300_v42, %v17002_v41  ;;  %v17004_v21 = vld [vmem:[#allocation281_spill] sm:$0xff]  ;;  %v17006_v6 = vld [vmem:[#allocation283_spill] sm:$0xff] }
 0x3c6   : > { %16997 = vst [vmem:[#allocation300_spill] sm:$0xff] %v13439_v10  ;;  %16999 = vst [vmem:[#allocation95_spill] sm:$0xff] %v13442_v57  ;;  %v4236_v59 = vpop.f32.mrf.mxu0  ;;  %v13455_v44 = vmul.f32 %v5055_v53, %v17004_v21  ;;  %v13466_v40 = vmul.f32 %v5054_v8, %v17006_v6  ;;  %v17008_v15 = vld [vmem:[#allocation282_spill] sm:$0xff]  ;;  %v17012_v8 = vrot.slane %v12312_v11, 7  ;;  %v17015_v55 = vld [vmem:[#allocation161_spill] sm:$0xff] }
 0x3c7   : > { %17001 = vst [vmem:[#allocation303_spill] sm:$0xff] %v13448_v25  ;;  %17003 = vst [vmem:[#allocation4_spill] sm:$0xff] %v13452_v58  ;;  %v4332_v54 = vadd.f32 %v13460_v24, %v4293_v30  ;;  %v4291_v17 = vadd.f32 %v4236_v59, %v3842_v56  ;;  %v13475_v48 = vmul.f32 %v5053_v37, %v17008_v15  ;;  %v17010_v56 = vld [vmem:[#allocation304_spill] sm:$0xff]  ;;  %v17011_v59 = vrot.slane %v12329_v23, 7  ;;  %v17013_v51 = vld [vmem:[#allocation2_spill] sm:$0xff] }
 0x3c8   : > { %17005 = vst [vmem:[#allocation27_spill] sm:$0xff] %v13455_v44  ;;  %17007 = vst [vmem:[#allocation26_spill] sm:$0xff] %v13466_v40  ;;  %v8700_v41 = vpop.f32.mrf.mxu0  ;;  %v2949_v30 = vadd.f32 %v17010_v56, %v13281_v63  ;;  %v13490_v1 = vmul.f32 %v12312_v11, %v17013_v51  ;;  %v3843_v15 = vadd.f32 %v3790_v29, %v13287_v32  ;;  %v17017_v51 = vld [vmem:[#allocation46_spill] sm:$0xff]  ;;  %v17026_v58 = vld [vmem:[#allocation157_spill] sm:$0xff] }
 0x3c9   : > { %17009 = vst [vmem:[#allocation137_spill] sm:$0xff] %v13475_v48  ;;  %v13485_v6 = vsel %vm319_vm1, %v17012_v8, %v17011_v59  ;;  %v4330_v53 = vadd.f32 %v13460_v24, %v4291_v17  ;;  %v4294_v21 = vadd.f32 %v8700_v41, %v3845_v26  ;;  %v13493_v37 = vmax.f32 %v4332_v54, 0.0  ;;  %v17016_v26 = vld [vmem:[#allocation205_spill] sm:$0xff]  ;;  %v17036_v35 = vld [vmem:[#allocation286_spill] sm:$0xff]  ;;  %v17041_v2 = vld [vmem:[#allocation284_spill] sm:$0xff] }
 0x3ca   : > { %v4239_v63 = vpop.f32.mrf.mxu0  ;;  %v3400_v44 = vadd.f32 %v17015_v55, %v13291_v19  ;;  %v13503_v41 = vadd.f32 %v17016_v26, %v2949_v30  ;;  %v13507_v8 = vmul.f32 %v13485_v6, %v17017_v51  ;;  %v17019_v55 = vld [vmem:[#allocation8_spill] sm:$0xff]  ;;  %v17020_v51 = vld [vmem:[#allocation34_spill] sm:$0xff]  ;;  %v17031_v10 = vld [vmem:[#allocation117_spill] sm:$0xff] }
 0x3cb   : > { %17014 = vst [vmem:[#allocation124_spill] sm:$0xff] %v13493_v37  ;;  %v13499_v59 = vmax.f32 %v4330_v53, 0.0  ;;  %v4333_v17 = vadd.f32 %v13460_v24, %v4294_v21  ;;  %v4292_v29 = vadd.f32 %v4239_v63, %v3843_v15  ;;  %v13517_v53 = vmul.f32 %v12491_v31, %v17019_v55  ;;  %v17028_v63 = vld [vmem:[#allocation226_spill] sm:$0xff]  ;;  %v17034_v18 = vld [vmem:[#allocation289_spill] sm:$0xff]  ;;  %v17039_v31 = vld [vmem:[#allocation148_spill] sm:$0xff] }
 0x3cc   : > { %v4396_v21 = vrot.slane %v13493_v37, 7  ;;  %v5038_v30 = vrot.slane %v13493_v37, 1  ;;  %v13524_v32 = vmul.f32 %v13493_v37, %v17020_v51  ;;  %v17024_v55 = vrot.slane %v13300_v42, 7  ;;  %v17045_v20 = vld [vmem:[#allocation78_spill] sm:$0xff] }
 0x3cd   : > { %v4394_v54 = vrot.slane %v13499_v59, 7  ;;  %v5036_v56 = vrot.slane %v13499_v59, 1  ;;  %v13513_v19 = vmax.f32 %v4333_v17, 0.0  ;;  %v4331_v26 = vadd.f32 %v13460_v24, %v4292_v29  ;;  %v17022_v17 = vld [vmem:[#allocation33_spill] sm:$0xff] }
 0x3ce   : > { %17021 = vst [vmem:[#allocation141_spill] sm:$0xff] %v13524_v32  ;;  %v17025_v29 = vrot.slane %v13300_v42, 1  ;;  %v13544_v15 = vmul.f32 %v13346_v43, %v17026_v58  ;;  %v13569_v25 = vmul.f32 %v13493_v37, %v17034_v18  ;;  %v13585_v32 = vmul.f32 %v13499_v59, %v17041_v2  ;;  %v17043_v18 = vld [vmem:[#allocation301_spill] sm:$0xff] }
 0x3cf   : > { %17018 = vst [vmem:[#allocation113_spill] sm:$0xff] %v13513_v19  ;;  %v13530_v40 = vmul.f32 %v13513_v19, %v17022_v17  ;;  %v4409_v48 = vsel %vm319_vm1, %v17024_v55, %v4394_v54  ;;  %v13536_v5 = vmax.f32 %v4331_v26, 0.0  ;;  %v13548_v17 = vmul.f32 %v13346_v43, %v17028_v63 }
 0x3d0   : > { %v5051_v51 = vsel %vm1283_vm2, %v17025_v29, %v5036_v56  ;;  %17027 = vst [vmem:[#allocation133_spill] sm:$0xff] %v13544_v15  ;;  %v17030_v26 = vrot.slane %v13513_v19, 7  ;;  %v17033_v29 = vrot.slane %v13513_v19, 1  ;;  %17035 = vst [vmem:[#allocation88_spill] sm:$0xff] %v13569_v25  ;;  %v13576_v28 = vmul.f32 %v4409_v48, %v17038_v62  ;;  %v17044_v62 = vld [vmem:[#allocation164_spill] sm:$0xff] }
 0x3d1   : > { %17023 = vst [vmem:[#allocation280_spill] sm:$0xff] %v13530_v40  ;;  %17029 = vst [vmem:[#allocation199_spill] sm:$0xff] %v13548_v17  ;;  %v8663_v38 = vpop.f32.mrf.mxu1  ;;  %v13557_v57 = vmul.f32 %v5051_v51, %v17031_v10  ;;  %v4395_v63 = vrot.slane %v13536_v5, 7  ;;  %v5037_v42 = vrot.slane %v13536_v5, 1  ;;  %v13581_v23 = vmul.f32 %v4409_v48, %v17039_v31  ;;  %v17046_v31 = vld [vmem:[#allocation81_spill] sm:$0xff]  ;;  %v17103_v17 = vld [vmem:[#allocation48_spill] sm:$0xff] }
 0x3d2   : > { %v4406_v55 = vsel %vm319_vm1, %v4396_v21, %v17030_v26  ;;  %v13563_v58 = vsel %vm1283_vm2, %v5038_v30, %v17033_v29  ;;  %v13573_v26 = vmul.f32 %v13346_v43, %v17036_v35  ;;  %17042 = vst [vmem:[#allocation76_spill] sm:$0xff] %v13585_v32  ;;  %v3848_v40 = vadd.f32 %v8663_v38, %v17043_v18  ;;  %v17050_v18 = vld [vmem:[#allocation30_spill] sm:$0xff] }
 0x3d3   : > { %17032 = vst [vmem:[#allocation278_spill] sm:$0xff] %v13557_v57  ;;  %v3803_v10 = vpop.f32.mrf.mxu1  ;;  %17040 = vst [vmem:[#allocation72_spill] sm:$0xff] %v13581_v23  ;;  %v4408_v43 = vsel %vm319_vm1, %v4394_v54, %v4395_v63  ;;  %v4407_v35 = vsel %vm319_vm1, %v4395_v63, %v4396_v21  ;;  %v13593_v36 = vmul.f32 %v4406_v55, %v17044_v62  ;;  %v17048_v57 = vld [vmem:[#allocation181_spill] sm:$0xff]  ;;  %v17052_v63 = vld [vmem:[#allocation115_spill] sm:$0xff]  ;;  %v17093_v32 = vrot.slane %v13513_v19, 7 }
 0x3d4   : > { %17037 = vst [vmem:[#allocation149_spill] sm:$0xff] %v13573_v26  ;;  %v13596_v29 = vmul.f32 %v4408_v43, %v17045_v20  ;;  %v13599_v15 = vmul.f32 %v4407_v35, %v17046_v31  ;;  %v13602_v2 = vmul.f32 %v4408_v43, %v17048_v57  ;;  %v5049_v38 = vsel %vm1283_vm2, %v5037_v42, %v5038_v30  ;;  %v17054_v20 = vld [vmem:[#allocation53_spill] sm:$0xff]  ;;  %v17061_v57 = vld [vmem:[#allocation235_spill] sm:$0xff]  ;;  %v17063_v30 = vld [vmem:[#allocation138_spill] sm:$0xff] }
 0x3d5   : > { %v5050_v54 = vsel %vm1283_vm2, %v5036_v56, %v5037_v42  ;;  %v13609_v21 = vmul.f32 %v5049_v38, %v17050_v18  ;;  %v13612_v62 = vmul.f32 %v4407_v35, %v17052_v63  ;;  %v13615_v60 = vmul.f32 %v4406_v55, %v17054_v20  ;;  %v8664_v31 = vpop.f32.mrf.mxu1  ;;  %v17056_v42 = vld [vmem:[#allocation31_spill] sm:$0xff]  ;;  %v17058_v18 = vld [vmem:[#allocation302_spill] sm:$0xff]  ;;  %v17073_v20 = vld [vmem:[#allocation285_spill] sm:$0xff] }
 0x3d6   : > { %17047 = vst [vmem:[#allocation171_spill] sm:$0xff] %v13599_v15  ;;  %17049 = vst [vmem:[#allocation144_spill] sm:$0xff] %v13602_v2  ;;  %v13624_v56 = vmul.f32 %v5050_v54, %v17056_v42  ;;  %v3846_v3 = vadd.f32 %v3803_v10, %v17058_v18  ;;  %v13632_v13 = vmul.f32 %v5051_v51, %v17059_v52 }
 0x3d7   : > { %17051 = vst [vmem:[#allocation147_spill] sm:$0xff] %v13609_v21  ;;  %17053 = vst [vmem:[#allocation177_spill] sm:$0xff] %v13612_v62  ;;  %v13637_v15 = vmul.f32 %v5050_v54, %v17061_v57  ;;  %v13640_v42 = vmul.f32 %v5049_v38, %v17063_v30  ;;  %v3849_v18 = vadd.f32 %v8664_v31, %v3400_v44  ;;  %v17065_v62 = vld [vmem:[#allocation234_spill] sm:$0xff]  ;;  %v17069_v30 = vld [vmem:[#allocation225_spill] sm:$0xff] }
 0x3d8   : > { %17055 = vst [vmem:[#allocation140_spill] sm:$0xff] %v13615_v60  ;;  %17057 = vst [vmem:[#allocation85_spill] sm:$0xff] %v13624_v56  ;;  %v13647_v52 = vmul.f32 %v4409_v48, %v17065_v62  ;;  %v17067_v60 = vld [vmem:[#allocation223_spill] sm:$0xff]  ;;  %v13655_v56 = vmul.f32 %v4407_v35, %v17069_v30  ;;  %v17071_v21 = vld [vmem:[#allocation162_spill] sm:$0xff]  ;;  %v13664_v48 = vmul.f32 %v13536_v5, %v17073_v20  ;;  %v3806_v35 = vpop.f32.mrf.mxu1 }
 0x3d9   : > { %17060 = vst [vmem:[#allocation221_spill] sm:$0xff] %v13632_v13  ;;  %17062 = vst [vmem:[#allocation142_spill] sm:$0xff] %v13637_v15  ;;  %v13650_v23 = vmul.f32 %v4408_v43, %v17067_v60  ;;  %v13658_v10 = vmul.f32 %v4406_v55, %v17071_v21  ;;  %v17075_v60 = vld [vmem:[#allocation39_spill] sm:$0xff]  ;;  %v17079_v30 = vld [vmem:[#allocation288_spill] sm:$0xff]  ;;  %v3847_v20 = vadd.f32 %v3806_v35, %v13503_v41 }
 0x3da   : > { %17064 = vst [vmem:[#allocation201_spill] sm:$0xff] %v13640_v42  ;;  %v8703_v63 = vpop.f32.mrf.mxu0  ;;  %17066 = vst [vmem:[#allocation89_spill] sm:$0xff] %v13647_v52  ;;  %v17077_v43 = vld [vmem:[#allocation287_spill] sm:$0xff]  ;;  %v13677_v31 = vmul.f32 %v5050_v54, %v17079_v30  ;;  %v17084_v30 = vld [vmem:[#allocation184_spill] sm:$0xff] }
 0x3db   : > { %17068 = vst [vmem:[#allocation224_spill] sm:$0xff] %v13650_v23  ;;  %v4297_v46 = vadd.f32 %v8703_v63, %v3848_v40  ;;  %17070 = vst [vmem:[#allocation220_spill] sm:$0xff] %v13655_v56  ;;  %v13668_v40 = vmul.f32 %v13513_v19, %v17075_v60  ;;  %v13671_v62 = vmul.f32 %v5051_v51, %v17077_v43  ;;  %v17081_v43 = vld [vmem:[#allocation155_spill] sm:$0xff]  ;;  %v17085_v51 = vld [vmem:[#allocation233_spill] sm:$0xff] }
 0x3dc   : > { %17072 = vst [vmem:[#allocation136_spill] sm:$0xff] %v13658_v10  ;;  %v4252_v44 = vpop.f32.mrf.mxu0  ;;  %17074 = vst [vmem:[#allocation231_spill] sm:$0xff] %v13664_v48  ;;  %v13686_v52 = vmul.f32 %v5049_v38, %v17081_v43  ;;  %v13695_v21 = vmul.f32 %v13485_v6, %v17084_v30  ;;  %v13702_v38 = vmul.f32 %v13485_v6, %v17085_v51  ;;  %v17088_v6 = vld [vmem:[#allocation170_spill] sm:$0xff]  ;;  %v17096_v56 = vld [vmem:[#allocation295_spill] sm:$0xff]  ;;  %v17097_v10 = vrot.slane %v12312_v11, 7 }
 0x3dd   : > { %17076 = vst [vmem:[#allocation279_spill] sm:$0xff] %v13668_v40  ;;  %17078 = vst [vmem:[#allocation249_spill] sm:$0xff] %v13671_v62  ;;  %v4336_v63 = vadd.f32 %v13460_v24, %v4297_v46  ;;  %v4295_v55 = vadd.f32 %v4252_v44, %v3846_v3  ;;  %v17083_v44 = vld [vmem:[#allocation9_spill] sm:$0xff]  ;;  %v13721_v51 = vmul.f32 %v13563_v58, %v17088_v6 }
 0x3de   : > { %17080 = vst [vmem:[#allocation281_spill] sm:$0xff] %v13677_v31  ;;  %v8704_v57 = vpop.f32.mrf.mxu0  ;;  %17082 = vst [vmem:[#allocation283_spill] sm:$0xff] %v13686_v52  ;;  %v13691_v54 = vmul.f32 %v12453_v45, %v17083_v44  ;;  %v17086_v44 = vld [vmem:[#allocation13_spill] sm:$0xff]  ;;  %v17091_v52 = vld [vmem:[#allocation3_spill] sm:$0xff] }
 0x3df   : > { %v4334_v3 = vadd.f32 %v13460_v24, %v4295_v55  ;;  %v4298_v46 = vadd.f32 %v8704_v57, %v3849_v18  ;;  %v13698_v60 = vmax.f32 %v4336_v63, 0.0  ;;  %v13713_v41 = vmul.f32 %v12672_v33, %v17086_v44  ;;  %v17087_v63 = vld [vmem:[#allocation12_spill] sm:$0xff]  ;;  %v17092_v40 = vld [vmem:[#allocation5_spill] sm:$0xff] }
 0x3e0   : > { %v4255_v25 = vpop.f32.mrf.mxu0  ;;  %v13717_v30 = vmul.f32 %v12711_v22, %v17087_v63  ;;  %v17090_v44 = vld [vmem:[#allocation292_spill] sm:$0xff] }
 0x3e1   : > { %v13706_v57 = vmax.f32 %v4334_v3, 0.0  ;;  %v4337_v55 = vadd.f32 %v13460_v24, %v4298_v46  ;;  %v4296_v35 = vadd.f32 %v4255_v25, %v3847_v20  ;;  %v17089_v3 = vld [vmem:[#allocation239_spill] sm:$0xff]  ;;  %v13733_v25 = vmul.f32 %v13563_v58, %v17090_v44 }
 0x3e2   : > { %v13725_v18 = vmul.f32 %v13563_v58, %v17089_v3  ;;  %v4400_v20 = vrot.slane %v13698_v60, 7  ;;  %v5042_v63 = vrot.slane %v13698_v60, 1  ;;  %v4490_v3 = vmul.f32 %v13698_v60, %v17091_v52 }
 0x3e3   : > { %v4398_v46 = vrot.slane %v13706_v57, 7  ;;  %v5040_v43 = vrot.slane %v13706_v57, 1  ;;  %v13729_v31 = vmax.f32 %v4337_v55, 0.0  ;;  %v4335_v6 = vadd.f32 %v13460_v24, %v4296_v35  ;;  %v17095_v35 = vld [vmem:[#allocation290_spill] sm:$0xff] }
 0x3e4   : > { %v17094_v24 = vrot.slane %v13513_v19, 1  ;;  %v13760_v48 = vmul.f32 %v13706_v57, %v17095_v35  ;;  %v17098_v35 = vld [vmem:[#allocation45_spill] sm:$0xff]  ;;  %v9185_v19 = vld [vmem:[%s15462_s4 + $0x50] sm:$0xff]  }
 0x3e5   : > { %v4401_v26 = vrot.slane %v13729_v31, 7  ;;  %v5043_v62 = vrot.slane %v13729_v31, 1  ;;  %v4491_v55 = vmul.f32 %v13729_v31, %v17092_v40  ;;  %v13748_v58 = vsel %vm319_vm1, %v17093_v32, %v4398_v46 }
 0x3e6   : > { %v13750_v44 = vmax.f32 %v4335_v6, 0.0  ;;  %v13756_v52 = vsel %vm1283_vm2, %v17094_v24, %v5040_v43  ;;  %v13764_v40 = vmul.f32 %v13698_v60, %v17096_v56 }
 0x3e7   : > { %v13770_v32 = vsel %vm319_vm1, %v4401_v26, %v17097_v10  ;;  %v4522_v6 = vpack.c.bf16 %v4491_v55, %v4490_v3  ;;  %v13774_v23 = vsel %vm319_vm1, %v4400_v20, %v4401_v26  ;;  %v13778_v24 = vsel %vm1283_vm2, %v5042_v63, %v5043_v62  ;;  %v17099_v10 = vld [vmem:[#allocation167_spill] sm:$0xff] }
 0x3e8   : > { %v4436_v37 = vmul.f32 %v13770_v32, %v17098_v35  ;;  %v4399_v56 = vrot.slane %v13750_v44, 7  ;;  %v13788_v3 = vmul.f32 %v13748_v58, %v17099_v10  ;;  %v17100_v55 = vld [vmem:[#allocation119_spill] sm:$0xff]  ;;  %v5041_v15 = vrot.slane %v13750_v44, 1  ;;  %v17104_v10 = vld [vmem:[#allocation126_spill] sm:$0xff] }
 0x3e9   : > { %v13792_v26 = vmul.f32 %v13748_v58, %v17100_v55  ;;  %8713 = vmatprep.mubr.msk.bf16.mxu1 %vm808_vm0, %v4522_v6  ;;  %v17102_v35 = vrot.slane %v12312_v11, 1  ;;  %v13804_v13 = vmul.f32 %v13778_v24, %v17103_v17  ;;  %v13808_v33 = vmul.f32 %v13770_v32, %v17104_v10  ;;  %v9341_v10 = vld [vmem:[%s15462_s4 + $0x58] sm:$0xff]  }
 0x3ea   : > { %v17106_v55 = vpack.c.bf16 %v13296_v0, %v13490_v1  ;;  %v4403_v6 = vsel %vm319_vm1, %v4399_v56, %v4400_v20  ;;  %v4467_v22 = vpack.c.bf16 %v13507_v8, %v4436_v37  ;;  %v4404_v17 = vsel %vm319_vm1, %v4398_v46, %v4399_v56  ;;  %v17108_v0 = vld [vmem:[#allocation6_spill] sm:$0xff]  ;;  %v17109_v1 = vld [vmem:[#allocation7_spill] sm:$0xff]  ;;  %v17112_v37 = vld [vmem:[#allocation41_spill] sm:$0xff] }
 0x3eb   : > { %17101 = vst [vmem:[#allocation282_spill] sm:$0xff] %v13792_v26  ;;  %v13800_v42 = vsel %vm1283_vm2, %v5043_v62, %v17102_v35  ;;  %17105 = vst [vmem:[#allocation304_spill] sm:$0xff] %v13808_v33  ;;  %v17107_v62 = vld [vmem:[#allocation90_spill] sm:$0xff]  ;;  %v4435_v8 = vmul.f32 %v13774_v23, %v17112_v37  ;;  %v9186_v46 = vld [vmem:[%s15462_s4 + $0x48] sm:$0xff]   ;;  %v5045_v2 = vsel %vm1283_vm2, %v5041_v15, %v5042_v63 }
 0x3ec   : > { %8714 = vmatmul.mubr.msk.bf16.vlgmr.msra.gmra.mxu1 %vm808_vm0, %v17106_v55  ;;  %v13819_v35 = vmul.f32 %v13800_v42, %v17107_v62  ;;  %v17110_v55 = vpack.c.bf16 %v17108_v0, %v17109_v1  ;;  %v17111_v20 = vld [vmem:[#allocation42_spill] sm:$0xff]  ;;  %v17113_v62 = vld [vmem:[#allocation83_spill] sm:$0xff]  ;;  %v17114_v0 = vld [vmem:[#allocation121_spill] sm:$0xff]  ;;  %v5046_v56 = vsel %vm1283_vm2, %v5040_v43, %v5041_v15  ;;  %v13871_v15 = vmul.f32 %v4403_v6, %v17118_v47 }
 0x3ed   : > { %8786 = vmatpush3.bf16.msra.mxu1 %v9341_v10  ;;  %v4434_v45 = vmul.f32 %v4403_v6, %v17111_v20  ;;  %v13834_v11 = vmul.f32 %v4404_v17, %v17113_v62  ;;  %v13845_v1 = vmul.f32 %v13756_v52, %v17114_v0  ;;  %v9189_v10 = vld [vmem:[%s15462_s4 + $0x70] sm:$0xff]   ;;  %v17117_v62 = vld [vmem:[#allocation178_spill] sm:$0xff]  ;;  %v17121_v47 = vld [vmem:[#allocation243_spill] sm:$0xff]  ;;  %v17122_v0 = vpack.c.bf16 %v12378_v39, %v12386_v34 }
 0x3ee   : > { %8717 = vmatprep.mubr.msk.bf16.mxu1 %vm808_vm0, %v17110_v55  ;;  %8787 = vmatprep.subr.bf16.mxu1 %v9185_v19  ;;  %v17115_v55 = vld [vmem:[#allocation188_spill] sm:$0xff]  ;;  %v13867_v33 = vmul.f32 %v5045_v2, %v17117_v62  ;;  %v17119_v43 = vld [vmem:[#allocation70_spill] sm:$0xff]  ;;  %v9190_v34 = vld [vmem:[%s15462_s4 + $0x68] sm:$0xff]  }
 0x3ef   : > { %v13848_v20 = vmul.f32 %v4404_v17, %v17115_v55  ;;  %v4466_v37 = vpack.c.bf16 %v4435_v8, %v4434_v45  ;;  %v17116_v45 = vld [vmem:[#allocation173_spill] sm:$0xff]  ;;  %v13875_v63 = vmul.f32 %v13774_v23, %v17119_v43  ;;  %v9187_v62 = vld [vmem:[%s15462_s4 + $0x40] sm:$0xff]   ;;  %v13890_v43 = vmul.f32 %v5046_v56, %v17121_v47  ;;  %v17123_v55 = vld [vmem:[#allocation203_spill] sm:$0xff] }
 0x3f0   : > { %v13864_v8 = vmul.f32 %v5046_v56, %v17116_v45  ;;  %v13900_v26 = vmul.f32 %v5045_v2, %v17123_v55  ;;  %v17124_v47 = vpack.c.bf16 %v13517_v53, %v13691_v54  ;;  %v17126_v55 = vld [vmem:[#allocation248_spill] sm:$0xff]  ;;  %v17127_v53 = vpack.c.bf16 %v12484_v27, %v12480_v50  ;;  %v17131_v27 = vld [vmem:[#allocation230_spill] sm:$0xff] }
 0x3f1   : > { %8753 = vmatprep.mubr.msk.bf16.mxu0 %vm808_vm0, %v4466_v37  ;;  %8788 = vmatpush3.bf16.msra.mxu1 %v9185_v19  ;;  %v17120_v37 = vld [vmem:[#allocation240_spill] sm:$0xff] }
 0x3f2   : > { %8754 = vmatmul.mubr.msk.bf16.vlgmr.msra.gmra.mxu0 %vm808_vm0, %v4467_v22  ;;  %8789 = vmatprep.subr.bf16.mxu1 %v9186_v46  ;;  %v13887_v45 = vmul.f32 %v13756_v52, %v17120_v37  ;;  %v13919_v37 = vmul.f32 %v13800_v42, %v17126_v55  ;;  %v17130_v22 = vld [vmem:[#allocation227_spill] sm:$0xff]  ;;  %v13937_v55 = vld [vmem:[%s15462_s4 + $0x98] sm:$0xff]   ;;  %v17136_v50 = vld [vmem:[#allocation44_spill] sm:$0xff] }
 0x3f3   : > { %8757 = vmatprep.mubr.msk.bf16.mxu0 %vm808_vm0, %v17122_v0  ;;  %8826 = vmatpush3.bf16.msra.mxu0 %v13091_v12  ;;  %v17125_v12 = vld [vmem:[#allocation246_spill] sm:$0xff] }
 0x3f4   : > { %8718 = vmatmul.mubr.msk.bf16.gmra.mxu1 %vm808_vm0, %v17124_v47  ;;  %8827 = vmatprep.subr.bf16.mxu0 %v9189_v10  ;;  %v13915_v0 = vmul.f32 %v13778_v24, %v17125_v12  ;;  %v17128_v47 = vld [vmem:[#allocation163_spill] sm:$0xff]  ;;  %v13932_v12 = vmul.f32 %v4404_v17, %v17130_v22 }
 0x3f5   : > { %8721 = vmatprep.mubr.msk.bf16.mxu1 %vm808_vm0, %v17127_v53  ;;  %8790 = vmatpush3.bf16.msra.mxu1 %v9186_v46  ;;  %v13929_v39 = vmul.f32 %v13748_v58, %v17128_v47  ;;  %v13942_v46 = vmul.f32 %v4403_v6, %v17131_v27  ;;  %v17133_v53 = vld [vmem:[#allocation251_spill] sm:$0xff]  ;;  %v17135_v47 = vld [vmem:[#allocation253_spill] sm:$0xff]  ;;  %v13960_v6 = vmul.f32 %v13770_v32, %v17136_v50 }
 0x3f6   : > { %8791 = vmatprep.subr.bf16.mxu1 %v9187_v62  ;;  %v13946_v54 = vmul.f32 %v13774_v23, %v17133_v53  ;;  %v17134_v58 = vld [vmem:[#allocation291_spill] sm:$0xff]  ;;  %v13956_v19 = vmul.f32 %v13729_v31, %v17135_v47  ;;  %v17137_v27 = vld [vmem:[#allocation293_spill] sm:$0xff]  ;;  %v17138_v47 = vld [vmem:[#allocation294_spill] sm:$0xff] }
 0x3f7   : > { %17129 = vst [vmem:[#allocation2_spill] sm:$0xff] %v13929_v39  ;;  %17132 = vst [vmem:[#allocation161_spill] sm:$0xff] %v13942_v46  ;;  %v13950_v17 = vmul.f32 %v13750_v44, %v17134_v58  ;;  %8828 = vmatpush3.bf16.msra.mxu0 %v9189_v10  ;;  %v13964_v23 = vmul.f32 %v13756_v52, %v17137_v27  ;;  %v9192_v10 = vld [vmem:[%s15462_s4 + $0x60] sm:$0xff]   ;;  %v13974_v22 = vmul.f32 %v5046_v56, %v17138_v47  ;;  %v17139_v32 = vld [vmem:[#allocation169_spill] sm:$0xff] }
 0x3f8   : > { %8829 = vmatprep.subr.bf16.mxu0 %v9190_v34  ;;  %v13977_v50 = vmul.f32 %v5045_v2, %v17139_v32  ;;  %v17140_v53 = vld [vmem:[#allocation297_spill] sm:$0xff]  ;;  %v17141_v56 = vpack.c.bf16 %v12553_v7, %v12534_v49  ;;  %v4527_v2 = vpack.c.bf16 %v13717_v30, %v13713_v41  ;;  %v17142_v47 = vld [vmem:[#allocation298_spill] sm:$0xff]  ;;  %v17145_v41 = vld [vmem:[#allocation16_spill] sm:$0xff] }
 0x3f9   : > { %8792 = vmatpush3.bf16.msra.mxu1 %v9187_v62  ;;  %v13987_v46 = vmul.f32 %v13778_v24, %v17140_v53  ;;  %v14000_v32 = vmul.f32 %v13800_v42, %v17142_v47  ;;  %v17143_v24 = vpack.c.bf16 %v12563_v4, %v12559_v9  ;;  %v9196_v49 = vld [vmem:[%s15462_s4 + $0xb8] sm:$0xff]   ;;  %v17144_v42 = vpack.c.bf16 %v12705_v14, %v12699_v61  ;;  %v17147_v30 = vld [vmem:[#allocation150_spill] sm:$0xff]  ;;  %v17148_v53 = vld [vmem:[#allocation260_spill] sm:$0xff] }
 0x3fa   : > { %8758 = vmatmul.mubr.msk.bf16.gmra.mxu0 %vm808_vm0, %v17141_v56  ;;  %8865 = vmatprep.subr.bf16.mxu1 %v13937_v55  ;;  %v4505_v9 = vmul.f32 %v12914_v16, %v17145_v41  ;;  %v17146_v4 = vld [vmem:[#allocation17_spill] sm:$0xff]  ;;  %v17149_v56 = vld [vmem:[#allocation194_spill] sm:$0xff]  ;;  %v17154_v61 = vld [vmem:[#allocation180_spill] sm:$0xff] }
 0x3fb   : > { %8761 = vmatprep.mubr.msk.bf16.mxu0 %vm808_vm0, %v17143_v24  ;;  %8830 = vmatpush3.bf16.msra.mxu0 %v9190_v34  ;;  %v4504_v34 = vmul.f32 %v17147_v30, %v17146_v4  ;;  %v17151_v24 = vld [vmem:[#allocation258_spill] sm:$0xff]  ;;  %v17155_v14 = vld [vmem:[#allocation73_spill] sm:$0xff] }
 0x3fc   : > { %8722 = vmatmul.mubr.msk.bf16.gmra.mxu1 %vm808_vm0, %v4527_v2  ;;  %8831 = vmatprep.subr.bf16.mxu0 %v9192_v10  ;;  %v17150_v2 = vpack.c.bf16 %v17148_v53, %v17149_v56  ;;  %v17152_v7 = vld [vmem:[#allocation250_spill] sm:$0xff]  ;;  %v17158_v41 = vld [vmem:[#allocation105_spill] sm:$0xff]  ;;  %v17160_v53 = vld [vmem:[#allocation156_spill] sm:$0xff] }
 0x3fd   : > { %8725 = vmatprep.mubr.msk.bf16.mxu1 %vm808_vm0, %v17144_v42  ;;  %v4529_v47 = vpack.c.bf16 %v4505_v9, %v4504_v34  ;;  %v17153_v62 = vpack.c.bf16 %v17151_v24, %v17152_v7  ;;  %v17157_v42 = vld [vmem:[#allocation20_spill] sm:$0xff]  ;;  %v17159_v39 = vld [vmem:[#allocation21_spill] sm:$0xff]  ;;  %v17162_v9 = vld [vmem:[#allocation99_spill] sm:$0xff] }
 0x3fe   : > { %v4509_v4 = vmul.f32 %v17158_v41, %v17157_v42  ;;  %v4508_v56 = vmul.f32 %v17160_v53, %v17159_v39  ;;  %v17165_v24 = vld [vmem:[#allocation232_spill] sm:$0xff]  ;;  %v17172_v52 = vld [vmem:[#allocation25_spill] sm:$0xff] }
 0x3ff   : > { %8832 = vmatpush3.bf16.msra.mxu0 %v9192_v10  ;;  %v17156_v10 = vpack.c.bf16 %v17154_v61, %v17155_v14  ;;  %v17167_v61 = vld [vmem:[#allocation158_spill] sm:$0xff]  ;;  %v17168_v14 = vld [vmem:[#allocation193_spill] sm:$0xff]  ;;  %v17170_v42 = vld [vmem:[#allocation24_spill] sm:$0xff] }
 0x400   : > { %8905 = vmatprep.subr.bf16.mxu0 %v9196_v49  ;;  %v4531_v7 = vpack.c.bf16 %v4509_v4, %v4508_v56  ;;  %v17171_v39 = vld [vmem:[#allocation68_spill] sm:$0xff]  ;;  %v17184_v58 = vld [vmem:[#allocation29_spill] sm:$0xff] }
 0x401   : > { %v4513_v27 = vmul.f32 %v17171_v39, %v17170_v42  ;;  %v17175_v4 = vld [vmem:[#allocation212_spill] sm:$0xff] }
 0x402   : > { %8762 = vmatmul.mubr.msk.bf16.gmra.mxu0 %vm808_vm0, %v17150_v2  ;;  %v17161_v2 = vld [vmem:[#allocation43_spill] sm:$0xff]  ;;  %v17183_v42 = vld [vmem:[#allocation28_spill] sm:$0xff] }
 0x403   : > { %8765 = vmatprep.mubr.msk.bf16.mxu0 %vm808_vm0, %v17153_v62  ;;  %v17163_v34 = vpack.c.bf16 %v17161_v2, %v17162_v9  ;;  %v17164_v62 = vld [vmem:[#allocation222_spill] sm:$0xff]  ;;  %v17173_v2 = vld [vmem:[#allocation271_spill] sm:$0xff] }
 0x404   : > { %8726 = vmatmul.mubr.msk.bf16.gmra.mxu1 %vm808_vm0, %v4529_v47  ;;  %v17166_v47 = vpack.c.bf16 %v17164_v62, %v17165_v24  ;;  %v4512_v9 = vmul.f32 %v17173_v2, %v17172_v52  ;;  %v17177_v24 = vld [vmem:[#allocation118_spill] sm:$0xff]  ;;  %v4517_v52 = vmul.f32 %v13536_v5, %v17183_v42 }
 0x405   : > { %8729 = vmatprep.mubr.msk.bf16.mxu1 %vm808_vm0, %v17156_v10  ;;  %v17169_v10 = vpack.c.bf16 %v17167_v61, %v17168_v14  ;;  %v17180_v61 = vld [vmem:[#allocation65_spill] sm:$0xff]  ;;  %v17181_v14 = vld [vmem:[#allocation131_spill] sm:$0xff]  ;;  %v17195_v42 = vld [vmem:[#allocation38_spill] sm:$0xff] }
 0x406   : > { %v4533_v62 = vpack.c.bf16 %v4513_v27, %v4512_v9  ;;  %v17186_v27 = vld [vmem:[#allocation176_spill] sm:$0xff] }
 0x40a   : > { %8766 = vmatmul.mubr.msk.bf16.gmra.mxu0 %vm808_vm0, %v17163_v34  ;;  %v17174_v34 = vld [vmem:[#allocation266_spill] sm:$0xff] }
 0x40b   : > { %8769 = vmatprep.mubr.msk.bf16.mxu0 %vm808_vm0, %v17166_v47  ;;  %v17176_v56 = vpack.c.bf16 %v17174_v34, %v17175_v4  ;;  %v17178_v47 = vld [vmem:[#allocation242_spill] sm:$0xff]  ;;  %v4516_v34 = vmul.f32 %v13499_v59, %v17184_v58  ;;  %v17185_v4 = vld [vmem:[#allocation175_spill] sm:$0xff] }
 0x40c   : > { %8730 = vmatmul.mubr.msk.bf16.gmra.mxu1 %vm808_vm0, %v4531_v7  ;;  %v17179_v7 = vpack.c.bf16 %v17177_v24, %v17178_v47  ;;  %v17187_v9 = vpack.c.bf16 %v17185_v4, %v17186_v27  ;;  %v17188_v24 = vld [vmem:[#allocation143_spill] sm:$0xff]  ;;  %v17189_v47 = vld [vmem:[#allocation217_spill] sm:$0xff]  ;;  %v4520_v4 = vmul.f32 %v13706_v57, %v17195_v42  ;;  %v17213_v42 = vld [vmem:[#allocation216_spill] sm:$0xff] }
 0x40d   : > { %8733 = vmatprep.mubr.msk.bf16.mxu1 %vm808_vm0, %v17169_v10  ;;  %v17182_v10 = vpack.c.bf16 %v17180_v61, %v17181_v14  ;;  %v17192_v61 = vld [vmem:[#allocation141_spill] sm:$0xff]  ;;  %v17197_v27 = vld [vmem:[#allocation171_spill] sm:$0xff] }
 0x412   : > { %8770 = vmatmul.mubr.msk.bf16.gmra.mxu0 %vm808_vm0, %v17176_v56  ;;  %v4535_v56 = vpack.c.bf16 %v4517_v52, %v4516_v34  ;;  %v17196_v52 = vpack.c.bf16 %v13596_v29, %v13576_v28  ;;  %v9193_v28 = vld [vmem:[%s15462_s4 + $0x90] sm:$0xff]  }
 0x413   : > { %8773 = vmatprep.mubr.msk.bf16.mxu0 %vm808_vm0, %v17179_v7  ;;  %v17191_v7 = vld [vmem:[#allocation280_spill] sm:$0xff] }
 0x414   : > { %8734 = vmatmul.mubr.msk.bf16.gmra.mxu1 %vm808_vm0, %v4533_v62  ;;  %v17190_v62 = vpack.c.bf16 %v17188_v24, %v17189_v47  ;;  %v17193_v14 = vpack.c.bf16 %v17191_v7, %v17192_v61  ;;  %v17200_v24 = vpack.c.bf16 %v13834_v11, %v13788_v3  ;;  %v17203_v47 = vld [vmem:[#allocation32_spill] sm:$0xff]  ;;  %v17207_v11 = vld [vmem:[#allocation129_spill] sm:$0xff] }
 0x415   : > { %8737 = vmatprep.mubr.msk.bf16.mxu1 %vm808_vm0, %v17182_v10  ;;  %v17194_v10 = vld [vmem:[#allocation37_spill] sm:$0xff]  ;;  %v17209_v61 = vld [vmem:[#allocation132_spill] sm:$0xff] }
 0x416   : > { %v4521_v58 = vmul.f32 %v13750_v44, %v17194_v10 }
 0x418   : > { %v4537_v34 = vpack.c.bf16 %v4521_v58, %v4520_v4  ;;  %v17212_v58 = vld [vmem:[#allocation244_spill] sm:$0xff] }
 0x419   : > { %v17214_v4 = vpack.c.bf16 %v17212_v58, %v17213_v42  ;;  %v17233_v58 = vld [vmem:[#allocation228_spill] sm:$0xff]  ;;  %v17234_v42 = vld [vmem:[#allocation146_spill] sm:$0xff] }
 0x41a   : > { %8774 = vmatmul.mubr.msk.bf16.gmra.mxu0 %vm808_vm0, %v17187_v9  ;;  %v17198_v9 = vpack.c.bf16 %v13593_v36, %v17197_v27  ;;  %v17201_v36 = vld [vmem:[#allocation304_spill] sm:$0xff] }
 0x41b   : > { %8777 = vmatprep.mubr.msk.bf16.mxu0 %vm808_vm0, %v17190_v62  ;;  %v17202_v29 = vpack.c.bf16 %v13695_v21, %v17201_v36  ;;  %v17204_v62 = vld [vmem:[#allocation207_spill] sm:$0xff]  ;;  %v9197_v21 = vld [vmem:[%s15462_s4 + $0xb0] sm:$0xff]   ;;  %v9200_v36 = vld [vmem:[%s15462_s4 + $0xa0] sm:$0xff]  }
 0x41c   : > { %8738 = vmatmul.mubr.msk.bf16.gmra.mxu1 %vm808_vm0, %v4535_v56  ;;  %v17199_v56 = vpack.c.bf16 %v13819_v35, %v13804_v13  ;;  %v17205_v7 = vpack.c.bf16 %v17203_v47, %v17204_v62  ;;  %v17206_v13 = vld [vmem:[#allocation247_spill] sm:$0xff]  ;;  %v17222_v47 = vld [vmem:[#allocation204_spill] sm:$0xff] }
 0x41d   : > { %8741 = vmatprep.mubr.msk.bf16.mxu1 %vm808_vm0, %v17193_v14  ;;  %v17208_v3 = vpack.c.bf16 %v17206_v13, %v17207_v11  ;;  %v9194_v35 = vld [vmem:[%s15462_s4 + $0x88] sm:$0xff]   ;;  %v17210_v14 = vld [vmem:[#allocation165_spill] sm:$0xff]  ;;  %v17225_v13 = vld [vmem:[#allocation210_spill] sm:$0xff] }
 0x41e   : > { %v17211_v10 = vpack.c.bf16 %v17209_v61, %v17210_v14  ;;  %v9204_v61 = vld [vmem:[%s15462_s4 + $0xf8] sm:$0xff]  }
 0x41f   : > { %v17230_v14 = vld [vmem:[#allocation77_spill] sm:$0xff] }
 0x422   : > { %8778 = vmatmul.mubr.msk.bf16.gmra.mxu0 %vm808_vm0, %v17196_v52  ;;  %v17215_v52 = vld [vmem:[#allocation62_spill] sm:$0xff] }
 0x423   : > { %8781 = vmatprep.mubr.msk.bf16.mxu0 %vm808_vm0, %v17198_v9  ;;  %v9198_v9 = vld [vmem:[%s15462_s4 + $0xa8] sm:$0xff]  }
 0x424   : > { %8742 = vmatmul.mubr.msk.bf16.gmra.mxu1 %vm808_vm0, %v4537_v34  ;;  %v17216_v34 = vld [vmem:[#allocation40_spill] sm:$0xff] }
 0x425   : > { %8793 = vmatprep.mubr.msk.bf16.mxu1 %vm808_vm0, %v17199_v56  ;;  %v17217_v27 = vpack.c.bf16 %v17215_v52, %v17216_v34  ;;  %v17218_v56 = vld [vmem:[#allocation190_spill] sm:$0xff]  ;;  %v17236_v52 = vld [vmem:[#allocation59_spill] sm:$0xff]  ;;  %v17237_v34 = vld [vmem:[#allocation97_spill] sm:$0xff] }
 0x42a   : > { %8782 = vmatmul.mubr.msk.bf16.gmra.mxu0 %vm808_vm0, %v17200_v24  ;;  %v17219_v24 = vld [vmem:[#allocation66_spill] sm:$0xff] }
 0x42b   : > { %8833 = vmatprep.mubr.msk.bf16.mxu0 %vm808_vm0, %v17202_v29  ;;  %v17221_v29 = vld [vmem:[#allocation94_spill] sm:$0xff] }
 0x42c   : > { %8794 = vmatmul.mubr.msk.bf16.vlgmr.msra.gmra.mxu1 %vm808_vm0, %v17205_v7  ;;  %v17223_v62 = vpack.c.bf16 %v17221_v29, %v17222_v47  ;;  %v17224_v7 = vld [vmem:[#allocation151_spill] sm:$0xff]  ;;  %v17243_v29 = vld [vmem:[#allocation160_spill] sm:$0xff] }
 0x42d   : > { %8866 = vmatpush3.bf16.msra.mxu1 %v13937_v55  ;;  %8797 = vmatprep.mubr.msk.bf16.mxu1 %vm808_vm0, %v17208_v3  ;;  %v9195_v55 = vld [vmem:[%s15462_s4 + $0x80] sm:$0xff]   ;;  %v17226_v11 = vpack.c.bf16 %v17224_v7, %v17225_v13  ;;  %v17227_v3 = vld [vmem:[#allocation219_spill] sm:$0xff] }
 0x42e   : > { %8867 = vmatprep.subr.bf16.mxu1 %v9193_v28  ;;  %v17248_v13 = vld [vmem:[#allocation267_spill] sm:$0xff] }
 0x431   : > { %8868 = vmatpush3.bf16.msra.mxu1 %v9193_v28  ;;  %v17220_v28 = vpack.c.bf16 %v17218_v56, %v17219_v24  ;;  %v17240_v56 = vld [vmem:[#allocation19_spill] sm:$0xff] }
 0x432   : > { %8834 = vmatmul.mubr.msk.bf16.vlgmr.msra.gmra.mxu0 %vm808_vm0, %v17211_v10  ;;  %8869 = vmatprep.subr.bf16.mxu1 %v9194_v35  ;;  %v17231_v10 = vld [vmem:[#allocation196_spill] sm:$0xff] }
 0x433   : > { %8837 = vmatprep.mubr.msk.bf16.mxu0 %vm808_vm0, %v17214_v4  ;;  %8906 = vmatpush3.bf16.msra.mxu0 %v9196_v49  ;;  %v9199_v49 = vld [vmem:[%s15462_s4 + $0xd8] sm:$0xff]   ;;  %v17235_v4 = vpack.c.bf16 %v17233_v58, %v17234_v42  ;;  %v17257_v42 = vld [vmem:[#allocation256_spill] sm:$0xff] }
 0x434   : > { %8798 = vmatmul.mubr.msk.bf16.gmra.mxu1 %vm808_vm0, %v17217_v27  ;;  %8907 = vmatprep.subr.bf16.mxu0 %v9197_v21  ;;  %v17238_v27 = vpack.c.bf16 %v17236_v52, %v17237_v34  ;;  %v17260_v34 = vld [vmem:[#allocation116_spill] sm:$0xff] }
 0x435   : > { %8801 = vmatprep.mubr.msk.bf16.mxu1 %vm808_vm0, %v17220_v28  ;;  %8870 = vmatpush3.bf16.msra.mxu1 %v9194_v35  ;;  %v17228_v35 = vld [vmem:[#allocation252_spill] sm:$0xff]  ;;  %v17242_v28 = vld [vmem:[#allocation110_spill] sm:$0xff] }
 0x436   : > { %8871 = vmatprep.subr.bf16.mxu1 %v9195_v55  ;;  %v17244_v47 = vpack.c.bf16 %v17242_v28, %v17243_v29  ;;  %v17266_v29 = vld [vmem:[#allocation278_spill] sm:$0xff] }
 0x437   : > { %8908 = vmatpush3.bf16.msra.mxu0 %v9197_v21  ;;  %v17229_v21 = vpack.c.bf16 %v17227_v3, %v17228_v35  ;;  %v17251_v35 = vld [vmem:[#allocation269_spill] sm:$0xff] }
 0x438   : > { %8909 = vmatprep.subr.bf16.mxu0 %v9198_v9 }
 0x439   : > { %8872 = vmatpush3.bf16.msra.mxu1 %v9195_v55  ;;  %v17232_v55 = vpack.c.bf16 %v17230_v14, %v17231_v10  ;;  %v17254_v10 = vld [vmem:[#allocation198_spill] sm:$0xff] }
 0x43a   : > { %8838 = vmatmul.mubr.msk.bf16.gmra.mxu0 %vm808_vm0, %v17223_v62  ;;  %8945 = vmatprep.subr.bf16.mxu1 %v9199_v49  ;;  %v17246_v62 = vld [vmem:[#allocation257_spill] sm:$0xff] }
 0x43b   : > { %8841 = vmatprep.mubr.msk.bf16.mxu0 %vm808_vm0, %v17226_v11  ;;  %8910 = vmatpush3.bf16.msra.mxu0 %v9198_v9  ;;  %v17239_v9 = vld [vmem:[#allocation238_spill] sm:$0xff]  ;;  %v17249_v11 = vld [vmem:[#allocation107_spill] sm:$0xff] }
 0x43c   : > { %8802 = vmatmul.mubr.msk.bf16.gmra.mxu1 %vm808_vm0, %v17229_v21  ;;  %8911 = vmatprep.subr.bf16.mxu0 %v9200_v36  ;;  %v17241_v24 = vpack.c.bf16 %v17239_v9, %v17240_v56  ;;  %v17250_v3 = vpack.c.bf16 %v17248_v13, %v17249_v11  ;;  %v17252_v21 = vld [vmem:[#allocation237_spill] sm:$0xff]  ;;  %v17263_v56 = vld [vmem:[#allocation218_spill] sm:$0xff]  ;;  %v17272_v11 = vld [vmem:[#allocation144_spill] sm:$0xff] }
 0x43d   : > { %8805 = vmatprep.mubr.msk.bf16.mxu1 %vm808_vm0, %v17232_v55  ;;  %v17253_v14 = vpack.c.bf16 %v17251_v35, %v17252_v21  ;;  %v17255_v55 = vld [vmem:[#allocation36_spill] sm:$0xff]  ;;  %v17275_v21 = vld [vmem:[#allocation147_spill] sm:$0xff] }
 0x43e   : > { %v17256_v58 = vpack.c.bf16 %v17254_v10, %v17255_v55  ;;  %v17278_v55 = vpack.c.bf16 %v13845_v1, %v13721_v51  ;;  %v17288_v1 = vpack.c.bf16 %v13875_v63, %v13871_v15  ;;  %v9202_v63 = vld [vmem:[%s15462_s4 + $0xc8] sm:$0xff]  }
 0x43f   : > { %8912 = vmatpush3.bf16.msra.mxu0 %v9200_v36  ;;  %v17245_v36 = vld [vmem:[#allocation93_spill] sm:$0xff] }
 0x440   : > { %8985 = vmatprep.subr.bf16.mxu0 %v9204_v61  ;;  %v17247_v7 = vpack.c.bf16 %v17245_v36, %v17246_v62  ;;  %v17269_v62 = vld [vmem:[#allocation272_spill] sm:$0xff] }
 0x442   : > { %8842 = vmatmul.mubr.msk.bf16.gmra.mxu0 %vm808_vm0, %v17235_v4  ;;  %v17258_v4 = vld [vmem:[#allocation268_spill] sm:$0xff] }
 0x443   : > { %8845 = vmatprep.mubr.msk.bf16.mxu0 %vm808_vm0, %v17238_v27  ;;  %v17259_v52 = vpack.c.bf16 %v17257_v42, %v17258_v4  ;;  %v17261_v27 = vld [vmem:[#allocation215_spill] sm:$0xff]  ;;  %v17280_v42 = vld [vmem:[#allocation177_spill] sm:$0xff] }
 0x444   : > { %8806 = vmatmul.mubr.msk.bf16.gmra.mxu1 %vm808_vm0, %v17241_v24  ;;  %v17262_v9 = vpack.c.bf16 %v17260_v34, %v17261_v27  ;;  %v17264_v24 = vld [vmem:[#allocation245_spill] sm:$0xff]  ;;  %v17284_v27 = vpack.c.bf16 %v13867_v33, %v13864_v8  ;;  %v17293_v8 = vld [vmem:[#allocation211_spill] sm:$0xff] }
 0x445   : > { %8809 = vmatprep.mubr.msk.bf16.mxu1 %vm808_vm0, %v17244_v47  ;;  %v17265_v28 = vpack.c.bf16 %v17263_v56, %v17264_v24  ;;  %v17267_v47 = vld [vmem:[#allocation133_spill] sm:$0xff]  ;;  %v17289_v24 = vld [vmem:[#allocation52_spill] sm:$0xff] }
 0x446   : > { %v17268_v36 = vpack.c.bf16 %v17266_v29, %v17267_v47  ;;  %v17286_v56 = vld [vmem:[#allocation209_spill] sm:$0xff] }
 0x447   : > { %v17292_v33 = vld [vmem:[#allocation241_spill] sm:$0xff] }
 0x448   : > { %v17294_v47 = vpack.c.bf16 %v17292_v33, %v17293_v8  ;;  %v17319_v8 = vpack.c.bf16 %v12914_v16, %v17147_v30  ;;  %v17329_v16 = vpack.c.bf16 %v17158_v41, %v17160_v53  ;;  %v17330_v30 = vld [vmem:[#allocation296_spill] sm:$0xff]  ;;  %v17339_v41 = vpack.c.bf16 %v17171_v39, %v17173_v2  ;;  %v17340_v53 = vld [vmem:[#allocation274_spill] sm:$0xff]  ;;  %v17350_v2 = vld [vmem:[#allocation221_spill] sm:$0xff] }
 0x449   : > { %v17349_v39 = vpack.c.bf16 %v13536_v5, %v13499_v59  ;;  %v17359_v5 = vpack.c.bf16 %v13750_v44, %v13706_v57  ;;  %v17360_v59 = vpack.c.bf16 %v13887_v45, %v13725_v18  ;;  %v17366_v18 = vpack.c.bf16 %v13919_v37, %v13915_v0  ;;  %v9209_v44 = vld [vmem:[%s15462_s4 + $0x110] sm:$0xff]   ;;  %v17368_v45 = vld [vmem:[#allocation69_spill] sm:$0xff]  ;;  %v17374_v37 = vld [vmem:[#allocation259_spill] sm:$0xff] }
 0x44a   : > { %8846 = vmatmul.mubr.msk.bf16.gmra.mxu0 %vm808_vm0, %v17247_v7  ;;  %v17270_v7 = vld [vmem:[#allocation134_spill] sm:$0xff] }
 0x44b   : > { %8849 = vmatprep.mubr.msk.bf16.mxu0 %vm808_vm0, %v17250_v3  ;;  %v17271_v13 = vpack.c.bf16 %v17269_v62, %v17270_v7  ;;  %v17273_v3 = vld [vmem:[#allocation72_spill] sm:$0xff]  ;;  %v17296_v62 = vld [vmem:[#allocation35_spill] sm:$0xff] }
 0x44c   : > { %8810 = vmatmul.mubr.msk.bf16.gmra.mxu1 %vm808_vm0, %v17253_v14  ;;  %v17274_v35 = vpack.c.bf16 %v17272_v11, %v17273_v3  ;;  %v17276_v14 = vld [vmem:[#allocation85_spill] sm:$0xff]  ;;  %v9205_v7 = vld [vmem:[%s15462_s4 + $0xf0] sm:$0xff]   ;;  %v17299_v11 = vld [vmem:[#allocation183_spill] sm:$0xff] }
 0x44d   : > { %8813 = vmatprep.mubr.msk.bf16.mxu1 %vm808_vm0, %v17256_v58  ;;  %v17277_v10 = vpack.c.bf16 %v17275_v21, %v17276_v14  ;;  %v17279_v58 = vld [vmem:[#allocation140_spill] sm:$0xff]  ;;  %v17302_v21 = vld [vmem:[#allocation206_spill] sm:$0xff] }
 0x44e   : > { %v17281_v4 = vpack.c.bf16 %v17279_v58, %v17280_v42  ;;  %v9206_v42 = vld [vmem:[%s15462_s4 + $0xe8] sm:$0xff]  }
 0x452   : > { %8850 = vmatmul.mubr.msk.bf16.gmra.mxu0 %vm808_vm0, %v17259_v52  ;;  %v17282_v52 = vld [vmem:[#allocation282_spill] sm:$0xff] }
 0x453   : > { %8853 = vmatprep.mubr.msk.bf16.mxu0 %vm808_vm0, %v17262_v9  ;;  %v17283_v34 = vpack.c.bf16 %v13848_v20, %v17282_v52  ;;  %v17285_v9 = vld [vmem:[#allocation172_spill] sm:$0xff]  ;;  %v17308_v52 = vld [vmem:[#allocation187_spill] sm:$0xff] }
 0x454   : > { %8814 = vmatmul.mubr.msk.bf16.gmra.mxu1 %vm808_vm0, %v17265_v28  ;;  %v17287_v51 = vpack.c.bf16 %v17285_v9, %v17286_v56  ;;  %v9201_v20 = vld [vmem:[%s15462_s4 + $0xd0] sm:$0xff]   ;;  %v17290_v28 = vld [vmem:[#allocation50_spill] sm:$0xff]  ;;  %v17310_v9 = vld [vmem:[#allocation15_spill] sm:$0xff] }
 0x455   : > { %8817 = vmatprep.mubr.msk.bf16.mxu1 %vm808_vm0, %v17268_v36  ;;  %v17291_v29 = vpack.c.bf16 %v17289_v24, %v17290_v28  ;;  %v17295_v36 = vld [vmem:[#allocation127_spill] sm:$0xff]  ;;  %v17311_v56 = vld [vmem:[#allocation92_spill] sm:$0xff] }
 0x456   : > { %v17297_v15 = vpack.c.bf16 %v17295_v36, %v17296_v62  ;;  %v17316_v28 = vld [vmem:[#allocation135_spill] sm:$0xff]  ;;  %v17321_v36 = vld [vmem:[#allocation174_spill] sm:$0xff] }
 0x45a   : > { %8854 = vmatmul.mubr.msk.bf16.gmra.mxu0 %vm808_vm0, %v17271_v13  ;;  %v17298_v13 = vld [vmem:[#allocation74_spill] sm:$0xff] }
 0x45b   : > { %8857 = vmatprep.mubr.msk.bf16.mxu0 %vm808_vm0, %v17274_v35  ;;  %v17300_v3 = vpack.c.bf16 %v17298_v13, %v17299_v11  ;;  %v17301_v35 = vld [vmem:[#allocation255_spill] sm:$0xff]  ;;  %v17326_v13 = vld [vmem:[#allocation82_spill] sm:$0xff] }
 0x45c   : > { %8818 = vmatmul.mubr.msk.bf16.gmra.mxu1 %vm808_vm0, %v17277_v10  ;;  %v17303_v14 = vpack.c.bf16 %v17301_v35, %v17302_v21  ;;  %v17304_v10 = vld [vmem:[#allocation86_spill] sm:$0xff]  ;;  %v17327_v11 = vld [vmem:[#allocation191_spill] sm:$0xff] }
 0x45d   : > { %8821 = vmatprep.mubr.msk.bf16.mxu1 %vm808_vm0, %v17278_v55  ;;  %v17305_v55 = vld [vmem:[#allocation122_spill] sm:$0xff] }
 0x45e   : > { %v17306_v58 = vpack.c.bf16 %v17304_v10, %v17305_v55  ;;  %v17333_v21 = vld [vmem:[#allocation98_spill] sm:$0xff]  ;;  %v17336_v55 = vld [vmem:[#allocation108_spill] sm:$0xff] }
 0x462   : > { %8858 = vmatmul.mubr.msk.bf16.gmra.mxu0 %vm808_vm0, %v17281_v4  ;;  %v17307_v4 = vld [vmem:[#allocation64_spill] sm:$0xff] }
 0x463   : > { %8861 = vmatprep.mubr.msk.bf16.mxu0 %vm808_vm0, %v17283_v34  ;;  %v17309_v34 = vpack.c.bf16 %v17307_v4, %v17308_v52  ;;  %v17341_v4 = vld [vmem:[#allocation128_spill] sm:$0xff] }
 0x464   : > { %8822 = vmatmul.mubr.msk.bf16.gmra.mxu1 %vm808_vm0, %v17284_v27  ;;  %v9208_v27 = vld [vmem:[%s15462_s4 + $0xe0] sm:$0xff]   ;;  %v17342_v52 = vpack.c.bf16 %v17340_v53, %v17341_v4 }
 0x465   : > { %8873 = vmatprep.mubr.msk.bf16.mxu1 %vm808_vm0, %v17287_v51  ;;  %v17312_v51 = vpack.c.bf16 %v17310_v9, %v17311_v56  ;;  %v17346_v56 = vld [vmem:[#allocation168_spill] sm:$0xff] }
 0x46a   : > { %8862 = vmatmul.mubr.msk.bf16.gmra.mxu0 %vm808_vm0, %v17288_v1  ;;  %v17313_v1 = vld [vmem:[#allocation79_spill] sm:$0xff] }
 0x46b   : > { %8913 = vmatprep.mubr.msk.bf16.mxu0 %vm808_vm0, %v17291_v29  ;;  %v17317_v29 = vld [vmem:[#allocation71_spill] sm:$0xff] }
 0x46c   : > { %8874 = vmatmul.mubr.msk.bf16.vlgmr.msra.gmra.mxu1 %vm808_vm0, %v17294_v47  ;;  %v17318_v33 = vpack.c.bf16 %v17316_v28, %v17317_v29  ;;  %v17320_v47 = vld [vmem:[#allocation18_spill] sm:$0xff]  ;;  %v17353_v28 = vld [vmem:[#allocation201_spill] sm:$0xff] }
 0x46d   : > { %8946 = vmatpush3.bf16.msra.mxu1 %v9199_v49  ;;  %8877 = vmatprep.mubr.msk.bf16.mxu1 %vm808_vm0, %v17297_v15  ;;  %v9203_v49 = vld [vmem:[%s15462_s4 + $0xc0] sm:$0xff]   ;;  %v17322_v62 = vpack.c.bf16 %v17320_v47, %v17321_v36  ;;  %v17357_v47 = vld [vmem:[#allocation124_spill] sm:$0xff] }
 0x46e   : > { %8947 = vmatprep.subr.bf16.mxu1 %v9201_v20  ;;  %v17323_v15 = vld [vmem:[#allocation102_spill] sm:$0xff] }
 0x46f   : > { %v17354_v29 = vld [vmem:[#allocation142_spill] sm:$0xff] }
 0x471   : > { %8948 = vmatpush3.bf16.msra.mxu1 %v9201_v20  ;;  %v17314_v20 = vld [vmem:[#allocation14_spill] sm:$0xff] }
 0x472   : > { %8914 = vmatmul.mubr.msk.bf16.vlgmr.msra.gmra.mxu0 %vm808_vm0, %v17300_v3  ;;  %8949 = vmatprep.subr.bf16.mxu1 %v9202_v63  ;;  %v17315_v24 = vpack.c.bf16 %v17313_v1, %v17314_v20  ;;  %v17328_v3 = vpack.c.bf16 %v17326_v13, %v17327_v11  ;;  %v17351_v20 = vld [vmem:[#allocation199_spill] sm:$0xff]  ;;  %v17371_v13 = vld [vmem:[#allocation213_spill] sm:$0xff] }
 0x473   : > { %8917 = vmatprep.mubr.msk.bf16.mxu0 %vm808_vm0, %v17303_v14  ;;  %8986 = vmatpush3.bf16.msra.mxu0 %v9204_v61  ;;  %v9207_v61 = vld [vmem:[%s15462_s4 + $0x118] sm:$0xff]  }
 0x474   : > { %8878 = vmatmul.mubr.msk.bf16.gmra.mxu1 %vm808_vm0, %v17306_v58  ;;  %8987 = vmatprep.subr.bf16.mxu0 %v9205_v7  ;;  %v17334_v14 = vld [vmem:[#allocation261_spill] sm:$0xff]  ;;  %v17337_v58 = vld [vmem:[#allocation63_spill] sm:$0xff] }
 0x475   : > { %8881 = vmatprep.mubr.msk.bf16.mxu1 %vm808_vm0, %v17309_v34  ;;  %8950 = vmatpush3.bf16.msra.mxu1 %v9202_v63  ;;  %v17324_v63 = vld [vmem:[#allocation101_spill] sm:$0xff]  ;;  %v17335_v10 = vpack.c.bf16 %v17333_v21, %v17334_v14  ;;  %v17343_v34 = vld [vmem:[#allocation275_spill] sm:$0xff]  ;;  %v17377_v14 = vld [vmem:[#allocation182_spill] sm:$0xff] }
 0x476   : > { %8951 = vmatprep.subr.bf16.mxu1 %v9203_v49  ;;  %v17376_v21 = vld [vmem:[#allocation197_spill] sm:$0xff] }
 0x477   : > { %8988 = vmatpush3.bf16.msra.mxu0 %v9205_v7  ;;  %v17325_v7 = vpack.c.bf16 %v17323_v15, %v17324_v63  ;;  %v17362_v15 = vpack.c.bf16 %v13729_v31, %v13698_v60  ;;  %v17363_v63 = vld [vmem:[#allocation236_spill] sm:$0xff] }
 0x478   : > { %8989 = vmatprep.subr.bf16.mxu0 %v9206_v42  ;;  %v17370_v60 = vld [vmem:[#allocation104_spill] sm:$0xff] }
 0x479   : > { %8952 = vmatpush3.bf16.msra.mxu1 %v9203_v49  ;;  %v17331_v49 = vld [vmem:[#allocation186_spill] sm:$0xff]  ;;  %v17372_v11 = vpack.c.bf16 %v17370_v60, %v17371_v13  ;;  %v17398_v60 = vld [vmem:[#allocation265_spill] sm:$0xff] }
 0x47a   : > { %8918 = vmatmul.mubr.msk.bf16.gmra.mxu0 %vm808_vm0, %v17312_v51  ;;  %9025 = vmatprep.subr.bf16.mxu1 %v9207_v61  ;;  %v17332_v35 = vpack.c.bf16 %v17330_v30, %v17331_v49  ;;  %v17347_v51 = vld [vmem:[#allocation195_spill] sm:$0xff] }
 0x47b   : > { %8921 = vmatprep.mubr.msk.bf16.mxu0 %vm808_vm0, %v17315_v24  ;;  %8990 = vmatpush3.bf16.msra.mxu0 %v9206_v42  ;;  %v17338_v42 = vpack.c.bf16 %v17336_v55, %v17337_v58  ;;  %v17348_v1 = vpack.c.bf16 %v17346_v56, %v17347_v51  ;;  %v17352_v24 = vpack.c.bf16 %v17350_v2, %v17351_v20  ;;  %v9210_v30 = vld [vmem:[%s15462_s4 + $0x108] sm:$0xff]   ;;  %v9211_v55 = vld [vmem:[%s15462_s4 + $0x100] sm:$0xff]  }
 0x47c   : > { %8882 = vmatmul.mubr.msk.bf16.gmra.mxu1 %vm808_vm0, %v17318_v33  ;;  %8991 = vmatprep.subr.bf16.mxu0 %v9208_v27  ;;  %v17355_v33 = vpack.c.bf16 %v17353_v28, %v17354_v29  ;;  %v17385_v51 = vld [vmem:[#allocation67_spill] sm:$0xff] }
 0x47d   : > { %8885 = vmatprep.mubr.msk.bf16.mxu1 %vm808_vm0, %v17319_v8  ;;  %v17356_v8 = vld [vmem:[#allocation113_spill] sm:$0xff] }
 0x47e   : > { %v17358_v36 = vpack.c.bf16 %v17356_v8, %v17357_v47  ;;  %v17388_v47 = vld [vmem:[#allocation91_spill] sm:$0xff] }
 0x47f   : > { %8992 = vmatpush3.bf16.msra.mxu0 %v9208_v27  ;;  %v17344_v27 = vld [vmem:[#allocation276_spill] sm:$0xff] }
 0x480   : > { %v17345_v9 = vpack.c.bf16 %v17343_v34, %v17344_v27  ;;  %v17382_v34 = vld [vmem:[#allocation100_spill] sm:$0xff] }
 0x481   : > { %v17383_v27 = vld [vmem:[#allocation208_spill] sm:$0xff] }
 0x482   : > { %8922 = vmatmul.mubr.msk.bf16.gmra.mxu0 %vm808_vm0, %v17322_v62  ;;  %v17361_v62 = vpack.c.bf16 %v13900_v26, %v13890_v43  ;;  %v17367_v26 = vld [vmem:[#allocation55_spill] sm:$0xff] }
 0x483   : > { %8925 = vmatprep.mubr.msk.bf16.mxu0 %vm808_vm0, %v17325_v7  ;;  %v17364_v7 = vld [vmem:[#allocation254_spill] sm:$0xff]  ;;  %v17369_v43 = vpack.c.bf16 %v17367_v26, %v17368_v45  ;;  %v17395_v26 = vld [vmem:[#allocation103_spill] sm:$0xff] }
 0x484   : > { %8886 = vmatmul.mubr.msk.bf16.gmra.mxu1 %vm808_vm0, %v17328_v3  ;;  %v17365_v57 = vpack.c.bf16 %v17363_v63, %v17364_v7  ;;  %v17373_v3 = vld [vmem:[#allocation60_spill] sm:$0xff]  ;;  %v17392_v63 = vld [vmem:[#allocation139_spill] sm:$0xff] }
 0x485   : > { %8889 = vmatprep.mubr.msk.bf16.mxu1 %vm808_vm0, %v17329_v16  ;;  %v17375_v0 = vpack.c.bf16 %v17373_v3, %v17374_v37 }
 0x48a   : > { %8926 = vmatmul.mubr.msk.bf16.gmra.mxu0 %vm808_vm0, %v17332_v35 }
 0x48b   : > { %8929 = vmatprep.mubr.msk.bf16.mxu0 %vm808_vm0, %v17335_v10  ;;  %v17378_v10 = vpack.c.bf16 %v17376_v21, %v17377_v14  ;;  %v17401_v21 = vld [vmem:[#allocation262_spill] sm:$0xff] }
 0x48c   : > { %8890 = vmatmul.mubr.msk.bf16.gmra.mxu1 %vm808_vm0, %v17338_v42  ;;  %v17379_v42 = vld [vmem:[#allocation49_spill] sm:$0xff] }
 0x48d   : > { %8893 = vmatprep.mubr.msk.bf16.mxu1 %vm808_vm0, %v17339_v41  ;;  %v17380_v41 = vld [vmem:[#allocation56_spill] sm:$0xff] }
 0x48e   : > { %v17381_v53 = vpack.c.bf16 %v17379_v42, %v17380_v41  ;;  %v17404_v42 = vld [vmem:[#allocation106_spill] sm:$0xff] }
 0x492   : > { %8930 = vmatmul.mubr.msk.bf16.gmra.mxu0 %vm808_vm0, %v17342_v52 }
 0x493   : > { %8933 = vmatprep.mubr.msk.bf16.mxu0 %vm808_vm0, %v17345_v9  ;;  %v17384_v9 = vpack.c.bf16 %v17382_v34, %v17383_v27  ;;  %v17407_v34 = vld [vmem:[#allocation87_spill] sm:$0xff] }
 0x494   : > { %8894 = vmatmul.mubr.msk.bf16.gmra.mxu1 %vm808_vm0, %v17348_v1  ;;  %v17386_v1 = vld [vmem:[#allocation75_spill] sm:$0xff] }
 0x495   : > { %8897 = vmatprep.mubr.msk.bf16.mxu1 %vm808_vm0, %v17349_v39  ;;  %v17387_v39 = vpack.c.bf16 %v17385_v51, %v17386_v1  ;;  %v17409_v51 = vld [vmem:[#allocation120_spill] sm:$0xff]  ;;  %v17410_v1 = vld [vmem:[#allocation22_spill] sm:$0xff] }
 0x49a   : > { %8934 = vmatmul.mubr.msk.bf16.gmra.mxu0 %vm808_vm0, %v17352_v24 }
 0x49b   : > { %8937 = vmatprep.mubr.msk.bf16.mxu0 %vm808_vm0, %v17355_v33 }
 0x49c   : > { %8898 = vmatmul.mubr.msk.bf16.gmra.mxu1 %vm808_vm0, %v17358_v36  ;;  %v17389_v36 = vld [vmem:[#allocation80_spill] sm:$0xff] }
 0x49d   : > { %8901 = vmatprep.mubr.msk.bf16.mxu1 %vm808_vm0, %v17359_v5  ;;  %v17390_v5 = vpack.c.bf16 %v17388_v47, %v17389_v36 }
 0x4a2   : > { %8938 = vmatmul.mubr.msk.bf16.gmra.mxu0 %vm808_vm0, %v17360_v59 }
 0x4a3   : > { %8941 = vmatprep.mubr.msk.bf16.mxu0 %vm808_vm0, %v17361_v62 }
 0x4a4   : > { %8902 = vmatmul.mubr.msk.bf16.gmra.mxu1 %vm808_vm0, %v17362_v15  ;;  %v17391_v15 = vld [vmem:[#allocation54_spill] sm:$0xff] }
 0x4a5   : > { %8953 = vmatprep.mubr.msk.bf16.mxu1 %vm808_vm0, %v17365_v57  ;;  %v17393_v7 = vpack.c.bf16 %v17391_v15, %v17392_v63 }
 0x4aa   : > { %8942 = vmatmul.mubr.msk.bf16.gmra.mxu0 %vm808_vm0, %v17366_v18 }
 0x4ab   : > { %8993 = vmatprep.mubr.msk.bf16.mxu0 %vm808_vm0, %v17369_v43 }
 0x4ac   : > { %v8715_v31 = vpop.f32.mrf.mxu1  ;;  %8954 = vmatmul.mubr.msk.bf16.vlgmr.msra.gmra.mxu1 %vm808_vm0, %v17372_v11 }
 0x4ad   : > { %9026 = vmatpush3.bf16.msra.mxu1 %v9207_v61  ;;  %8957 = vmatprep.mubr.msk.bf16.mxu1 %vm808_vm0, %v17375_v0 }
 0x4ae   : > { %v4652_v16 = vpop.f32.mrf.mxu1  ;;  %9027 = vmatprep.subr.bf16.mxu1 %v9209_v44 }
 0x4b0   : > { %v8716_v49 = vpop.f32.mrf.mxu1 }
 0x4b1   : > { %9028 = vmatpush3.bf16.msra.mxu1 %v9209_v44  ;;  %v17394_v44 = vld [vmem:[#allocation270_spill] sm:$0xff] }
 0x4b2   : > { %v8755_v35 = vpop.f32.mrf.mxu0  ;;  %8994 = vmatmul.mubr.msk.bf16.vlgmr.msra.gmra.mxu0 %vm808_vm0, %v17378_v10  ;;  %v4655_v61 = vpop.f32.mrf.mxu1  ;;  %9029 = vmatprep.subr.bf16.mxu1 %v9210_v30  ;;  %v17396_v45 = vpack.c.bf16 %v17394_v44, %v17395_v26 }
 0x4b3   : > { %v14432_v58 = vadd.f32 %v8755_v35, %v8715_v31  ;;  %8997 = vmatprep.mubr.msk.bf16.mxu0 %vm808_vm0, %v17381_v53  ;;  %v17397_v31 = vld [vmem:[#allocation96_spill] sm:$0xff] }
 0x4b4   : > { %v4885_v4 = vpop.f32.mrf.mxu0  ;;  %v8719_v52 = vpop.f32.mrf.mxu1  ;;  %8958 = vmatmul.mubr.msk.bf16.gmra.mxu1 %vm808_vm0, %v17384_v9  ;;  %v17399_v13 = vpack.c.bf16 %v17397_v31, %v17398_v60  ;;  %v17400_v35 = vld [vmem:[#allocation192_spill] sm:$0xff]  ;;  %v17418_v31 = vld [vmem:[#allocation263_spill] sm:$0xff] }
 0x4b5   : > { %v14442_v56 = vadd.f32 %v4885_v4, %v4652_v16  ;;  %8961 = vmatprep.mubr.msk.bf16.mxu1 %vm808_vm0, %v17387_v39  ;;  %9030 = vmatpush3.bf16.msra.mxu1 %v9210_v30  ;;  %v17402_v14 = vpack.c.bf16 %v17400_v35, %v17401_v21  ;;  %v17411_v39 = vpack.c.bf16 %v17409_v51, %v17410_v1  ;;  %v17419_v60 = vld [vmem:[#allocation299_spill] sm:$0xff]  ;;  %v17428_v51 = vld [vmem:[#allocation166_spill] sm:$0xff] }
 0x4b6   : > { %v8756_v2 = vpop.f32.mrf.mxu0  ;;  %v4668_v20 = vpop.f32.mrf.mxu1  ;;  %9031 = vmatprep.subr.bf16.mxu1 %v9211_v55 }
 0x4b7   : > { %v14448_v24 = vadd.f32 %v8756_v2, %v8716_v49 }
 0x4b8   : > { %v4888_v28 = vpop.f32.mrf.mxu0  ;;  %v8720_v29 = vpop.f32.mrf.mxu1 }
 0x4b9   : > { %v14450_v33 = vadd.f32 %v4888_v28, %v4655_v61  ;;  %9032 = vmatpush3.bf16.msra.mxu1 %v9211_v55  ;;  %v17403_v55 = vld [vmem:[#allocation264_spill] sm:$0xff] }
 0x4ba   : > { %v8759_v8 = vpop.f32.mrf.mxu0  ;;  %8998 = vmatmul.mubr.msk.bf16.gmra.mxu0 %vm808_vm0, %v17390_v5  ;;  %v4671_v59 = vpop.f32.mrf.mxu1  ;;  %v17405_v41 = vpack.c.bf16 %v17403_v55, %v17404_v42  ;;  %v17412_v5 = vld [vmem:[#allocation111_spill] sm:$0xff] }
 0x4bb   : > { %v14456_v62 = vadd.f32 %v8759_v8, %v8719_v52  ;;  %9001 = vmatprep.mubr.msk.bf16.mxu0 %vm808_vm0, %v17393_v7  ;;  %v17406_v52 = vld [vmem:[#allocation23_spill] sm:$0xff] }
 0x4bc   : > { %v4901_v57 = vpop.f32.mrf.mxu0  ;;  %v8723_v18 = vpop.f32.mrf.mxu1  ;;  %8962 = vmatmul.mubr.msk.bf16.gmra.mxu1 %vm808_vm0, %v17396_v45  ;;  %v17408_v27 = vpack.c.bf16 %v17406_v52, %v17407_v34 }
 0x4bd   : > { %v14466_v43 = vadd.f32 %v4901_v57, %v4668_v20  ;;  %8965 = vmatprep.mubr.msk.bf16.mxu1 %vm808_vm0, %v17399_v13  ;;  %v17415_v57 = vld [vmem:[#allocation109_spill] sm:$0xff]  ;;  %v17420_v13 = vpack.c.bf16 %v17418_v31, %v17419_v60  ;;  %v17436_v60 = vld [vmem:[#allocation231_spill] sm:$0xff] }
 0x4be   : > { %v8760_v11 = vpop.f32.mrf.mxu0  ;;  %v4684_v3 = vpop.f32.mrf.mxu1 }
 0x4bf   : > { %v14472_v37 = vadd.f32 %v8760_v11, %v8720_v29 }
 0x4c0   : > { %v4904_v0 = vpop.f32.mrf.mxu0  ;;  %v8724_v16 = vpop.f32.mrf.mxu1 }
 0x4c1   : > { %v14474_v30 = vadd.f32 %v4904_v0, %v4671_v59  ;;  %v17413_v59 = vld [vmem:[#allocation214_spill] sm:$0xff]  ;;  %v17422_v0 = vld [vmem:[#allocation300_spill] sm:$0xff] }
 0x4c2   : > { %v8763_v49 = vpop.f32.mrf.mxu0  ;;  %9002 = vmatmul.mubr.msk.bf16.gmra.mxu0 %vm808_vm0, %v17402_v14  ;;  %v4687_v10 = vpop.f32.mrf.mxu1  ;;  %v17414_v15 = vpack.c.bf16 %v17412_v5, %v17413_v59  ;;  %v17433_v5 = vld [vmem:[#allocation136_spill] sm:$0xff] }
 0x4c3   : > { %v14480_v61 = vadd.f32 %v8763_v49, %v8723_v18  ;;  %9005 = vmatprep.mubr.msk.bf16.mxu0 %vm808_vm0, %v17405_v41  ;;  %v17416_v18 = vld [vmem:[#allocation200_spill] sm:$0xff]  ;;  %v17424_v41 = vld [vmem:[#allocation303_spill] sm:$0xff] }
 0x4c4   : > { %v4917_v53 = vpop.f32.mrf.mxu0  ;;  %v8727_v4 = vpop.f32.mrf.mxu1  ;;  %8966 = vmatmul.mubr.msk.bf16.gmra.mxu1 %vm808_vm0, %v17408_v27  ;;  %v17417_v44 = vpack.c.bf16 %v17415_v57, %v17416_v18  ;;  %v17427_v27 = vld [vmem:[#allocation4_spill] sm:$0xff] }
 0x4c5   : > { %v14490_v9 = vadd.f32 %v4917_v53, %v4684_v3  ;;  %8969 = vmatprep.mubr.msk.bf16.mxu1 %vm808_vm0, %v17411_v39  ;;  %v17421_v3 = vld [vmem:[#allocation95_spill] sm:$0xff]  ;;  %v17425_v53 = vld [vmem:[#allocation125_spill] sm:$0xff]  ;;  %v17429_v1 = vpack.c.bf16 %v17427_v27, %v17428_v51  ;;  %v17434_v59 = vld [vmem:[#allocation220_spill] sm:$0xff] }
 0x4c6   : > { %v8764_v2 = vpop.f32.mrf.mxu0  ;;  %v4700_v20 = vpop.f32.mrf.mxu1 }
 0x4c7   : > { %v14496_v28 = vadd.f32 %v8764_v2, %v8724_v16  ;;  %v17423_v16 = vpack.c.bf16 %v17421_v3, %v17422_v0 }
 0x4c8   : > { %v4920_v29 = vpop.f32.mrf.mxu0  ;;  %v8728_v8 = vpop.f32.mrf.mxu1 }
 0x4c9   : > { %v14498_v47 = vadd.f32 %v4920_v29, %v4687_v10  ;;  %v17431_v29 = vld [vmem:[#allocation89_spill] sm:$0xff] }
 0x4ca   : > { %v8767_v36 = vpop.f32.mrf.mxu0  ;;  %9006 = vmatmul.mubr.msk.bf16.gmra.mxu0 %vm808_vm0, %v17414_v15  ;;  %v4703_v63 = vpop.f32.mrf.mxu1  ;;  %v17435_v15 = vpack.c.bf16 %v17433_v5, %v17434_v59 }
 0x4cb   : > { %v14504_v7 = vadd.f32 %v8767_v36, %v8727_v4  ;;  %9009 = vmatprep.mubr.msk.bf16.mxu0 %vm808_vm0, %v17417_v44  ;;  %v17426_v4 = vpack.c.bf16 %v17424_v41, %v17425_v53  ;;  %v17442_v41 = vld [vmem:[#allocation2_spill] sm:$0xff] }
 0x4cc   : > { %v4933_v26 = vpop.f32.mrf.mxu0  ;;  %v8731_v45 = vpop.f32.mrf.mxu1  ;;  %8970 = vmatmul.mubr.msk.bf16.gmra.mxu1 %vm808_vm0, %v17420_v13  ;;  %v17437_v13 = vld [vmem:[#allocation76_spill] sm:$0xff]  ;;  %v17443_v53 = vpack.c.bf16 %v13932_v12, %v17442_v41  ;;  %v17446_v12 = vpack.c.bf16 %v13950_v17, %v13760_v48  ;;  %v17449_v48 = vld [vmem:[#allocation51_spill] sm:$0xff]  ;;  %v17455_v41 = vld [vmem:[#allocation10_spill] sm:$0xff] }
 0x4cd   : > { %v14514_v11 = vadd.f32 %v4933_v26, %v4700_v20  ;;  %8973 = vmatprep.mubr.msk.bf16.mxu1 %vm808_vm0, %v17423_v16  ;;  %v17430_v20 = vld [vmem:[#allocation224_spill] sm:$0xff]  ;;  %v17438_v3 = vpack.c.bf16 %v17436_v60, %v17437_v13 }
 0x4ce   : > { %v8768_v49 = vpop.f32.mrf.mxu0  ;;  %v4716_v35 = vpop.f32.mrf.mxu1  ;;  %v17450_v17 = vld [vmem:[#allocation152_spill] sm:$0xff] }
 0x4cf   : > { %v14520_v21 = vadd.f32 %v8768_v49, %v8728_v8  ;;  %v17432_v8 = vpack.c.bf16 %v17430_v20, %v17431_v29  ;;  %v17439_v49 = vld [vmem:[#allocation279_spill] sm:$0xff] }
 0x4d0   : > { %v4936_v14 = vpop.f32.mrf.mxu0  ;;  %v8732_v10 = vpop.f32.mrf.mxu1 }
 0x4d1   : > { %v14522_v55 = vadd.f32 %v4936_v14, %v4703_v63 }
 0x4d2   : > { %v8771_v42 = vpop.f32.mrf.mxu0  ;;  %9010 = vmatmul.mubr.msk.bf16.gmra.mxu0 %vm808_vm0, %v17426_v4  ;;  %v4719_v52 = vpop.f32.mrf.mxu1 }
 0x4d3   : > { %v14528_v34 = vadd.f32 %v8771_v42, %v8731_v45  ;;  %9013 = vmatprep.mubr.msk.bf16.mxu0 %vm808_vm0, %v17429_v1 }
 0x4d4   : > { %v4949_v39 = vpop.f32.mrf.mxu0  ;;  %v8735_v2 = vpop.f32.mrf.mxu1  ;;  %8974 = vmatmul.mubr.msk.bf16.gmra.mxu1 %vm808_vm0, %v17432_v8 }
 0x4d5   : > { %v14538_v36 = vadd.f32 %v4949_v39, %v4716_v35  ;;  %8977 = vmatprep.mubr.msk.bf16.mxu1 %vm808_vm0, %v17435_v15  ;;  %v17440_v35 = vld [vmem:[#allocation88_spill] sm:$0xff] }
 0x4d6   : > { %v8772_v63 = vpop.f32.mrf.mxu0  ;;  %v4732_v57 = vpop.f32.mrf.mxu1  ;;  %v17441_v14 = vpack.c.bf16 %v17439_v49, %v17440_v35  ;;  %v17452_v49 = vld [vmem:[#allocation130_spill] sm:$0xff] }
 0x4d7   : > { %v14544_v18 = vadd.f32 %v8772_v63, %v8732_v10 }
 0x4d8   : > { %v4952_v44 = vpop.f32.mrf.mxu0  ;;  %v8736_v26 = vpop.f32.mrf.mxu1 }
 0x4d9   : > { %v14546_v45 = vadd.f32 %v4952_v44, %v4719_v52  ;;  %v17444_v52 = vld [vmem:[#allocation161_spill] sm:$0xff] }
 0x4da   : > { %v8775_v31 = vpop.f32.mrf.mxu0  ;;  %9014 = vmatmul.mubr.msk.bf16.gmra.mxu0 %vm808_vm0, %v17438_v3  ;;  %v4735_v0 = vpop.f32.mrf.mxu1  ;;  %v17445_v27 = vpack.c.bf16 %v13946_v54, %v17444_v52  ;;  %v17447_v54 = vpack.c.bf16 %v13956_v19, %v13764_v40 }
 0x4db   : > { %v14552_v16 = vadd.f32 %v8775_v31, %v8735_v2  ;;  %9017 = vmatprep.mubr.msk.bf16.mxu0 %vm808_vm0, %v17441_v14 }
 0x4dc   : > { %v4965_v10 = vpop.f32.mrf.mxu0  ;;  %v8739_v42 = vpop.f32.mrf.mxu1  ;;  %8978 = vmatmul.mubr.msk.bf16.gmra.mxu1 %vm808_vm0, %v17443_v53  ;;  %v17456_v53 = vld [vmem:[#allocation11_spill] sm:$0xff] }
 0x4dd   : > { %v14562_v4 = vadd.f32 %v4965_v10, %v4732_v57  ;;  %8981 = vmatprep.mubr.msk.bf16.mxu1 %vm808_vm0, %v17445_v27  ;;  %v17448_v57 = vpack.c.bf16 %v13702_v38, %v13960_v6  ;;  %v17453_v38 = vld [vmem:[#allocation57_spill] sm:$0xff]  ;;  %v17457_v52 = vpack.c.bf16 %v17455_v41, %v17456_v53 }
 0x4de   : > { %v8776_v51 = vpop.f32.mrf.mxu0  ;;  %v4748_v1 = vpop.f32.mrf.mxu1  ;;  %v17454_v6 = vpack.c.bf16 %v17452_v49, %v17453_v38  ;;  %v17462_v49 = vld [vmem:[#allocation145_spill] sm:$0xff] }
 0x4df   : > { %v14568_v39 = vadd.f32 %v8776_v51, %v8736_v26  ;;  %v17451_v26 = vpack.c.bf16 %v17449_v48, %v17450_v17 }
 0x4e0   : > { %v4968_v2 = vpop.f32.mrf.mxu0  ;;  %v8740_v20 = vpop.f32.mrf.mxu1 }
 0x4e1   : > { %v14570_v29 = vadd.f32 %v4968_v2, %v4735_v0  ;;  %v17459_v2 = vld [vmem:[#allocation179_spill] sm:$0xff] }
 0x4e2   : > { %v8779_v8 = vpop.f32.mrf.mxu0  ;;  %9018 = vmatmul.mubr.msk.bf16.gmra.mxu0 %vm808_vm0, %v17446_v12  ;;  %v4751_v5 = vpop.f32.mrf.mxu1 }
 0x4e3   : > { %v14576_v59 = vadd.f32 %v8779_v8, %v8739_v42  ;;  %9021 = vmatprep.mubr.msk.bf16.mxu0 %vm808_vm0, %v17447_v54 }
 0x4e4   : > { %v4981_v15 = vpop.f32.mrf.mxu0  ;;  %v8743_v63 = vpop.f32.mrf.mxu1  ;;  %8982 = vmatmul.mubr.msk.bf16.gmra.mxu1 %vm808_vm0, %v17448_v57 }
 0x4e5   : > { %v14586_v44 = vadd.f32 %v4981_v15, %v4748_v1  ;;  %9033 = vmatprep.mubr.msk.bf16.mxu1 %vm808_vm0, %v17451_v26  ;;  %v17458_v1 = vld [vmem:[#allocation58_spill] sm:$0xff] }
 0x4e6   : > { %v8780_v31 = vpop.f32.mrf.mxu0  ;;  %v4764_v60 = vpop.f32.mrf.mxu1 }
 0x4e7   : > { %v14592_v13 = vadd.f32 %v8780_v31, %v8740_v20  ;;  %v17460_v20 = vpack.c.bf16 %v17458_v1, %v17459_v2 }
 0x4e8   : > { %v4984_v40 = vpop.f32.mrf.mxu0  ;;  %v8744_v19 = vpop.f32.mrf.mxu1 }
 0x4e9   : > { %v14594_v3 = vadd.f32 %v4984_v40, %v4751_v5 }
 0x4ea   : > { %v8783_v0 = vpop.f32.mrf.mxu0  ;;  %9022 = vmatmul.mubr.msk.bf16.gmra.mxu0 %vm808_vm0, %v17454_v6  ;;  %v4767_v35 = vpop.f32.mrf.mxu1  ;;  %v17464_v6 = vld [vmem:[#allocation154_spill] sm:$0xff] }
 0x4eb   : > { %v14600_v14 = vadd.f32 %v8783_v0, %v8743_v63  ;;  %v17461_v0 = vld [vmem:[#allocation84_spill] sm:$0xff] }
 0x4ec   : > { %v4997_v10 = vpop.f32.mrf.mxu0  ;;  %v8795_v42 = vpop.f32.mrf.mxu1  ;;  %9034 = vmatmul.mubr.msk.bf16.vlgmr.msra.gmra.mxu1 %vm808_vm0, %v17457_v52 }
 0x4ed   : > { %v14606_v27 = vadd.f32 %v4997_v10, %v4764_v60  ;;  %v5367_v51 = vadd.f32 %v8795_v42, %v14432_v58  ;;  %9037 = vmatprep.mubr.msk.bf16.mxu1 %vm808_vm0, %v17460_v20 }
 0x4ee   : > { %v8784_v8 = vpop.f32.mrf.mxu0  ;;  %v5238_v12 = vpop.f32.mrf.mxu1 }
 0x4ef   : > { %v14613_v5 = vadd.f32 %v8784_v8, %v8744_v19  ;;  %v5365_v54 = vadd.f32 %v5238_v12, %v14442_v56  ;;  %v17463_v19 = vpack.c.bf16 %v17461_v0, %v17462_v49 }
 0x4f0   : > { %v5000_v15 = vpop.f32.mrf.mxu0  ;;  %v8796_v63 = vpop.f32.mrf.mxu1 }
 0x4f1   : > { %v14616_v57 = vadd.f32 %v5000_v15, %v4767_v35  ;;  %v5368_v48 = vadd.f32 %v8796_v63, %v14448_v24  ;;  %v17465_v35 = vld [vmem:[#allocation189_spill] sm:$0xff]  ;;  %v17468_v63 = vld [vmem:[#allocation112_spill] sm:$0xff] }
 0x4f2   : > { %v8835_v17 = vpop.f32.mrf.mxu0  ;;  %v5241_v26 = vpop.f32.mrf.mxu1  ;;  %v17466_v24 = vpack.c.bf16 %v17464_v6, %v17465_v35  ;;  %v17467_v15 = vld [vmem:[#allocation61_spill] sm:$0xff] }
 0x4f3   : > { %v14619_v58 = vadd.f32 %v8835_v17, %v5367_v51  ;;  %v5366_v31 = vadd.f32 %v5241_v26, %v14450_v33  ;;  %v17470_v26 = vld [vmem:[#allocation277_spill] sm:$0xff] }
 0x4f4   : > { %v5559_v60 = vpop.f32.mrf.mxu0  ;;  %v8799_v40 = vpop.f32.mrf.mxu1  ;;  %9038 = vmatmul.mubr.msk.bf16.gmra.mxu1 %vm808_vm0, %v17463_v19 }
 0x4f5   : > { %v14626_v56 = vadd.f32 %v5559_v60, %v5365_v54  ;;  %v5371_v38 = vadd.f32 %v8799_v40, %v14456_v62  ;;  %9041 = vmatprep.mubr.msk.bf16.mxu1 %vm808_vm0, %v17466_v24 }
 0x4f6   : > { %v8836_v10 = vpop.f32.mrf.mxu0  ;;  %v5254_v42 = vpop.f32.mrf.mxu1 }
 0x4f7   : > { %v14633_v41 = vadd.f32 %v8836_v10, %v5368_v48  ;;  %v5369_v33 = vadd.f32 %v5254_v42, %v14466_v43  ;;  %v17469_v48 = vpack.c.bf16 %v17467_v15, %v17468_v63 }
 0x4f8   : > { %v5562_v53 = vpop.f32.mrf.mxu0  ;;  %v8800_v52 = vpop.f32.mrf.mxu1 }
 0x4f9   : > { %v14636_v51 = vadd.f32 %v5562_v53, %v5366_v31  ;;  %v5372_v1 = vadd.f32 %v8800_v52, %v14472_v37  ;;  %v17471_v31 = vld [vmem:[#allocation159_spill] sm:$0xff]  ;;  %v17473_v53 = vld [vmem:[#allocation114_spill] sm:$0xff]  ;;  %v17474_v52 = vld [vmem:[#allocation273_spill] sm:$0xff] }
 0x4fa   : > { %v8839_v2 = vpop.f32.mrf.mxu0  ;;  %v5257_v20 = vpop.f32.mrf.mxu1  ;;  %v17472_v37 = vpack.c.bf16 %v17470_v26, %v17471_v31 }
 0x4fb   : > { %v14639_v62 = vadd.f32 %v8839_v2, %v5371_v38  ;;  %v5370_v8 = vadd.f32 %v5257_v20, %v14474_v30  ;;  %v17476_v20 = vld [vmem:[#allocation27_spill] sm:$0xff] }
 0x4fc   : > { %v5575_v12 = vpop.f32.mrf.mxu0  ;;  %v8803_v54 = vpop.f32.mrf.mxu1  ;;  %9042 = vmatmul.mubr.msk.bf16.gmra.mxu1 %vm808_vm0, %v17469_v48 }
 0x4fd   : > { %v14646_v43 = vadd.f32 %v5575_v12, %v5369_v33  ;;  %v5375_v17 = vadd.f32 %v8803_v54, %v14480_v61  ;;  %9045 = vmatprep.mubr.msk.bf16.mxu1 %vm808_vm0, %v17472_v37 }
 0x4fe   : > { %v8840_v60 = vpop.f32.mrf.mxu0  ;;  %v5270_v40 = vpop.f32.mrf.mxu1 }
 0x4ff   : > { %v14653_v0 = vadd.f32 %v8840_v60, %v5372_v1  ;;  %v5373_v30 = vadd.f32 %v5270_v40, %v14490_v9  ;;  %v17475_v1 = vpack.c.bf16 %v17473_v53, %v17474_v52 }
 0x500   : > { %v5578_v49 = vpop.f32.mrf.mxu0  ;;  %v8804_v19 = vpop.f32.mrf.mxu1 }
 0x501   : > { %v14656_v38 = vadd.f32 %v5578_v49, %v5370_v8  ;;  %v5376_v6 = vadd.f32 %v8804_v19, %v14496_v28  ;;  %v17477_v8 = vld [vmem:[#allocation123_spill] sm:$0xff]  ;;  %v17479_v49 = vld [vmem:[#allocation137_spill] sm:$0xff]  ;;  %v17480_v19 = vld [vmem:[#allocation26_spill] sm:$0xff] }
 0x502   : > { %v8843_v35 = vpop.f32.mrf.mxu0  ;;  %v5273_v24 = vpop.f32.mrf.mxu1  ;;  %v17478_v28 = vpack.c.bf16 %v17476_v20, %v17477_v8 }
 0x503   : > { %v14659_v61 = vadd.f32 %v8843_v35, %v5375_v17  ;;  %v5374_v10 = vadd.f32 %v5273_v24, %v14498_v47  ;;  %v17482_v24 = vld [vmem:[#allocation249_spill] sm:$0xff] }
 0x504   : > { %v5591_v42 = vpop.f32.mrf.mxu0  ;;  %v8807_v33 = vpop.f32.mrf.mxu1  ;;  %9046 = vmatmul.mubr.msk.bf16.gmra.mxu1 %vm808_vm0, %v17475_v1 }
 0x505   : > { %v14666_v9 = vadd.f32 %v5591_v42, %v5373_v30  ;;  %v5379_v2 = vadd.f32 %v8807_v33, %v14504_v7  ;;  %9049 = vmatprep.mubr.msk.bf16.mxu1 %vm808_vm0, %v17478_v28 }
 0x506   : > { %v8844_v12 = vpop.f32.mrf.mxu0  ;;  %v5286_v54 = vpop.f32.mrf.mxu1 }
 0x507   : > { %v14673_v15 = vadd.f32 %v8844_v12, %v5376_v6  ;;  %v5377_v47 = vadd.f32 %v5286_v54, %v14514_v11  ;;  %v17481_v6 = vpack.c.bf16 %v17479_v49, %v17480_v19 }
 0x508   : > { %v5594_v63 = vpop.f32.mrf.mxu0  ;;  %v8808_v48 = vpop.f32.mrf.mxu1 }
 0x509   : > { %v14676_v17 = vadd.f32 %v5594_v63, %v5374_v10  ;;  %v5380_v26 = vadd.f32 %v8808_v48, %v14520_v21  ;;  %v17483_v10 = vld [vmem:[#allocation149_spill] sm:$0xff]  ;;  %v17485_v63 = vld [vmem:[#allocation283_spill] sm:$0xff] }
 0x50a   : > { %v8847_v31 = vpop.f32.mrf.mxu0  ;;  %v5289_v37 = vpop.f32.mrf.mxu1  ;;  %v17484_v21 = vpack.c.bf16 %v17482_v24, %v17483_v10  ;;  %v17486_v48 = vld [vmem:[#allocation281_spill] sm:$0xff] }
 0x50b   : > { %v14679_v7 = vadd.f32 %v8847_v31, %v5379_v2  ;;  %v5378_v60 = vadd.f32 %v5289_v37, %v14522_v55 }
 0x50c   : > { %v5607_v40 = vpop.f32.mrf.mxu0  ;;  %v8811_v30 = vpop.f32.mrf.mxu1  ;;  %9050 = vmatmul.mubr.msk.bf16.gmra.mxu1 %vm808_vm0, %v17481_v6 }
 0x50d   : > { %v14686_v11 = vadd.f32 %v5607_v40, %v5377_v47  ;;  %v5383_v35 = vadd.f32 %v8811_v30, %v14528_v34  ;;  %9053 = vmatprep.mubr.msk.bf16.mxu1 %vm808_vm0, %v17484_v21  ;;  %v17489_v21 = vpack.c.bf16 %v13977_v50, %v13974_v22 }
 0x50e   : > { %v8848_v42 = vpop.f32.mrf.mxu0  ;;  %v5302_v33 = vpop.f32.mrf.mxu1 }
 0x50f   : > { %v14693_v53 = vadd.f32 %v8848_v42, %v5380_v26  ;;  %v5381_v55 = vadd.f32 %v5302_v33, %v14538_v36  ;;  %v17487_v26 = vpack.c.bf16 %v17485_v63, %v17486_v48 }
 0x510   : > { %v5610_v52 = vpop.f32.mrf.mxu0  ;;  %v8812_v1 = vpop.f32.mrf.mxu1 }
 0x511   : > { %v14696_v2 = vadd.f32 %v5610_v52, %v5378_v60  ;;  %v5384_v20 = vadd.f32 %v8812_v1, %v14544_v18  ;;  %v17488_v18 = vpack.c.bf16 %v13964_v23, %v13733_v25 }
 0x512   : > { %v8851_v8 = vpop.f32.mrf.mxu0  ;;  %v5305_v28 = vpop.f32.mrf.mxu1 }
 0x513   : > { %v14699_v34 = vadd.f32 %v8851_v8, %v5383_v35  ;;  %v5382_v12 = vadd.f32 %v5305_v28, %v14546_v45 }
 0x514   : > { %v5623_v54 = vpop.f32.mrf.mxu0  ;;  %v8815_v47 = vpop.f32.mrf.mxu1  ;;  %9054 = vmatmul.mubr.msk.bf16.gmra.mxu1 %vm808_vm0, %v17487_v26 }
 0x515   : > { %v14706_v36 = vadd.f32 %v5623_v54, %v5381_v55  ;;  %v5387_v31 = vadd.f32 %v8815_v47, %v14552_v16  ;;  %9057 = vmatprep.mubr.msk.bf16.mxu1 %vm808_vm0, %v17488_v18  ;;  %v17491_v54 = vld [vmem:[#allocation185_spill] sm:$0xff]  ;;  %v17492_v47 = vld [vmem:[#allocation47_spill] sm:$0xff] }
 0x516   : > { %v8852_v37 = vpop.f32.mrf.mxu0  ;;  %v5318_v60 = vpop.f32.mrf.mxu1  ;;  %v17493_v63 = vpack.c.bf16 %v17491_v54, %v17492_v47 }
 0x517   : > { %v14713_v40 = vadd.f32 %v8852_v37, %v5384_v20  ;;  %v5385_v45 = vadd.f32 %v5318_v60, %v14562_v4 }
 0x518   : > { %v5626_v30 = vpop.f32.mrf.mxu0  ;;  %v8816_v49 = vpop.f32.mrf.mxu1 }
 0x519   : > { %v14716_v19 = vadd.f32 %v5626_v30, %v5382_v12  ;;  %v5388_v6 = vadd.f32 %v8816_v49, %v14568_v39  ;;  %v17490_v39 = vpack.c.bf16 %v14000_v32, %v13987_v46 }
 0x51a   : > { %v8855_v35 = vpop.f32.mrf.mxu0  ;;  %v5321_v24 = vpop.f32.mrf.mxu1 }
 0x51b   : > { %v14719_v16 = vadd.f32 %v8855_v35, %v5387_v31  ;;  %v5386_v25 = vadd.f32 %v5321_v24, %v14570_v29 }
 0x51c   : > { %v5639_v23 = vpop.f32.mrf.mxu0  ;;  %v8819_v10 = vpop.f32.mrf.mxu1  ;;  %9058 = vmatmul.mubr.msk.bf16.gmra.mxu1 %vm808_vm0, %v17489_v21 }
 0x51d   : > { %v14726_v4 = vadd.f32 %v5639_v23, %v5385_v45  ;;  %v5391_v42 = vadd.f32 %v8819_v10, %v14576_v59  ;;  %9061 = vmatprep.mubr.msk.bf16.mxu1 %vm808_vm0, %v17490_v39 }
 0x51e   : > { %v8856_v33 = vpop.f32.mrf.mxu0  ;;  %v5334_v55 = vpop.f32.mrf.mxu1 }
 0x51f   : > { %v14733_v52 = vadd.f32 %v8856_v33, %v5388_v6  ;;  %v5389_v29 = vadd.f32 %v5334_v55, %v14586_v44 }
 0x520   : > { %v5642_v1 = vpop.f32.mrf.mxu0  ;;  %v8820_v20 = vpop.f32.mrf.mxu1 }
 0x521   : > { %v14736_v22 = vadd.f32 %v5642_v1, %v5386_v25  ;;  %v5392_v50 = vadd.f32 %v8820_v20, %v14592_v13 }
 0x522   : > { %v8859_v8 = vpop.f32.mrf.mxu0  ;;  %v5337_v28 = vpop.f32.mrf.mxu1 }
 0x523   : > { %v14739_v59 = vadd.f32 %v8859_v8, %v5391_v42  ;;  %v5390_v46 = vadd.f32 %v5337_v28, %v14594_v3 }
 0x524   : > { %v5655_v32 = vpop.f32.mrf.mxu0  ;;  %v8823_v12 = vpop.f32.mrf.mxu1  ;;  %9062 = vmatmul.mubr.msk.bf16.gmra.mxu1 %vm808_vm0, %v17493_v63 }
 0x525   : > { %v14746_v44 = vadd.f32 %v5655_v32, %v5389_v29  ;;  %v5395_v48 = vadd.f32 %v8823_v12, %v14600_v14 }
 0x526   : > { %v8860_v26 = vpop.f32.mrf.mxu0  ;;  %v5350_v31 = vpop.f32.mrf.mxu1 }
 0x527   : > { %v14749_v13 = vadd.f32 %v8860_v26, %v5392_v50  ;;  %v5393_v18 = vadd.f32 %v5350_v31, %v14606_v27 }
 0x528   : > { %v5658_v37 = vpop.f32.mrf.mxu0  ;;  %v8824_v60 = vpop.f32.mrf.mxu1 }
 0x529   : > { %v14752_v3 = vadd.f32 %v5658_v37, %v5390_v46  ;;  %v5396_v45 = vadd.f32 %v8824_v60, %v14613_v5 }
 0x52a   : > { %v8863_v30 = vpop.f32.mrf.mxu0  ;;  %v5353_v49 = vpop.f32.mrf.mxu1 }
 0x52b   : > { %v14755_v6 = vadd.f32 %v8863_v30, %v5395_v48  ;;  %v5394_v35 = vadd.f32 %v5353_v49, %v14616_v57 }
 0x52c   : > { %v5671_v24 = vpop.f32.mrf.mxu0  ;;  %v8875_v14 = vpop.f32.mrf.mxu1 }
 0x52d   : > { %v14758_v25 = vadd.f32 %v5671_v24, %v5393_v18  ;;  %v14761_v23 = vadd.f32 %v8875_v14, %v14619_v58 }
 0x52e   : > { %v8864_v27 = vpop.f32.mrf.mxu0  ;;  %v5848_v10 = vpop.f32.mrf.mxu1 }
 0x52f   : > { %v14763_v21 = vadd.f32 %v8864_v27, %v5396_v45  ;;  %v14766_v42 = vadd.f32 %v5848_v10, %v14626_v56 }
 0x530   : > { %v5674_v5 = vpop.f32.mrf.mxu0  ;;  %v8876_v39 = vpop.f32.mrf.mxu1 }
 0x531   : > { %v14768_v33 = vadd.f32 %v5674_v5, %v5394_v35  ;;  %v14771_v57 = vadd.f32 %v8876_v39, %v14633_v41 }
 0x532   : > { %v14773_v55 = vpop.f32.mrf.mxu0  ;;  %v5851_v29 = vpop.f32.mrf.mxu1 }
 0x533   : > { %v14776_v58 = vadd.f32 %v5851_v29, %v14636_v51 }
 0x534   : > { %v14778_v1 = vpop.f32.mrf.mxu0  ;;  %v8879_v20 = vpop.f32.mrf.mxu1 }
 0x535   : > { %v14781_v50 = vadd.f32 %v8879_v20, %v14639_v62 }
 0x536   : > { %v14783_v56 = vpop.f32.mrf.mxu0  ;;  %v5864_v8 = vpop.f32.mrf.mxu1 }
 0x537   : > { %v14786_v28 = vadd.f32 %v5864_v8, %v14646_v43 }
 0x538   : > { %v14788_v41 = vpop.f32.mrf.mxu0  ;;  %v8880_v46 = vpop.f32.mrf.mxu1 }
 0x539   : > { %v14791_v32 = vadd.f32 %v8880_v46, %v14653_v0 }
 0x53a   : > { %v14793_v51 = vpop.f32.mrf.mxu0  ;;  %v5867_v12 = vpop.f32.mrf.mxu1 }
 0x53b   : > { %v14796_v54 = vadd.f32 %v5867_v12, %v14656_v38 }
 0x53c   : > { %v14798_v62 = vpop.f32.mrf.mxu0  ;;  %v8883_v47 = vpop.f32.mrf.mxu1 }
 0x53d   : > { %v14801_v63 = vadd.f32 %v8883_v47, %v14659_v61 }
 0x53e   : > { %v14803_v43 = vpop.f32.mrf.mxu0  ;;  %v5880_v48 = vpop.f32.mrf.mxu1 }
 0x53f   : > { %v14806_v26 = vadd.f32 %v5880_v48, %v14666_v9 }
 0x540   : > { %v14808_v0 = vpop.f32.mrf.mxu0  ;;  %v8884_v31 = vpop.f32.mrf.mxu1 }
 0x541   : > { %v14811_v18 = vadd.f32 %v8884_v31, %v14673_v15 }
 0x542   : > { %v14813_v38 = vpop.f32.mrf.mxu0  ;;  %v5883_v37 = vpop.f32.mrf.mxu1 }
 0x543   : > { %v14816_v60 = vadd.f32 %v5883_v37, %v14676_v17 }
 0x544   : > { %v14818_v61 = vpop.f32.mrf.mxu0  ;;  %v8887_v45 = vpop.f32.mrf.mxu1 }
 0x545   : > { %v14821_v30 = vadd.f32 %v8887_v45, %v14679_v7 }
 0x546   : > { %v14823_v9 = vpop.f32.mrf.mxu0  ;;  %v5896_v49 = vpop.f32.mrf.mxu1 }
 0x547   : > { %v14826_v35 = vadd.f32 %v5896_v49, %v14686_v11 }
 0x548   : > { %v14828_v15 = vpop.f32.mrf.mxu0  ;;  %v8888_v24 = vpop.f32.mrf.mxu1 }
 0x549   : > { %v14831_v14 = vadd.f32 %v8888_v24, %v14693_v53 }
 0x54a   : > { %v14833_v17 = vpop.f32.mrf.mxu0  ;;  %v5899_v27 = vpop.f32.mrf.mxu1 }
 0x54b   : > { %17494 = vst [vmem:[#allocation205_spill] sm:$0xff] %v14831_v14  ;;  %v14836_v10 = vadd.f32 %v5899_v27, %v14696_v2 }
 0x54c   : > { %v14838_v7 = vpop.f32.mrf.mxu0  ;;  %v8891_v5 = vpop.f32.mrf.mxu1 }
 0x54d   : > { %17495 = vst [vmem:[#allocation46_spill] sm:$0xff] %v14836_v10  ;;  %v14841_v39 = vadd.f32 %v8891_v5, %v14699_v34 }
 0x54e   : > { %v14843_v11 = vpop.f32.mrf.mxu0  ;;  %v5912_v29 = vpop.f32.mrf.mxu1 }
 0x54f   : > { %17496 = vst [vmem:[#allocation8_spill] sm:$0xff] %v14841_v39  ;;  %17497 = vst [vmem:[#allocation34_spill] sm:$0xff] %v14843_v11  ;;  %v14846_v20 = vadd.f32 %v5912_v29, %v14706_v36 }
 0x550   : > { %v14848_v53 = vpop.f32.mrf.mxu0  ;;  %v8892_v8 = vpop.f32.mrf.mxu1 }
 0x551   : > { %17498 = vst [vmem:[#allocation33_spill] sm:$0xff] %v14846_v20  ;;  %17499 = vst [vmem:[#allocation157_spill] sm:$0xff] %v14848_v53  ;;  %v14851_v46 = vadd.f32 %v8892_v8, %v14713_v40 }
 0x552   : > { %v14853_v2 = vpop.f32.mrf.mxu0  ;;  %v5915_v12 = vpop.f32.mrf.mxu1 }
 0x553   : > { %17500 = vst [vmem:[#allocation226_spill] sm:$0xff] %v14851_v46  ;;  %17501 = vst [vmem:[#allocation117_spill] sm:$0xff] %v14853_v2  ;;  %v14856_v47 = vadd.f32 %v5915_v12, %v14716_v19 }
 0x554   : > { %v14858_v34 = vpop.f32.mrf.mxu0  ;;  %v8895_v48 = vpop.f32.mrf.mxu1 }
 0x555   : > { %17502 = vst [vmem:[#allocation289_spill] sm:$0xff] %v14856_v47  ;;  %17503 = vst [vmem:[#allocation286_spill] sm:$0xff] %v14858_v34  ;;  %v14861_v31 = vadd.f32 %v8895_v48, %v14719_v16 }
 0x556   : > { %v14863_v36 = vpop.f32.mrf.mxu0  ;;  %v5928_v37 = vpop.f32.mrf.mxu1 }
 0x557   : > { %17504 = vst [vmem:[#allocation153_spill] sm:$0xff] %v14861_v31  ;;  %17505 = vst [vmem:[#allocation148_spill] sm:$0xff] %v14863_v36  ;;  %v14866_v45 = vadd.f32 %v5928_v37, %v14726_v4 }
 0x558   : > { %v14868_v40 = vpop.f32.mrf.mxu0  ;;  %v8896_v49 = vpop.f32.mrf.mxu1 }
 0x559   : > { %17506 = vst [vmem:[#allocation284_spill] sm:$0xff] %v14866_v45  ;;  %17507 = vst [vmem:[#allocation301_spill] sm:$0xff] %v14868_v40  ;;  %v14871_v24 = vadd.f32 %v8896_v49, %v14733_v52 }
 0x55a   : > { %v14873_v19 = vpop.f32.mrf.mxu0  ;;  %v5931_v27 = vpop.f32.mrf.mxu1 }
 0x55b   : > { %17508 = vst [vmem:[#allocation164_spill] sm:$0xff] %v14871_v24  ;;  %17509 = vst [vmem:[#allocation78_spill] sm:$0xff] %v14873_v19  ;;  %v14876_v5 = vadd.f32 %v5931_v27, %v14736_v22 }
 0x55c   : > { %v14878_v16 = vpop.f32.mrf.mxu0  ;;  %v8899_v29 = vpop.f32.mrf.mxu1 }
 0x55d   : > { %17510 = vst [vmem:[#allocation81_spill] sm:$0xff] %v14876_v5  ;;  %17511 = vst [vmem:[#allocation181_spill] sm:$0xff] %v14878_v16  ;;  %v14881_v8 = vadd.f32 %v8899_v29, %v14739_v59 }
 0x55e   : > { %v14883_v4 = vpop.f32.mrf.mxu0  ;;  %v5944_v12 = vpop.f32.mrf.mxu1 }
 0x55f   : > { %17512 = vst [vmem:[#allocation30_spill] sm:$0xff] %v14881_v8  ;;  %17513 = vst [vmem:[#allocation115_spill] sm:$0xff] %v14883_v4  ;;  %v14886_v48 = vadd.f32 %v5944_v12, %v14746_v44 }
 0x560   : > { %v14888_v52 = vpop.f32.mrf.mxu0  ;;  %v8900_v37 = vpop.f32.mrf.mxu1 }
 0x561   : > { %17514 = vst [vmem:[#allocation53_spill] sm:$0xff] %v14886_v48  ;;  %17515 = vst [vmem:[#allocation31_spill] sm:$0xff] %v14888_v52  ;;  %v14891_v49 = vadd.f32 %v8900_v37, %v14749_v13 }
 0x562   : > { %v14893_v22 = vpop.f32.mrf.mxu0  ;;  %v5947_v27 = vpop.f32.mrf.mxu1 }
 0x563   : > { %17516 = vst [vmem:[#allocation302_spill] sm:$0xff] %v14891_v49  ;;  %17517 = vst [vmem:[#allocation229_spill] sm:$0xff] %v14893_v22  ;;  %v14896_v5 = vadd.f32 %v5947_v27, %v14752_v3 }
 0x564   : > { %v14898_v59 = vpop.f32.mrf.mxu0  ;;  %v8903_v29 = vpop.f32.mrf.mxu1 }
 0x565   : > { %17518 = vst [vmem:[#allocation235_spill] sm:$0xff] %v14896_v5  ;;  %17519 = vst [vmem:[#allocation138_spill] sm:$0xff] %v14898_v59  ;;  %v6005_v8 = vadd.f32 %v8903_v29, %v14755_v6 }
 0x566   : > { %v14901_v4 = vpop.f32.mrf.mxu0  ;;  %v5960_v44 = vpop.f32.mrf.mxu1 }
 0x567   : > { %17520 = vst [vmem:[#allocation234_spill] sm:$0xff] %v14901_v4  ;;  %v14904_v12 = vadd.f32 %v5960_v44, %v14758_v25 }
 0x568   : > { %v14906_v48 = vpop.f32.mrf.mxu0  ;;  %v8904_v13 = vpop.f32.mrf.mxu1 }
 0x569   : > { %17521 = vst [vmem:[#allocation223_spill] sm:$0xff] %v14904_v12  ;;  %17522 = vst [vmem:[#allocation225_spill] sm:$0xff] %v14906_v48  ;;  %v6006_v37 = vadd.f32 %v8904_v13, %v14763_v21 }
 0x56a   : > { %v8943_v49 = vpop.f32.mrf.mxu0  ;;  %v5963_v22 = vpop.f32.mrf.mxu1 }
 0x56b   : > { %v6326_v3 = vadd.f32 %v8943_v49, %v6005_v8  ;;  %v14910_v27 = vadd.f32 %v5963_v22, %v14768_v33 }
 0x56c   : > { %v14912_v5 = vpop.f32.mrf.mxu0  ;;  %v8955_v6 = vpop.f32.mrf.mxu1 }
 0x56d   : > { %17523 = vst [vmem:[#allocation162_spill] sm:$0xff] %v14910_v27  ;;  %17524 = vst [vmem:[#allocation285_spill] sm:$0xff] %v14912_v5 }
 0x56e   : > { %v8944_v29 = vpop.f32.mrf.mxu0  ;;  %v6490_v4 = vpop.f32.mrf.mxu1 }
 0x56f   : > { %v6327_v59 = vadd.f32 %v8944_v29, %v6006_v37 }
 0x570   : > { %v14914_v52 = vpop.f32.mrf.mxu0  ;;  %v8956_v25 = vpop.f32.mrf.mxu1 }
 0x571   : > { %17525 = vst [vmem:[#allocation39_spill] sm:$0xff] %v14914_v52 }
 0x572   : > { %v8995_v44 = vpop.f32.mrf.mxu0  ;;  %v6493_v12 = vpop.f32.mrf.mxu1 }
 0x574   : > { %v6811_v48 = vpop.f32.mrf.mxu0  ;;  %v14916_v24 = vpop.f32.mrf.mxu1 }
 0x576   : > { %v8996_v21 = vpop.f32.mrf.mxu0  ;;  %v14918_v13 = vpop.f32.mrf.mxu1 }
 0x578   : > { %v14920_v8 = vpop.f32.mrf.mxu0  ;;  %v14922_v33 = vpop.f32.mrf.mxu1 }
 0x57a   : > { %v14924_v49 = vpop.f32.mrf.mxu0  ;;  %v14926_v22 = vpop.f32.mrf.mxu1 }
 0x57c   : > { %v14928_v37 = vpop.f32.mrf.mxu1  ;;  %v14930_v29 = vpop.f32.mrf.mxu0 }
 0x57e   : > { %v14932_v52 = vpop.f32.mrf.mxu1  ;;  %v14936_v5 = vpop.f32.mrf.mxu0 }
 0x580   : > { %v14934_v27 = vpop.f32.mrf.mxu1  ;;  %v14942_v19 = vpop.f32.mrf.mxu0 }
 0x582   : > { %v14938_v16 = vpop.f32.mrf.mxu1  ;;  %v14948_v47 = vpop.f32.mrf.mxu0 }
 0x584   : > { %v14940_v45 = vpop.f32.mrf.mxu1  ;;  %v14954_v34 = vpop.f32.mrf.mxu0 }
 0x585   : > { %17526 = vst [vmem:[#allocation287_spill] sm:$0xff] %v14940_v45 }
 0x586   : > { %v14944_v31 = vpop.f32.mrf.mxu1  ;;  %v14960_v39 = vpop.f32.mrf.mxu0 }
 0x587   : > { %17527 = vst [vmem:[#allocation288_spill] sm:$0xff] %v14944_v31 }
 0x588   : > { %v14946_v40 = vpop.f32.mrf.mxu1  ;;  %v14966_v31 = vpop.f32.mrf.mxu0 }
 0x589   : > { %17528 = vst [vmem:[#allocation155_spill] sm:$0xff] %v14946_v40  ;;  %17535 = vst [vmem:[#allocation239_spill] sm:$0xff] %v14966_v31 }
 0x58a   : > { %v14950_v36 = vpop.f32.mrf.mxu1 }
 0x58b   : > { %17529 = vst [vmem:[#allocation9_spill] sm:$0xff] %v14950_v36  ;;  %v14972_v36 = vpop.f32.mrf.mxu0 }
 0x58c   : > { %v14952_v46 = vpop.f32.mrf.mxu1  ;;  %17538 = vst [vmem:[#allocation5_spill] sm:$0xff] %v14972_v36 }
 0x58d   : > { %17530 = vst [vmem:[#allocation184_spill] sm:$0xff] %v14952_v46 }
 0x58e   : > { %v14956_v20 = vpop.f32.mrf.mxu1 }
 0x58f   : > { %17531 = vst [vmem:[#allocation233_spill] sm:$0xff] %v14956_v20  ;;  %v14978_v20 = vpop.f32.mrf.mxu0 }
 0x590   : > { %v14958_v2 = vpop.f32.mrf.mxu1  ;;  %17541 = vst [vmem:[#allocation45_spill] sm:$0xff] %v14978_v20 }
 0x591   : > { %17532 = vst [vmem:[#allocation13_spill] sm:$0xff] %v14958_v2 }
 0x592   : > { %v14962_v53 = vpop.f32.mrf.mxu1 }
 0x593   : > { %17533 = vst [vmem:[#allocation12_spill] sm:$0xff] %v14962_v53  ;;  %v14984_v53 = vpop.f32.mrf.mxu0 }
 0x594   : > { %v14964_v10 = vpop.f32.mrf.mxu1  ;;  %17544 = vst [vmem:[#allocation48_spill] sm:$0xff] %v14984_v53 }
 0x595   : > { %17534 = vst [vmem:[#allocation170_spill] sm:$0xff] %v14964_v10 }
 0x596   : > { %v14968_v40 = vpop.f32.mrf.mxu1 }
 0x597   : > { %17536 = vst [vmem:[#allocation292_spill] sm:$0xff] %v14968_v40 }
 0x598   : > { %v14970_v11 = vpop.f32.mrf.mxu1 }
 0x599   : > { %17537 = vst [vmem:[#allocation3_spill] sm:$0xff] %v14970_v11  ;;  %v14990_v11 = vpop.f32.mrf.mxu0 }
 0x59a   : > { %v14974_v46 = vpop.f32.mrf.mxu1 }
 0x59b   : > { %17539 = vst [vmem:[#allocation290_spill] sm:$0xff] %v14974_v46  ;;  %v15000_v53 = vpop.f32.mrf.mxu0 }
 0x59c   : > { %v14976_v14 = vpop.f32.mrf.mxu1 }
 0x59d   : > { %17540 = vst [vmem:[#allocation295_spill] sm:$0xff] %v14976_v14  ;;  %v6298_v14 = vadd.f32 %v14773_v55, %v14761_v23  ;;  %v15009_v23 = vld [vmem:[%s15463_s5] ss:$0 sm:$0xff] }
 0x59e   : > { %v14980_v2 = vpop.f32.mrf.mxu1 }
 0x59f   : > { %17542 = vst [vmem:[#allocation167_spill] sm:$0xff] %v14980_v2  ;;  %v6296_v2 = vadd.f32 %v14778_v1, %v14766_v42  ;;  %v6619_v20 = vadd.f32 %v8955_v6, %v6298_v14  ;;  %v6297_v42 = vadd.f32 %v14788_v41, %v14776_v58  ;;  %v6300_v6 = vadd.f32 %v14798_v62, %v14786_v28 }
 0x5a0   : > { %v14982_v45 = vpop.f32.mrf.mxu1 }
 0x5a1   : > { %17543 = vst [vmem:[#allocation119_spill] sm:$0xff] %v14982_v45 }
 0x5a2   : > { %v14986_v10 = vpop.f32.mrf.mxu1 }
 0x5a3   : > { %17545 = vst [vmem:[#allocation126_spill] sm:$0xff] %v14986_v10 }
 0x5a4   : > { %v8983_v31 = vpop.f32.mrf.mxu1 }
 0x5a5   : > { %v14988_v40 = vadd.f32 %v8983_v31, %v6326_v3  ;;  %v6299_v31 = vadd.f32 %v14783_v56, %v14771_v57  ;;  %v6617_v3 = vadd.f32 %v6490_v4, %v6296_v2  ;;  %v6618_v56 = vadd.f32 %v6493_v12, %v6297_v42 }
 0x5a6   : > { %v14992_v36 = vpop.f32.mrf.mxu1  ;;  %v6304_v42 = vadd.f32 %v14818_v61, %v14806_v26 }
 0x5a7   : > { %17546 = vst [vmem:[#allocation90_spill] sm:$0xff] %v14988_v40  ;;  %17547 = vst [vmem:[#allocation6_spill] sm:$0xff] %v14992_v36  ;;  %v6940_v40 = vadd.f32 %v8995_v44, %v6619_v20  ;;  %v6620_v55 = vadd.f32 %v8956_v25, %v6299_v31  ;;  %v6938_v1 = vadd.f32 %v6811_v48, %v6617_v3 }
 0x5a8   : > { %v8984_v46 = vpop.f32.mrf.mxu1  ;;  %v6939_v41 = vadd.f32 %v14920_v8, %v6618_v56  ;;  %v6301_v25 = vadd.f32 %v14808_v0, %v14796_v54  ;;  %v6306_v8 = vadd.f32 %v14813_v38, %v14801_v63 }
 0x5a9   : > { %v14998_v45 = vadd.f32 %v8984_v46, %v6327_v59  ;;  %v6302_v46 = vadd.f32 %v14793_v51, %v14781_v50  ;;  %v15015_v59 = vpop.f32.mrf.mxu0  ;;  %v6941_v20 = vadd.f32 %v8996_v21, %v6620_v55  ;;  %v6303_v50 = vadd.f32 %v14803_v43, %v14791_v32 }
 0x5aa   : > { %v15002_v10 = vpop.f32.mrf.mxu1  ;;  %v6621_v51 = vadd.f32 %v14918_v13, %v6300_v6  ;;  %v6627_v63 = vadd.f32 %v14928_v37, %v6306_v8  ;;  %v17555_v8 = vld [vmem:[#allocation157_spill] sm:$0xff] }
 0x5ab   : > { %v6623_v58 = vadd.f32 %v14916_v24, %v6302_v46  ;;  %v6624_v32 = vadd.f32 %v14922_v33, %v6303_v50  ;;  %v17551_v50 = vld [vmem:[#allocation34_spill] sm:$0xff] }
 0x5ac   : > { %v9035_v36 = vpop.f32.mrf.mxu1  ;;  %v6942_v43 = vadd.f32 %v14930_v29, %v6621_v51  ;;  %v6948_v61 = vadd.f32 %v14948_v47, %v6627_v63  ;;  %v6310_v47 = vadd.f32 %v14833_v17, %v14821_v30  ;;  %v17549_v17 = vld [vmem:[#allocation239_spill] sm:$0xff] }
 0x5ad   : > { %v7261_v14 = vadd.f32 %v9035_v36, %v6940_v40  ;;  %v15029_v40 = vpop.f32.mrf.mxu0  ;;  %v6944_v28 = vadd.f32 %v14924_v49, %v6623_v58  ;;  %v6622_v49 = vadd.f32 %v14926_v22, %v6301_v25  ;;  %v6945_v0 = vadd.f32 %v14936_v5, %v6624_v32 }
 0x5ae   : > { %v7132_v57 = vpop.f32.mrf.mxu1  ;;  %v6307_v5 = vadd.f32 %v14823_v9, %v14811_v18 }
 0x5af   : > { %v15018_v2 = vadd.f32 %v15009_v23, %v7261_v14  ;;  %v7259_v4 = vadd.f32 %v7132_v57, %v6938_v1  ;;  %v15049_v31 = vpop.f32.mrf.mxu0  ;;  %v6943_v38 = vadd.f32 %v14942_v19, %v6622_v49  ;;  %v6625_v1 = vadd.f32 %v14932_v52, %v6304_v42  ;;  %v17557_v42 = vld [vmem:[#allocation45_spill] sm:$0xff] }
 0x5b0   : > { %v9036_v44 = vpop.f32.mrf.mxu1  ;;  %v6305_v57 = vadd.f32 %v14828_v15, %v14816_v60  ;;  %v6628_v18 = vadd.f32 %v14934_v27, %v6307_v5 }
 0x5b1   : > { %v7262_v36 = vadd.f32 %v9036_v44, %v6941_v20  ;;  %7366 = vrot.lane.b32.xlu1 %v15018_v2, %s9390_s23  ;;  %v15033_v62 = vadd.f32 %v15009_v23, %v7259_v4  ;;  %v15069_v14 = vpop.f32.mrf.mxu0  ;;  %v6946_v9 = vadd.f32 %v14954_v34, %v6625_v1  ;;  %v6308_v44 = vadd.f32 %v14838_v7, %v14826_v35  ;;  %v17553_v7 = vld [vmem:[#allocation5_spill] sm:$0xff] }
 0x5b2   : > { %v7135_v48 = vpop.f32.mrf.mxu1  ;;  %v6626_v20 = vadd.f32 %v14938_v16, %v6305_v57  ;;  %v6949_v15 = vadd.f32 %v14960_v39, %v6628_v18  ;;  %v17550_v39 = vld [vmem:[#allocation205_spill] sm:$0xff]  ;;  %v17561_v57 = vld [vmem:[#allocation48_spill] sm:$0xff] }
 0x5b3   : > { %v15036_v24 = vadd.f32 %v15009_v23, %v7262_v36  ;;  %v7260_v12 = vadd.f32 %v7135_v48, %v6939_v41  ;;  %v15089_v4 = vpop.f32.mrf.mxu0  ;;  %v17548_v41 = vld [vmem:[#allocation287_spill] sm:$0xff]  ;;  %v6311_v51 = vadd.f32 %v17551_v50, %v17550_v39  ;;  %v17552_v48 = vld [vmem:[#allocation288_spill] sm:$0xff]  ;;  %v17560_v1 = vld [vmem:[#allocation9_spill] sm:$0xff] }
 0x5b4   : > { %v9039_v21 = vpop.f32.mrf.mxu1  ;;  %v6631_v30 = vadd.f32 %v17548_v41, %v6310_v47  ;;  %v6947_v16 = vadd.f32 %v17549_v17, %v6626_v20  ;;  %v17562_v47 = vld [vmem:[#allocation33_spill] sm:$0xff]  ;;  %v17563_v20 = vld [vmem:[#allocation286_spill] sm:$0xff]  ;;  %v17566_v17 = vld [vmem:[#allocation148_spill] sm:$0xff] }
 0x5b5   : > { %v7265_v13 = vadd.f32 %v9039_v21, %v6944_v28  ;;  %7368 = vrot.lane.b32.xlu0 %v15036_v24, %s9390_s23  ;;  %7362 = vrot.lane.b32.xlu1 %v15033_v62, %s9390_s23  ;;  %v15053_v33 = vadd.f32 %v15009_v23, %v7260_v12  ;;  %v6629_v28 = vadd.f32 %v17552_v48, %v6308_v44  ;;  %v15109_v12 = vpop.f32.mrf.mxu0 }
 0x5b6   : > { %v7148_v54 = vpop.f32.mrf.mxu1  ;;  %v6952_v25 = vadd.f32 %v17553_v7, %v6631_v30  ;;  %v17565_v30 = vld [vmem:[#allocation226_spill] sm:$0xff]  ;;  %v17568_v7 = vld [vmem:[#allocation289_spill] sm:$0xff] }
 0x5b7   : > { %v15056_v29 = vadd.f32 %v15009_v23, %v7265_v13  ;;  %v7263_v3 = vadd.f32 %v7148_v54, %v6942_v43  ;;  %v17554_v13 = vld [vmem:[#allocation46_spill] sm:$0xff] }
 0x5b8   : > { %v9040_v55 = vpop.f32.mrf.mxu1  ;;  %v6309_v49 = vadd.f32 %v17555_v8, %v17554_v13  ;;  %v17570_v8 = vld [vmem:[#allocation13_spill] sm:$0xff] }
 0x5b9   : > { %v7266_v22 = vadd.f32 %v9040_v55, %v6945_v0  ;;  %7364 = vrot.lane.b32.xlu0 %v15053_v33, %s9390_s23  ;;  %7374 = vrot.lane.b32.xlu1 %v15056_v29, %s9390_s23  ;;  %v15073_v37 = vadd.f32 %v15009_v23, %v7263_v3  ;;  %v17556_v0 = vld [vmem:[#allocation155_spill] sm:$0xff]  ;;  %v6950_v55 = vadd.f32 %v17557_v42, %v6629_v28 }
 0x5ba   : > { %v7151_v26 = vpop.f32.mrf.mxu1  ;;  %v6632_v3 = vadd.f32 %v17556_v0, %v6311_v51 }
 0x5bb   : > { %v15076_v19 = vadd.f32 %v15009_v23, %v7266_v22  ;;  %v7264_v46 = vadd.f32 %v7151_v26, %v6943_v38  ;;  %v17558_v38 = vld [vmem:[#allocation8_spill] sm:$0xff]  ;;  %v17559_v22 = vld [vmem:[#allocation117_spill] sm:$0xff]  ;;  %v6630_v26 = vadd.f32 %v17560_v1, %v6309_v49 }
 0x5bc   : > { %v9043_v56 = vpop.f32.mrf.mxu1  ;;  %v6314_v5 = vadd.f32 %v17559_v22, %v17558_v38 }
 0x5bd   : > { %v7269_v52 = vadd.f32 %v9043_v56, %v6948_v61  ;;  %7376 = vrot.lane.b32.xlu0 %v15076_v19, %s9390_s23  ;;  %7370 = vrot.lane.b32.xlu1 %v15073_v37, %s9390_s23  ;;  %v15093_v27 = vadd.f32 %v15009_v23, %v7264_v46  ;;  %v15129_v61 = vpop.f32.mrf.mxu0  ;;  %v6953_v56 = vadd.f32 %v17561_v57, %v6632_v3  ;;  %v17572_v3 = vld [vmem:[#allocation78_spill] sm:$0xff]  ;;  %v17575_v57 = vld [vmem:[#allocation181_spill] sm:$0xff] }
 0x5be   : > { %v7164_v60 = vpop.f32.mrf.mxu1 }
 0x5bf   : > { %v15096_v34 = vadd.f32 %v15009_v23, %v7269_v52  ;;  %v7267_v6 = vadd.f32 %v7164_v60, %v6946_v9  ;;  %v6312_v60 = vadd.f32 %v17563_v20, %v17562_v47  ;;  %v9019_v50 = vpop.f32.mrf.mxu0  ;;  %v17576_v47 = vld [vmem:[#allocation170_spill] sm:$0xff] }
 0x5c0   : > { %v9044_v58 = vpop.f32.mrf.mxu1 }
 0x5c1   : > { %v7270_v36 = vadd.f32 %v9044_v58, %v6949_v15  ;;  %7372 = vrot.lane.b32.xlu0 %v15093_v27, %s9390_s23  ;;  %7382 = vrot.lane.b32.xlu1 %v15096_v34, %s9390_s23  ;;  %v15113_v21 = vadd.f32 %v15009_v23, %v7267_v6  ;;  %v17564_v6 = vld [vmem:[#allocation184_spill] sm:$0xff]  ;;  %v6951_v58 = vadd.f32 %v14990_v11, %v6630_v26  ;;  %v6907_v38 = vpop.f32.mrf.mxu0 }
 0x5c2   : > { %v7167_v35 = vpop.f32.mrf.mxu1  ;;  %v6635_v44 = vadd.f32 %v17564_v6, %v6314_v5  ;;  %v17578_v6 = vld [vmem:[#allocation115_spill] sm:$0xff] }
 0x5c3   : > { %v15116_v32 = vadd.f32 %v15009_v23, %v7270_v36  ;;  %v7268_v43 = vadd.f32 %v7167_v35, %v6947_v16  ;;  %v6315_v16 = vadd.f32 %v17566_v17, %v17565_v30  ;;  %v17567_v36 = vld [vmem:[#allocation233_spill] sm:$0xff]  ;;  %v9020_v30 = vpop.f32.mrf.mxu0 }
 0x5c4   : > { %v9047_v54 = vpop.f32.mrf.mxu1  ;;  %v6633_v39 = vadd.f32 %v17567_v36, %v6312_v60  ;;  %v6956_v48 = vadd.f32 %v15000_v53, %v6635_v44  ;;  %v17571_v53 = vld [vmem:[#allocation153_spill] sm:$0xff] }
 0x5c5   : > { %v7273_v63 = vadd.f32 %v9047_v54, %v6952_v25  ;;  %7384 = vrot.lane.b32.xlu0 %v15116_v32, %s9390_s23  ;;  %7378 = vrot.lane.b32.xlu1 %v15113_v21, %s9390_s23  ;;  %v15133_v18 = vadd.f32 %v15009_v23, %v7268_v43  ;;  %v17569_v25 = vld [vmem:[#allocation301_spill] sm:$0xff]  ;;  %v6636_v49 = vadd.f32 %v17570_v8, %v6315_v16 }
 0x5c6   : > { %v7180_v46 = vpop.f32.mrf.mxu1  ;;  %v6313_v43 = vadd.f32 %v17569_v25, %v17568_v7  ;;  %v6954_v54 = vadd.f32 %v15015_v59, %v6633_v39  ;;  %v6318_v42 = vadd.f32 %v17572_v3, %v17571_v53  ;;  %v17582_v25 = vld [vmem:[#allocation3_spill] sm:$0xff]  ;;  %v6910_v3 = vpop.f32.mrf.mxu0 }
 0x5c7   : > { %v15136_v9 = vadd.f32 %v15009_v23, %v7273_v63  ;;  %v7271_v52 = vadd.f32 %v7180_v46, %v6950_v55  ;;  %v17573_v55 = vld [vmem:[#allocation12_spill] sm:$0xff]  ;;  %v6957_v5 = vadd.f32 %v15029_v40, %v6636_v49  ;;  %v17584_v49 = vld [vmem:[#allocation229_spill] sm:$0xff] }
 0x5c8   : > { %v9048_v15 = vpop.f32.mrf.mxu1  ;;  %v6634_v63 = vadd.f32 %v17573_v55, %v6313_v43  ;;  %v17574_v46 = vld [vmem:[#allocation284_spill] sm:$0xff]  ;;  %v6639_v20 = vadd.f32 %v17576_v47, %v6318_v42 }
 0x5c9   : > { %v7274_v41 = vadd.f32 %v9048_v15, %v6953_v56  ;;  %7380 = vrot.lane.b32.xlu0 %v15133_v18, %s9390_s23  ;;  %7390 = vrot.lane.b32.xlu1 %v15136_v9, %s9390_s23  ;;  %v15151_v28 = vadd.f32 %v15009_v23, %v7271_v52  ;;  %v6316_v56 = vadd.f32 %v17575_v57, %v17574_v46  ;;  %v17577_v40 = vld [vmem:[#allocation164_spill] sm:$0xff] }
 0x5ca   : > { %v7183_v51 = vpop.f32.mrf.mxu1  ;;  %v6955_v60 = vadd.f32 %v15049_v31, %v6634_v63  ;;  %v6319_v44 = vadd.f32 %v17578_v6, %v17577_v40  ;;  %v6960_v16 = vadd.f32 %v15069_v14, %v6639_v20  ;;  %v17583_v14 = vld [vmem:[#allocation30_spill] sm:$0xff]  ;;  %v17591_v40 = vld [vmem:[#allocation167_spill] sm:$0xff] }
 0x5cb   : > { %v15154_v11 = vadd.f32 %v15009_v23, %v7274_v41  ;;  %v7272_v35 = vadd.f32 %v7183_v51, %v6951_v58  ;;  %v17579_v58 = vld [vmem:[#allocation292_spill] sm:$0xff]  ;;  %v17580_v51 = vld [vmem:[#allocation81_spill] sm:$0xff] }
 0x5cc   : > { %v9051_v13 = vpop.f32.mrf.mxu1  ;;  %v6637_v41 = vadd.f32 %v17579_v58, %v6316_v56  ;;  %v6640_v43 = vadd.f32 %v17582_v25, %v6319_v44  ;;  %v17588_v56 = vld [vmem:[#allocation295_spill] sm:$0xff]  ;;  %v9023_v44 = vpop.f32.mrf.mxu0 }
 0x5cd   : > { %v7277_v0 = vadd.f32 %v9051_v13, %v6956_v48  ;;  %7392 = vrot.lane.b32.xlu0 %v15154_v11, %s9390_s23  ;;  %7386 = vrot.lane.b32.xlu1 %v15151_v28, %s9390_s23  ;;  %v15169_v1 = vadd.f32 %v15009_v23, %v7272_v35  ;;  %v17581_v48 = vld [vmem:[#allocation31_spill] sm:$0xff] }
 0x5ce   : > { %v7196_v22 = vpop.f32.mrf.mxu1  ;;  %v6317_v35 = vadd.f32 %v17581_v48, %v17580_v51  ;;  %v6958_v13 = vadd.f32 %v15089_v4, %v6637_v41  ;;  %v6961_v55 = vadd.f32 %v15109_v12, %v6640_v43  ;;  %v17589_v12 = vld [vmem:[#allocation302_spill] sm:$0xff]  ;;  %v17593_v51 = vld [vmem:[#allocation225_spill] sm:$0xff] }
 0x5cf   : > { %v15172_v59 = vadd.f32 %v15009_v23, %v7277_v0  ;;  %v7275_v26 = vadd.f32 %v7196_v22, %v6954_v54  ;;  %v6322_v54 = vadd.f32 %v17584_v49, %v17583_v14  ;;  %v17585_v0 = vld [vmem:[#allocation290_spill] sm:$0xff]  ;;  %v6923_v14 = vpop.f32.mrf.mxu0 }
 0x5d0   : > { %v9052_v52 = vpop.f32.mrf.mxu1  ;;  %v6638_v53 = vadd.f32 %v17585_v0, %v6317_v35 }
 0x5d1   : > { %v7278_v15 = vadd.f32 %v9052_v52, %v6957_v5  ;;  %7388 = vrot.lane.b32.xlu0 %v15169_v1, %s9390_s23  ;;  %7398 = vrot.lane.b32.xlu1 %v15172_v59, %s9390_s23  ;;  %v15187_v36 = vadd.f32 %v15009_v23, %v7275_v26  ;;  %v17586_v5 = vld [vmem:[#allocation53_spill] sm:$0xff]  ;;  %v17587_v26 = vld [vmem:[#allocation138_spill] sm:$0xff]  ;;  %v6643_v52 = vadd.f32 %v17588_v56, %v6322_v54 }
 0x5d2   : > { %v7199_v17 = vpop.f32.mrf.mxu1  ;;  %v6320_v46 = vadd.f32 %v17587_v26, %v17586_v5  ;;  %v6959_v47 = vadd.f32 %v15129_v61, %v6638_v53  ;;  %v17598_v56 = vld [vmem:[#allocation6_spill] sm:$0xff] }
 0x5d3   : > { %v15190_v31 = vadd.f32 %v15009_v23, %v7278_v15  ;;  %v7276_v39 = vadd.f32 %v7199_v17, %v6955_v60  ;;  %v17590_v60 = vld [vmem:[#allocation234_spill] sm:$0xff]  ;;  %v6964_v41 = vadd.f32 %v9019_v50, %v6643_v52 }
 0x5d4   : > { %v9055_v7 = vpop.f32.mrf.mxu1  ;;  %v6323_v15 = vadd.f32 %v17590_v60, %v17589_v12  ;;  %v6641_v6 = vadd.f32 %v17591_v40, %v6320_v46  ;;  %v17595_v50 = vld [vmem:[#allocation126_spill] sm:$0xff] }
 0x5d5   : > { %v7281_v8 = vadd.f32 %v9055_v7, %v6960_v16  ;;  %7400 = vrot.lane.b32.xlu0 %v15190_v31, %s9390_s23  ;;  %7394 = vrot.lane.b32.xlu1 %v15187_v36, %s9390_s23  ;;  %v15205_v63 = vadd.f32 %v15009_v23, %v7276_v39  ;;  %v17592_v39 = vld [vmem:[#allocation235_spill] sm:$0xff] }
 0x5d6   : > { %v7212_v42 = vpop.f32.mrf.mxu1  ;;  %v6321_v48 = vadd.f32 %v17593_v51, %v17592_v39  ;;  %v17594_v7 = vld [vmem:[#allocation119_spill] sm:$0xff]  ;;  %v6962_v43 = vadd.f32 %v6907_v38, %v6641_v6 }
 0x5d7   : > { %v15208_v4 = vadd.f32 %v15009_v23, %v7281_v8  ;;  %v7279_v22 = vadd.f32 %v7212_v42, %v6958_v13  ;;  %v6644_v25 = vadd.f32 %v17594_v7, %v6323_v15  ;;  %v17600_v15 = vld [vmem:[#allocation39_spill] sm:$0xff] }
 0x5d8   : > { %v9056_v57 = vpop.f32.mrf.mxu1  ;;  %v6642_v8 = vadd.f32 %v17595_v50, %v6321_v48 }
 0x5d9   : > { %v7282_v20 = vadd.f32 %v9056_v57, %v6961_v55  ;;  %7396 = vrot.lane.b32.xlu0 %v15205_v63, %s9390_s23  ;;  %7406 = vrot.lane.b32.xlu1 %v15208_v4, %s9390_s23  ;;  %v15222_v17 = vadd.f32 %v15009_v23, %v7279_v22  ;;  %v6965_v54 = vadd.f32 %v9020_v30, %v6644_v25  ;;  %v17596_v55 = vld [vmem:[#allocation223_spill] sm:$0xff]  ;;  %v17597_v22 = vld [vmem:[#allocation285_spill] sm:$0xff]  ;;  %v9024_v30 = vpop.f32.mrf.mxu0 }
 0x5da   : > { %v7215_v58 = vpop.f32.mrf.mxu1  ;;  %v6324_v5 = vadd.f32 %v17597_v22, %v17596_v55  ;;  %v6963_v26 = vadd.f32 %v6910_v3, %v6642_v8  ;;  %v17599_v3 = vld [vmem:[#allocation162_spill] sm:$0xff]  ;;  %v6969_v48 = vadd.f32 %v9024_v30, %v14998_v45 }
 0x5db   : > { %v15225_v61 = vadd.f32 %v15009_v23, %v7282_v20  ;;  %v7280_v16 = vadd.f32 %v7215_v58, %v6959_v47  ;;  %v6325_v40 = vadd.f32 %v17600_v15, %v17599_v3  ;;  %v17601_v58 = vld [vmem:[#allocation90_spill] sm:$0xff]  ;;  %v9346_v3 = vld [vmem:[%s9701_s18 + $0x30] sm:$0xff] }
 0x5dc   : > { %v9059_v35 = vpop.f32.mrf.mxu1  ;;  %v6645_v52 = vadd.f32 %v17598_v56, %v6324_v5 }
 0x5dd   : > { %v7285_v13 = vadd.f32 %v9059_v35, %v6964_v41  ;;  %7408 = vrot.lane.b32.xlu0 %v15225_v61, %s9390_s23  ;;  %7402 = vrot.lane.b32.xlu1 %v15222_v17, %s9390_s23  ;;  %v15236_v0 = vadd.f32 %v15009_v23, %v7280_v16  ;;  %v6968_v41 = vadd.f32 %v9023_v44, %v17601_v58  ;;  %v6926_v16 = vpop.f32.mrf.mxu0  ;;  %v9347_v58 = vld [vmem:[%s9701_s18 + $0x38] sm:$0xff] }
 0x5de   : > { %v7228_v49 = vpop.f32.mrf.mxu1  ;;  %v6966_v6 = vadd.f32 %v6923_v14, %v6645_v52  ;;  %v6646_v51 = vadd.f32 %v15002_v10, %v6325_v40 }
 0x5df   : > { %v15239_v53 = vadd.f32 %v15009_v23, %v7285_v13  ;;  %v7283_v42 = vadd.f32 %v7228_v49, %v6962_v43 }
 0x5e0   : > { %v9060_v38 = vpop.f32.mrf.mxu1  ;;  %v6967_v43 = vadd.f32 %v6926_v16, %v6646_v51  ;;  %v9348_v16 = vld [vmem:[%s9701_s18 + $0x20] sm:$0xff] }
 0x5e1   : > { %v7286_v46 = vadd.f32 %v9060_v38, %v6965_v54  ;;  %7404 = vrot.lane.b32.xlu0 %v15236_v0, %s9390_s23  ;;  %7414 = vrot.lane.b32.xlu1 %v15239_v53, %s9390_s23  ;;  %v15249_v47 = vadd.f32 %v15009_v23, %v7283_v42  ;;  %v9342_v42 = vld [vmem:[%s9701_s18 + $0x10] sm:$0xff] }
 0x5e2   : > { %v7231_v57 = vpop.f32.mrf.mxu1 }
 0x5e3   : > { %v15252_v20 = vadd.f32 %v15009_v23, %v7286_v46  ;;  %v7284_v12 = vadd.f32 %v7231_v57, %v6963_v26  ;;  %v9343_v46 = vld [vmem:[%s9701_s18 + $0x18] sm:$0xff]  ;;  %v9344_v57 = vld [vmem:[%s9701_s18] sm:$0xff] }
 0x5e4   : > { %v9063_v60 = vpop.f32.mrf.mxu1 }
 0x5e5   : > { %7416 = vrot.lane.b32.xlu0 %v15252_v20, %s9390_s23  ;;  %7410 = vrot.lane.b32.xlu1 %v15249_v47, %s9390_s23  ;;  %v15264_v35 = vadd.f32 %v15009_v23, %v7284_v12  ;;  %v7289_v13 = vadd.f32 %v9063_v60, %v6968_v41  ;;  %v9345_v12 = vld [vmem:[%s9701_s18 + $0x8] sm:$0xff] }
 0x5e6   : > { %v7244_v39 = vpop.f32.mrf.mxu1 }
 0x5e7   : > { %v7287_v7 = vadd.f32 %v7244_v39, %v6966_v6  ;;  %v15277_v14 = vadd.f32 %v15009_v23, %v7289_v13 }
 0x5e8   : > { %v9064_v25 = vpop.f32.mrf.mxu1 }
 0x5e9   : > { %v15267_v50 = vadd.f32 %v15009_v23, %v7287_v7  ;;  %v7290_v8 = vadd.f32 %v9064_v25, %v6969_v48  ;;  %7412 = vrot.lane.b32.xlu0 %v15264_v35, %s9390_s23  ;;  %v9349_v7 = vld [vmem:[%s9701_s18 + $0x28] sm:$0xff] }
 0x5ea   : > { %v7247_v44 = vpop.f32.mrf.mxu1 }
 0x5eb   : > { %v15272_v10 = vadd.f32 %v15009_v23, %v7290_v8  ;;  %v7288_v45 = vadd.f32 %v7247_v44, %v6967_v43  ;;  %7418 = vrot.lane.b32.xlu1 %v15267_v50, %s9390_s23  ;;  %v9350_v43 = vld [vmem:[%s9701_s18 + $0x50] sm:$0xff] }
 0x5ed   : > { %v15280_v49 = vadd.f32 %v15009_v23, %v7288_v45  ;;  %v9351_v45 = vld [vmem:[%s9701_s18 + $0x58] sm:$0xff] }
 0x5ef   : > { %7420 = vrot.lane.b32.xlu0 %v15280_v49, %s9390_s23  ;;  %7422 = vrot.lane.b32.xlu1 %v15277_v14, %s9390_s23 }
 0x5f3   : > { %7424 = vrot.lane.b32.xlu0 %v15272_v10, %s9390_s23 }
 0x623   : > { %v7367_v54 = vpop.permute.xlu1 %7366 }
 0x624   : > { %v7461_v23 = vsel %vm7458_vm3, %v15018_v2, %v7367_v54 }
 0x625   : > { %v7493_v38 = vadd.f32 %v9342_v42, %v7461_v23  ;;  %v9352_v23 = vld [vmem:[%s9701_s18 + $0x40] sm:$0xff] }
 0x627   : > { %7525 = vst.msk [vmem:[%s15293_s26 + $0x10] sm:$0xff] %vm808_vm0, %v7493_v38  ;;  %v7369_v55 = vpop.permute.xlu0 %7368  ;;  %v7363_v22 = vpop.permute.xlu1 %7362 }
 0x628   : > { %v7462_v5 = vsel %vm7458_vm3, %v15036_v24, %v7369_v55  ;;  %v7459_v26 = vsel %vm7458_vm3, %v15033_v62, %v7363_v22  ;;  %v9353_v22 = vld [vmem:[%s9701_s18 + $0x48] sm:$0xff] }
 0x629   : > { %v7494_v30 = vadd.f32 %v9343_v46, %v7462_v5  ;;  %v7491_v2 = vadd.f32 %v9344_v57, %v7459_v26  ;;  %v9354_v26 = vld [vmem:[%s9701_s18 + $0x70] sm:$0xff] }
 0x62b   : > { %7526 = vst.msk [vmem:[%s15293_s26 + $0x18] sm:$0xff] %vm808_vm0, %v7494_v30  ;;  %7523 = vst.msk [vmem:[%s15293_s26] sm:$0xff] %vm808_vm0, %v7491_v2  ;;  %v7365_v56 = vpop.permute.xlu0 %7364  ;;  %v7375_v52 = vpop.permute.xlu1 %7374  ;;  %v9355_v2 = vld [vmem:[%s9701_s18 + $0x78] sm:$0xff] }
 0x62c   : > { %v7460_v24 = vsel %vm7458_vm3, %v15053_v33, %v7365_v56  ;;  %v7465_v62 = vsel %vm7458_vm3, %v15056_v29, %v7375_v52  ;;  %v9356_v52 = vld [vmem:[%s9701_s18 + $0x60] sm:$0xff] }
 0x62d   : > { %v7492_v60 = vadd.f32 %v9345_v12, %v7460_v24  ;;  %v7497_v15 = vadd.f32 %v9346_v3, %v7465_v62 }
 0x62f   : > { %7524 = vst.msk [vmem:[%s15293_s26 + $0x8] sm:$0xff] %vm808_vm0, %v7492_v60  ;;  %7529 = vst.msk [vmem:[%s15293_s26 + $0x30] sm:$0xff] %vm808_vm0, %v7497_v15  ;;  %v7377_v40 = vpop.permute.xlu0 %7376  ;;  %v7371_v6 = vpop.permute.xlu1 %7370  ;;  %v9357_v60 = vld [vmem:[%s9701_s18 + $0x68] sm:$0xff]  ;;  %v9358_v15 = vld [vmem:[%s9701_s18 + $0x90] sm:$0xff] }
 0x630   : > { %v7466_v33 = vsel %vm7458_vm3, %v15076_v19, %v7377_v40  ;;  %v7463_v29 = vsel %vm7458_vm3, %v15073_v37, %v7371_v6 }
 0x631   : > { %v7498_v41 = vadd.f32 %v9347_v58, %v7466_v33  ;;  %v7495_v39 = vadd.f32 %v9348_v16, %v7463_v29  ;;  %v9359_v29 = vld [vmem:[%s9701_s18 + $0x98] sm:$0xff] }
 0x633   : > { %7530 = vst.msk [vmem:[%s15293_s26 + $0x38] sm:$0xff] %vm808_vm0, %v7498_v41  ;;  %7527 = vst.msk [vmem:[%s15293_s26 + $0x20] sm:$0xff] %vm808_vm0, %v7495_v39  ;;  %v7373_v51 = vpop.permute.xlu0 %7372  ;;  %v7383_v48 = vpop.permute.xlu1 %7382  ;;  %v9360_v41 = vld [vmem:[%s9701_s18 + $0x80] sm:$0xff] }
 0x634   : > { %v7464_v19 = vsel %vm7458_vm3, %v15093_v27, %v7373_v51  ;;  %v7469_v37 = vsel %vm7458_vm3, %v15096_v34, %v7383_v48  ;;  %v9361_v48 = vld [vmem:[%s9701_s18 + $0x88] sm:$0xff] }
 0x635   : > { %v7496_v25 = vadd.f32 %v9349_v7, %v7464_v19  ;;  %v7501_v13 = vadd.f32 %v9350_v43, %v7469_v37  ;;  %v9362_v37 = vld [vmem:[%s9701_s18 + $0xb0] sm:$0xff] }
 0x637   : > { %7528 = vst.msk [vmem:[%s15293_s26 + $0x28] sm:$0xff] %vm808_vm0, %v7496_v25  ;;  %7533 = vst.msk [vmem:[%s15293_s26 + $0x50] sm:$0xff] %vm808_vm0, %v7501_v13  ;;  %v7385_v8 = vpop.permute.xlu0 %7384  ;;  %v7379_v44 = vpop.permute.xlu1 %7378  ;;  %v9363_v13 = vld [vmem:[%s9701_s18 + $0xb8] sm:$0xff] }
 0x638   : > { %v7470_v27 = vsel %vm7458_vm3, %v15116_v32, %v7385_v8  ;;  %v7467_v34 = vsel %vm7458_vm3, %v15113_v21, %v7379_v44  ;;  %v9364_v44 = vld [vmem:[%s9701_s18 + $0xa0] sm:$0xff] }
 0x639   : > { %v7502_v54 = vadd.f32 %v9351_v45, %v7470_v27  ;;  %v7499_v42 = vadd.f32 %v9352_v23, %v7467_v34 }
 0x63b   : > { %7534 = vst.msk [vmem:[%s15293_s26 + $0x58] sm:$0xff] %vm808_vm0, %v7502_v54  ;;  %7531 = vst.msk [vmem:[%s15293_s26 + $0x40] sm:$0xff] %vm808_vm0, %v7499_v42  ;;  %v7381_v38 = vpop.permute.xlu0 %7380  ;;  %v7391_v55 = vpop.permute.xlu1 %7390  ;;  %v9365_v54 = vld [vmem:[%s9701_s18 + $0xa8] sm:$0xff]  ;;  %v9366_v42 = vld [vmem:[%s9701_s18 + $0xd0] sm:$0xff] }
 0x63c   : > { %v7468_v32 = vsel %vm7458_vm3, %v15133_v18, %v7381_v38  ;;  %v7473_v21 = vsel %vm7458_vm3, %v15136_v9, %v7391_v55 }
 0x63d   : > { %v7500_v5 = vadd.f32 %v9353_v22, %v7468_v32  ;;  %v7505_v46 = vadd.f32 %v9354_v26, %v7473_v21  ;;  %v9367_v21 = vld [vmem:[%s9701_s18 + $0xd8] sm:$0xff] }
 0x63f   : > { %7532 = vst.msk [vmem:[%s15293_s26 + $0x48] sm:$0xff] %vm808_vm0, %v7500_v5  ;;  %7537 = vst.msk [vmem:[%s15293_s26 + $0x70] sm:$0xff] %vm808_vm0, %v7505_v46  ;;  %v7393_v30 = vpop.permute.xlu0 %7392  ;;  %v7387_v57 = vpop.permute.xlu1 %7386  ;;  %v9368_v5 = vld [vmem:[%s9701_s18 + $0xc0] sm:$0xff] }
 0x640   : > { %v7474_v18 = vsel %vm7458_vm3, %v15154_v11, %v7393_v30  ;;  %v7471_v9 = vsel %vm7458_vm3, %v15151_v28, %v7387_v57  ;;  %v9369_v57 = vld [vmem:[%s9701_s18 + $0xc8] sm:$0xff] }
 0x641   : > { %v7506_v56 = vadd.f32 %v9355_v2, %v7474_v18  ;;  %v7503_v24 = vadd.f32 %v9356_v52, %v7471_v9  ;;  %v9370_v9 = vld [vmem:[%s9701_s18 + $0xe0] sm:$0xff] }
 0x643   : > { %7538 = vst.msk [vmem:[%s15293_s26 + $0x78] sm:$0xff] %vm808_vm0, %v7506_v56  ;;  %7535 = vst.msk [vmem:[%s15293_s26 + $0x60] sm:$0xff] %vm808_vm0, %v7503_v24  ;;  %v7389_v62 = vpop.permute.xlu0 %7388  ;;  %v7399_v12 = vpop.permute.xlu1 %7398 }
 0x644   : > { %v7472_v11 = vsel %vm7458_vm3, %v15169_v1, %v7389_v62  ;;  %v7477_v28 = vsel %vm7458_vm3, %v15172_v59, %v7399_v12  ;;  %v9371_v62 = vld [vmem:[%s9701_s18 + $0xe8] sm:$0xff] }
 0x645   : > { %v7504_v3 = vadd.f32 %v9357_v60, %v7472_v11  ;;  %v7509_v40 = vadd.f32 %v9358_v15, %v7477_v28  ;;  %v9372_v11 = vld [vmem:[%s9701_s18 + $0xf0] sm:$0xff] }
 0x647   : > { %7536 = vst.msk [vmem:[%s15293_s26 + $0x68] sm:$0xff] %vm808_vm0, %v7504_v3  ;;  %7541 = vst.msk [vmem:[%s15293_s26 + $0x90] sm:$0xff] %vm808_vm0, %v7509_v40  ;;  %v7401_v6 = vpop.permute.xlu0 %7400  ;;  %v7395_v33 = vpop.permute.xlu1 %7394  ;;  %v9373_v3 = vld [vmem:[%s9701_s18 + $0xf8] sm:$0xff] }
 0x648   : > { %v7478_v1 = vsel %vm7458_vm3, %v15190_v31, %v7401_v6  ;;  %v7475_v59 = vsel %vm7458_vm3, %v15187_v36, %v7395_v33 }
 0x649   : > { %v7510_v58 = vadd.f32 %v9359_v29, %v7478_v1  ;;  %v7507_v16 = vadd.f32 %v9360_v41, %v7475_v59 }
 0x64b   : > { %7542 = vst.msk [vmem:[%s15293_s26 + $0x98] sm:$0xff] %vm808_vm0, %v7510_v58  ;;  %7539 = vst.msk [vmem:[%s15293_s26 + $0x80] sm:$0xff] %vm808_vm0, %v7507_v16  ;;  %v7397_v39 = vpop.permute.xlu0 %7396  ;;  %v7407_v51 = vpop.permute.xlu1 %7406 }
 0x64c   : > { %v7476_v31 = vsel %vm7458_vm3, %v15205_v63, %v7397_v39  ;;  %v7481_v36 = vsel %vm7458_vm3, %v15208_v4, %v7407_v51 }
 0x64d   : > { %v7508_v19 = vadd.f32 %v9361_v48, %v7476_v31  ;;  %v7513_v7 = vadd.f32 %v9362_v37, %v7481_v36 }
 0x64f   : > { %7540 = vst.msk [vmem:[%s15293_s26 + $0x88] sm:$0xff] %vm808_vm0, %v7508_v19  ;;  %7545 = vst.msk [vmem:[%s15293_s26 + $0xb0] sm:$0xff] %vm808_vm0, %v7513_v7  ;;  %v7409_v25 = vpop.permute.xlu0 %7408  ;;  %v7403_v43 = vpop.permute.xlu1 %7402 }
 0x650   : > { %v7482_v63 = vsel %vm7458_vm3, %v15225_v61, %v7409_v25  ;;  %v7479_v4 = vsel %vm7458_vm3, %v15222_v17, %v7403_v43 }
 0x651   : > { %v7514_v8 = vadd.f32 %v9363_v13, %v7482_v63  ;;  %v7511_v27 = vadd.f32 %v9364_v44, %v7479_v4 }
 0x653   : > { %7546 = vst.msk [vmem:[%s15293_s26 + $0xb8] sm:$0xff] %vm808_vm0, %v7514_v8  ;;  %7543 = vst.msk [vmem:[%s15293_s26 + $0xa0] sm:$0xff] %vm808_vm0, %v7511_v27  ;;  %v7405_v34 = vpop.permute.xlu0 %7404  ;;  %v7415_v45 = vpop.permute.xlu1 %7414 }
 0x654   : > { %v7480_v61 = vsel %vm7458_vm3, %v15236_v0, %v7405_v34  ;;  %v7485_v17 = vsel %vm7458_vm3, %v15239_v53, %v7415_v45 }
 0x655   : > { %v7512_v23 = vadd.f32 %v9365_v54, %v7480_v61  ;;  %v7517_v38 = vadd.f32 %v9366_v42, %v7485_v17 }
 0x657   : > { %7544 = vst.msk [vmem:[%s15293_s26 + $0xa8] sm:$0xff] %vm808_vm0, %v7512_v23  ;;  %7549 = vst.msk [vmem:[%s15293_s26 + $0xd0] sm:$0xff] %vm808_vm0, %v7517_v38  ;;  %v7417_v55 = vpop.permute.xlu0 %7416  ;;  %v7411_v32 = vpop.permute.xlu1 %7410 }
 0x658   : > { %v7486_v0 = vsel %vm7458_vm3, %v15252_v20, %v7417_v55  ;;  %v7483_v53 = vsel %vm7458_vm3, %v15249_v47, %v7411_v32 }
 0x659   : > { %v7518_v22 = vadd.f32 %v9367_v21, %v7486_v0  ;;  %v7515_v26 = vadd.f32 %v9368_v5, %v7483_v53 }
 0x65b   : > { %7550 = vst.msk [vmem:[%s15293_s26 + $0xd8] sm:$0xff] %vm808_vm0, %v7518_v22  ;;  %7547 = vst.msk [vmem:[%s15293_s26 + $0xc0] sm:$0xff] %vm808_vm0, %v7515_v26  ;;  %v7413_v46 = vpop.permute.xlu0 %7412 }
 0x65c   : > { %v7484_v30 = vsel %vm7458_vm3, %v15264_v35, %v7413_v46 }
 0x65d   : > { %v7516_v20 = vadd.f32 %v9369_v57, %v7484_v30  ;;  %v7419_v47 = vpop.permute.xlu1 %7418 }
 0x65e   : > { %v7487_v18 = vsel %vm7458_vm3, %v15267_v50, %v7419_v47 }
 0x65f   : > { %7548 = vst.msk [vmem:[%s15293_s26 + $0xc8] sm:$0xff] %vm808_vm0, %v7516_v20  ;;  %v7519_v2 = vadd.f32 %v9370_v9, %v7487_v18 }
 0x661   : > { %7551 = vst.msk [vmem:[%s15293_s26 + $0xe0] sm:$0xff] %vm808_vm0, %v7519_v2  ;;  %v7421_v56 = vpop.permute.xlu0 %7420  ;;  %v7423_v52 = vpop.permute.xlu1 %7422 }
 0x662   : > { %v7488_v35 = vsel %vm7458_vm3, %v15280_v49, %v7421_v56  ;;  %v7489_v24 = vsel %vm7458_vm3, %v15277_v14, %v7423_v52 }
 0x663   : > { %v7520_v12 = vadd.f32 %v9371_v62, %v7488_v35  ;;  %v7521_v50 = vadd.f32 %v9372_v11, %v7489_v24 }
 0x665   : > { %7552 = vst.msk [vmem:[%s15293_s26 + $0xe8] sm:$0xff] %vm808_vm0, %v7520_v12  ;;  %7553 = vst.msk [vmem:[%s15293_s26 + $0xf0] sm:$0xff] %vm808_vm0, %v7521_v50  ;;  %v7425_v28 = vpop.permute.xlu0 %7424 }
 0x666   : > { %v7490_v60 = vsel %vm7458_vm3, %v15272_v10, %v7425_v28 }
 0x667   : > { %v7522_v15 = vadd.f32 %v9373_v3, %v7490_v60 }
 0x669   : > { %7554 = vst.msk [vmem:[%s15293_s26 + $0xf8] sm:$0xff] %vm808_vm0, %v7522_v15 }
 0x66a PF: > { %s16_s21 = sadd.s32 1, %s9380_s21  }
 0x66b   : > { %p13_p4 = scmp.ge.s32.totalorder %s16_s21, 4  }
 0x66d   :  { %15 = sbr.rel (!%p13_p4) target bundleno = 1 (0x1), region = 74 }

</bundles_post_ra>
